<compile_context>
chip_gen: v7x
topology: tpu7x:2x2x1
jax: 0.10.0
libtpu: 0.0.40
codegen_flags: <defaults>
</compile_context>

<pallas_src>
import functools

import jax
import jax.numpy as jnp
from jax.experimental import pallas as pl
from jax.experimental.pallas import tpu as pltpu

QBITS = 8
QMAX = 2 ** (QBITS - 1) - 1  # 127; clamp to [-128, 127] like HAWQ SymmetricQuantFunction

_PARALLEL = pltpu.CompilerParams(dimension_semantics=("parallel",))


# ---------------------------------------------------------------------------
# small helpers
# ---------------------------------------------------------------------------
def _round_up(x, m):
    return (x + m - 1) // m * m


def _row_tiling(m):
    """Pick (row_tile, padded_rows): large tiles, never a tiny-divisor fallback."""
    if m <= 1024:
        tm = _round_up(m, 8)
        return tm, tm
    tm = 512
    return tm, _round_up(m, tm)


def _smem_scalar(v):
    return jnp.asarray(v, jnp.float32).reshape(1, 1)


def _quantize_bf16(x, inv_scale):
    """Symmetric 8-bit quantize to integer values, encoded exactly in bf16."""
    return jnp.clip(jnp.round(x * inv_scale), -QMAX - 1.0, QMAX).astype(jnp.bfloat16)


# ---------------------------------------------------------------------------
# Pallas kernels
# ---------------------------------------------------------------------------
def _absmax_partial_kernel(x_ref, pmax_ref):
    """Per-grid-block partial abs-max (parallel; final max done in JAX)."""
    pmax_ref[...] = jnp.full(pmax_ref.shape, jnp.max(jnp.abs(x_ref[...])),
                             dtype=jnp.float32)


def _q_conv1_identity_kernel(x_ref, inv_s_ref, w1_ref, c1_ref, b1_ref,
                             wid_ref, cid_ref, bid_ref,
                             y1_ref, id_ref, pmax_ref, *, m_valid, tm):
    """fake-quant(x) -> conv1+BN+ReLU  and  identity 1x1 conv+BN, + absmax(y1)."""
    q = _quantize_bf16(x_ref[...], inv_s_ref[0, 0])            # int8 values in bf16
    acc1 = jnp.dot(q, w1_ref[...], preferred_element_type=jnp.float32)
    y1 = jnp.maximum(acc1 * c1_ref[...] + b1_ref[...], 0.0)    # dequant + bias + ReLU
    y1_ref[...] = y1
    accid = jnp.dot(q, wid_ref[...], preferred_element_type=jnp.float32)
    id_ref[...] = accid * cid_ref[...] + bid_ref[...]
    if m_valid % tm != 0:  # zero-padded rows must not contaminate the abs-max
        rows = pl.program_id(0) * tm + jax.lax.broadcasted_iota(jnp.int32, y1.shape, 0)
        y1 = jnp.where(rows < m_valid, y1, 0.0)
    pmax_ref[...] = jnp.full(pmax_ref.shape, jnp.max(jnp.abs(y1)), dtype=jnp.float32)


def _q_conv3x3_kernel(x_ref, inv_s_ref, w_ref, c_ref, b_ref, mask_ref,
                      y_ref, pmax_ref, *, H, W):
    """fake-quant -> 3x3 conv+BN+ReLU via 9 shifted-window taps, + absmax."""
    WP = W + 2
    inv_s = inv_s_ref[0, 0]
    # flattened zero-padded image: ((H+2)*(W+2)+extra, C) -> quantized integers
    q = jnp.clip(jnp.round(x_ref[0] * inv_s), -QMAX - 1.0, QMAX)
    acc = jnp.zeros((H * WP, w_ref.shape[-1]), jnp.float32)
    for dy in range(3):
        for dx in range(3):
            off = dy * WP + dx
            patch = q[off:off + H * WP, :].astype(jnp.bfloat16)   # shifted window
            acc = acc + jnp.dot(patch, w_ref[dy * 3 + dx],
                                preferred_element_type=jnp.float32)
    y = jnp.maximum(acc * c_ref[...] + b_ref[...], 0.0)
    y_ref[0] = y
    # mask out the (W+2 - W) wrap-around columns before the abs-max
    pmax_ref[...] = jnp.full(pmax_ref.shape, jnp.max(jnp.abs(y * mask_ref[...])),
                             dtype=jnp.float32)


def _q_conv3_res_kernel(x_ref, inv_s_ref, w_ref, c_ref, b_ref, r_ref,
                        z_ref, pmax_ref, *, m_valid, tm):
    """fake-quant(y2) -> conv3+BN + residual add, + absmax(z) epilogue."""
    q = _quantize_bf16(x_ref[...], inv_s_ref[0, 0])
    acc = jnp.dot(q, w_ref[...], preferred_element_type=jnp.float32)
    z = acc * c_ref[...] + b_ref[...] + r_ref[...]
    z_ref[...] = z
    if m_valid % tm != 0:
        rows = pl.program_id(0) * tm + jax.lax.broadcasted_iota(jnp.int32, z.shape, 0)
        z = jnp.where(rows < m_valid, z, 0.0)
    pmax_ref[...] = jnp.full(pmax_ref.shape, jnp.max(jnp.abs(z)), dtype=jnp.float32)


def _quant_relu_kernel(x_ref, s_ref, inv_s_ref, o_ref):
    """quant_act_int32 (scale from pre-ReLU values) followed by final ReLU."""
    q = jnp.clip(jnp.round(x_ref[...] * inv_s_ref[0, 0]), -QMAX - 1.0, QMAX)
    o_ref[...] = jnp.maximum(q * s_ref[0, 0], 0.0)


# ---------------------------------------------------------------------------
# Pallas wrappers
# ---------------------------------------------------------------------------
def pallas_partial_absmax(x_pad, tm):
    m_pad, c = x_pad.shape
    g = m_pad // tm
    pmax = pl.pallas_call(
        _absmax_partial_kernel,
        out_shape=jax.ShapeDtypeStruct((8 * g, 128), jnp.float32),
        grid=(g,),
        in_specs=[pl.BlockSpec((tm, c), lambda i: (i, 0))],
        out_specs=pl.BlockSpec((8, 128), lambda i: (i, 0)),
        compiler_params=_PARALLEL,
    )(x_pad)
    return jnp.max(pmax)


def fused_quant_conv1_identity(x_pad, inv_sx, w1_i, comb1, b1,
                               wid_i, combid, bid, m_valid, tm):
    m_pad, cin = x_pad.shape
    cmid = w1_i.shape[1]
    cout = wid_i.shape[1]
    g = m_pad // tm
    kernel = functools.partial(_q_conv1_identity_kernel, m_valid=m_valid, tm=tm)
    return pl.pallas_call(
        kernel,
        out_shape=(jax.ShapeDtypeStruct((m_pad, cmid), jnp.float32),
                   jax.ShapeDtypeStruct((m_pad, cout), jnp.float32),
                   jax.ShapeDtypeStruct((8 * g, 128), jnp.float32)),
        grid=(g,),
        in_specs=[
            pl.BlockSpec((tm, cin), lambda i: (i, 0)),
            pl.BlockSpec(memory_space=pltpu.MemorySpace.SMEM),
            pl.BlockSpec((cin, cmid), lambda i: (0, 0)),
            pl.BlockSpec((1, cmid), lambda i: (0, 0)),
            pl.BlockSpec((1, cmid), lambda i: (0, 0)),
            pl.BlockSpec((cin, cout), lambda i: (0, 0)),
            pl.BlockSpec((1, cout), lambda i: (0, 0)),
            pl.BlockSpec((1, cout), lambda i: (0, 0)),
        ],
        out_specs=(
            pl.BlockSpec((tm, cmid), lambda i: (i, 0)),
            pl.BlockSpec((tm, cout), lambda i: (i, 0)),
            pl.BlockSpec((8, 128), lambda i: (i, 0)),
        ),
        compiler_params=_PARALLEL,
    )(x_pad, inv_sx, w1_i, comb1, b1, wid_i, combid, bid)


def fused_quant_conv3x3(y1_img, inv_s1, w2_i, comb2, b2, H, W):
    n, _, _, c = y1_img.shape
    WP = W + 2
    cmid = w2_i.shape[-1]
    # zero-pad (ring of 1) then flatten pixels; pad the tail so every tap
    # window slice of length H*WP stays in-bounds (and rows are 8-aligned).
    xp = jnp.pad(y1_img, ((0, 0), (1, 1), (1, 1), (0, 0)))
    xp = xp.reshape(n, (H + 2) * WP, c)
    pp = _round_up((H + 2) * WP + 2, 8)
    xp = jnp.pad(xp, ((0, 0), (0, pp - (H + 2) * WP), (0, 0)))
    # mask of valid (non-wraparound) columns in the flattened output layout
    col = jnp.arange(H * WP, dtype=jnp.int32) % WP
    mask = (col < W).astype(jnp.float32).reshape(H * WP, 1)

    kernel = functools.partial(_q_conv3x3_kernel, H=H, W=W)
    y_flat, pmax = pl.pallas_call(
        kernel,
        out_shape=(jax.ShapeDtypeStruct((n, H * WP, cmid), jnp.float32),
                   jax.ShapeDtypeStruct((8 * n, 128), jnp.float32)),
        grid=(n,),
        in_specs=[
            pl.BlockSpec((1, pp, c), lambda i: (i, 0, 0)),
            pl.BlockSpec(memory_space=pltpu.MemorySpace.SMEM),
            pl.BlockSpec((9, c, cmid), lambda i: (0, 0, 0)),
            pl.BlockSpec((1, cmid), lambda i: (0, 0)),
            pl.BlockSpec((1, cmid), lambda i: (0, 0)),
            pl.BlockSpec((H * WP, 1), lambda i: (0, 0)),
        ],
        out_specs=(
            pl.BlockSpec((1, H * WP, cmid), lambda i: (i, 0, 0)),
            pl.BlockSpec((8, 128), lambda i: (i, 0)),
        ),
        compiler_params=_PARALLEL,
    )(xp, inv_s1, w2_i, comb2, b2, mask)
    # drop the wrap-around columns: (N, H, W+2, C) -> (N, H, W, C)
    y = y_flat.reshape(n, H, WP, cmid)[:, :, :W, :]
    return y, jnp.max(pmax)


def fused_quant_conv3_res(x_pad, inv_s, w3_i, comb3, b3, residual, m_valid, tm):
    m_pad, cmid = x_pad.shape
    cout = w3_i.shape[1]
    g = m_pad // tm
    kernel = functools.partial(_q_conv3_res_kernel, m_valid=m_valid, tm=tm)
    return pl.pallas_call(
        kernel,
        out_shape=(jax.ShapeDtypeStruct((m_pad, cout), jnp.float32),
                   jax.ShapeDtypeStruct((8 * g, 128), jnp.float32)),
        grid=(g,),
        in_specs=[
            pl.BlockSpec((tm, cmid), lambda i: (i, 0)),
            pl.BlockSpec(memory_space=pltpu.MemorySpace.SMEM),
            pl.BlockSpec((cmid, cout), lambda i: (0, 0)),
            pl.BlockSpec((1, cout), lambda i: (0, 0)),
            pl.BlockSpec((1, cout), lambda i: (0, 0)),
            pl.BlockSpec((tm, cout), lambda i: (i, 0)),
        ],
        out_specs=(
            pl.BlockSpec((tm, cout), lambda i: (i, 0)),
            pl.BlockSpec((8, 128), lambda i: (i, 0)),
        ),
        compiler_params=_PARALLEL,
    )(x_pad, inv_s, w3_i, comb3, b3, residual)


def fused_quant_relu(z_pad, scale, inv_scale, tm):
    m_pad, c = z_pad.shape
    g = m_pad // tm
    return pl.pallas_call(
        _quant_relu_kernel,
        out_shape=jax.ShapeDtypeStruct((m_pad, c), jnp.float32),
        grid=(g,),
        in_specs=[pl.BlockSpec((tm, c), lambda i: (i, 0)),
                  pl.BlockSpec(memory_space=pltpu.MemorySpace.SMEM),
                  pl.BlockSpec(memory_space=pltpu.MemorySpace.SMEM)],
        out_specs=pl.BlockSpec((tm, c), lambda i: (i, 0)),
        compiler_params=_PARALLEL,
    )(z_pad, scale, inv_scale)


# ---------------------------------------------------------------------------
# Parameter setup + BN fold + per-channel int8 weight quantization
# ---------------------------------------------------------------------------
def init_convbn_params(key, kh, kw, cin, cout):
    k1, k2, k3, k4, k5 = jax.random.split(key, 5)
    fan_in = kh * kw * cin
    w = jax.random.normal(k1, (kh, kw, cin, cout), jnp.float32) / jnp.sqrt(fan_in)
    gamma = 1.0 + 0.1 * jax.random.normal(k2, (cout,), jnp.float32)
    beta = 0.1 * jax.random.normal(k3, (cout,), jnp.float32)
    mean = 0.1 * jax.random.normal(k4, (cout,), jnp.float32)
    var = jnp.abs(jax.random.normal(k5, (cout,), jnp.float32)) * 0.5 + 0.5
    return dict(w=w, gamma=gamma, beta=beta, mean=mean, var=var)


def fold_bn_and_quant_weight(p, eps=1e-5):
    """QuantBnConv2d: fold BN, per-out-channel 8-bit symmetric quantization.

    Returns integer weight values (bf16-encoded, exact), per-channel scale,
    and folded float bias.
    """
    std = jnp.sqrt(p["var"] + eps)
    s = p["gamma"] / std
    w_fold = p["w"] * s
    b_fold = p["beta"] - p["mean"] * s
    red = tuple(range(w_fold.ndim - 1))
    s_w = jnp.maximum(jnp.max(jnp.abs(w_fold), axis=red) / QMAX, 1e-8)
    w_int = jnp.clip(jnp.round(w_fold / s_w), -QMAX - 1, QMAX).astype(jnp.bfloat16)
    return w_int, s_w, b_fold


# ---------------------------------------------------------------------------
# Q_ResUnitBn_Daq forward (resize_identity=True)
# ---------------------------------------------------------------------------
def q_res_unit_bn_forward(x_nchw, params):
    n, cin, h, w = x_nchw.shape
    m = n * h * w
    x2d = jnp.transpose(x_nchw, (0, 2, 3, 1)).reshape(m, cin)

    tm, m_pad = _row_tiling(m)
    x2d_p = jnp.pad(x2d, ((0, m_pad - m), (0, 0))) if m_pad != m else x2d

    # weights: fold BN, int8 per-channel
    w1_i, sw1, b1 = fold_bn_and_quant_weight(params["conv1"])
    w2_i, sw2, b2 = fold_bn_and_quant_weight(params["conv2"])
    w3_i, sw3, b3 = fold_bn_and_quant_weight(params["conv3"])
    wid_i, swid, bid = fold_bn_and_quant_weight(params["identity"])
    cmid = w1_i.shape[-1]
    cout = w3_i.shape[-1]
    w1_i = w1_i.reshape(cin, cmid)
    w2_i = w2_i.reshape(9, cmid, cmid)
    w3_i = w3_i.reshape(cmid, cout)
    wid_i = wid_i.reshape(cin, cout)

    # quant_act: dynamic per-tensor scale of the shared input (partial-max kernel)
    sx = jnp.maximum(pallas_partial_absmax(x2d_p, tm) / QMAX, 1e-8)

    # kernel 1: quant(x) -> conv1+ReLU and identity conv (+ absmax(y1) epilogue)
    y1, identity, pmax1 = fused_quant_conv1_identity(
        x2d_p, _smem_scalar(1.0 / sx),
        w1_i, (sx * sw1).reshape(1, cmid), b1.reshape(1, cmid),
        wid_i, (sx * swid).reshape(1, cout), bid.reshape(1, cout), m, tm)
    s1 = jnp.maximum(jnp.max(pmax1) / QMAX, 1e-8)

    # kernel 2: quant(y1) -> 3x3 conv2+ReLU in-kernel taps (+ absmax epilogue)
    y1_img = y1[:m].reshape(n, h, w, cmid)
    y2_img, max2 = fused_quant_conv3x3(
        y1_img, _smem_scalar(1.0 / s1), w2_i,
        (s1 * sw2).reshape(1, cmid), b2.reshape(1, cmid), h, w)
    s2 = jnp.maximum(max2 / QMAX, 1e-8)

    y2 = y2_img.reshape(m, cmid)
    if m_pad != m:
        y2 = jnp.pad(y2, ((0, m_pad - m), (0, 0)))

    # kernel 3: quant(y2) -> conv3 + residual add (+ absmax(z) epilogue)
    z, pmax3 = fused_quant_conv3_res(
        y2, _smem_scalar(1.0 / s2), w3_i,
        (s2 * sw3).reshape(1, cout), b3.reshape(1, cout), identity, m, tm)
    s_out = jnp.maximum(jnp.max(pmax3) / QMAX, 1e-8)

    # kernel 4: quant_act_int32 (scale from pre-ReLU residual sum) then ReLU
    out2d = fused_quant_relu(z, _smem_scalar(s_out), _smem_scalar(1.0 / s_out), tm)

    out = jnp.transpose(out2d[:m].reshape(n, h, w, cout), (0, 3, 1, 2))
    return out, s_out


if __name__ == "__main__":
    key = jax.random.PRNGKey(0)
    kx, k1, k2, k3, k4 = jax.random.split(key, 5)

    N, CIN, H, W = 2, 4, 16, 16
    CMID, COUT = 4, 8  # resize_identity=True since CIN != COUT

    x = jax.random.normal(kx, (N, CIN, H, W), jnp.float32)
    params = {
        "conv1": init_convbn_params(k1, 1, 1, CIN, CMID),
        "conv2": init_convbn_params(k2, 3, 3, CMID, CMID),
        "conv3": init_convbn_params(k3, 1, 1, CMID, COUT),
        "identity": init_convbn_params(k4, 1, 1, CIN, COUT),
    }

    fwd = jax.jit(q_res_unit_bn_forward)
    out, act_sf = fwd(x, params)
    jax.block_until_ready((out, act_sf))
    assert out.shape == (N, COUT, H, W)
    assert bool(jnp.all(out >= 0.0))  # final ReLU
    print("KERNEL_OK")
</pallas_src>

<mosaic_0001>
module attributes {stable_mosaic.version = 11 : i64} {
  func.func @_absmax_partial_kernel(%arg0: i32, %arg1: memref<512x4xf32, #tpu.memory_space<vmem>>, %arg2: memref<8x128xf32, #tpu.memory_space<vmem>>) attributes {dimension_semantics = [#tpu.dimension_semantics<parallel>], iteration_bounds = array<i64: 1>, scalar_prefetch = 0 : i64, scratch_operands = 0 : i64, tpu.core_type = #tpu.core_type<tc>, window_params = [{transform_indices = @transform_0, window_bounds = array<i64: 512, 4>}, {transform_indices = @transform_1, window_bounds = array<i64: 8, 128>}]} {
    %c0 = arith.constant 0 : index
    %c0_0 = arith.constant 0 : index
    %0 = vector.load %arg1[%c0, %c0_0] : memref<512x4xf32, #tpu.memory_space<vmem>>, vector<512x4xf32>
    %1 = math.absf %0 : vector<512x4xf32>
    %2 = vector.shape_cast %1 : vector<512x4xf32> to vector<1x512x4xf32>
    %cst = arith.constant dense<0xFF800000> : vector<1xf32>
    %3 = vector.multi_reduction <maximumf>, %2, %cst [1, 2] : vector<1x512x4xf32> to vector<1xf32>
    %4 = vector.shape_cast %3 : vector<1xf32> to vector<1x1x1xf32>
    %5 = vector.extract %4[0, 0, 0] : f32 from vector<1x1x1xf32>
    %6 = vector.broadcast %5 : f32 to vector<8x128xf32>
    %c0_1 = arith.constant 0 : index
    %c0_2 = arith.constant 0 : index
    %7 = vector.load %arg2[%c0_1, %c0_2] : memref<8x128xf32, #tpu.memory_space<vmem>>, vector<8x128xf32>
    tpu.vector_store %arg2[%c0_1, %c0_2], %6 {strides = array<i32>} : memref<8x128xf32, #tpu.memory_space<vmem>>, vector<8x128xf32>,
    return
  }
  func.func @transform_0(%arg0: i32) -> (i32, i32) {
    %c0_i32 = arith.constant 0 : i32
    %c0_i32_0 = arith.constant 0 : i32
    return %arg0, %c0_i32 : i32, i32
  }
  func.func @transform_1(%arg0: i32) -> (i32, i32) {
    %c0_i32 = arith.constant 0 : i32
    %c0_i32_0 = arith.constant 0 : i32
    return %arg0, %c0_i32 : i32, i32
  }
}

module attributes {stable_mosaic.version = 11 : i64} {
  func.func @_q_conv1_identity_kernel(%arg0: i32, %arg1: memref<512x4xf32, #tpu.memory_space<vmem>>, %arg2: memref<1x1xf32, #tpu.memory_space<smem>>, %arg3: memref<4x4xbf16, #tpu.memory_space<vmem>>, %arg4: memref<1x4xf32, #tpu.memory_space<vmem>>, %arg5: memref<1x4xf32, #tpu.memory_space<vmem>>, %arg6: memref<4x8xbf16, #tpu.memory_space<vmem>>, %arg7: memref<1x8xf32, #tpu.memory_space<vmem>>, %arg8: memref<1x8xf32, #tpu.memory_space<vmem>>, %arg9: memref<512x4xf32, #tpu.memory_space<vmem>>, %arg10: memref<512x8xf32, #tpu.memory_space<vmem>>, %arg11: memref<8x128xf32, #tpu.memory_space<vmem>>) attributes {dimension_semantics = [#tpu.dimension_semantics<parallel>], iteration_bounds = array<i64: 1>, scalar_prefetch = 0 : i64, scratch_operands = 0 : i64, tpu.core_type = #tpu.core_type<tc>, window_params = [{transform_indices = @transform_0, window_bounds = array<i64: 512, 4>}, {transform_indices = @transform_1, window_bounds = array<i64: 1, 1>}, {pipeline_mode = #tpu.pipeline_mode<synchronous>, transform_indices = @transform_2, window_bounds = array<i64: 4, 4>}, {pipeline_mode = #tpu.pipeline_mode<synchronous>, transform_indices = @transform_3, window_bounds = array<i64: 1, 4>}, {pipeline_mode = #tpu.pipeline_mode<synchronous>, transform_indices = @transform_4, window_bounds = array<i64: 1, 4>}, {pipeline_mode = #tpu.pipeline_mode<synchronous>, transform_indices = @transform_5, window_bounds = array<i64: 4, 8>}, {pipeline_mode = #tpu.pipeline_mode<synchronous>, transform_indices = @transform_6, window_bounds = array<i64: 1, 8>}, {pipeline_mode = #tpu.pipeline_mode<synchronous>, transform_indices = @transform_7, window_bounds = array<i64: 1, 8>}, {transform_indices = @transform_8, window_bounds = array<i64: 512, 4>}, {transform_indices = @transform_9, window_bounds = array<i64: 512, 8>}, {transform_indices = @transform_10, window_bounds = array<i64: 8, 128>}]} {
    %c0 = arith.constant 0 : index
    %c0_0 = arith.constant 0 : index
    %0 = vector.load %arg1[%c0, %c0_0] : memref<512x4xf32, #tpu.memory_space<vmem>>, vector<512x4xf32>
    %c0_1 = arith.constant 0 : index
    %c0_2 = arith.constant 0 : index
    %1 = memref.load %arg2[%c0_1, %c0_2] : memref<1x1xf32, #tpu.memory_space<smem>>
    %2 = vector.broadcast %1 : f32 to vector<512x4xf32>
    %3 = arith.mulf %0, %2 : vector<512x4xf32>
    %4 = math.roundeven %3 : vector<512x4xf32>
    %cst = arith.constant -1.280000e+02 : f32
    %c127_i32 = arith.constant 127 : i32
    %5 = vector.broadcast %cst : f32 to vector<512x4xf32>
    %6 = arith.maximumf %5, %4 : vector<512x4xf32>
    %7 = arith.sitofp %c127_i32 : i32 to f32
    %8 = vector.broadcast %7 : f32 to vector<512x4xf32>
    %9 = arith.minimumf %8, %6 : vector<512x4xf32>
    %10 = arith.truncf %9 : vector<512x4xf32> to vector<512x4xbf16>
    %c0_3 = arith.constant 0 : index
    %c0_4 = arith.constant 0 : index
    %11 = vector.load %arg3[%c0_3, %c0_4] : memref<4x4xbf16, #tpu.memory_space<vmem>>, vector<4x4xbf16>
    %cst_5 = arith.constant dense<0.000000e+00> : vector<512x4xf32>
    %12 = tpu.matmul %10, %11, %cst_5 {dimension_numbers = #tpu.dot_dimension_numbers<[1], [0], [0], [1], [0, 0, 1, 1], [], []>} : vector<512x4xbf16>, vector<4x4xbf16>, vector<512x4xf32> -> vector<512x4xf32>
    %c0_6 = arith.constant 0 : index
    %c0_7 = arith.constant 0 : index
    %13 = vector.load %arg4[%c0_6, %c0_7] : memref<1x4xf32, #tpu.memory_space<vmem>>, vector<1x4xf32>
    %14 = vector.broadcast %13 : vector<1x4xf32> to vector<512x4xf32>
    %15 = arith.mulf %12, %14 : vector<512x4xf32>
    %c0_8 = arith.constant 0 : index
    %c0_9 = arith.constant 0 : index
    %16 = vector.load %arg5[%c0_8, %c0_9] : memref<1x4xf32, #tpu.memory_space<vmem>>, vector<1x4xf32>
    %17 = vector.broadcast %16 : vector<1x4xf32> to vector<512x4xf32>
    %18 = arith.addf %15, %17 : vector<512x4xf32>
    %cst_10 = arith.constant 0.000000e+00 : f32
    %19 = vector.broadcast %cst_10 : f32 to vector<512x4xf32>
    %20 = arith.maximumf %18, %19 : vector<512x4xf32>
    %c0_11 = arith.constant 0 : index
    %c0_12 = arith.constant 0 : index
    %21 = vector.load %arg9[%c0_11, %c0_12] : memref<512x4xf32, #tpu.memory_space<vmem>>, vector<512x4xf32>
    tpu.vector_store %arg9[%c0_11, %c0_12], %20 {strides = array<i32>} : memref<512x4xf32, #tpu.memory_space<vmem>>, vector<512x4xf32>,
    %c0_13 = arith.constant 0 : index
    %c0_14 = arith.constant 0 : index
    %22 = vector.load %arg6[%c0_13, %c0_14] : memref<4x8xbf16, #tpu.memory_space<vmem>>, vector<4x8xbf16>
    %cst_15 = arith.constant dense<0.000000e+00> : vector<512x8xf32>
    %23 = tpu.matmul %10, %22, %cst_15 {dimension_numbers = #tpu.dot_dimension_numbers<[1], [0], [0], [1], [0, 0, 1, 1], [], []>} : vector<512x4xbf16>, vector<4x8xbf16>, vector<512x8xf32> -> vector<512x8xf32>
    %c0_16 = arith.constant 0 : index
    %c0_17 = arith.constant 0 : index
    %24 = vector.load %arg7[%c0_16, %c0_17] : memref<1x8xf32, #tpu.memory_space<vmem>>, vector<1x8xf32>
    %25 = vector.broadcast %24 : vector<1x8xf32> to vector<512x8xf32>
    %26 = arith.mulf %23, %25 : vector<512x8xf32>
    %c0_18 = arith.constant 0 : index
    %c0_19 = arith.constant 0 : index
    %27 = vector.load %arg8[%c0_18, %c0_19] : memref<1x8xf32, #tpu.memory_space<vmem>>, vector<1x8xf32>
    %28 = vector.broadcast %27 : vector<1x8xf32> to vector<512x8xf32>
    %29 = arith.addf %26, %28 : vector<512x8xf32>
    %c0_20 = arith.constant 0 : index
    %c0_21 = arith.constant 0 : index
    %30 = vector.load %arg10[%c0_20, %c0_21] : memref<512x8xf32, #tpu.memory_space<vmem>>, vector<512x8xf32>
    tpu.vector_store %arg10[%c0_20, %c0_21], %29 {strides = array<i32>} : memref<512x8xf32, #tpu.memory_space<vmem>>, vector<512x8xf32>,
    %31 = math.absf %20 : vector<512x4xf32>
    %32 = vector.shape_cast %31 : vector<512x4xf32> to vector<1x512x4xf32>
    %cst_22 = arith.constant dense<0xFF800000> : vector<1xf32>
    %33 = vector.multi_reduction <maximumf>, %32, %cst_22 [1, 2] : vector<1x512x4xf32> to vector<1xf32>
    %34 = vector.shape_cast %33 : vector<1xf32> to vector<1x1x1xf32>
    %35 = vector.extract %34[0, 0, 0] : f32 from vector<1x1x1xf32>
    %36 = vector.broadcast %35 : f32 to vector<8x128xf32>
    %c0_23 = arith.constant 0 : index
    %c0_24 = arith.constant 0 : index
    %37 = vector.load %arg11[%c0_23, %c0_24] : memref<8x128xf32, #tpu.memory_space<vmem>>, vector<8x128xf32>
    tpu.vector_store %arg11[%c0_23, %c0_24], %36 {strides = array<i32>} : memref<8x128xf32, #tpu.memory_space<vmem>>, vector<8x128xf32>,
    return
  }
  func.func @transform_0(%arg0: i32) -> (i32, i32) {
    %c0_i32 = arith.constant 0 : i32
    %c0_i32_0 = arith.constant 0 : i32
    return %arg0, %c0_i32 : i32, i32
  }
  func.func @transform_1(%arg0: i32) -> (i32, i32) {
    %c0_i32 = arith.constant 0 : i32
    %c0_i32_0 = arith.constant 0 : i32
    %c0_i32_1 = arith.constant 0 : i32
    return %c0_i32, %c0_i32_0 : i32, i32
  }
  func.func @transform_2(%arg0: i32) -> (i32, i32) {
    %c0_i32 = arith.constant 0 : i32
    %c0_i32_0 = arith.constant 0 : i32
    %c0_i32_1 = arith.constant 0 : i32
    return %c0_i32, %c0_i32_0 : i32, i32
  }
  func.func @transform_3(%arg0: i32) -> (i32, i32) {
    %c0_i32 = arith.constant 0 : i32
    %c0_i32_0 = arith.constant 0 : i32
    %c0_i32_1 = arith.constant 0 : i32
    return %c0_i32, %c0_i32_0 : i32, i32
  }
  func.func @transform_4(%arg0: i32) -> (i32, i32) {
    %c0_i32 = arith.constant 0 : i32
    %c0_i32_0 = arith.constant 0 : i32
    %c0_i32_1 = arith.constant 0 : i32
    return %c0_i32, %c0_i32_0 : i32, i32
  }
  func.func @transform_5(%arg0: i32) -> (i32, i32) {
    %c0_i32 = arith.constant 0 : i32
    %c0_i32_0 = arith.constant 0 : i32
    %c0_i32_1 = arith.constant 0 : i32
    return %c0_i32, %c0_i32_0 : i32, i32
  }
  func.func @transform_6(%arg0: i32) -> (i32, i32) {
    %c0_i32 = arith.constant 0 : i32
    %c0_i32_0 = arith.constant 0 : i32
    %c0_i32_1 = arith.constant 0 : i32
    return %c0_i32, %c0_i32_0 : i32, i32
  }
  func.func @transform_7(%arg0: i32) -> (i32, i32) {
    %c0_i32 = arith.constant 0 : i32
    %c0_i32_0 = arith.constant 0 : i32
    %c0_i32_1 = arith.constant 0 : i32
    return %c0_i32, %c0_i32_0 : i32, i32
  }
  func.func @transform_8(%arg0: i32) -> (i32, i32) {
    %c0_i32 = arith.constant 0 : i32
    %c0_i32_0 = arith.constant 0 : i32
    return %arg0, %c0_i32 : i32, i32
  }
  func.func @transform_9(%arg0: i32) -> (i32, i32) {
    %c0_i32 = arith.constant 0 : i32
    %c0_i32_0 = arith.constant 0 : i32
    return %arg0, %c0_i32 : i32, i32
  }
  func.func @transform_10(%arg0: i32) -> (i32, i32) {
    %c0_i32 = arith.constant 0 : i32
    %c0_i32_0 = arith.constant 0 : i32
    return %arg0, %c0_i32 : i32, i32
  }
}

module attributes {stable_mosaic.version = 11 : i64} {
  func.func @_q_conv3x3_kernel(%arg0: i32, %arg1: memref<1x328x4xf32, #tpu.memory_space<vmem>>, %arg2: memref<1x1xf32, #tpu.memory_space<smem>>, %arg3: memref<9x4x4xbf16, #tpu.memory_space<vmem>>, %arg4: memref<1x4xf32, #tpu.memory_space<vmem>>, %arg5: memref<1x4xf32, #tpu.memory_space<vmem>>, %arg6: memref<288x1xf32, #tpu.memory_space<vmem>>, %arg7: memref<1x288x4xf32, #tpu.memory_space<vmem>>, %arg8: memref<8x128xf32, #tpu.memory_space<vmem>>) attributes {dimension_semantics = [#tpu.dimension_semantics<parallel>], iteration_bounds = array<i64: 2>, scalar_prefetch = 0 : i64, scratch_operands = 0 : i64, tpu.core_type = #tpu.core_type<tc>, window_params = [{transform_indices = @transform_0, window_bounds = array<i64: 1, 328, 4>}, {transform_indices = @transform_1, window_bounds = array<i64: 1, 1>}, {pipeline_mode = #tpu.pipeline_mode<synchronous>, transform_indices = @transform_2, window_bounds = array<i64: 9, 4, 4>}, {pipeline_mode = #tpu.pipeline_mode<synchronous>, transform_indices = @transform_3, window_bounds = array<i64: 1, 4>}, {pipeline_mode = #tpu.pipeline_mode<synchronous>, transform_indices = @transform_4, window_bounds = array<i64: 1, 4>}, {pipeline_mode = #tpu.pipeline_mode<synchronous>, transform_indices = @transform_5, window_bounds = array<i64: 288, 1>}, {transform_indices = @transform_6, window_bounds = array<i64: 1, 288, 4>}, {transform_indices = @transform_7, window_bounds = array<i64: 8, 128>}]} {
    %c0 = arith.constant 0 : index
    %c0_0 = arith.constant 0 : index
    %0 = memref.load %arg2[%c0, %c0_0] : memref<1x1xf32, #tpu.memory_space<smem>>
    %c0_1 = arith.constant 0 : index
    %c0_2 = arith.constant 0 : index
    %c0_3 = arith.constant 0 : index
    %1 = vector.load %arg1[%c0_1, %c0_2, %c0_3] : memref<1x328x4xf32, #tpu.memory_space<vmem>>, vector<1x328x4xf32>
    %2 = vector.shape_cast %1 : vector<1x328x4xf32> to vector<328x4xf32>
    %3 = vector.broadcast %0 : f32 to vector<328x4xf32>
    %4 = arith.mulf %2, %3 : vector<328x4xf32>
    %5 = math.roundeven %4 : vector<328x4xf32>
    %cst = arith.constant -1.280000e+02 : f32
    %c127_i32 = arith.constant 127 : i32
    %6 = vector.broadcast %cst : f32 to vector<328x4xf32>
    %7 = arith.maximumf %6, %5 : vector<328x4xf32>
    %8 = arith.sitofp %c127_i32 : i32 to f32
    %9 = vector.broadcast %8 : f32 to vector<328x4xf32>
    %10 = arith.minimumf %9, %7 : vector<328x4xf32>
    %cst_4 = arith.constant 0.000000e+00 : f32
    %11 = vector.broadcast %cst_4 : f32 to vector<288x4xf32>
    %12 = vector.extract_strided_slice %10 {offsets = [0, 0], sizes = [288, 4], strides = [1, 1]} : vector<328x4xf32> to vector<288x4xf32>
    %13 = arith.truncf %12 : vector<288x4xf32> to vector<288x4xbf16>
    %c0_5 = arith.constant 0 : index
    %c0_6 = arith.constant 0 : index
    %c0_7 = arith.constant 0 : index
    %14 = vector.load %arg3[%c0_5, %c0_6, %c0_7] : memref<9x4x4xbf16, #tpu.memory_space<vmem>>, vector<1x4x4xbf16>
    %15 = vector.shape_cast %14 : vector<1x4x4xbf16> to vector<4x4xbf16>
    %cst_8 = arith.constant dense<0.000000e+00> : vector<288x4xf32>
    %16 = tpu.matmul %13, %15, %cst_8 {dimension_numbers = #tpu.dot_dimension_numbers<[1], [0], [0], [1], [0, 0, 1, 1], [], []>} : vector<288x4xbf16>, vector<4x4xbf16>, vector<288x4xf32> -> vector<288x4xf32>
    %17 = arith.addf %11, %16 : vector<288x4xf32>
    %18 = vector.extract_strided_slice %10 {offsets = [1, 0], sizes = [288, 4], strides = [1, 1]} : vector<328x4xf32> to vector<288x4xf32>
    %19 = arith.truncf %18 : vector<288x4xf32> to vector<288x4xbf16>
    %c1 = arith.constant 1 : index
    %c0_9 = arith.constant 0 : index
    %c0_10 = arith.constant 0 : index
    %20 = vector.load %arg3[%c1, %c0_9, %c0_10] : memref<9x4x4xbf16, #tpu.memory_space<vmem>>, vector<1x4x4xbf16>
    %21 = vector.shape_cast %20 : vector<1x4x4xbf16> to vector<4x4xbf16>
    %cst_11 = arith.constant dense<0.000000e+00> : vector<288x4xf32>
    %22 = tpu.matmul %19, %21, %cst_11 {dimension_numbers = #tpu.dot_dimension_numbers<[1], [0], [0], [1], [0, 0, 1, 1], [], []>} : vector<288x4xbf16>, vector<4x4xbf16>, vector<288x4xf32> -> vector<288x4xf32>
    %23 = arith.addf %17, %22 : vector<288x4xf32>
    %24 = vector.extract_strided_slice %10 {offsets = [2, 0], sizes = [288, 4], strides = [1, 1]} : vector<328x4xf32> to vector<288x4xf32>
    %25 = arith.truncf %24 : vector<288x4xf32> to vector<288x4xbf16>
    %c2 = arith.constant 2 : index
    %c0_12 = arith.constant 0 : index
    %c0_13 = arith.constant 0 : index
    %26 = vector.load %arg3[%c2, %c0_12, %c0_13] : memref<9x4x4xbf16, #tpu.memory_space<vmem>>, vector<1x4x4xbf16>
    %27 = vector.shape_cast %26 : vector<1x4x4xbf16> to vector<4x4xbf16>
    %cst_14 = arith.constant dense<0.000000e+00> : vector<288x4xf32>
    %28 = tpu.matmul %25, %27, %cst_14 {dimension_numbers = #tpu.dot_dimension_numbers<[1], [0], [0], [1], [0, 0, 1, 1], [], []>} : vector<288x4xbf16>, vector<4x4xbf16>, vector<288x4xf32> -> vector<288x4xf32>
    %29 = arith.addf %23, %28 : vector<288x4xf32>
    %30 = vector.extract_strided_slice %10 {offsets = [18, 0], sizes = [288, 4], strides = [1, 1]} : vector<328x4xf32> to vector<288x4xf32>
    %31 = arith.truncf %30 : vector<288x4xf32> to vector<288x4xbf16>
    %c3 = arith.constant 3 : index
    %c0_15 = arith.constant 0 : index
    %c0_16 = arith.constant 0 : index
    %32 = vector.load %arg3[%c3, %c0_15, %c0_16] : memref<9x4x4xbf16, #tpu.memory_space<vmem>>, vector<1x4x4xbf16>
    %33 = vector.shape_cast %32 : vector<1x4x4xbf16> to vector<4x4xbf16>
    %cst_17 = arith.constant dense<0.000000e+00> : vector<288x4xf32>
    %34 = tpu.matmul %31, %33, %cst_17 {dimension_numbers = #tpu.dot_dimension_numbers<[1], [0], [0], [1], [0, 0, 1, 1], [], []>} : vector<288x4xbf16>, vector<4x4xbf16>, vector<288x4xf32> -> vector<288x4xf32>
    %35 = arith.addf %29, %34 : vector<288x4xf32>
    %36 = vector.extract_strided_slice %10 {offsets = [19, 0], sizes = [288, 4], strides = [1, 1]} : vector<328x4xf32> to vector<288x4xf32>
    %37 = arith.truncf %36 : vector<288x4xf32> to vector<288x4xbf16>
    %c4 = arith.constant 4 : index
    %c0_18 = arith.constant 0 : index
    %c0_19 = arith.constant 0 : index
    %38 = vector.load %arg3[%c4, %c0_18, %c0_19] : memref<9x4x4xbf16, #tpu.memory_space<vmem>>, vector<1x4x4xbf16>
    %39 = vector.shape_cast %38 : vector<1x4x4xbf16> to vector<4x4xbf16>
    %cst_20 = arith.constant dense<0.000000e+00> : vector<288x4xf32>
    %40 = tpu.matmul %37, %39, %cst_20 {dimension_numbers = #tpu.dot_dimension_numbers<[1], [0], [0], [1], [0, 0, 1, 1], [], []>} : vector<288x4xbf16>, vector<4x4xbf16>, vector<288x4xf32> -> vector<288x4xf32>
    %41 = arith.addf %35, %40 : vector<288x4xf32>
    %42 = vector.extract_strided_slice %10 {offsets = [20, 0], sizes = [288, 4], strides = [1, 1]} : vector<328x4xf32> to vector<288x4xf32>
    %43 = arith.truncf %42 : vector<288x4xf32> to vector<288x4xbf16>
    %c5 = arith.constant 5 : index
    %c0_21 = arith.constant 0 : index
    %c0_22 = arith.constant 0 : index
    %44 = vector.load %arg3[%c5, %c0_21, %c0_22] : memref<9x4x4xbf16, #tpu.memory_space<vmem>>, vector<1x4x4xbf16>
    %45 = vector.shape_cast %44 : vector<1x4x4xbf16> to vector<4x4xbf16>
    %cst_23 = arith.constant dense<0.000000e+00> : vector<288x4xf32>
    %46 = tpu.matmul %43, %45, %cst_23 {dimension_numbers = #tpu.dot_dimension_numbers<[1], [0], [0], [1], [0, 0, 1, 1], [], []>} : vector<288x4xbf16>, vector<4x4xbf16>, vector<288x4xf32> -> vector<288x4xf32>
    %47 = arith.addf %41, %46 : vector<288x4xf32>
    %48 = vector.extract_strided_slice %10 {offsets = [36, 0], sizes = [288, 4], strides = [1, 1]} : vector<328x4xf32> to vector<288x4xf32>
    %49 = arith.truncf %48 : vector<288x4xf32> to vector<288x4xbf16>
    %c6 = arith.constant 6 : index
    %c0_24 = arith.constant 0 : index
    %c0_25 = arith.constant 0 : index
    %50 = vector.load %arg3[%c6, %c0_24, %c0_25] : memref<9x4x4xbf16, #tpu.memory_space<vmem>>, vector<1x4x4xbf16>
    %51 = vector.shape_cast %50 : vector<1x4x4xbf16> to vector<4x4xbf16>
    %cst_26 = arith.constant dense<0.000000e+00> : vector<288x4xf32>
    %52 = tpu.matmul %49, %51, %cst_26 {dimension_numbers = #tpu.dot_dimension_numbers<[1], [0], [0], [1], [0, 0, 1, 1], [], []>} : vector<288x4xbf16>, vector<4x4xbf16>, vector<288x4xf32> -> vector<288x4xf32>
    %53 = arith.addf %47, %52 : vector<288x4xf32>
    %54 = vector.extract_strided_slice %10 {offsets = [37, 0], sizes = [288, 4], strides = [1, 1]} : vector<328x4xf32> to vector<288x4xf32>
    %55 = arith.truncf %54 : vector<288x4xf32> to vector<288x4xbf16>
    %c7 = arith.constant 7 : index
    %c0_27 = arith.constant 0 : index
    %c0_28 = arith.constant 0 : index
    %56 = vector.load %arg3[%c7, %c0_27, %c0_28] : memref<9x4x4xbf16, #tpu.memory_space<vmem>>, vector<1x4x4xbf16>
    %57 = vector.shape_cast %56 : vector<1x4x4xbf16> to vector<4x4xbf16>
    %cst_29 = arith.constant dense<0.000000e+00> : vector<288x4xf32>
    %58 = tpu.matmul %55, %57, %cst_29 {dimension_numbers = #tpu.dot_dimension_numbers<[1], [0], [0], [1], [0, 0, 1, 1], [], []>} : vector<288x4xbf16>, vector<4x4xbf16>, vector<288x4xf32> -> vector<288x4xf32>
    %59 = arith.addf %53, %58 : vector<288x4xf32>
    %60 = vector.extract_strided_slice %10 {offsets = [38, 0], sizes = [288, 4], strides = [1, 1]} : vector<328x4xf32> to vector<288x4xf32>
    %61 = arith.truncf %60 : vector<288x4xf32> to vector<288x4xbf16>
    %c8 = arith.constant 8 : index
    %c0_30 = arith.constant 0 : index
    %c0_31 = arith.constant 0 : index
    %62 = vector.load %arg3[%c8, %c0_30, %c0_31] : memref<9x4x4xbf16, #tpu.memory_space<vmem>>, vector<1x4x4xbf16>
    %63 = vector.shape_cast %62 : vector<1x4x4xbf16> to vector<4x4xbf16>
    %cst_32 = arith.constant dense<0.000000e+00> : vector<288x4xf32>
    %64 = tpu.matmul %61, %63, %cst_32 {dimension_numbers = #tpu.dot_dimension_numbers<[1], [0], [0], [1], [0, 0, 1, 1], [], []>} : vector<288x4xbf16>, vector<4x4xbf16>, vector<288x4xf32> -> vector<288x4xf32>
    %65 = arith.addf %59, %64 : vector<288x4xf32>
    %c0_33 = arith.constant 0 : index
    %c0_34 = arith.constant 0 : index
    %66 = vector.load %arg4[%c0_33, %c0_34] : memref<1x4xf32, #tpu.memory_space<vmem>>, vector<1x4xf32>
    %67 = vector.broadcast %66 : vector<1x4xf32> to vector<288x4xf32>
    %68 = arith.mulf %65, %67 : vector<288x4xf32>
    %c0_35 = arith.constant 0 : index
    %c0_36 = arith.constant 0 : index
    %69 = vector.load %arg5[%c0_35, %c0_36] : memref<1x4xf32, #tpu.memory_space<vmem>>, vector<1x4xf32>
    %70 = vector.broadcast %69 : vector<1x4xf32> to vector<288x4xf32>
    %71 = arith.addf %68, %70 : vector<288x4xf32>
    %cst_37 = arith.constant 0.000000e+00 : f32
    %72 = vector.broadcast %cst_37 : f32 to vector<288x4xf32>
    %73 = arith.maximumf %71, %72 : vector<288x4xf32>
    %c0_38 = arith.constant 0 : index
    %c0_39 = arith.constant 0 : index
    %c0_40 = arith.constant 0 : index
    %74 = vector.load %arg7[%c0_38, %c0_39, %c0_40] : memref<1x288x4xf32, #tpu.memory_space<vmem>>, vector<1x288x4xf32>
    %75 = vector.shape_cast %74 : vector<1x288x4xf32> to vector<288x4xf32>
    %76 = vector.shape_cast %73 : vector<288x4xf32> to vector<1x288x4xf32>
    tpu.vector_store %arg7[%c0_38, %c0_39, %c0_40], %76 {strides = array<i32>} : memref<1x288x4xf32, #tpu.memory_space<vmem>>, vector<1x288x4xf32>,
    %c0_41 = arith.constant 0 : index
    %c0_42 = arith.constant 0 : index
    %77 = vector.load %arg6[%c0_41, %c0_42] : memref<288x1xf32, #tpu.memory_space<vmem>>, vector<288x1xf32>
    %78 = vector.broadcast %77 : vector<288x1xf32> to vector<288x4xf32>
    %79 = arith.mulf %73, %78 : vector<288x4xf32>
    %80 = math.absf %79 : vector<288x4xf32>
    %81 = vector.shape_cast %80 : vector<288x4xf32> to vector<1x288x4xf32>
    %cst_43 = arith.constant dense<0xFF800000> : vector<1xf32>
    %82 = vector.multi_reduction <maximumf>, %81, %cst_43 [1, 2] : vector<1x288x4xf32> to vector<1xf32>
    %83 = vector.shape_cast %82 : vector<1xf32> to vector<1x1x1xf32>
    %84 = vector.extract %83[0, 0, 0] : f32 from vector<1x1x1xf32>
    %85 = vector.broadcast %84 : f32 to vector<8x128xf32>
    %c0_44 = arith.constant 0 : index
    %c0_45 = arith.constant 0 : index
    %86 = vector.load %arg8[%c0_44, %c0_45] : memref<8x128xf32, #tpu.memory_space<vmem>>, vector<8x128xf32>
    tpu.vector_store %arg8[%c0_44, %c0_45], %85 {strides = array<i32>} : memref<8x128xf32, #tpu.memory_space<vmem>>, vector<8x128xf32>,
    return
  }
  func.func @transform_0(%arg0: i32) -> (i32, i32, i32) {
    %c0_i32 = arith.constant 0 : i32
    %c0_i32_0 = arith.constant 0 : i32
    %c0_i32_1 = arith.constant 0 : i32
    return %arg0, %c0_i32, %c0_i32_0 : i32, i32, i32
  }
  func.func @transform_1(%arg0: i32) -> (i32, i32) {
    %c0_i32 = arith.constant 0 : i32
    %c0_i32_0 = arith.constant 0 : i32
    %c0_i32_1 = arith.constant 0 : i32
    return %c0_i32, %c0_i32_0 : i32, i32
  }
  func.func @transform_2(%arg0: i32) -> (i32, i32, i32) {
    %c0_i32 = arith.constant 0 : i32
    %c0_i32_0 = arith.constant 0 : i32
    %c0_i32_1 = arith.constant 0 : i32
    %c0_i32_2 = arith.constant 0 : i32
    return %c0_i32, %c0_i32_0, %c0_i32_1 : i32, i32, i32
  }
  func.func @transform_3(%arg0: i32) -> (i32, i32) {
    %c0_i32 = arith.constant 0 : i32
    %c0_i32_0 = arith.constant 0 : i32
    %c0_i32_1 = arith.constant 0 : i32
    return %c0_i32, %c0_i32_0 : i32, i32
  }
  func.func @transform_4(%arg0: i32) -> (i32, i32) {
    %c0_i32 = arith.constant 0 : i32
    %c0_i32_0 = arith.constant 0 : i32
    %c0_i32_1 = arith.constant 0 : i32
    return %c0_i32, %c0_i32_0 : i32, i32
  }
  func.func @transform_5(%arg0: i32) -> (i32, i32) {
    %c0_i32 = arith.constant 0 : i32
    %c0_i32_0 = arith.constant 0 : i32
    %c0_i32_1 = arith.constant 0 : i32
    return %c0_i32, %c0_i32_0 : i32, i32
  }
  func.func @transform_6(%arg0: i32) -> (i32, i32, i32) {
    %c0_i32 = arith.constant 0 : i32
    %c0_i32_0 = arith.constant 0 : i32
    %c0_i32_1 = arith.constant 0 : i32
    return %arg0, %c0_i32, %c0_i32_0 : i32, i32, i32
  }
  func.func @transform_7(%arg0: i32) -> (i32, i32) {
    %c0_i32 = arith.constant 0 : i32
    %c0_i32_0 = arith.constant 0 : i32
    return %arg0, %c0_i32 : i32, i32
  }
}

module attributes {stable_mosaic.version = 11 : i64} {
  func.func @_q_conv3_res_kernel(%arg0: i32, %arg1: memref<512x4xf32, #tpu.memory_space<vmem>>, %arg2: memref<1x1xf32, #tpu.memory_space<smem>>, %arg3: memref<4x8xbf16, #tpu.memory_space<vmem>>, %arg4: memref<1x8xf32, #tpu.memory_space<vmem>>, %arg5: memref<1x8xf32, #tpu.memory_space<vmem>>, %arg6: memref<512x8xf32, #tpu.memory_space<vmem>>, %arg7: memref<512x8xf32, #tpu.memory_space<vmem>>, %arg8: memref<8x128xf32, #tpu.memory_space<vmem>>) attributes {dimension_semantics = [#tpu.dimension_semantics<parallel>], iteration_bounds = array<i64: 1>, scalar_prefetch = 0 : i64, scratch_operands = 0 : i64, tpu.core_type = #tpu.core_type<tc>, window_params = [{transform_indices = @transform_0, window_bounds = array<i64: 512, 4>}, {transform_indices = @transform_1, window_bounds = array<i64: 1, 1>}, {pipeline_mode = #tpu.pipeline_mode<synchronous>, transform_indices = @transform_2, window_bounds = array<i64: 4, 8>}, {pipeline_mode = #tpu.pipeline_mode<synchronous>, transform_indices = @transform_3, window_bounds = array<i64: 1, 8>}, {pipeline_mode = #tpu.pipeline_mode<synchronous>, transform_indices = @transform_4, window_bounds = array<i64: 1, 8>}, {transform_indices = @transform_5, window_bounds = array<i64: 512, 8>}, {transform_indices = @transform_6, window_bounds = array<i64: 512, 8>}, {transform_indices = @transform_7, window_bounds = array<i64: 8, 128>}]} {
    %c0 = arith.constant 0 : index
    %c0_0 = arith.constant 0 : index
    %0 = vector.load %arg1[%c0, %c0_0] : memref<512x4xf32, #tpu.memory_space<vmem>>, vector<512x4xf32>
    %c0_1 = arith.constant 0 : index
    %c0_2 = arith.constant 0 : index
    %1 = memref.load %arg2[%c0_1, %c0_2] : memref<1x1xf32, #tpu.memory_space<smem>>
    %2 = vector.broadcast %1 : f32 to vector<512x4xf32>
    %3 = arith.mulf %0, %2 : vector<512x4xf32>
    %4 = math.roundeven %3 : vector<512x4xf32>
    %cst = arith.constant -1.280000e+02 : f32
    %c127_i32 = arith.constant 127 : i32
    %5 = vector.broadcast %cst : f32 to vector<512x4xf32>
    %6 = arith.maximumf %5, %4 : vector<512x4xf32>
    %7 = arith.sitofp %c127_i32 : i32 to f32
    %8 = vector.broadcast %7 : f32 to vector<512x4xf32>
    %9 = arith.minimumf %8, %6 : vector<512x4xf32>
    %10 = arith.truncf %9 : vector<512x4xf32> to vector<512x4xbf16>
    %c0_3 = arith.constant 0 : index
    %c0_4 = arith.constant 0 : index
    %11 = vector.load %arg3[%c0_3, %c0_4] : memref<4x8xbf16, #tpu.memory_space<vmem>>, vector<4x8xbf16>
    %cst_5 = arith.constant dense<0.000000e+00> : vector<512x8xf32>
    %12 = tpu.matmul %10, %11, %cst_5 {dimension_numbers = #tpu.dot_dimension_numbers<[1], [0], [0], [1], [0, 0, 1, 1], [], []>} : vector<512x4xbf16>, vector<4x8xbf16>, vector<512x8xf32> -> vector<512x8xf32>
    %c0_6 = arith.constant 0 : index
    %c0_7 = arith.constant 0 : index
    %13 = vector.load %arg4[%c0_6, %c0_7] : memref<1x8xf32, #tpu.memory_space<vmem>>, vector<1x8xf32>
    %14 = vector.broadcast %13 : vector<1x8xf32> to vector<512x8xf32>
    %15 = arith.mulf %12, %14 : vector<512x8xf32>
    %c0_8 = arith.constant 0 : index
    %c0_9 = arith.constant 0 : index
    %16 = vector.load %arg5[%c0_8, %c0_9] : memref<1x8xf32, #tpu.memory_space<vmem>>, vector<1x8xf32>
    %17 = vector.broadcast %16 : vector<1x8xf32> to vector<512x8xf32>
    %18 = arith.addf %15, %17 : vector<512x8xf32>
    %c0_10 = arith.constant 0 : index
    %c0_11 = arith.constant 0 : index
    %19 = vector.load %arg6[%c0_10, %c0_11] : memref<512x8xf32, #tpu.memory_space<vmem>>, vector<512x8xf32>
    %20 = arith.addf %18, %19 : vector<512x8xf32>
    %c0_12 = arith.constant 0 : index
    %c0_13 = arith.constant 0 : index
    %21 = vector.load %arg7[%c0_12, %c0_13] : memref<512x8xf32, #tpu.memory_space<vmem>>, vector<512x8xf32>
    tpu.vector_store %arg7[%c0_12, %c0_13], %20 {strides = array<i32>} : memref<512x8xf32, #tpu.memory_space<vmem>>, vector<512x8xf32>,
    %22 = math.absf %20 : vector<512x8xf32>
    %23 = vector.shape_cast %22 : vector<512x8xf32> to vector<1x512x8xf32>
    %cst_14 = arith.constant dense<0xFF800000> : vector<1xf32>
    %24 = vector.multi_reduction <maximumf>, %23, %cst_14 [1, 2] : vector<1x512x8xf32> to vector<1xf32>
    %25 = vector.shape_cast %24 : vector<1xf32> to vector<1x1x1xf32>
    %26 = vector.extract %25[0, 0, 0] : f32 from vector<1x1x1xf32>
    %27 = vector.broadcast %26 : f32 to vector<8x128xf32>
    %c0_15 = arith.constant 0 : index
    %c0_16 = arith.constant 0 : index
    %28 = vector.load %arg8[%c0_15, %c0_16] : memref<8x128xf32, #tpu.memory_space<vmem>>, vector<8x128xf32>
    tpu.vector_store %arg8[%c0_15, %c0_16], %27 {strides = array<i32>} : memref<8x128xf32, #tpu.memory_space<vmem>>, vector<8x128xf32>,
    return
  }
  func.func @transform_0(%arg0: i32) -> (i32, i32) {
    %c0_i32 = arith.constant 0 : i32
    %c0_i32_0 = arith.constant 0 : i32
    return %arg0, %c0_i32 : i32, i32
  }
  func.func @transform_1(%arg0: i32) -> (i32, i32) {
    %c0_i32 = arith.constant 0 : i32
    %c0_i32_0 = arith.constant 0 : i32
    %c0_i32_1 = arith.constant 0 : i32
    return %c0_i32, %c0_i32_0 : i32, i32
  }
  func.func @transform_2(%arg0: i32) -> (i32, i32) {
    %c0_i32 = arith.constant 0 : i32
    %c0_i32_0 = arith.constant 0 : i32
    %c0_i32_1 = arith.constant 0 : i32
    return %c0_i32, %c0_i32_0 : i32, i32
  }
  func.func @transform_3(%arg0: i32) -> (i32, i32) {
    %c0_i32 = arith.constant 0 : i32
    %c0_i32_0 = arith.constant 0 : i32
    %c0_i32_1 = arith.constant 0 : i32
    return %c0_i32, %c0_i32_0 : i32, i32
  }
  func.func @transform_4(%arg0: i32) -> (i32, i32) {
    %c0_i32 = arith.constant 0 : i32
    %c0_i32_0 = arith.constant 0 : i32
    %c0_i32_1 = arith.constant 0 : i32
    return %c0_i32, %c0_i32_0 : i32, i32
  }
  func.func @transform_5(%arg0: i32) -> (i32, i32) {
    %c0_i32 = arith.constant 0 : i32
    %c0_i32_0 = arith.constant 0 : i32
    return %arg0, %c0_i32 : i32, i32
  }
  func.func @transform_6(%arg0: i32) -> (i32, i32) {
    %c0_i32 = arith.constant 0 : i32
    %c0_i32_0 = arith.constant 0 : i32
    return %arg0, %c0_i32 : i32, i32
  }
  func.func @transform_7(%arg0: i32) -> (i32, i32) {
    %c0_i32 = arith.constant 0 : i32
    %c0_i32_0 = arith.constant 0 : i32
    return %arg0, %c0_i32 : i32, i32
  }
}

module attributes {stable_mosaic.version = 11 : i64} {
  func.func @_quant_relu_kernel(%arg0: i32, %arg1: memref<512x8xf32, #tpu.memory_space<vmem>>, %arg2: memref<1x1xf32, #tpu.memory_space<smem>>, %arg3: memref<1x1xf32, #tpu.memory_space<smem>>, %arg4: memref<512x8xf32, #tpu.memory_space<vmem>>) attributes {dimension_semantics = [#tpu.dimension_semantics<parallel>], iteration_bounds = array<i64: 1>, scalar_prefetch = 0 : i64, scratch_operands = 0 : i64, tpu.core_type = #tpu.core_type<tc>, window_params = [{transform_indices = @transform_0, window_bounds = array<i64: 512, 8>}, {transform_indices = @transform_1, window_bounds = array<i64: 1, 1>}, {transform_indices = @transform_2, window_bounds = array<i64: 1, 1>}, {transform_indices = @transform_3, window_bounds = array<i64: 512, 8>}]} {
    %c0 = arith.constant 0 : index
    %c0_0 = arith.constant 0 : index
    %0 = vector.load %arg1[%c0, %c0_0] : memref<512x8xf32, #tpu.memory_space<vmem>>, vector<512x8xf32>
    %c0_1 = arith.constant 0 : index
    %c0_2 = arith.constant 0 : index
    %1 = memref.load %arg3[%c0_1, %c0_2] : memref<1x1xf32, #tpu.memory_space<smem>>
    %2 = vector.broadcast %1 : f32 to vector<512x8xf32>
    %3 = arith.mulf %0, %2 : vector<512x8xf32>
    %4 = math.roundeven %3 : vector<512x8xf32>
    %cst = arith.constant -1.280000e+02 : f32
    %c127_i32 = arith.constant 127 : i32
    %5 = vector.broadcast %cst : f32 to vector<512x8xf32>
    %6 = arith.maximumf %5, %4 : vector<512x8xf32>
    %7 = arith.sitofp %c127_i32 : i32 to f32
    %8 = vector.broadcast %7 : f32 to vector<512x8xf32>
    %9 = arith.minimumf %8, %6 : vector<512x8xf32>
    %c0_3 = arith.constant 0 : index
    %c0_4 = arith.constant 0 : index
    %10 = memref.load %arg2[%c0_3, %c0_4] : memref<1x1xf32, #tpu.memory_space<smem>>
    %11 = vector.broadcast %10 : f32 to vector<512x8xf32>
    %12 = arith.mulf %9, %11 : vector<512x8xf32>
    %cst_5 = arith.constant 0.000000e+00 : f32
    %13 = vector.broadcast %cst_5 : f32 to vector<512x8xf32>
    %14 = arith.maximumf %12, %13 : vector<512x8xf32>
    %c0_6 = arith.constant 0 : index
    %c0_7 = arith.constant 0 : index
    %15 = vector.load %arg4[%c0_6, %c0_7] : memref<512x8xf32, #tpu.memory_space<vmem>>, vector<512x8xf32>
    tpu.vector_store %arg4[%c0_6, %c0_7], %14 {strides = array<i32>} : memref<512x8xf32, #tpu.memory_space<vmem>>, vector<512x8xf32>,
    return
  }
  func.func @transform_0(%arg0: i32) -> (i32, i32) {
    %c0_i32 = arith.constant 0 : i32
    %c0_i32_0 = arith.constant 0 : i32
    return %arg0, %c0_i32 : i32, i32
  }
  func.func @transform_1(%arg0: i32) -> (i32, i32) {
    %c0_i32 = arith.constant 0 : i32
    %c0_i32_0 = arith.constant 0 : i32
    %c0_i32_1 = arith.constant 0 : i32
    return %c0_i32, %c0_i32_0 : i32, i32
  }
  func.func @transform_2(%arg0: i32) -> (i32, i32) {
    %c0_i32 = arith.constant 0 : i32
    %c0_i32_0 = arith.constant 0 : i32
    %c0_i32_1 = arith.constant 0 : i32
    return %c0_i32, %c0_i32_0 : i32, i32
  }
  func.func @transform_3(%arg0: i32) -> (i32, i32) {
    %c0_i32 = arith.constant 0 : i32
    %c0_i32_0 = arith.constant 0 : i32
    return %arg0, %c0_i32 : i32, i32
  }
}

</mosaic_0001>

<bundles_post_ra>
// kernel: q_res_unit_bn_forward.5
= control target key start
LH: loop header
LB: loop body
LE: loop exit
PB: predicated region body
PF: predicated region fallthrough
CT: control target
= control target key end

     0   :  { %vm136_vm0 = vcmask 31744   ;;  %s820_s0 = inlined_call_operand.vmem [shape: f32[512,4], index: 0, kind: input, shape index: {}]   ;;  %s821_s1 = inlined_call_operand.vmem [shape: f32[8,128], index: 1, kind: output, shape index: {}]  }
   0x1   :  { %v8_v0 = vld [vmem:[%s820_s0] sm:$0xff]  ;;  %v9_v1 = vld [vmem:[%s820_s0 + $0x8] sm:$0xff]  ;;  %v10_v2 = vld [vmem:[%s820_s0 + $0x10] sm:$0xff] }
   0x2   :  { %v12_v3 = vld [vmem:[%s820_s0 + $0x20] sm:$0xff]  ;;  %v13_v4 = vld [vmem:[%s820_s0 + $0x28] sm:$0xff]  ;;  %v14_v5 = vld [vmem:[%s820_s0 + $0x30] sm:$0xff]  ;;  %v72_v6 = vand.u32 2147483647, %v8_v0 }
   0x3   :  { %v11_v7 = vld [vmem:[%s820_s0 + $0x18] sm:$0xff]  ;;  %v73_v8 = vand.u32 2147483647, %v9_v1  ;;  %v16_v10 = vld [vmem:[%s820_s0 + $0x40] sm:$0xff]  ;;  %v74_v11 = vand.u32 2147483647, %v10_v2 }
   0x4   :  { %v15_v9 = vld [vmem:[%s820_s0 + $0x38] sm:$0xff]  ;;  %v76_v12 = vand.u32 2147483647, %v12_v3  ;;  %v17_v13 = vld [vmem:[%s820_s0 + $0x48] sm:$0xff]  ;;  %v18_v14 = vld [vmem:[%s820_s0 + $0x50] sm:$0xff]  ;;  %v334_v20 = vsel %vm136_vm0, %v72_v6, -inf }
   0x5   :  { %v77_v15 = vand.u32 2147483647, %v13_v4  ;;  %v78_v16 = vand.u32 2147483647, %v14_v5  ;;  %v19_v17 = vld [vmem:[%s820_s0 + $0x58] sm:$0xff]  ;;  %v20_v18 = vld [vmem:[%s820_s0 + $0x60] sm:$0xff] }
   0x6   :  { %v21_v19 = vld [vmem:[%s820_s0 + $0x68] sm:$0xff]  ;;  %v22_v21 = vld [vmem:[%s820_s0 + $0x70] sm:$0xff]  ;;  %v23_v22 = vld [vmem:[%s820_s0 + $0x78] sm:$0xff]  ;;  %v75_v24 = vand.u32 2147483647, %v11_v7  ;;  %v346_v25 = vsel %vm136_vm0, %v73_v8, -inf }
   0x7   :  { %v24_v23 = vld [vmem:[%s820_s0 + $0x80] sm:$0xff]  ;;  %v25_v26 = vld [vmem:[%s820_s0 + $0x88] sm:$0xff]  ;;  %v79_v27 = vand.u32 2147483647, %v15_v9  ;;  %v80_v28 = vand.u32 2147483647, %v16_v10 }
   0x8   :  { %v352_v29 = vsel %vm136_vm0, %v74_v11, -inf  ;;  %v355_v30 = vsel %vm136_vm0, %v76_v12, -inf  ;;  %v26_v31 = vld [vmem:[%s820_s0 + $0x90] sm:$0xff]  ;;  %v81_v32 = vand.u32 2147483647, %v17_v13  ;;  %v361_v34 = vsel %vm136_vm0, %v77_v15, -inf }
   0x9   :  { %v82_v33 = vand.u32 2147483647, %v18_v14  ;;  %v364_v35 = vsel %vm136_vm0, %v78_v16, -inf  ;;  %v369_v36 = vld [vmem:[%s820_s0 + $0x98] sm:$0xff]  ;;  %v83_v37 = vand.u32 2147483647, %v19_v17  ;;  %v142_v45 = vmax.f32 %v334_v20, %v355_v30 }
   0xa   :  { %v84_v38 = vand.u32 2147483647, %v20_v18  ;;  %v85_v39 = vand.u32 2147483647, %v21_v19  ;;  %v374_v40 = vld [vmem:[%s820_s0 + $0xa0] sm:$0xff]  ;;  %v379_v41 = vld [vmem:[%s820_s0 + $0xa8] sm:$0xff]  ;;  %v144_v50 = vmax.f32 %v346_v25, %v361_v34  ;;  %v146_v51 = vmax.f32 %v352_v29, %v364_v35 }
   0xb   :  { %v86_v42 = vand.u32 2147483647, %v22_v21  ;;  %v87_v43 = vand.u32 2147483647, %v23_v22  ;;  %v382_v44 = vsel %vm136_vm0, %v75_v24, -inf  ;;  %v389_v46 = vld [vmem:[%s820_s0 + $0xb0] sm:$0xff] }
   0xc   :  { %v394_v47 = vld [vmem:[%s820_s0 + $0xb8] sm:$0xff]  ;;  %v399_v48 = vld [vmem:[%s820_s0 + $0xc0] sm:$0xff]  ;;  %v88_v49 = vand.u32 2147483647, %v24_v23  ;;  %v406_v52 = vsel %vm136_vm0, %v79_v27, -inf  ;;  %v411_v53 = vld [vmem:[%s820_s0 + $0xc8] sm:$0xff] }
   0xd   :  { %v416_v54 = vld [vmem:[%s820_s0 + $0xd0] sm:$0xff]  ;;  %v421_v55 = vld [vmem:[%s820_s0 + $0xd8] sm:$0xff]  ;;  %v89_v56 = vand.u32 2147483647, %v25_v26  ;;  %v149_v57 = vsel %vm136_vm0, %v80_v28, -inf  ;;  %v151_v58 = vsel %vm136_vm0, %v81_v32, -inf  ;;  %v148_v23 = vmax.f32 %v382_v44, %v406_v52 }
   0xe   :  { %v153_v59 = vsel %vm136_vm0, %v82_v33, -inf  ;;  %v429_v60 = vld [vmem:[%s820_s0 + $0xe0] sm:$0xff]  ;;  %v434_v61 = vld [vmem:[%s820_s0 + $0xe8] sm:$0xff]  ;;  %v439_v62 = vld [vmem:[%s820_s0 + $0xf0] sm:$0xff]  ;;  %v90_v63 = vand.u32 2147483647, %v26_v31  ;;  %v150_v30 = vmax.f32 %v142_v45, %v149_v57 }
   0xf   :  { %v155_v0 = vsel %vm136_vm0, %v83_v37, -inf  ;;  %v443_v1 = vsel %vm136_vm0, %v84_v38, -inf  ;;  %v446_v2 = vsel %vm136_vm0, %v85_v39, -inf  ;;  %v451_v3 = vld [vmem:[%s820_s0 + $0xf8] sm:$0xff]  ;;  %v456_v4 = vld [vmem:[%s820_s0 + $0x100] sm:$0xff]  ;;  %v461_v5 = vld [vmem:[%s820_s0 + $0x108] sm:$0xff]  ;;  %v152_v38 = vmax.f32 %v144_v50, %v151_v58 }
  0x10   :  { %v91_v6 = vand.u32 2147483647, %v369_v36  ;;  %v465_v7 = vsel %vm136_vm0, %v86_v42, -inf  ;;  %v468_v8 = vsel %vm136_vm0, %v87_v43, -inf  ;;  %v471_v9 = vsel %vm136_vm0, %v88_v49, -inf  ;;  %v476_v10 = vld [vmem:[%s820_s0 + $0x110] sm:$0xff] }
  0x11   :  { %v481_v11 = vld [vmem:[%s820_s0 + $0x118] sm:$0xff]  ;;  %v486_v12 = vld [vmem:[%s820_s0 + $0x120] sm:$0xff]  ;;  %v491_v15 = vsel %vm136_vm0, %v89_v56, -inf  ;;  %v494_v16 = vsel %vm136_vm0, %v90_v63, -inf  ;;  %v499_v17 = vld [vmem:[%s820_s0 + $0x128] sm:$0xff]  ;;  %v154_v50 = vmax.f32 %v146_v51, %v153_v59  ;;  %v156_v59 = vmax.f32 %v148_v23, %v155_v0 }
  0x12   :  { %v504_v18 = vld [vmem:[%s820_s0 + $0x130] sm:$0xff]  ;;  %v509_v19 = vld [vmem:[%s820_s0 + $0x138] sm:$0xff]  ;;  %v519_v24 = vld [vmem:[%s820_s0 + $0x140] sm:$0xff]  ;;  %v158_v23 = vmax.f32 %v150_v30, %v443_v1  ;;  %v160_v30 = vmax.f32 %v152_v38, %v446_v2  ;;  %v825_v36 = vand.u32 2147483647, %v394_v47 }
  0x13   :  { %v524_v25 = vld [vmem:[%s820_s0 + $0x148] sm:$0xff]  ;;  %v529_v26 = vld [vmem:[%s820_s0 + $0x150] sm:$0xff]  ;;  %v537_v31 = vld [vmem:[%s820_s0 + $0x158] sm:$0xff]  ;;  %v162_v38 = vmax.f32 %v154_v50, %v465_v7  ;;  %v164_v50 = vmax.f32 %v156_v59, %v468_v8  ;;  %v822_v59 = vand.u32 2147483647, %v374_v40 }
  0x14   :  { %v542_v32 = vld [vmem:[%s820_s0 + $0x160] sm:$0xff]  ;;  %v547_v33 = vld [vmem:[%s820_s0 + $0x168] sm:$0xff]  ;;  %v555_v39 = vld [vmem:[%s820_s0 + $0x170] sm:$0xff]  ;;  %v166_v20 = vmax.f32 %v158_v23, %v471_v9  ;;  %v168_v2 = vmax.f32 %v160_v30, %v491_v15  ;;  %v171_v30 = vsel %vm136_vm0, %v91_v6, -inf  ;;  %v824_v23 = vand.u32 2147483647, %v389_v46 }
  0x15   :  { %v560_v42 = vld [vmem:[%s820_s0 + $0x178] sm:$0xff]  ;;  %v565_v43 = vld [vmem:[%s820_s0 + $0x180] sm:$0xff]  ;;  %v573_v52 = vld [vmem:[%s820_s0 + $0x188] sm:$0xff]  ;;  %v170_v22 = vmax.f32 %v162_v38, %v494_v16  ;;  %v173_v16 = vsel %vm136_vm0, %v822_v59, -inf  ;;  %v823_v38 = vand.u32 2147483647, %v379_v41  ;;  %v172_v21 = vmax.f32 %v164_v50, %v171_v30 }
  0x16   :  { %v578_v56 = vld [vmem:[%s820_s0 + $0x190] sm:$0xff]  ;;  %v583_v57 = vld [vmem:[%s820_s0 + $0x198] sm:$0xff]  ;;  %v591_v49 = vld [vmem:[%s820_s0 + $0x1a0] sm:$0xff]  ;;  %v121_v27 = vand.u32 2147483647, %v573_v52  ;;  %v177_v13 = vsel %vm136_vm0, %v824_v23, -inf  ;;  %v174_v1 = vmax.f32 %v166_v20, %v173_v16 }
  0x17   :  { %v596_v45 = vld [vmem:[%s820_s0 + $0x1a8] sm:$0xff]  ;;  %v601_v44 = vld [vmem:[%s820_s0 + $0x1b0] sm:$0xff]  ;;  %v610_v58 = vld [vmem:[%s820_s0 + $0x1b8] sm:$0xff]  ;;  %v124_v14 = vand.u32 2147483647, %v591_v49  ;;  %v175_v9 = vsel %vm136_vm0, %v823_v38, -inf  ;;  %v178_v15 = vmax.f32 %v170_v22, %v177_v13 }
  0x18   :  { %v615_v37 = vld [vmem:[%s820_s0 + $0x1c0] sm:$0xff]  ;;  %v620_v63 = vld [vmem:[%s820_s0 + $0x1c8] sm:$0xff]  ;;  %v629_v35 = vld [vmem:[%s820_s0 + $0x1d0] sm:$0xff]  ;;  %v127_v7 = vand.u32 2147483647, %v610_v58  ;;  %v176_v8 = vmax.f32 %v168_v2, %v175_v9  ;;  %v179_v6 = vsel %vm136_vm0, %v825_v36, -inf }
  0x19   :  { %v634_v34 = vld [vmem:[%s820_s0 + $0x1d8] sm:$0xff]  ;;  %v639_v51 = vld [vmem:[%s820_s0 + $0x1e0] sm:$0xff]  ;;  %v648_v29 = vld [vmem:[%s820_s0 + $0x1e8] sm:$0xff]  ;;  %v826_v40 = vand.u32 2147483647, %v399_v48  ;;  %v180_v50 = vmax.f32 %v172_v21, %v179_v6 }
  0x1a   :  { %v653_v28 = vld [vmem:[%s820_s0 + $0x1f0] sm:$0xff]  ;;  %v658_v0 = vld [vmem:[%s820_s0 + $0x1f8] sm:$0xff]  ;;  %v827_v41 = vand.u32 2147483647, %v411_v53  ;;  %v828_v46 = vand.u32 2147483647, %v416_v54 }
  0x1b   :  { %v181_v59 = vsel %vm136_vm0, %v826_v40, -inf  ;;  %v829_v47 = vand.u32 2147483647, %v421_v55  ;;  %v830_v48 = vand.u32 2147483647, %v429_v60 }
  0x1c   :  { %v183_v38 = vsel %vm136_vm0, %v827_v41, -inf  ;;  %v185_v23 = vsel %vm136_vm0, %v828_v46, -inf  ;;  %v182_v20 = vmax.f32 %v174_v1, %v181_v59  ;;  %v831_v53 = vand.u32 2147483647, %v434_v61 }
  0x1d   :  { %v184_v2 = vmax.f32 %v176_v8, %v183_v38  ;;  %v186_v13 = vmax.f32 %v178_v15, %v185_v23  ;;  %v187_v22 = vsel %vm136_vm0, %v829_v47, -inf  ;;  %v189_v9 = vsel %vm136_vm0, %v830_v48, -inf }
  0x1e   :  { %v191_v30 = vsel %vm136_vm0, %v831_v53, -inf  ;;  %v832_v54 = vand.u32 2147483647, %v439_v62  ;;  %v188_v21 = vmax.f32 %v180_v50, %v187_v22  ;;  %v190_v1 = vmax.f32 %v182_v20, %v189_v9 }
  0x1f   :  { %v192_v8 = vmax.f32 %v184_v2, %v191_v30  ;;  %v833_v55 = vand.u32 2147483647, %v451_v3  ;;  %v834_v60 = vand.u32 2147483647, %v456_v4  ;;  %v835_v61 = vand.u32 2147483647, %v461_v5 }
  0x20   :  { %v193_v16 = vsel %vm136_vm0, %v832_v54, -inf  ;;  %v836_v62 = vand.u32 2147483647, %v476_v10  ;;  %v837_v3 = vand.u32 2147483647, %v481_v11 }
  0x21   :  { %v194_v15 = vmax.f32 %v186_v13, %v193_v16  ;;  %v195_v36 = vsel %vm136_vm0, %v833_v55, -inf  ;;  %v197_v6 = vsel %vm136_vm0, %v834_v60, -inf  ;;  %v199_v40 = vsel %vm136_vm0, %v835_v61, -inf }
  0x22   :  { %v201_v59 = vsel %vm136_vm0, %v836_v62, -inf  ;;  %v196_v41 = vmax.f32 %v188_v21, %v195_v36  ;;  %v198_v38 = vmax.f32 %v190_v1, %v197_v6  ;;  %v200_v46 = vmax.f32 %v192_v8, %v199_v40 }
  0x23   :  { %v202_v23 = vmax.f32 %v194_v15, %v201_v59  ;;  %v203_v50 = vsel %vm136_vm0, %v837_v3, -inf  ;;  %v838_v4 = vand.u32 2147483647, %v486_v12  ;;  %v839_v5 = vand.u32 2147483647, %v499_v17 }
  0x24   :  { %v840_v10 = vand.u32 2147483647, %v504_v18  ;;  %v204_v47 = vmax.f32 %v196_v41, %v203_v50  ;;  %v841_v11 = vand.u32 2147483647, %v509_v19  ;;  %v842_v12 = vand.u32 2147483647, %v519_v24 }
  0x25   :  { %v205_v20 = vsel %vm136_vm0, %v838_v4, -inf  ;;  %v207_v2 = vsel %vm136_vm0, %v839_v5, -inf  ;;  %v843_v17 = vand.u32 2147483647, %v524_v25  ;;  %v844_v18 = vand.u32 2147483647, %v529_v26 }
  0x26   :  { %v209_v13 = vsel %vm136_vm0, %v840_v10, -inf  ;;  %v206_v22 = vmax.f32 %v198_v38, %v205_v20  ;;  %v208_v48 = vmax.f32 %v200_v46, %v207_v2  ;;  %v211_v53 = vsel %vm136_vm0, %v841_v11, -inf }
  0x27   :  { %v210_v9 = vmax.f32 %v202_v23, %v209_v13  ;;  %v213_v30 = vsel %vm136_vm0, %v842_v12, -inf  ;;  %v215_v54 = vsel %vm136_vm0, %v843_v17, -inf  ;;  %v217_v16 = vsel %vm136_vm0, %v844_v18, -inf }
  0x28   :  { %v212_v21 = vmax.f32 %v204_v47, %v211_v53  ;;  %v214_v1 = vmax.f32 %v206_v22, %v213_v30  ;;  %v216_v8 = vmax.f32 %v208_v48, %v215_v54  ;;  %v845_v19 = vand.u32 2147483647, %v537_v31 }
  0x29   :  { %v218_v15 = vmax.f32 %v210_v9, %v217_v16  ;;  %v846_v24 = vand.u32 2147483647, %v542_v32  ;;  %v847_v25 = vand.u32 2147483647, %v547_v33  ;;  %v848_v26 = vand.u32 2147483647, %v555_v39 }
  0x2a   :  { %v219_v55 = vsel %vm136_vm0, %v845_v19, -inf  ;;  %v849_v31 = vand.u32 2147483647, %v560_v42  ;;  %v850_v32 = vand.u32 2147483647, %v565_v43  ;;  %v231_v33 = vsel %vm136_vm0, %v121_v27, -inf }
  0x2b   :  { %v221_v36 = vsel %vm136_vm0, %v846_v24, -inf  ;;  %v223_v60 = vsel %vm136_vm0, %v847_v25, -inf  ;;  %v225_v6 = vsel %vm136_vm0, %v848_v26, -inf  ;;  %v220_v61 = vmax.f32 %v212_v21, %v219_v55 }
  0x2c   :  { %v222_v40 = vmax.f32 %v214_v1, %v221_v36  ;;  %v224_v62 = vmax.f32 %v216_v8, %v223_v60  ;;  %v226_v59 = vmax.f32 %v218_v15, %v225_v6  ;;  %v227_v41 = vsel %vm136_vm0, %v849_v31, -inf }
  0x2d   :  { %v229_v38 = vsel %vm136_vm0, %v850_v32, -inf  ;;  %v851_v39 = vand.u32 2147483647, %v578_v56  ;;  %v228_v23 = vmax.f32 %v220_v61, %v227_v41  ;;  %v852_v42 = vand.u32 2147483647, %v583_v57 }
  0x2e   :  { %v230_v3 = vmax.f32 %v222_v40, %v229_v38  ;;  %v232_v50 = vmax.f32 %v224_v62, %v231_v33  ;;  %v237_v43 = vsel %vm136_vm0, %v124_v14, -inf  ;;  %v853_v52 = vand.u32 2147483647, %v596_v45 }
  0x2f   :  { %v233_v46 = vsel %vm136_vm0, %v851_v39, -inf  ;;  %v235_v20 = vsel %vm136_vm0, %v852_v42, -inf  ;;  %v854_v56 = vand.u32 2147483647, %v601_v44  ;;  %v243_v57 = vsel %vm136_vm0, %v127_v7, -inf }
  0x30   :  { %v234_v4 = vmax.f32 %v226_v59, %v233_v46  ;;  %v239_v27 = vsel %vm136_vm0, %v853_v52, -inf  ;;  %v236_v2 = vmax.f32 %v228_v23, %v235_v20  ;;  %v238_v10 = vmax.f32 %v230_v3, %v237_v43 }
  0x31   :  { %v241_v5 = vsel %vm136_vm0, %v854_v56, -inf  ;;  %v240_v13 = vmax.f32 %v232_v50, %v239_v27  ;;  %v855_v49 = vand.u32 2147483647, %v615_v37  ;;  %v856_v45 = vand.u32 2147483647, %v620_v63 }
  0x32   :  { %v242_v47 = vmax.f32 %v234_v4, %v241_v5  ;;  %v857_v44 = vand.u32 2147483647, %v629_v35  ;;  %v244_v9 = vmax.f32 %v236_v2, %v243_v57  ;;  %v858_v58 = vand.u32 2147483647, %v634_v34 }
  0x33   :  { %v245_v14 = vsel %vm136_vm0, %v855_v49, -inf  ;;  %v247_v22 = vsel %vm136_vm0, %v856_v45, -inf  ;;  %v859_v37 = vand.u32 2147483647, %v639_v51  ;;  %v860_v63 = vand.u32 2147483647, %v648_v29 }
  0x34   :  { %v249_v48 = vsel %vm136_vm0, %v857_v44, -inf  ;;  %v246_v11 = vmax.f32 %v238_v10, %v245_v14  ;;  %v248_v53 = vmax.f32 %v240_v13, %v247_v22  ;;  %v251_v7 = vsel %vm136_vm0, %v858_v58, -inf }
  0x35   :  { %v250_v12 = vmax.f32 %v242_v47, %v249_v48  ;;  %v253_v30 = vsel %vm136_vm0, %v859_v37, -inf  ;;  %v255_v17 = vsel %vm136_vm0, %v860_v63, -inf  ;;  %v861_v35 = vand.u32 2147483647, %v653_v28 }
  0x36   :  { %v252_v18 = vmax.f32 %v244_v9, %v251_v7  ;;  %v254_v16 = vmax.f32 %v246_v11, %v253_v30  ;;  %v256_v21 = vmax.f32 %v248_v53, %v255_v17  ;;  %v862_v34 = vand.u32 2147483647, %v658_v0 }
  0x37   :  { %v257_v54 = vsel %vm136_vm0, %v861_v35, -inf }
  0x38   :  { %v258_v1 = vmax.f32 %v250_v12, %v257_v54  ;;  %v259_v8 = vsel %vm136_vm0, %v862_v34, -inf  ;;  %v261_v51 = vmax.f32 %v254_v16, %v256_v21 }
  0x39   :  { %v260_v15 = vmax.f32 %v252_v18, %v259_v8 }
  0x3b   :  { %v262_v19 = vmax.f32 %v258_v1, %v260_v15 }
  0x3d   :  { %v263_v55 = vmax.f32 %v261_v51, %v262_v19 }
  0x3f   :  { %264 = vmax.xlane.f32.xlu0 %v263_v55 }
  0xcc   :  { %v265_v29 = vpop.xlane.xlu0 %264 }
  0xcd   :  { %v266_v24 = vrot.slane %v265_v29, 4 }
  0xcf   :  { %v267_v36 = vmax.f32 %v265_v29, %v266_v24 }
  0xd1   :  { %v268_v25 = vrot.slane %v267_v36, 2 }
  0xd3   :  { %v269_v28 = vmax.f32 %v267_v36, %v268_v25 }
  0xd5   :  { %v270_v60 = vrot.slane %v269_v28, 1 }
  0xd7   :  { %v271_v26 = vmax.f32 %v269_v28, %v270_v60 }
  0xd9   :  { %279 = vpush %v271_v26 }
 0x10a   :  { %s280_s0 = spop %279 }
 0x10b   :  { %v273_v6 = vstv %s280_s0 }
 0x10c   :  { %274 = vst [vmem:[%s821_s1] sm:$0xff] %v273_v6 }

// kernel: q_res_unit_bn_forward.6
= control target key start
LH: loop header
LB: loop body
LE: loop exit
PB: predicated region body
PF: predicated region fallthrough
CT: control target
= control target key end

     0   :  { %vm486_vm0 = vcmask 1041408   ;;  %vm389_vm1 = vcmask 31744   ;;  %vm1484_vm2 = vcmask 64512   ;;  %s3528_s2 = inlined_call_operand.vmem [shape: bf16[4,4], index: 2, kind: input, shape index: {}]   ;;  %s3529_s0 = inlined_call_operand.vmem [shape: f32[512,4], index: 0, kind: input, shape index: {}]   ;;  %s3530_s1 = inlined_call_operand.<no memory space> [shape: f32[1,1], index: 1, kind: input, shape index: {}]   ;;  %s3531_s5 = inlined_call_operand.vmem [shape: bf16[4,8], index: 5, kind: input, shape index: {}]   ;;  %s3532_s3 = inlined_call_operand.vmem [shape: f32[1,4], index: 3, kind: input, shape index: {}]   ;;  %s3533_s4 = inlined_call_operand.vmem [shape: f32[1,4], index: 4, kind: input, shape index: {}]   ;;  %s3534_s8 = inlined_call_operand.vmem [shape: f32[512,4], index: 8, kind: output, shape index: {0}]   ;;  %s3535_s6 = inlined_call_operand.vmem [shape: f32[1,8], index: 6, kind: input, shape index: {}]   ;;  %s3536_s7 = inlined_call_operand.vmem [shape: f32[1,8], index: 7, kind: input, shape index: {}]   ;;  %s3537_s9 = inlined_call_operand.vmem [shape: f32[512,8], index: 9, kind: output, shape index: {1}]   ;;  %s3538_s10 = inlined_call_operand.vmem [shape: f32[8,128], index: 10, kind: output, shape index: {2}]  }
   0x1   :  { %v388_v0 = vld [vmem:[%s3528_s2] sm:$0x3]  ;;  %v35_v2 = vld [vmem:[%s3529_s0 + $0x8] sm:$0xff]  ;;  %v2168_v3 = vstv %s3530_s1  ;;  %v36_v7 = vld [vmem:[%s3529_s0 + $0x10] sm:$0xff] }
   0x2   :  { %v34_v1 = vld [vmem:[%s3529_s0] sm:$0xff]  ;;  %2029 = vmatprep.subr.msk.bf16.mxu0 %vm486_vm0, %v388_v0  ;;  %v488_v4 = vsel %vm486_vm0, %v388_v0, 0  ;;  %v101_v6 = vmul.f32 %v2168_v3, %v35_v2  ;;  %v37_v8 = vld [vmem:[%s3529_s0 + $0x18] sm:$0xff]  ;;  %v102_v10 = vmul.f32 %v2168_v3, %v36_v7  ;;  %v39_v12 = vld [vmem:[%s3529_s0 + $0x28] sm:$0xff] }
   0x3   :  { %v100_v5 = vmul.f32 %v2168_v3, %v34_v1  ;;  %v38_v9 = vld [vmem:[%s3529_s0 + $0x20] sm:$0xff]  ;;  %1898 = vmatpush3.bf16.msra.mxu0 %v488_v4  ;;  %v103_v11 = vmul.f32 %v2168_v3, %v37_v8  ;;  %v40_v14 = vld [vmem:[%s3529_s0 + $0x30] sm:$0xff]  ;;  %v41_v15 = vld [vmem:[%s3529_s0 + $0x38] sm:$0xff]  ;;  %v105_v18 = vmul.f32 %v2168_v3, %v39_v12 }
   0x4   :  { %v104_v13 = vmul.f32 %v2168_v3, %v38_v9  ;;  %v2032_v17 = vround.rtne.f32 %v101_v6  ;;  %v106_v19 = vmul.f32 %v2168_v3, %v40_v14  ;;  %v2033_v20 = vround.rtne.f32 %v102_v10  ;;  %v42_v32 = vld [vmem:[%s3529_s0 + $0x40] sm:$0xff]  ;;  %v43_v37 = vld [vmem:[%s3529_s0 + $0x48] sm:$0xff]  ;;  %v44_v38 = vld [vmem:[%s3529_s0 + $0x50] sm:$0xff] }
   0x5   :  { %v2031_v16 = vround.rtne.f32 %v100_v5  ;;  %v2034_v21 = vround.rtne.f32 %v103_v11  ;;  %v107_v23 = vmul.f32 %v2168_v3, %v41_v15  ;;  %v2036_v26 = vround.rtne.f32 %v105_v18  ;;  %v45_v43 = vld [vmem:[%s3529_s0 + $0x58] sm:$0xff]  ;;  %v46_v44 = vld [vmem:[%s3529_s0 + $0x60] sm:$0xff]  ;;  %v47_v48 = vld [vmem:[%s3529_s0 + $0x68] sm:$0xff] }
   0x6   :  { %v2035_v22 = vround.rtne.f32 %v104_v13  ;;  %v229_v25 = vmax.f32 %v2032_v17, -128.0  ;;  %v2037_v27 = vround.rtne.f32 %v106_v19  ;;  %v230_v28 = vmax.f32 %v2033_v20, -128.0  ;;  %v48_v61 = vld [vmem:[%s3529_s0 + $0x70] sm:$0xff]  ;;  %v49_v62 = vld [vmem:[%s3529_s0 + $0x78] sm:$0xff]  ;;  %v50_v5 = vld [vmem:[%s3529_s0 + $0x80] sm:$0xff] }
   0x7   :  { %v228_v24 = vmax.f32 %v2031_v16, -128.0  ;;  %v231_v29 = vmax.f32 %v2034_v21, -128.0  ;;  %v2038_v31 = vround.rtne.f32 %v107_v23  ;;  %v233_v35 = vmax.f32 %v2036_v26, -128.0  ;;  %v51_v9 = vld [vmem:[%s3529_s0 + $0x88] sm:$0xff] }
   0x8   :  { %v232_v30 = vmax.f32 %v2035_v22, -128.0  ;;  %v293_v34 = vmin.f32 %v229_v25, 127.0  ;;  %v234_v36 = vmax.f32 %v2037_v27, -128.0  ;;  %v294_v39 = vmin.f32 %v230_v28, 127.0  ;;  %v52_v27 = vld [vmem:[%s3529_s0 + $0x90] sm:$0xff]  ;;  %v53_v28 = vld [vmem:[%s3529_s0 + $0x98] sm:$0xff] }
   0x9   :  { %v292_v33 = vmin.f32 %v228_v24, 127.0  ;;  %v295_v40 = vmin.f32 %v231_v29, 127.0  ;;  %v235_v42 = vmax.f32 %v2038_v31, -128.0  ;;  %v297_v46 = vmin.f32 %v233_v35, 127.0  ;;  %v54_v29 = vld [vmem:[%s3529_s0 + $0xa0] sm:$0xff] }
   0xa   :  { %v296_v41 = vmin.f32 %v232_v30, 127.0  ;;  %v108_v47 = vmul.f32 %v2168_v3, %v42_v32  ;;  %v298_v50 = vmin.f32 %v234_v36, 127.0  ;;  %v109_v51 = vmul.f32 %v2168_v3, %v43_v37  ;;  %v55_v30 = vld [vmem:[%s3529_s0 + $0xa8] sm:$0xff]  ;;  %v2271_v31 = vld [vmem:[%s3531_s5] sm:$0x3] }
   0xb   :  { %v356_v45 = vpack.c.bf16 %v293_v34, %v292_v33  ;;  %v2217_v49 = vpack.c.bf16 %v295_v40, %v294_v39  ;;  %v110_v52 = vmul.f32 %v2168_v3, %v44_v38  ;;  %v111_v55 = vmul.f32 %v2168_v3, %v45_v43  ;;  %2030 = vmatprep.subr.msk.bf16.mxu1 %vm486_vm0, %v2271_v31 }
   0xc   :  { %v2222_v53 = vpack.c.bf16 %v297_v46, %v296_v41  ;;  %v2039_v54 = vround.rtne.f32 %v108_v47  ;;  %v112_v56 = vmul.f32 %v2168_v3, %v46_v44  ;;  %v299_v57 = vmin.f32 %v235_v42, 127.0  ;;  %v56_v47 = vld [vmem:[%s3529_s0 + $0xb0] sm:$0xff] }
   0xd   :  { %1899 = vmatprep.mubr.msk.bf16.mxu0 %vm389_vm1, %v356_v45  ;;  %1965 = vmatprep.mubr.msk.bf16.mxu1 %vm389_vm1, %v356_v45  ;;  %v2040_v58 = vround.rtne.f32 %v109_v51  ;;  %v2041_v59 = vround.rtne.f32 %v110_v52  ;;  %v113_v60 = vmul.f32 %v2168_v3, %v47_v48  ;;  %v2042_v0 = vround.rtne.f32 %v111_v55  ;;  %v57_v52 = vld [vmem:[%s3529_s0 + $0xb8] sm:$0xff]  ;;  %v59_v55 = vld [vmem:[%s3529_s0 + $0xc8] sm:$0xff] }
   0xe   :  { %1900 = vmatmul.mubr.msk.bf16.vlgmr.msra.gmra.mrb[0].mxu0 %vm389_vm1, %v2217_v49  ;;  %v236_v63 = vmax.f32 %v2039_v54, -128.0  ;;  %v2043_v1 = vround.rtne.f32 %v112_v56  ;;  %v114_v7 = vmul.f32 %v2168_v3, %v48_v61  ;;  %v115_v8 = vmul.f32 %v2168_v3, %v49_v62  ;;  %v58_v54 = vld [vmem:[%s3529_s0 + $0xc0] sm:$0xff] }
   0xf   :  { %1903 = vmatprep.mubr.msk.bf16.mxu0 %vm389_vm1, %v2222_v53  ;;  %v237_v2 = vmax.f32 %v2040_v58, -128.0  ;;  %v2044_v4 = vround.rtne.f32 %v113_v60  ;;  %v2246_v10 = vpack.c.bf16 %v299_v57, %v298_v50  ;;  %v238_v12 = vmax.f32 %v2041_v59, -128.0 }
  0x10   :  { %v300_v6 = vmin.f32 %v236_v63, 127.0  ;;  %v239_v13 = vmax.f32 %v2042_v0, -128.0  ;;  %v240_v14 = vmax.f32 %v2043_v1, -128.0  ;;  %v116_v16 = vmul.f32 %v2168_v3, %v50_v5 }
  0x11   :  { %v301_v11 = vmin.f32 %v237_v2, 127.0  ;;  %v241_v15 = vmax.f32 %v2044_v4, -128.0  ;;  %v117_v18 = vmul.f32 %v2168_v3, %v51_v9  ;;  %v2045_v19 = vround.rtne.f32 %v114_v7  ;;  %v60_v7 = vld [vmem:[%s3529_s0 + $0xd0] sm:$0xff] }
  0x12   :  { %v2046_v20 = vround.rtne.f32 %v115_v8  ;;  %v302_v21 = vmin.f32 %v238_v12, 127.0  ;;  %v303_v22 = vmin.f32 %v239_v13, 127.0  ;;  %v304_v23 = vmin.f32 %v240_v14, 127.0  ;;  %v61_v8 = vld [vmem:[%s3529_s0 + $0xd8] sm:$0xff]  ;;  %v62_v14 = vld [vmem:[%s3529_s0 + $0xe0] sm:$0xff] }
  0x13   :  { %v2249_v17 = vpack.c.bf16 %v301_v11, %v300_v6  ;;  %v305_v24 = vmin.f32 %v241_v15, 127.0  ;;  %v2047_v25 = vround.rtne.f32 %v116_v16  ;;  %v2048_v26 = vround.rtne.f32 %v117_v18  ;;  %v63_v15 = vld [vmem:[%s3529_s0 + $0xe8] sm:$0xff] }
  0x14   :  { %v242_v32 = vmax.f32 %v2045_v19, -128.0  ;;  %v243_v33 = vmax.f32 %v2046_v20, -128.0  ;;  %v2275_v34 = vpack.c.bf16 %v303_v22, %v302_v21  ;;  %v118_v35 = vmul.f32 %v2168_v3, %v52_v27 }
  0x15   :  { %v119_v36 = vmul.f32 %v2168_v3, %v53_v28  ;;  %v120_v37 = vmul.f32 %v2168_v3, %v54_v29  ;;  %v2280_v38 = vpack.c.bf16 %v305_v24, %v304_v23  ;;  %v244_v39 = vmax.f32 %v2047_v25, -128.0 }
  0x16   :  { %1904 = vmatmul.mubr.msk.bf16.gmra.mrb[4].mxu0 %vm389_vm1, %v2246_v10  ;;  %v245_v40 = vmax.f32 %v2048_v26, -128.0  ;;  %v121_v41 = vmul.f32 %v2168_v3, %v55_v30  ;;  %v306_v42 = vmin.f32 %v242_v32, 127.0  ;;  %v307_v43 = vmin.f32 %v243_v33, 127.0  ;;  %v64_v33 = vld [vmem:[%s3529_s0 + $0xf0] sm:$0xff] }
  0x17   :  { %1907 = vmatprep.mubr.msk.bf16.mxu0 %vm389_vm1, %v2249_v17  ;;  %v2049_v44 = vround.rtne.f32 %v118_v35  ;;  %v2050_v45 = vround.rtne.f32 %v119_v36  ;;  %v2051_v46 = vround.rtne.f32 %v120_v37  ;;  %v308_v48 = vmin.f32 %v244_v39, 127.0  ;;  %v65_v39 = vld [vmem:[%s3529_s0 + $0xf8] sm:$0xff] }
  0x18   :  { %v309_v50 = vmin.f32 %v245_v40, 127.0  ;;  %v2052_v51 = vround.rtne.f32 %v121_v41  ;;  %v2299_v56 = vpack.c.bf16 %v307_v43, %v306_v42  ;;  %v122_v57 = vmul.f32 %v2168_v3, %v56_v47  ;;  %v66_v40 = vld [vmem:[%s3529_s0 + $0x100] sm:$0xff]  ;;  %v67_v41 = vld [vmem:[%s3529_s0 + $0x108] sm:$0xff] }
  0x19   :  { %v246_v58 = vmax.f32 %v2049_v44, -128.0  ;;  %v247_v59 = vmax.f32 %v2050_v45, -128.0  ;;  %v248_v60 = vmax.f32 %v2051_v46, -128.0  ;;  %v123_v61 = vmul.f32 %v2168_v3, %v57_v52 }
  0x1a   :  { %v2303_v62 = vpack.c.bf16 %v309_v50, %v308_v48  ;;  %v249_v63 = vmax.f32 %v2052_v51, -128.0  ;;  %v124_v0 = vmul.f32 %v2168_v3, %v58_v54  ;;  %v125_v1 = vmul.f32 %v2168_v3, %v59_v55 }
  0x1b   :  { %v310_v2 = vmin.f32 %v246_v58, 127.0  ;;  %v311_v4 = vmin.f32 %v247_v59, 127.0  ;;  %v2053_v5 = vround.rtne.f32 %v122_v57  ;;  %v2054_v6 = vround.rtne.f32 %v123_v61 }
  0x1c   :  { %v312_v9 = vmin.f32 %v248_v60, 127.0  ;;  %v313_v11 = vmin.f32 %v249_v63, 127.0  ;;  %v2055_v12 = vround.rtne.f32 %v124_v0  ;;  %v2056_v13 = vround.rtne.f32 %v125_v1  ;;  %v68_v0 = vld [vmem:[%s3529_s0 + $0x110] sm:$0xff]  ;;  %v69_v1 = vld [vmem:[%s3529_s0 + $0x118] sm:$0xff] }
  0x1d   :  { %v126_v16 = vmul.f32 %v2168_v3, %v60_v7  ;;  %v127_v18 = vmul.f32 %v2168_v3, %v61_v8  ;;  %v2325_v19 = vpack.c.bf16 %v311_v4, %v310_v2  ;;  %v250_v20 = vmax.f32 %v2053_v5, -128.0  ;;  %v70_v2 = vld [vmem:[%s3529_s0 + $0x120] sm:$0xff]  ;;  %v71_v4 = vld [vmem:[%s3529_s0 + $0x128] sm:$0xff] }
  0x1e   :  { %1908 = vmatmul.mubr.msk.bf16.gmra.mrb[8].mxu0 %vm389_vm1, %v2275_v34  ;;  %v251_v21 = vmax.f32 %v2054_v6, -128.0  ;;  %v128_v22 = vmul.f32 %v2168_v3, %v62_v14  ;;  %v2328_v23 = vpack.c.bf16 %v313_v11, %v312_v9  ;;  %v252_v24 = vmax.f32 %v2055_v12, -128.0 }
  0x1f   :  { %1911 = vmatprep.mubr.msk.bf16.mxu0 %vm389_vm1, %v2280_v38  ;;  %v253_v25 = vmax.f32 %v2056_v13, -128.0  ;;  %v129_v26 = vmul.f32 %v2168_v3, %v63_v15  ;;  %v2057_v27 = vround.rtne.f32 %v126_v16  ;;  %v2058_v28 = vround.rtne.f32 %v127_v18 }
  0x20   :  { %v314_v29 = vmin.f32 %v250_v20, 127.0  ;;  %v315_v30 = vmin.f32 %v251_v21, 127.0  ;;  %v2059_v32 = vround.rtne.f32 %v128_v22  ;;  %v316_v35 = vmin.f32 %v252_v24, 127.0  ;;  %v72_v24 = vld [vmem:[%s3529_s0 + $0x130] sm:$0xff] }
  0x21   :  { %v317_v36 = vmin.f32 %v253_v25, 127.0  ;;  %v2060_v37 = vround.rtne.f32 %v129_v26  ;;  %v254_v42 = vmax.f32 %v2057_v27, -128.0  ;;  %v255_v43 = vmax.f32 %v2058_v28, -128.0  ;;  %v73_v25 = vld [vmem:[%s3529_s0 + $0x138] sm:$0xff] }
  0x22   :  { %v130_v44 = vmul.f32 %v2168_v3, %v64_v33  ;;  %v2348_v45 = vpack.c.bf16 %v315_v30, %v314_v29  ;;  %v256_v46 = vmax.f32 %v2059_v32, -128.0  ;;  %v131_v47 = vmul.f32 %v2168_v3, %v65_v39  ;;  %v74_v29 = vld [vmem:[%s3529_s0 + $0x140] sm:$0xff]  ;;  %v75_v30 = vld [vmem:[%s3529_s0 + $0x148] sm:$0xff] }
  0x23   :  { %v2351_v48 = vpack.c.bf16 %v317_v36, %v316_v35  ;;  %v257_v50 = vmax.f32 %v2060_v37, -128.0  ;;  %v132_v51 = vmul.f32 %v2168_v3, %v66_v40  ;;  %v133_v52 = vmul.f32 %v2168_v3, %v67_v41 }
  0x24   :  { %v318_v54 = vmin.f32 %v254_v42, 127.0  ;;  %v319_v55 = vmin.f32 %v255_v43, 127.0  ;;  %v2061_v57 = vround.rtne.f32 %v130_v44  ;;  %v2062_v58 = vround.rtne.f32 %v131_v47 }
  0x25   :  { %v320_v59 = vmin.f32 %v256_v46, 127.0  ;;  %v321_v60 = vmin.f32 %v257_v50, 127.0  ;;  %v2063_v61 = vround.rtne.f32 %v132_v51  ;;  %v2064_v63 = vround.rtne.f32 %v133_v52 }
  0x26   :  { %1912 = vmatmul.mubr.msk.bf16.gmra.mrb[12].mxu0 %vm389_vm1, %v2299_v56  ;;  %v2371_v5 = vpack.c.bf16 %v319_v55, %v318_v54  ;;  %v258_v6 = vmax.f32 %v2061_v57, -128.0  ;;  %v259_v7 = vmax.f32 %v2062_v58, -128.0  ;;  %v134_v8 = vmul.f32 %v2168_v3, %v68_v0  ;;  %v76_v57 = vld [vmem:[%s3529_s0 + $0x150] sm:$0xff]  ;;  %v77_v58 = vld [vmem:[%s3529_s0 + $0x158] sm:$0xff] }
  0x27   :  { %1915 = vmatprep.mubr.msk.bf16.mxu0 %vm389_vm1, %v2303_v62  ;;  %v135_v9 = vmul.f32 %v2168_v3, %v69_v1  ;;  %v136_v11 = vmul.f32 %v2168_v3, %v70_v2  ;;  %v2376_v12 = vpack.c.bf16 %v321_v60, %v320_v59  ;;  %v260_v13 = vmax.f32 %v2063_v61, -128.0  ;;  %v78_v59 = vld [vmem:[%s3529_s0 + $0x160] sm:$0xff]  ;;  %v79_v60 = vld [vmem:[%s3529_s0 + $0x168] sm:$0xff] }
  0x28   :  { %v261_v14 = vmax.f32 %v2064_v63, -128.0  ;;  %v137_v15 = vmul.f32 %v2168_v3, %v71_v4  ;;  %v322_v16 = vmin.f32 %v258_v6, 127.0  ;;  %v323_v18 = vmin.f32 %v259_v7, 127.0 }
  0x29   :  { %v2065_v20 = vround.rtne.f32 %v134_v8  ;;  %v2066_v21 = vround.rtne.f32 %v135_v9  ;;  %v2067_v22 = vround.rtne.f32 %v136_v11  ;;  %v324_v26 = vmin.f32 %v260_v13, 127.0 }
  0x2a   :  { %v325_v27 = vmin.f32 %v261_v14, 127.0  ;;  %v2068_v28 = vround.rtne.f32 %v137_v15  ;;  %v138_v32 = vmul.f32 %v2168_v3, %v72_v24  ;;  %v139_v33 = vmul.f32 %v2168_v3, %v73_v25  ;;  %v83_v24 = vld [vmem:[%s3529_s0 + $0x188] sm:$0xff] }
  0x2b   :  { %v2397_v35 = vpack.c.bf16 %v323_v18, %v322_v16  ;;  %v262_v36 = vmax.f32 %v2065_v20, -128.0  ;;  %v263_v37 = vmax.f32 %v2066_v21, -128.0  ;;  %v264_v39 = vmax.f32 %v2067_v22, -128.0  ;;  %v80_v18 = vld [vmem:[%s3529_s0 + $0x170] sm:$0xff]  ;;  %v82_v22 = vld [vmem:[%s3529_s0 + $0x180] sm:$0xff] }
  0x2c   :  { %v2399_v40 = vpack.c.bf16 %v325_v27, %v324_v26  ;;  %v265_v41 = vmax.f32 %v2068_v28, -128.0  ;;  %v140_v42 = vmul.f32 %v2168_v3, %v74_v29  ;;  %v141_v43 = vmul.f32 %v2168_v3, %v75_v30 }
  0x2d   :  { %v2069_v44 = vround.rtne.f32 %v138_v32  ;;  %v2070_v46 = vround.rtne.f32 %v139_v33  ;;  %v326_v47 = vmin.f32 %v262_v36, 127.0  ;;  %v327_v50 = vmin.f32 %v263_v37, 127.0 }
  0x2e   :  { %1916 = vmatmul.mubr.msk.bf16.gmra.mrb[16].mxu0 %vm389_vm1, %v2325_v19  ;;  %v328_v51 = vmin.f32 %v264_v39, 127.0  ;;  %v329_v52 = vmin.f32 %v265_v41, 127.0  ;;  %v2071_v54 = vround.rtne.f32 %v140_v42  ;;  %v2072_v55 = vround.rtne.f32 %v141_v43 }
  0x2f   :  { %1919 = vmatprep.mubr.msk.bf16.mxu0 %vm389_vm1, %v2328_v23  ;;  %v1051_v61 = vsel %vm486_vm0, %v2271_v31, 0  ;;  %v266_v63 = vmax.f32 %v2069_v44, -128.0  ;;  %v267_v0 = vmax.f32 %v2070_v46, -128.0  ;;  %v2421_v1 = vpack.c.bf16 %v327_v50, %v326_v47  ;;  %v84_v44 = vld [vmem:[%s3529_s0 + $0x190] sm:$0xff]  ;;  %v85_v46 = vld [vmem:[%s3529_s0 + $0x198] sm:$0xff] }
  0x30   :  { %1964 = vmatpush3.bf16.msra.mxu1 %v1051_v61  ;;  %v142_v2 = vmul.f32 %v2168_v3, %v76_v57  ;;  %v143_v4 = vmul.f32 %v2168_v3, %v77_v58  ;;  %v144_v6 = vmul.f32 %v2168_v3, %v78_v59  ;;  %v2426_v7 = vpack.c.bf16 %v329_v52, %v328_v51  ;;  %v86_v51 = vld [vmem:[%s3529_s0 + $0x1a0] sm:$0xff]  ;;  %v87_v52 = vld [vmem:[%s3529_s0 + $0x1a8] sm:$0xff] }
  0x31   :  { %v268_v8 = vmax.f32 %v2071_v54, -128.0  ;;  %v269_v9 = vmax.f32 %v2072_v55, -128.0  ;;  %v145_v11 = vmul.f32 %v2168_v3, %v79_v60  ;;  %v330_v31 = vmin.f32 %v266_v63, 127.0 }
  0x32   :  { %v331_v13 = vmin.f32 %v267_v0, 127.0  ;;  %v2073_v14 = vround.rtne.f32 %v142_v2  ;;  %v2074_v15 = vround.rtne.f32 %v143_v4  ;;  %v2075_v16 = vround.rtne.f32 %v144_v6 }
  0x33   :  { %1966 = vmatmul.mubr.msk.bf16.vlgmr.msra.gmra.mrb[0].mxu1 %vm389_vm1, %v2217_v49  ;;  %v332_v20 = vmin.f32 %v268_v8, 127.0  ;;  %v333_v49 = vmin.f32 %v269_v9, 127.0  ;;  %v2076_v21 = vround.rtne.f32 %v145_v11  ;;  %v146_v26 = vmul.f32 %v2168_v3, %v80_v18 }
  0x34   :  { %1969 = vmatprep.mubr.msk.bf16.mxu1 %vm389_vm1, %v2222_v53  ;;  %v81_v53 = vld [vmem:[%s3529_s0 + $0x178] sm:$0xff]  ;;  %v2449_v25 = vpack.c.bf16 %v331_v13, %v330_v31  ;;  %v270_v27 = vmax.f32 %v2073_v14, -128.0  ;;  %v271_v28 = vmax.f32 %v2074_v15, -128.0  ;;  %v272_v29 = vmax.f32 %v2075_v16, -128.0  ;;  %v88_v13 = vld [vmem:[%s3529_s0 + $0x1b0] sm:$0xff]  ;;  %v90_v15 = vld [vmem:[%s3529_s0 + $0x1c0] sm:$0xff] }
  0x35   :  { %v147_v30 = vmul.f32 %v2168_v3, %v81_v53  ;;  %v2453_v32 = vpack.c.bf16 %v333_v49, %v332_v20  ;;  %v273_v33 = vmax.f32 %v2076_v21, -128.0  ;;  %v148_v36 = vmul.f32 %v2168_v3, %v82_v22  ;;  %v91_v16 = vld [vmem:[%s3529_s0 + $0x1c8] sm:$0xff] }
  0x36   :  { %1920 = vmatmul.mubr.msk.bf16.gmra.mrb[20].mxu0 %vm389_vm1, %v2348_v45  ;;  %v149_v37 = vmul.f32 %v2168_v3, %v83_v24  ;;  %v2077_v39 = vround.rtne.f32 %v146_v26  ;;  %v334_v41 = vmin.f32 %v270_v27, 127.0  ;;  %v335_v42 = vmin.f32 %v271_v28, 127.0 }
  0x37   :  { %1923 = vmatprep.mubr.msk.bf16.mxu0 %vm389_vm1, %v2351_v48  ;;  %v2078_v43 = vround.rtne.f32 %v147_v30  ;;  %v337_v47 = vmin.f32 %v273_v33, 127.0  ;;  %v150_v55 = vmul.f32 %v2168_v3, %v84_v44  ;;  %v151_v57 = vmul.f32 %v2168_v3, %v85_v46  ;;  %v95_v44 = vld [vmem:[%s3529_s0 + $0x1e8] sm:$0xff] }
  0x38   :  { %v2080_v50 = vround.rtne.f32 %v149_v37  ;;  %v274_v54 = vmax.f32 %v2077_v39, -128.0  ;;  %v2479_v58 = vpack.c.bf16 %v335_v42, %v334_v41  ;;  %v152_v60 = vmul.f32 %v2168_v3, %v86_v51 }
  0x39   :  { %v275_v59 = vmax.f32 %v2078_v43, -128.0  ;;  %v153_v61 = vmul.f32 %v2168_v3, %v87_v52  ;;  %v2081_v4 = vround.rtne.f32 %v150_v55  ;;  %v2082_v6 = vround.rtne.f32 %v151_v57  ;;  %v93_v43 = vld [vmem:[%s3529_s0 + $0x1d8] sm:$0xff] }
  0x3a   :  { %v277_v2 = vmax.f32 %v2080_v50, -128.0  ;;  %v338_v8 = vmin.f32 %v274_v54, 127.0  ;;  %v2083_v11 = vround.rtne.f32 %v152_v60  ;;  %v154_v49 = vmul.f32 %v2168_v3, %v88_v13 }
  0x3b   :  { %1970 = vmatmul.mubr.msk.bf16.gmra.mrb[4].mxu1 %vm389_vm1, %v2246_v10  ;;  %v336_v10 = vmin.f32 %v272_v29, 127.0  ;;  %v339_v9 = vmin.f32 %v275_v59, 127.0  ;;  %v2084_v31 = vround.rtne.f32 %v153_v61  ;;  %v278_v18 = vmax.f32 %v2081_v4, -128.0 }
  0x3c   :  { %1973 = vmatprep.mubr.msk.bf16.mxu1 %vm389_vm1, %v2249_v17  ;;  %v2079_v17 = vround.rtne.f32 %v148_v36  ;;  %v341_v14 = vmin.f32 %v277_v2, 127.0  ;;  %v279_v20 = vmax.f32 %v2082_v6, -128.0  ;;  %v280_v53 = vmax.f32 %v2083_v11, -128.0  ;;  %v96_v2 = vld [vmem:[%s3529_s0 + $0x1f0] sm:$0xff] }
  0x3d   :  { %v2483_v63 = vpack.c.bf16 %v337_v47, %v336_v10  ;;  %v2506_v21 = vpack.c.bf16 %v339_v9, %v338_v8  ;;  %v281_v22 = vmax.f32 %v2084_v31, -128.0  ;;  %v156_v27 = vmul.f32 %v2168_v3, %v90_v15 }
  0x3e   :  { %1924 = vmatmul.mubr.msk.bf16.gmra.mrb[24].mxu0 %vm389_vm1, %v2371_v5  ;;  %v276_v0 = vmax.f32 %v2079_v17, -128.0  ;;  %v157_v28 = vmul.f32 %v2168_v3, %v91_v16  ;;  %v342_v29 = vmin.f32 %v278_v18, 127.0  ;;  %v343_v30 = vmin.f32 %v279_v20, 127.0 }
  0x3f   :  { %1927 = vmatprep.mubr.msk.bf16.mxu0 %vm389_vm1, %v2376_v12  ;;  %v2085_v33 = vround.rtne.f32 %v154_v49  ;;  %v344_v36 = vmin.f32 %v280_v53, 127.0  ;;  %v345_v37 = vmin.f32 %v281_v22, 127.0  ;;  %v2087_v41 = vround.rtne.f32 %v156_v27 }
  0x40   :  { %v2088_v42 = vround.rtne.f32 %v157_v28  ;;  %v2533_v46 = vpack.c.bf16 %v343_v30, %v342_v29  ;;  %v159_v51 = vmul.f32 %v2168_v3, %v93_v43  ;;  %v161_v57 = vmul.f32 %v2168_v3, %v95_v44 }
  0x41   :  { %v282_v10 = vmax.f32 %v2085_v33, -128.0  ;;  %v2535_v47 = vpack.c.bf16 %v345_v37, %v344_v36  ;;  %v284_v52 = vmax.f32 %v2087_v41, -128.0  ;;  %v162_v9 = vmul.f32 %v2168_v3, %v96_v2 }
  0x42   :  { %v285_v54 = vmax.f32 %v2088_v42, -128.0  ;;  %v2092_v8 = vround.rtne.f32 %v161_v57 }
  0x43   :  { %1974 = vmatmul.mubr.msk.bf16.gmra.mrb[8].mxu1 %vm389_vm1, %v2275_v34  ;;  %v340_v34 = vmin.f32 %v276_v0, 127.0  ;;  %v346_v59 = vmin.f32 %v282_v10, 127.0  ;;  %v2090_v0 = vround.rtne.f32 %v159_v51  ;;  %v348_v4 = vmin.f32 %v284_v52, 127.0 }
  0x44   :  { %1977 = vmatprep.mubr.msk.bf16.mxu1 %vm389_vm1, %v2280_v38  ;;  %v89_v38 = vld [vmem:[%s3529_s0 + $0x1b8] sm:$0xff]  ;;  %v349_v6 = vmin.f32 %v285_v54, 127.0  ;;  %v289_v15 = vmax.f32 %v2092_v8, -128.0  ;;  %v2093_v20 = vround.rtne.f32 %v162_v9 }
  0x45   :  { %v155_v24 = vmul.f32 %v2168_v3, %v89_v38  ;;  %v2509_v26 = vpack.c.bf16 %v341_v14, %v340_v34  ;;  %v287_v13 = vmax.f32 %v2090_v0, -128.0 }
  0x46   :  { %1928 = vmatmul.mubr.msk.bf16.gmra.mrb[28].mxu0 %vm389_vm1, %v2397_v35  ;;  %v384_v14 = vpack.c.bf16 %v349_v6, %v348_v4  ;;  %v353_v22 = vmin.f32 %v289_v15, 127.0 }
  0x47   :  { %1931 = vmatprep.mubr.msk.bf16.mxu0 %vm389_vm1, %v2399_v40  ;;  %v2086_v39 = vround.rtne.f32 %v155_v24  ;;  %v351_v18 = vmin.f32 %v287_v13, 127.0  ;;  %v290_v24 = vmax.f32 %v2093_v20, -128.0 }
  0x49   :  { %v283_v17 = vmax.f32 %v2086_v39, -128.0 }
  0x4b   :  { %1978 = vmatmul.mubr.msk.bf16.gmra.mrb[12].mxu1 %vm389_vm1, %v2299_v56  ;;  %v92_v56 = vld [vmem:[%s3529_s0 + $0x1d0] sm:$0xff]  ;;  %v347_v60 = vmin.f32 %v283_v17, 127.0 }
  0x4c   :  { %1981 = vmatprep.mubr.msk.bf16.mxu1 %vm389_vm1, %v2303_v62  ;;  %v94_v62 = vld [vmem:[%s3529_s0 + $0x1e0] sm:$0xff]  ;;  %v158_v50 = vmul.f32 %v2168_v3, %v92_v56 }
  0x4d   :  { %v160_v55 = vmul.f32 %v2168_v3, %v94_v62  ;;  %v383_v11 = vpack.c.bf16 %v347_v60, %v346_v59 }
  0x4e   :  { %1932 = vmatmul.mubr.msk.bf16.gmra.mrb[32].mxu0 %vm389_vm1, %v2421_v1  ;;  %v2089_v61 = vround.rtne.f32 %v158_v50 }
  0x4f   :  { %1935 = vmatprep.mubr.msk.bf16.mxu0 %vm389_vm1, %v2426_v7 }
  0x50   :  { %v286_v31 = vmax.f32 %v2089_v61, -128.0 }
  0x52   :  { %v350_v16 = vmin.f32 %v286_v31, 127.0 }
  0x53   :  { %1982 = vmatmul.mubr.msk.bf16.gmra.mrb[16].mxu1 %vm389_vm1, %v2325_v19  ;;  %v2091_v19 = vround.rtne.f32 %v160_v55 }
  0x54   :  { %1985 = vmatprep.mubr.msk.bf16.mxu1 %vm389_vm1, %v2328_v23  ;;  %v97_v23 = vld [vmem:[%s3529_s0 + $0x1f8] sm:$0xff] }
  0x55   :  { %v163_v34 = vmul.f32 %v2168_v3, %v97_v23  ;;  %v288_v38 = vmax.f32 %v2091_v19, -128.0  ;;  %v385_v3 = vpack.c.bf16 %v351_v18, %v350_v16 }
  0x56   :  { %1936 = vmatmul.mubr.msk.bf16.gmra.mrb[36].mxu0 %vm389_vm1, %v2449_v25 }
  0x57   :  { %1939 = vmatprep.mubr.msk.bf16.mxu0 %vm389_vm1, %v2453_v32  ;;  %v2094_v49 = vround.rtne.f32 %v163_v34  ;;  %v352_v53 = vmin.f32 %v288_v38, 127.0 }
  0x59   :  { %v291_v27 = vmax.f32 %v2094_v49, -128.0  ;;  %v386_v28 = vpack.c.bf16 %v353_v22, %v352_v53 }
  0x5b   :  { %1986 = vmatmul.mubr.msk.bf16.gmra.mrb[20].mxu1 %vm389_vm1, %v2348_v45  ;;  %v354_v45 = vmin.f32 %v290_v24, 127.0 }
  0x5c   :  { %1989 = vmatprep.mubr.msk.bf16.mxu1 %vm389_vm1, %v2351_v48  ;;  %v355_v48 = vmin.f32 %v291_v27, 127.0 }
  0x5e   :  { %1940 = vmatmul.mubr.msk.bf16.gmra.mrb[40].mxu0 %vm389_vm1, %v2479_v58  ;;  %v387_v29 = vpack.c.bf16 %v355_v48, %v354_v45 }
  0x5f   :  { %1943 = vmatprep.mubr.msk.bf16.mxu0 %vm389_vm1, %v2483_v63 }
  0x63   :  { %1990 = vmatmul.mubr.msk.bf16.gmra.mrb[24].mxu1 %vm389_vm1, %v2371_v5  ;;  %v2602_v5 = vld [vmem:[%s3532_s3] ss:$0 sm:$0xff] }
  0x64   :  { %1993 = vmatprep.mubr.msk.bf16.mxu1 %vm389_vm1, %v2376_v12 }
  0x66   :  { %1944 = vmatmul.mubr.msk.bf16.gmra.mrb[44].mxu0 %vm389_vm1, %v2506_v21 }
  0x67   :  { %1947 = vmatprep.mubr.msk.bf16.mxu0 %vm389_vm1, %v2509_v26 }
  0x6b   :  { %1994 = vmatmul.mubr.msk.bf16.gmra.mrb[28].mxu1 %vm389_vm1, %v2397_v35  ;;  %v2607_v35 = vld [vmem:[%s3533_s4] ss:$0 sm:$0xff] }
  0x6c   :  { %1997 = vmatprep.mubr.msk.bf16.mxu1 %vm389_vm1, %v2399_v40 }
  0x6e   :  { %1948 = vmatmul.mubr.msk.bf16.gmra.mrb[48].mxu0 %vm389_vm1, %v2533_v46 }
  0x6f   :  { %1951 = vmatprep.mubr.msk.bf16.mxu0 %vm389_vm1, %v2535_v47 }
  0x73   :  { %1998 = vmatmul.mubr.msk.bf16.gmra.mrb[32].mxu1 %vm389_vm1, %v2421_v1 }
  0x74   :  { %2001 = vmatprep.mubr.msk.bf16.mxu1 %vm389_vm1, %v2426_v7 }
  0x76   :  { %1952 = vmatmul.mubr.msk.bf16.gmra.mrb[52].mxu0 %vm389_vm1, %v383_v11 }
  0x77   :  { %1955 = vmatprep.mubr.msk.bf16.mxu0 %vm389_vm1, %v384_v14 }
  0x7b   :  { %2002 = vmatmul.mubr.msk.bf16.gmra.mrb[36].mxu1 %vm389_vm1, %v2449_v25 }
  0x7c   :  { %2005 = vmatprep.mubr.msk.bf16.mxu1 %vm389_vm1, %v2453_v32 }
  0x7e   :  { %1956 = vmatmul.mubr.msk.bf16.gmra.mrb[56].mxu0 %vm389_vm1, %v385_v3 }
  0x7f   :  { %1959 = vmatprep.mubr.msk.bf16.mxu0 %vm389_vm1, %v386_v28 }
  0x83   :  { %2006 = vmatmul.mubr.msk.bf16.gmra.mrb[40].mxu1 %vm389_vm1, %v2479_v58 }
  0x84   :  { %2009 = vmatprep.mubr.msk.bf16.mxu1 %vm389_vm1, %v2483_v63 }
  0x86   :  { %1960 = vmatmul.mubr.msk.bf16.gmra.mrb[60].mxu0 %vm389_vm1, %v387_v29 }
  0x8b   :  { %2010 = vmatmul.mubr.msk.bf16.gmra.mrb[44].mxu1 %vm389_vm1, %v2506_v21 }
  0x8c   :  { %2013 = vmatprep.mubr.msk.bf16.mxu1 %vm389_vm1, %v2509_v26 }
  0x93   :  { %2014 = vmatmul.mubr.msk.bf16.gmra.mrb[48].mxu1 %vm389_vm1, %v2533_v46 }
  0x94   :  { %2017 = vmatprep.mubr.msk.bf16.mxu1 %vm389_vm1, %v2535_v47 }
  0x9b   :  { %2018 = vmatmul.mubr.msk.bf16.gmra.mrb[52].mxu1 %vm389_vm1, %v383_v11 }
  0x9c   :  { %2021 = vmatprep.mubr.msk.bf16.mxu1 %vm389_vm1, %v384_v14 }
  0xa3   :  { %2022 = vmatmul.mubr.msk.bf16.gmra.mrb[56].mxu1 %vm389_vm1, %v385_v3 }
  0xa4   :  { %2025 = vmatprep.mubr.msk.bf16.mxu1 %vm389_vm1, %v386_v28 }
  0xab   :  { %2026 = vmatmul.mubr.msk.bf16.gmra.mrb[60].mxu1 %vm389_vm1, %v387_v29 }
  0xe1   :  { %v1901_v12 = vpop.f32.mrb[0].mxu0 }
  0xe2   :  { %v788_v40 = vmul.f32 %v1901_v12, %v2602_v5  ;;  %v524_v1 = vpop.f32.mrb[1].mxu0 }
  0xe3   :  { %v786_v7 = vmul.f32 %v2602_v5, %v524_v1  ;;  %v1902_v25 = vpop.f32.mrb[2].mxu0 }
  0xe4   :  { %v859_v32 = vadd.f32 %v2607_v35, %v788_v40  ;;  %v789_v58 = vmul.f32 %v1902_v25, %v2602_v5  ;;  %v527_v63 = vpop.f32.mrb[3].mxu0 }
  0xe5   :  { %v857_v21 = vadd.f32 %v2607_v35, %v786_v7  ;;  %v787_v26 = vmul.f32 %v2602_v5, %v527_v63 }
  0xe6   :  { %v923_v30 = vmax.f32 %v859_v32, 0.0  ;;  %v860_v33 = vadd.f32 %v2607_v35, %v789_v58 }
  0xe7   :  { %v921_v36 = vmax.f32 %v857_v21, 0.0  ;;  %v858_v37 = vadd.f32 %v2607_v35, %v787_v26 }
  0xe8   :  { %987 = vst.msk [vmem:[%s3534_s8 + $0x10] sm:$0xff] %vm389_vm1, %v923_v30  ;;  %v924_v39 = vmax.f32 %v860_v33, 0.0  ;;  %v1551_v46 = vand.u32 2147483647, %v923_v30 }
  0xe9   :  { %985 = vst.msk [vmem:[%s3534_s8] sm:$0xff] %vm389_vm1, %v921_v36  ;;  %v922_v41 = vmax.f32 %v858_v37, 0.0  ;;  %v1905_v42 = vpop.f32.mrb[4].mxu0  ;;  %v1549_v50 = vand.u32 2147483647, %v921_v36 }
  0xea   :  { %988 = vst.msk [vmem:[%s3534_s8 + $0x18] sm:$0xff] %vm389_vm1, %v924_v39  ;;  %v792_v56 = vmul.f32 %v1905_v42, %v2602_v5  ;;  %v540_v43 = vpop.f32.mrb[5].mxu0  ;;  %v1552_v51 = vand.u32 2147483647, %v924_v39  ;;  %v1615_v0 = vsel %vm389_vm1, %v1551_v46, -inf }
  0xeb   :  { %986 = vst.msk [vmem:[%s3534_s8 + $0x8] sm:$0xff] %vm389_vm1, %v922_v41  ;;  %v790_v62 = vmul.f32 %v2602_v5, %v540_v43  ;;  %v1906_v44 = vpop.f32.mrb[6].mxu0  ;;  %v1550_v55 = vand.u32 2147483647, %v922_v41  ;;  %v1613_v6 = vsel %vm389_vm1, %v1549_v50, -inf }
  0xec   :  { %v863_v10 = vadd.f32 %v2607_v35, %v792_v56  ;;  %v793_v47 = vmul.f32 %v1906_v44, %v2602_v5  ;;  %v543_v17 = vpop.f32.mrb[7].mxu0  ;;  %v1616_v19 = vsel %vm389_vm1, %v1552_v51, -inf }
  0xed   :  { %v861_v52 = vadd.f32 %v2607_v35, %v790_v62  ;;  %v791_v54 = vmul.f32 %v2602_v5, %v543_v17  ;;  %v1614_v11 = vsel %vm389_vm1, %v1550_v55, -inf }
  0xee   :  { %v927_v57 = vmax.f32 %v863_v10, 0.0  ;;  %v864_v59 = vadd.f32 %v2607_v35, %v793_v47 }
  0xef   :  { %v925_v60 = vmax.f32 %v861_v52, 0.0  ;;  %v862_v61 = vadd.f32 %v2607_v35, %v791_v54 }
  0xf0   :  { %991 = vst.msk [vmem:[%s3534_s8 + $0x30] sm:$0xff] %vm389_vm1, %v927_v57  ;;  %v1555_v2 = vand.u32 2147483647, %v927_v57  ;;  %v928_v4 = vmax.f32 %v864_v59, 0.0 }
  0xf1   :  { %989 = vst.msk [vmem:[%s3534_s8 + $0x20] sm:$0xff] %vm389_vm1, %v925_v60  ;;  %v1553_v8 = vand.u32 2147483647, %v925_v60  ;;  %v926_v23 = vmax.f32 %v862_v61, 0.0  ;;  %v1909_v9 = vpop.f32.mrb[8].mxu0 }
  0xf2   :  { %v1621_v31 = vsel %vm389_vm1, %v1555_v2, -inf  ;;  %992 = vst.msk [vmem:[%s3534_s8 + $0x38] sm:$0xff] %vm389_vm1, %v928_v4  ;;  %v1556_v13 = vand.u32 2147483647, %v928_v4  ;;  %v796_v34 = vmul.f32 %v1909_v9, %v2602_v5  ;;  %v556_v14 = vpop.f32.mrb[9].mxu0 }
  0xf3   :  { %v1622_v38 = vmax.f32 %v1615_v0, %v1621_v31  ;;  %v1617_v15 = vsel %vm389_vm1, %v1553_v8, -inf  ;;  %990 = vst.msk [vmem:[%s3534_s8 + $0x28] sm:$0xff] %vm389_vm1, %v926_v23  ;;  %v1554_v16 = vand.u32 2147483647, %v926_v23  ;;  %v794_v18 = vmul.f32 %v2602_v5, %v556_v14  ;;  %v1910_v20 = vpop.f32.mrb[10].mxu0 }
  0xf4   :  { %v1618_v49 = vmax.f32 %v1613_v6, %v1617_v15  ;;  %v1623_v53 = vsel %vm389_vm1, %v1556_v13, -inf  ;;  %v867_v22 = vadd.f32 %v2607_v35, %v796_v34  ;;  %v797_v3 = vmul.f32 %v1910_v20, %v2602_v5  ;;  %v559_v24 = vpop.f32.mrb[11].mxu0 }
  0xf5   :  { %v1624_v27 = vmax.f32 %v1616_v19, %v1623_v53  ;;  %v1619_v28 = vsel %vm389_vm1, %v1554_v16, -inf  ;;  %v865_v45 = vadd.f32 %v2607_v35, %v794_v18  ;;  %v795_v48 = vmul.f32 %v2602_v5, %v559_v24 }
  0xf6   :  { %v1620_v29 = vmax.f32 %v1614_v11, %v1619_v28  ;;  %v931_v12 = vmax.f32 %v867_v22, 0.0  ;;  %v868_v40 = vadd.f32 %v2607_v35, %v797_v3 }
  0xf7   :  { %v929_v1 = vmax.f32 %v865_v45, 0.0  ;;  %v866_v7 = vadd.f32 %v2607_v35, %v795_v48 }
  0xf8   :  { %995 = vst.msk [vmem:[%s3534_s8 + $0x50] sm:$0xff] %vm389_vm1, %v931_v12  ;;  %v1559_v25 = vand.u32 2147483647, %v931_v12  ;;  %v932_v32 = vmax.f32 %v868_v40, 0.0 }
  0xf9   :  { %993 = vst.msk [vmem:[%s3534_s8 + $0x40] sm:$0xff] %vm389_vm1, %v929_v1  ;;  %v1557_v58 = vand.u32 2147483647, %v929_v1  ;;  %v930_v63 = vmax.f32 %v866_v7, 0.0  ;;  %v1913_v21 = vpop.f32.mrb[12].mxu0 }
  0xfa   :  { %v1629_v26 = vsel %vm389_vm1, %v1559_v25, -inf  ;;  %996 = vst.msk [vmem:[%s3534_s8 + $0x58] sm:$0xff] %vm389_vm1, %v932_v32  ;;  %v1560_v30 = vand.u32 2147483647, %v932_v32  ;;  %v800_v33 = vmul.f32 %v1913_v21, %v2602_v5  ;;  %v572_v36 = vpop.f32.mrb[13].mxu0 }
  0xfb   :  { %v2687_v37 = vmax.f32 %v1622_v38, %v1629_v26  ;;  %v1625_v39 = vsel %vm389_vm1, %v1557_v58, -inf  ;;  %994 = vst.msk [vmem:[%s3534_s8 + $0x48] sm:$0xff] %vm389_vm1, %v930_v63  ;;  %v1558_v41 = vand.u32 2147483647, %v930_v63  ;;  %v798_v42 = vmul.f32 %v2602_v5, %v572_v36  ;;  %v1914_v56 = vpop.f32.mrb[14].mxu0 }
  0xfc   :  { %v2695_v43 = vmax.f32 %v1618_v49, %v1625_v39  ;;  %v1631_v62 = vsel %vm389_vm1, %v1560_v30, -inf  ;;  %v871_v44 = vadd.f32 %v2607_v35, %v800_v33  ;;  %v801_v46 = vmul.f32 %v1914_v56, %v2602_v5  ;;  %v575_v10 = vpop.f32.mrb[15].mxu0 }
  0xfd   :  { %v2700_v47 = vmax.f32 %v1624_v27, %v1631_v62  ;;  %v1627_v17 = vsel %vm389_vm1, %v1558_v41, -inf  ;;  %v869_v50 = vadd.f32 %v2607_v35, %v798_v42  ;;  %v799_v51 = vmul.f32 %v2602_v5, %v575_v10 }
  0xfe   :  { %v2705_v52 = vmax.f32 %v1620_v29, %v1627_v17  ;;  %v935_v54 = vmax.f32 %v871_v44, 0.0  ;;  %v872_v55 = vadd.f32 %v2607_v35, %v801_v46 }
  0xff   :  { %v933_v57 = vmax.f32 %v869_v50, 0.0  ;;  %v870_v59 = vadd.f32 %v2607_v35, %v799_v51 }
 0x100   :  { %999 = vst.msk [vmem:[%s3534_s8 + $0x70] sm:$0xff] %vm389_vm1, %v935_v54  ;;  %v1563_v60 = vand.u32 2147483647, %v935_v54  ;;  %v936_v61 = vmax.f32 %v872_v55, 0.0 }
 0x101   :  { %997 = vst.msk [vmem:[%s3534_s8 + $0x60] sm:$0xff] %vm389_vm1, %v933_v57  ;;  %v1561_v0 = vand.u32 2147483647, %v933_v57  ;;  %v934_v2 = vmax.f32 %v870_v59, 0.0  ;;  %v1917_v4 = vpop.f32.mrb[16].mxu0 }
 0x102   :  { %v1637_v6 = vsel %vm389_vm1, %v1563_v60, -inf  ;;  %1000 = vst.msk [vmem:[%s3534_s8 + $0x78] sm:$0xff] %vm389_vm1, %v936_v61  ;;  %v1564_v19 = vand.u32 2147483647, %v936_v61  ;;  %v804_v8 = vmul.f32 %v1917_v4, %v2602_v5  ;;  %v588_v23 = vpop.f32.mrb[17].mxu0 }
 0x103   :  { %v1638_v9 = vmax.f32 %v2687_v37, %v1637_v6  ;;  %v1633_v11 = vsel %vm389_vm1, %v1561_v0, -inf  ;;  %998 = vst.msk [vmem:[%s3534_s8 + $0x68] sm:$0xff] %vm389_vm1, %v934_v2  ;;  %v1562_v31 = vand.u32 2147483647, %v934_v2  ;;  %v802_v13 = vmul.f32 %v2602_v5, %v588_v23  ;;  %v1918_v34 = vpop.f32.mrb[18].mxu0 }
 0x104   :  { %v1634_v14 = vmax.f32 %v2695_v43, %v1633_v11  ;;  %v1639_v38 = vsel %vm389_vm1, %v1564_v19, -inf  ;;  %v875_v15 = vadd.f32 %v2607_v35, %v804_v8  ;;  %v805_v16 = vmul.f32 %v1918_v34, %v2602_v5  ;;  %v591_v18 = vpop.f32.mrb[19].mxu0 }
 0x105   :  { %v1640_v20 = vmax.f32 %v2700_v47, %v1639_v38  ;;  %v1635_v49 = vsel %vm389_vm1, %v1562_v31, -inf  ;;  %v873_v53 = vadd.f32 %v2607_v35, %v802_v13  ;;  %v803_v22 = vmul.f32 %v2602_v5, %v591_v18 }
 0x106   :  { %v1636_v3 = vmax.f32 %v2705_v52, %v1635_v49  ;;  %v939_v24 = vmax.f32 %v875_v15, 0.0  ;;  %v876_v27 = vadd.f32 %v2607_v35, %v805_v16 }
 0x107   :  { %v937_v28 = vmax.f32 %v873_v53, 0.0  ;;  %v874_v45 = vadd.f32 %v2607_v35, %v803_v22 }
 0x108   :  { %1003 = vst.msk [vmem:[%s3534_s8 + $0x90] sm:$0xff] %vm389_vm1, %v939_v24  ;;  %v1567_v48 = vand.u32 2147483647, %v939_v24  ;;  %v940_v29 = vmax.f32 %v876_v27, 0.0 }
 0x109   :  { %1001 = vst.msk [vmem:[%s3534_s8 + $0x80] sm:$0xff] %vm389_vm1, %v937_v28  ;;  %v1565_v12 = vand.u32 2147483647, %v937_v28  ;;  %v938_v40 = vmax.f32 %v874_v45, 0.0  ;;  %v1921_v1 = vpop.f32.mrb[20].mxu0 }
 0x10a   :  { %v1645_v7 = vsel %vm389_vm1, %v1567_v48, -inf  ;;  %1004 = vst.msk [vmem:[%s3534_s8 + $0x98] sm:$0xff] %vm389_vm1, %v940_v29  ;;  %v1568_v25 = vand.u32 2147483647, %v940_v29  ;;  %v808_v32 = vmul.f32 %v1921_v1, %v2602_v5  ;;  %v604_v58 = vpop.f32.mrb[21].mxu0 }
 0x10b   :  { %v2755_v63 = vmax.f32 %v1638_v9, %v1645_v7  ;;  %v1641_v21 = vsel %vm389_vm1, %v1565_v12, -inf  ;;  %1002 = vst.msk [vmem:[%s3534_s8 + $0x88] sm:$0xff] %vm389_vm1, %v938_v40  ;;  %v1566_v26 = vand.u32 2147483647, %v938_v40  ;;  %v806_v30 = vmul.f32 %v2602_v5, %v604_v58  ;;  %v1922_v33 = vpop.f32.mrb[22].mxu0 }
 0x10c   :  { %v2763_v36 = vmax.f32 %v1634_v14, %v1641_v21  ;;  %v1647_v37 = vsel %vm389_vm1, %v1568_v25, -inf  ;;  %v879_v39 = vadd.f32 %v2607_v35, %v808_v32  ;;  %v809_v41 = vmul.f32 %v1922_v33, %v2602_v5  ;;  %v607_v42 = vpop.f32.mrb[23].mxu0 }
 0x10d   :  { %v2768_v56 = vmax.f32 %v1640_v20, %v1647_v37  ;;  %v1643_v43 = vsel %vm389_vm1, %v1566_v26, -inf  ;;  %v877_v62 = vadd.f32 %v2607_v35, %v806_v30  ;;  %v807_v44 = vmul.f32 %v2602_v5, %v607_v42 }
 0x10e   :  { %v2773_v46 = vmax.f32 %v1636_v3, %v1643_v43  ;;  %v943_v10 = vmax.f32 %v879_v39, 0.0  ;;  %v880_v47 = vadd.f32 %v2607_v35, %v809_v41  ;;  %v2844_v41 = vld [vmem:[%s3535_s6] ss:$0 sm:$0xff] }
 0x10f   :  { %v941_v17 = vmax.f32 %v877_v62, 0.0  ;;  %v878_v50 = vadd.f32 %v2607_v35, %v807_v44 }
 0x110   :  { %1007 = vst.msk [vmem:[%s3534_s8 + $0xb0] sm:$0xff] %vm389_vm1, %v943_v10  ;;  %v1571_v51 = vand.u32 2147483647, %v943_v10  ;;  %v944_v52 = vmax.f32 %v880_v47, 0.0  ;;  %v2853_v10 = vld [vmem:[%s3536_s7] ss:$0 sm:$0xff] }
 0x111   :  { %1005 = vst.msk [vmem:[%s3534_s8 + $0xa0] sm:$0xff] %vm389_vm1, %v941_v17  ;;  %v1569_v54 = vand.u32 2147483647, %v941_v17  ;;  %v942_v55 = vmax.f32 %v878_v50, 0.0  ;;  %v1925_v57 = vpop.f32.mrb[24].mxu0 }
 0x112   :  { %v1653_v59 = vsel %vm389_vm1, %v1571_v51, -inf  ;;  %1008 = vst.msk [vmem:[%s3534_s8 + $0xb8] sm:$0xff] %vm389_vm1, %v944_v52  ;;  %v1572_v60 = vand.u32 2147483647, %v944_v52  ;;  %v812_v61 = vmul.f32 %v1925_v57, %v2602_v5  ;;  %v620_v0 = vpop.f32.mrb[25].mxu0 }
 0x113   :  { %v1654_v2 = vmax.f32 %v2755_v63, %v1653_v59  ;;  %v1649_v4 = vsel %vm389_vm1, %v1569_v54, -inf  ;;  %1006 = vst.msk [vmem:[%s3534_s8 + $0xa8] sm:$0xff] %vm389_vm1, %v942_v55  ;;  %v1570_v6 = vand.u32 2147483647, %v942_v55  ;;  %v810_v19 = vmul.f32 %v2602_v5, %v620_v0  ;;  %v1926_v8 = vpop.f32.mrb[26].mxu0 }
 0x114   :  { %v1650_v23 = vmax.f32 %v2763_v36, %v1649_v4  ;;  %v1655_v9 = vsel %vm389_vm1, %v1572_v60, -inf  ;;  %v883_v11 = vadd.f32 %v2607_v35, %v812_v61  ;;  %v813_v31 = vmul.f32 %v1926_v8, %v2602_v5  ;;  %v623_v13 = vpop.f32.mrb[27].mxu0 }
 0x115   :  { %v1656_v34 = vmax.f32 %v2768_v56, %v1655_v9  ;;  %v1651_v14 = vsel %vm389_vm1, %v1570_v6, -inf  ;;  %v881_v38 = vadd.f32 %v2607_v35, %v810_v19  ;;  %v811_v15 = vmul.f32 %v2602_v5, %v623_v13 }
 0x116   :  { %v1652_v16 = vmax.f32 %v2773_v46, %v1651_v14  ;;  %v947_v18 = vmax.f32 %v883_v11, 0.0  ;;  %v884_v20 = vadd.f32 %v2607_v35, %v813_v31  ;;  %v1967_v46 = vpop.f32.mrb[0].mxu1 }
 0x117   :  { %v945_v49 = vmax.f32 %v881_v38, 0.0  ;;  %v882_v53 = vadd.f32 %v2607_v35, %v811_v15  ;;  %v1351_v50 = vmul.f32 %v1967_v46, %v2844_v41  ;;  %v1087_v51 = vpop.f32.mrb[1].mxu1 }
 0x118   :  { %1011 = vst.msk [vmem:[%s3534_s8 + $0xd0] sm:$0xff] %vm389_vm1, %v947_v18  ;;  %v1575_v22 = vand.u32 2147483647, %v947_v18  ;;  %v948_v3 = vmax.f32 %v884_v20, 0.0  ;;  %v1349_v57 = vmul.f32 %v2844_v41, %v1087_v51  ;;  %v1968_v59 = vpop.f32.mrb[2].mxu1 }
 0x119   :  { %1009 = vst.msk [vmem:[%s3534_s8 + $0xc0] sm:$0xff] %vm389_vm1, %v945_v49  ;;  %v1573_v24 = vand.u32 2147483647, %v945_v49  ;;  %v946_v27 = vmax.f32 %v882_v53, 0.0  ;;  %v1929_v28 = vpop.f32.mrb[28].mxu0  ;;  %v1422_v4 = vadd.f32 %v2853_v10, %v1351_v50  ;;  %v1090_v6 = vpop.f32.mrb[3].mxu1 }
 0x11a   :  { %v1661_v45 = vsel %vm389_vm1, %v1575_v22, -inf  ;;  %1012 = vst.msk [vmem:[%s3534_s8 + $0xd8] sm:$0xff] %vm389_vm1, %v948_v3  ;;  %v1576_v48 = vand.u32 2147483647, %v948_v3  ;;  %v816_v29 = vmul.f32 %v1929_v28, %v2602_v5  ;;  %v636_v12 = vpop.f32.mrb[29].mxu0  ;;  %v1420_v3 = vadd.f32 %v2853_v10, %v1349_v57 }
 0x11b   :  { %v2823_v40 = vmax.f32 %v1654_v2, %v1661_v45  ;;  %v1657_v1 = vsel %vm389_vm1, %v1573_v24, -inf  ;;  %1010 = vst.msk [vmem:[%s3534_s8 + $0xc8] sm:$0xff] %vm389_vm1, %v946_v27  ;;  %v1574_v7 = vand.u32 2147483647, %v946_v27  ;;  %v814_v25 = vmul.f32 %v2602_v5, %v636_v12  ;;  %v1930_v32 = vpop.f32.mrb[30].mxu0 }
 0x11c   :  { %v2831_v58 = vmax.f32 %v1650_v23, %v1657_v1  ;;  %v1663_v63 = vsel %vm389_vm1, %v1576_v48, -inf  ;;  %v887_v21 = vadd.f32 %v2607_v35, %v816_v29  ;;  %v817_v26 = vmul.f32 %v1930_v32, %v2602_v5  ;;  %v639_v30 = vpop.f32.mrb[31].mxu0  ;;  %1487 = vst.msk [vmem:[%s3537_s9 + $0x10] sm:$0xff] %vm1484_vm2, %v1422_v4  ;;  %v1971_v48 = vpop.f32.mrb[4].mxu1  ;;  %1485 = vst.msk [vmem:[%s3537_s9] sm:$0xff] %vm1484_vm2, %v1420_v3 }
 0x11d   :  { %v2836_v33 = vmax.f32 %v1656_v34, %v1663_v63  ;;  %v1659_v36 = vsel %vm389_vm1, %v1574_v7, -inf  ;;  %v885_v37 = vadd.f32 %v2607_v35, %v814_v25  ;;  %v815_v39 = vmul.f32 %v2602_v5, %v639_v30  ;;  %v1103_v1 = vpop.f32.mrb[5].mxu1 }
 0x11e   :  { %v2846_v42 = vmax.f32 %v1652_v16, %v1659_v36  ;;  %v951_v56 = vmax.f32 %v887_v21, 0.0  ;;  %v888_v43 = vadd.f32 %v2607_v35, %v817_v26  ;;  %v1352_v28 = vmul.f32 %v1968_v59, %v2844_v41  ;;  %v1972_v21 = vpop.f32.mrb[6].mxu1 }
 0x11f   :  { %v949_v62 = vmax.f32 %v885_v37, 0.0  ;;  %v886_v44 = vadd.f32 %v2607_v35, %v815_v39  ;;  %v1350_v45 = vmul.f32 %v2844_v41, %v1090_v6  ;;  %v1106_v39 = vpop.f32.mrb[7].mxu1  ;;  %v1356_v6 = vmul.f32 %v1972_v21, %v2844_v41 }
 0x120   :  { %1015 = vst.msk [vmem:[%s3534_s8 + $0xf0] sm:$0xff] %vm389_vm1, %v951_v56  ;;  %v1579_v47 = vand.u32 2147483647, %v951_v56  ;;  %v952_v17 = vmax.f32 %v888_v43, 0.0 }
 0x121   :  { %1013 = vst.msk [vmem:[%s3534_s8 + $0xe0] sm:$0xff] %vm389_vm1, %v949_v62  ;;  %v1577_v52 = vand.u32 2147483647, %v949_v62  ;;  %v950_v54 = vmax.f32 %v886_v44, 0.0  ;;  %v1933_v55 = vpop.f32.mrb[32].mxu0  ;;  %v1421_v63 = vadd.f32 %v2853_v10, %v1350_v45 }
 0x122   :  { %v1669_v60 = vsel %vm389_vm1, %v1579_v47, -inf  ;;  %1016 = vst.msk [vmem:[%s3534_s8 + $0xf8] sm:$0xff] %vm389_vm1, %v952_v17  ;;  %v1580_v61 = vand.u32 2147483647, %v952_v17  ;;  %v820_v0 = vmul.f32 %v1933_v55, %v2602_v5  ;;  %v652_v2 = vpop.f32.mrb[33].mxu0 }
 0x123   :  { %v1670_v19 = vmax.f32 %v2823_v40, %v1669_v60  ;;  %v1665_v8 = vsel %vm389_vm1, %v1577_v52, -inf  ;;  %1014 = vst.msk [vmem:[%s3534_s8 + $0xe8] sm:$0xff] %vm389_vm1, %v950_v54  ;;  %v1578_v23 = vand.u32 2147483647, %v950_v54  ;;  %v818_v9 = vmul.f32 %v2602_v5, %v652_v2  ;;  %v1934_v11 = vpop.f32.mrb[34].mxu0 }
 0x124   :  { %v1666_v31 = vmax.f32 %v2831_v58, %v1665_v8  ;;  %v1671_v13 = vsel %vm389_vm1, %v1580_v61, -inf  ;;  %v891_v34 = vadd.f32 %v2607_v35, %v820_v0  ;;  %v821_v14 = vmul.f32 %v1934_v11, %v2602_v5  ;;  %v655_v38 = vpop.f32.mrb[35].mxu0  ;;  %1486 = vst.msk [vmem:[%s3537_s9 + $0x8] sm:$0xff] %vm1484_vm2, %v1421_v63  ;;  %v1975_v8 = vpop.f32.mrb[8].mxu1 }
 0x125   :  { %v1672_v15 = vmax.f32 %v2836_v33, %v1671_v13  ;;  %v1667_v16 = vsel %vm389_vm1, %v1578_v23, -inf  ;;  %v889_v18 = vadd.f32 %v2607_v35, %v818_v9  ;;  %v819_v20 = vmul.f32 %v2602_v5, %v655_v38  ;;  %v1119_v13 = vpop.f32.mrb[9].mxu1 }
 0x126   :  { %v1668_v49 = vmax.f32 %v2846_v42, %v1667_v16  ;;  %v955_v53 = vmax.f32 %v891_v34, 0.0  ;;  %v892_v22 = vadd.f32 %v2607_v35, %v821_v14  ;;  %v1355_v40 = vmul.f32 %v1971_v48, %v2844_v41 }
 0x127   :  { %v953_v24 = vmax.f32 %v889_v18, 0.0  ;;  %v890_v27 = vadd.f32 %v2607_v35, %v819_v20  ;;  %v1423_v58 = vadd.f32 %v2853_v10, %v1352_v28  ;;  %v1353_v0 = vmul.f32 %v2844_v41, %v1103_v1  ;;  %v1976_v18 = vpop.f32.mrb[10].mxu1 }
 0x128   :  { %1019 = vst.msk [vmem:[%s3534_s8 + $0x110] sm:$0xff] %vm389_vm1, %v955_v53  ;;  %v1583_v29 = vand.u32 2147483647, %v955_v53  ;;  %v956_v12 = vmax.f32 %v892_v22, 0.0  ;;  %v1426_v37 = vadd.f32 %v2853_v10, %v1355_v40 }
 0x129   :  { %1017 = vst.msk [vmem:[%s3534_s8 + $0x100] sm:$0xff] %vm389_vm1, %v953_v24  ;;  %v1581_v7 = vand.u32 2147483647, %v953_v24  ;;  %v954_v25 = vmax.f32 %v890_v27, 0.0  ;;  %v1937_v32 = vpop.f32.mrb[36].mxu0  ;;  %v1424_v11 = vadd.f32 %v2853_v10, %v1353_v0  ;;  %v1122_v24 = vpop.f32.mrb[11].mxu1 }
 0x12a   :  { %v1677_v26 = vsel %vm389_vm1, %v1583_v29, -inf  ;;  %1020 = vst.msk [vmem:[%s3534_s8 + $0x118] sm:$0xff] %vm389_vm1, %v956_v12  ;;  %v1584_v30 = vand.u32 2147483647, %v956_v12  ;;  %v824_v33 = vmul.f32 %v1937_v32, %v2602_v5  ;;  %v668_v36 = vpop.f32.mrb[37].mxu0 }
 0x12b   :  { %v2919_v42 = vmax.f32 %v1670_v19, %v1677_v26  ;;  %v1673_v56 = vsel %vm389_vm1, %v1581_v7, -inf  ;;  %1018 = vst.msk [vmem:[%s3534_s8 + $0x108] sm:$0xff] %vm389_vm1, %v954_v25  ;;  %v1582_v43 = vand.u32 2147483647, %v954_v25  ;;  %v822_v62 = vmul.f32 %v2602_v5, %v668_v36  ;;  %v1938_v44 = vpop.f32.mrb[38].mxu0 }
 0x12c   :  { %1488 = vst.msk [vmem:[%s3537_s9 + $0x18] sm:$0xff] %vm1484_vm2, %v1423_v58  ;;  %v2935_v46 = vmax.f32 %v1666_v31, %v1673_v56  ;;  %v1679_v47 = vsel %vm389_vm1, %v1584_v30, -inf  ;;  %v895_v17 = vadd.f32 %v2607_v35, %v824_v33  ;;  %v825_v50 = vmul.f32 %v1938_v44, %v2602_v5  ;;  %v671_v51 = vpop.f32.mrb[39].mxu0  ;;  %1491 = vst.msk [vmem:[%s3537_s9 + $0x30] sm:$0xff] %vm1484_vm2, %v1426_v37 }
 0x12d   :  { %v2944_v52 = vmax.f32 %v1672_v15, %v1679_v47  ;;  %v1675_v54 = vsel %vm389_vm1, %v1582_v43, -inf  ;;  %v893_v55 = vadd.f32 %v2607_v35, %v822_v62  ;;  %v823_v57 = vmul.f32 %v2602_v5, %v671_v51  ;;  %1489 = vst.msk [vmem:[%s3537_s9 + $0x20] sm:$0xff] %vm1484_vm2, %v1424_v11  ;;  %v1979_v43 = vpop.f32.mrb[12].mxu1 }
 0x12e   :  { %v2949_v59 = vmax.f32 %v1668_v49, %v1675_v54  ;;  %v959_v60 = vmax.f32 %v895_v17, 0.0  ;;  %v896_v61 = vadd.f32 %v2607_v35, %v825_v50  ;;  %v1354_v19 = vmul.f32 %v2844_v41, %v1106_v39  ;;  %v1135_v17 = vpop.f32.mrb[13].mxu1 }
 0x12f   :  { %v957_v2 = vmax.f32 %v893_v55, 0.0  ;;  %v894_v4 = vadd.f32 %v2607_v35, %v823_v57  ;;  %v1359_v31 = vmul.f32 %v1975_v8, %v2844_v41  ;;  %v1427_v15 = vadd.f32 %v2853_v10, %v1356_v6  ;;  %v1980_v57 = vpop.f32.mrb[14].mxu1 }
 0x130   :  { %1023 = vst.msk [vmem:[%s3534_s8 + $0x130] sm:$0xff] %vm389_vm1, %v959_v60  ;;  %v1587_v23 = vand.u32 2147483647, %v959_v60  ;;  %v960_v9 = vmax.f32 %v896_v61, 0.0  ;;  %v1425_v16 = vadd.f32 %v2853_v10, %v1354_v19  ;;  %v1357_v36 = vmul.f32 %v2844_v41, %v1119_v13 }
 0x131   :  { %1021 = vst.msk [vmem:[%s3534_s8 + $0x120] sm:$0xff] %vm389_vm1, %v957_v2  ;;  %v1585_v34 = vand.u32 2147483647, %v957_v2  ;;  %v958_v14 = vmax.f32 %v894_v4, 0.0  ;;  %v1941_v38 = vpop.f32.mrb[40].mxu0  ;;  %v1430_v3 = vadd.f32 %v2853_v10, %v1359_v31  ;;  %v1358_v56 = vmul.f32 %v2844_v41, %v1122_v24  ;;  %v1138_v4 = vpop.f32.mrb[15].mxu1 }
 0x132   :  { %v1685_v20 = vsel %vm389_vm1, %v1587_v23, -inf  ;;  %1024 = vst.msk [vmem:[%s3534_s8 + $0x138] sm:$0xff] %vm389_vm1, %v960_v9  ;;  %v1588_v49 = vand.u32 2147483647, %v960_v9  ;;  %v828_v53 = vmul.f32 %v1941_v38, %v2602_v5  ;;  %v684_v22 = vpop.f32.mrb[41].mxu0  ;;  %v1363_v47 = vmul.f32 %v1979_v43, %v2844_v41 }
 0x133   :  { %v1686_v27 = vmax.f32 %v2919_v42, %v1685_v20  ;;  %v1681_v28 = vsel %vm389_vm1, %v1585_v34, -inf  ;;  %1022 = vst.msk [vmem:[%s3534_s8 + $0x128] sm:$0xff] %vm389_vm1, %v958_v14  ;;  %v1586_v45 = vand.u32 2147483647, %v958_v14  ;;  %v826_v48 = vmul.f32 %v2602_v5, %v684_v22  ;;  %v1942_v29 = vpop.f32.mrb[42].mxu0 }
 0x134   :  { %1492 = vst.msk [vmem:[%s3537_s9 + $0x38] sm:$0xff] %vm1484_vm2, %v1427_v15  ;;  %1490 = vst.msk [vmem:[%s3537_s9 + $0x28] sm:$0xff] %vm1484_vm2, %v1425_v16  ;;  %v1682_v12 = vmax.f32 %v2935_v46, %v1681_v28  ;;  %v1687_v40 = vsel %vm389_vm1, %v1588_v49, -inf  ;;  %v899_v1 = vadd.f32 %v2607_v35, %v828_v53  ;;  %v829_v7 = vmul.f32 %v1942_v29, %v2602_v5  ;;  %v687_v25 = vpop.f32.mrb[43].mxu0 }
 0x135   :  { %1495 = vst.msk [vmem:[%s3537_s9 + $0x50] sm:$0xff] %vm1484_vm2, %v1430_v3  ;;  %v1688_v32 = vmax.f32 %v2944_v52, %v1687_v40  ;;  %v1683_v58 = vsel %vm389_vm1, %v1586_v45, -inf  ;;  %v897_v63 = vadd.f32 %v2607_v35, %v826_v48  ;;  %v827_v21 = vmul.f32 %v2602_v5, %v687_v25  ;;  %v1983_v45 = vpop.f32.mrb[16].mxu1 }
 0x136   :  { %v1684_v26 = vmax.f32 %v2949_v59, %v1683_v58  ;;  %v963_v30 = vmax.f32 %v899_v1, 0.0  ;;  %v900_v33 = vadd.f32 %v2607_v35, %v829_v7  ;;  %v1360_v42 = vmul.f32 %v1976_v18, %v2844_v41  ;;  %v1151_v1 = vpop.f32.mrb[17].mxu1 }
 0x137   :  { %v961_v37 = vmax.f32 %v897_v63, 0.0  ;;  %v898_v39 = vadd.f32 %v2607_v35, %v827_v21  ;;  %v1428_v46 = vadd.f32 %v2853_v10, %v1357_v36  ;;  %v1429_v55 = vadd.f32 %v2853_v10, %v1358_v56  ;;  %v1984_v21 = vpop.f32.mrb[18].mxu1 }
 0x138   :  { %1027 = vst.msk [vmem:[%s3534_s8 + $0x150] sm:$0xff] %vm389_vm1, %v963_v30  ;;  %v1591_v62 = vand.u32 2147483647, %v963_v30  ;;  %v964_v44 = vmax.f32 %v900_v33, 0.0  ;;  %v1431_v54 = vadd.f32 %v2853_v10, %v1360_v42  ;;  %v1434_v2 = vadd.f32 %v2853_v10, %v1363_v47 }
 0x139   :  { %1025 = vst.msk [vmem:[%s3534_s8 + $0x140] sm:$0xff] %vm389_vm1, %v961_v37  ;;  %v1589_v50 = vand.u32 2147483647, %v961_v37  ;;  %v962_v51 = vmax.f32 %v898_v39, 0.0  ;;  %v1945_v52 = vpop.f32.mrb[44].mxu0  ;;  %v1361_v22 = vmul.f32 %v2844_v41, %v1135_v17  ;;  %v1362_v28 = vmul.f32 %v2844_v41, %v1138_v4  ;;  %v1154_v39 = vpop.f32.mrb[19].mxu1 }
 0x13a   :  { %v1693_v59 = vsel %vm389_vm1, %v1591_v62, -inf  ;;  %1028 = vst.msk [vmem:[%s3534_s8 + $0x158] sm:$0xff] %vm389_vm1, %v964_v44  ;;  %v1592_v60 = vand.u32 2147483647, %v964_v44  ;;  %v832_v61 = vmul.f32 %v1945_v52, %v2602_v5  ;;  %v700_v0 = vpop.f32.mrb[45].mxu0  ;;  %v1367_v40 = vmul.f32 %v1983_v45, %v2844_v41 }
 0x13b   :  { %1493 = vst.msk [vmem:[%s3537_s9 + $0x40] sm:$0xff] %vm1484_vm2, %v1428_v46  ;;  %v3035_v6 = vmax.f32 %v1686_v27, %v1693_v59  ;;  %v1689_v19 = vsel %vm389_vm1, %v1589_v50, -inf  ;;  %v1590_v8 = vand.u32 2147483647, %v962_v51  ;;  %v830_v23 = vmul.f32 %v2602_v5, %v700_v0  ;;  %v1946_v9 = vpop.f32.mrb[46].mxu0  ;;  %1496 = vst.msk [vmem:[%s3537_s9 + $0x58] sm:$0xff] %vm1484_vm2, %v1431_v54 }
 0x13c   :  { %1026 = vst.msk [vmem:[%s3534_s8 + $0x148] sm:$0xff] %vm389_vm1, %v962_v51  ;;  %v3051_v11 = vmax.f32 %v1682_v12, %v1689_v19  ;;  %v1695_v31 = vsel %vm389_vm1, %v1592_v60, -inf  ;;  %v903_v13 = vadd.f32 %v2607_v35, %v832_v61  ;;  %v833_v34 = vmul.f32 %v1946_v9, %v2602_v5  ;;  %v703_v14 = vpop.f32.mrb[47].mxu0 }
 0x13d   :  { %1494 = vst.msk [vmem:[%s3537_s9 + $0x48] sm:$0xff] %vm1484_vm2, %v1429_v55  ;;  %1499 = vst.msk [vmem:[%s3537_s9 + $0x70] sm:$0xff] %vm1484_vm2, %v1434_v2  ;;  %v3060_v38 = vmax.f32 %v1688_v32, %v1695_v31  ;;  %v1691_v15 = vsel %vm389_vm1, %v1590_v8, -inf  ;;  %v901_v16 = vadd.f32 %v2607_v35, %v830_v23  ;;  %v831_v18 = vmul.f32 %v2602_v5, %v703_v14  ;;  %v1987_v8 = vpop.f32.mrb[20].mxu1 }
 0x13e   :  { %v3065_v20 = vmax.f32 %v1684_v26, %v1691_v15  ;;  %v967_v49 = vmax.f32 %v903_v13, 0.0  ;;  %v904_v53 = vadd.f32 %v2607_v35, %v833_v34  ;;  %v1364_v27 = vmul.f32 %v1980_v57, %v2844_v41  ;;  %v1167_v13 = vpop.f32.mrb[21].mxu1 }
 0x13f   :  { %v965_v3 = vmax.f32 %v901_v16, 0.0  ;;  %v902_v24 = vadd.f32 %v2607_v35, %v831_v18  ;;  %v1432_v12 = vadd.f32 %v2853_v10, %v1361_v22  ;;  %v1433_v63 = vadd.f32 %v2853_v10, %v1362_v28  ;;  %v1988_v18 = vpop.f32.mrb[22].mxu1 }
 0x140   :  { %1031 = vst.msk [vmem:[%s3534_s8 + $0x170] sm:$0xff] %vm389_vm1, %v967_v49  ;;  %v1595_v48 = vand.u32 2147483647, %v967_v49  ;;  %v968_v29 = vmax.f32 %v904_v53, 0.0  ;;  %v1435_v58 = vadd.f32 %v2853_v10, %v1364_v27  ;;  %v1438_v37 = vadd.f32 %v2853_v10, %v1367_v40 }
 0x141   :  { %1029 = vst.msk [vmem:[%s3534_s8 + $0x160] sm:$0xff] %vm389_vm1, %v965_v3  ;;  %v1593_v7 = vand.u32 2147483647, %v965_v3  ;;  %v966_v25 = vmax.f32 %v902_v24, 0.0  ;;  %v1949_v32 = vpop.f32.mrb[48].mxu0  ;;  %v1365_v0 = vmul.f32 %v2844_v41, %v1151_v1  ;;  %v1366_v19 = vmul.f32 %v2844_v41, %v1154_v39  ;;  %v1170_v24 = vpop.f32.mrb[23].mxu1 }
 0x142   :  { %v1701_v26 = vsel %vm389_vm1, %v1595_v48, -inf  ;;  %1032 = vst.msk [vmem:[%s3534_s8 + $0x178] sm:$0xff] %vm389_vm1, %v968_v29  ;;  %v1596_v30 = vand.u32 2147483647, %v968_v29  ;;  %v836_v33 = vmul.f32 %v1949_v32, %v2602_v5  ;;  %v716_v36 = vpop.f32.mrb[49].mxu0  ;;  %v1371_v31 = vmul.f32 %v1987_v8, %v2844_v41 }
 0x143   :  { %1497 = vst.msk [vmem:[%s3537_s9 + $0x60] sm:$0xff] %vm1484_vm2, %v1432_v12  ;;  %v1702_v42 = vmax.f32 %v3035_v6, %v1701_v26  ;;  %v1697_v56 = vsel %vm389_vm1, %v1593_v7, -inf  ;;  %v1594_v43 = vand.u32 2147483647, %v966_v25  ;;  %v834_v62 = vmul.f32 %v2602_v5, %v716_v36  ;;  %v1950_v44 = vpop.f32.mrb[50].mxu0  ;;  %1500 = vst.msk [vmem:[%s3537_s9 + $0x78] sm:$0xff] %vm1484_vm2, %v1435_v58 }
 0x144   :  { %1030 = vst.msk [vmem:[%s3534_s8 + $0x168] sm:$0xff] %vm389_vm1, %v966_v25  ;;  %v1698_v46 = vmax.f32 %v3051_v11, %v1697_v56  ;;  %v1703_v47 = vsel %vm389_vm1, %v1596_v30, -inf  ;;  %v907_v17 = vadd.f32 %v2607_v35, %v836_v33  ;;  %v837_v50 = vmul.f32 %v1950_v44, %v2602_v5  ;;  %v719_v51 = vpop.f32.mrb[51].mxu0 }
 0x145   :  { %1498 = vst.msk [vmem:[%s3537_s9 + $0x68] sm:$0xff] %vm1484_vm2, %v1433_v63  ;;  %1503 = vst.msk [vmem:[%s3537_s9 + $0x90] sm:$0xff] %vm1484_vm2, %v1438_v37  ;;  %v1704_v52 = vmax.f32 %v3060_v38, %v1703_v47  ;;  %v1699_v54 = vsel %vm389_vm1, %v1594_v43, -inf  ;;  %v905_v55 = vadd.f32 %v2607_v35, %v834_v62  ;;  %v835_v57 = vmul.f32 %v2602_v5, %v719_v51  ;;  %v3182_v63 = vld [vmem:[%s3533_s4] ss:$0 sm:$0xff]  ;;  %v1991_v43 = vpop.f32.mrb[24].mxu1 }
 0x146   :  { %v1700_v59 = vmax.f32 %v3065_v20, %v1699_v54  ;;  %v971_v60 = vmax.f32 %v907_v17, 0.0  ;;  %v908_v61 = vadd.f32 %v2607_v35, %v837_v50  ;;  %v1368_v6 = vmul.f32 %v1984_v21, %v2844_v41  ;;  %v1183_v17 = vpop.f32.mrb[25].mxu1 }
 0x147   :  { %v969_v2 = vmax.f32 %v905_v55, 0.0  ;;  %v906_v4 = vadd.f32 %v2607_v35, %v835_v57  ;;  %v1436_v11 = vadd.f32 %v2853_v10, %v1365_v0  ;;  %v1437_v16 = vadd.f32 %v2853_v10, %v1366_v19  ;;  %v1992_v57 = vpop.f32.mrb[26].mxu1 }
 0x148   :  { %1035 = vst.msk [vmem:[%s3534_s8 + $0x190] sm:$0xff] %vm389_vm1, %v971_v60  ;;  %v1599_v23 = vand.u32 2147483647, %v971_v60  ;;  %v972_v9 = vmax.f32 %v908_v61, 0.0  ;;  %v1439_v15 = vadd.f32 %v2853_v10, %v1368_v6  ;;  %v1442_v3 = vadd.f32 %v2853_v10, %v1371_v31 }
 0x149   :  { %1033 = vst.msk [vmem:[%s3534_s8 + $0x180] sm:$0xff] %vm389_vm1, %v969_v2  ;;  %v1597_v34 = vand.u32 2147483647, %v969_v2  ;;  %v970_v14 = vmax.f32 %v906_v4, 0.0  ;;  %v1953_v38 = vpop.f32.mrb[52].mxu0  ;;  %v1369_v36 = vmul.f32 %v2844_v41, %v1167_v13  ;;  %v1370_v56 = vmul.f32 %v2844_v41, %v1170_v24  ;;  %v1186_v4 = vpop.f32.mrb[27].mxu1 }
 0x14a   :  { %v1709_v20 = vsel %vm389_vm1, %v1599_v23, -inf  ;;  %1036 = vst.msk [vmem:[%s3534_s8 + $0x198] sm:$0xff] %vm389_vm1, %v972_v9  ;;  %v1600_v49 = vand.u32 2147483647, %v972_v9  ;;  %v840_v53 = vmul.f32 %v1953_v38, %v2602_v5  ;;  %v732_v22 = vpop.f32.mrb[53].mxu0  ;;  %v1375_v47 = vmul.f32 %v1991_v43, %v2844_v41 }
 0x14b   :  { %1501 = vst.msk [vmem:[%s3537_s9 + $0x80] sm:$0xff] %vm1484_vm2, %v1436_v11  ;;  %v3151_v27 = vmax.f32 %v1702_v42, %v1709_v20  ;;  %v1705_v28 = vsel %vm389_vm1, %v1597_v34, -inf  ;;  %v1598_v45 = vand.u32 2147483647, %v970_v14  ;;  %v838_v48 = vmul.f32 %v2602_v5, %v732_v22  ;;  %v1954_v29 = vpop.f32.mrb[54].mxu0  ;;  %1504 = vst.msk [vmem:[%s3537_s9 + $0x98] sm:$0xff] %vm1484_vm2, %v1439_v15 }
 0x14c   :  { %1034 = vst.msk [vmem:[%s3534_s8 + $0x188] sm:$0xff] %vm389_vm1, %v970_v14  ;;  %v3167_v12 = vmax.f32 %v1698_v46, %v1705_v28  ;;  %v1711_v40 = vsel %vm389_vm1, %v1600_v49, -inf  ;;  %v911_v1 = vadd.f32 %v2607_v35, %v840_v53  ;;  %v841_v7 = vmul.f32 %v1954_v29, %v2602_v5  ;;  %v735_v25 = vpop.f32.mrb[55].mxu0  ;;  %v3188_v5 = vld [vmem:[%s3532_s3] ss:$0 sm:$0xff] }
 0x14d   :  { %1502 = vst.msk [vmem:[%s3537_s9 + $0x88] sm:$0xff] %vm1484_vm2, %v1437_v16  ;;  %1507 = vst.msk [vmem:[%s3537_s9 + $0xb0] sm:$0xff] %vm1484_vm2, %v1442_v3  ;;  %v3176_v32 = vmax.f32 %v1704_v52, %v1711_v40  ;;  %v1707_v58 = vsel %vm389_vm1, %v1598_v45, -inf  ;;  %v909_v21 = vadd.f32 %v3182_v63, %v838_v48  ;;  %v839_v35 = vmul.f32 %v3188_v5, %v735_v25  ;;  %v1995_v45 = vpop.f32.mrb[28].mxu1 }
 0x14e   :  { %v3191_v26 = vmax.f32 %v1700_v59, %v1707_v58  ;;  %v975_v30 = vmax.f32 %v911_v1, 0.0  ;;  %v912_v33 = vadd.f32 %v3182_v63, %v841_v7  ;;  %v1372_v42 = vmul.f32 %v1988_v18, %v2844_v41  ;;  %v1199_v1 = vpop.f32.mrb[29].mxu1 }
 0x14f   :  { %v973_v37 = vmax.f32 %v909_v21, 0.0  ;;  %v910_v39 = vadd.f32 %v3182_v63, %v839_v35  ;;  %v1440_v46 = vadd.f32 %v2853_v10, %v1369_v36  ;;  %v1441_v55 = vadd.f32 %v2853_v10, %v1370_v56  ;;  %v1996_v35 = vpop.f32.mrb[30].mxu1 }
 0x150   :  { %1039 = vst.msk [vmem:[%s3534_s8 + $0x1b0] sm:$0xff] %vm389_vm1, %v975_v30  ;;  %v1603_v62 = vand.u32 2147483647, %v975_v30  ;;  %v976_v44 = vmax.f32 %v912_v33, 0.0  ;;  %v1443_v54 = vadd.f32 %v2853_v10, %v1372_v42  ;;  %v1446_v2 = vadd.f32 %v2853_v10, %v1375_v47 }
 0x151   :  { %1037 = vst.msk [vmem:[%s3534_s8 + $0x1a0] sm:$0xff] %vm389_vm1, %v973_v37  ;;  %v1601_v50 = vand.u32 2147483647, %v973_v37  ;;  %v974_v51 = vmax.f32 %v910_v39, 0.0  ;;  %v1957_v52 = vpop.f32.mrb[56].mxu0  ;;  %v1373_v22 = vmul.f32 %v2844_v41, %v1183_v17  ;;  %v1374_v28 = vmul.f32 %v2844_v41, %v1186_v4  ;;  %v1202_v39 = vpop.f32.mrb[31].mxu1 }
 0x152   :  { %v1717_v59 = vsel %vm389_vm1, %v1603_v62, -inf  ;;  %1040 = vst.msk [vmem:[%s3534_s8 + $0x1b8] sm:$0xff] %vm389_vm1, %v976_v44  ;;  %v1604_v60 = vand.u32 2147483647, %v976_v44  ;;  %v844_v61 = vmul.f32 %v3188_v5, %v1957_v52  ;;  %v748_v0 = vpop.f32.mrb[57].mxu0  ;;  %v1379_v40 = vmul.f32 %v1995_v45, %v2844_v41 }
 0x153   :  { %1505 = vst.msk [vmem:[%s3537_s9 + $0xa0] sm:$0xff] %vm1484_vm2, %v1440_v46  ;;  %v1713_v6 = vsel %vm389_vm1, %v1601_v50, -inf  ;;  %v1602_v19 = vand.u32 2147483647, %v974_v51  ;;  %v842_v8 = vmul.f32 %v3188_v5, %v748_v0  ;;  %v1958_v23 = vpop.f32.mrb[58].mxu0  ;;  %v1718_v9 = vmax.f32 %v3151_v27, %v1717_v59  ;;  %1508 = vst.msk [vmem:[%s3537_s9 + $0xb8] sm:$0xff] %vm1484_vm2, %v1443_v54 }
 0x154   :  { %1038 = vst.msk [vmem:[%s3534_s8 + $0x1a8] sm:$0xff] %vm389_vm1, %v974_v51  ;;  %v1719_v11 = vsel %vm389_vm1, %v1604_v60, -inf  ;;  %v915_v31 = vadd.f32 %v3182_v63, %v844_v61  ;;  %v845_v13 = vmul.f32 %v3188_v5, %v1958_v23  ;;  %v751_v34 = vpop.f32.mrb[59].mxu0  ;;  %v1714_v14 = vmax.f32 %v3167_v12, %v1713_v6 }
 0x155   :  { %1506 = vst.msk [vmem:[%s3537_s9 + $0xa8] sm:$0xff] %vm1484_vm2, %v1441_v55  ;;  %1511 = vst.msk [vmem:[%s3537_s9 + $0xd0] sm:$0xff] %vm1484_vm2, %v1446_v2  ;;  %v1715_v38 = vsel %vm389_vm1, %v1602_v19, -inf  ;;  %v913_v15 = vadd.f32 %v3182_v63, %v842_v8  ;;  %v843_v16 = vmul.f32 %v3188_v5, %v751_v34  ;;  %v1720_v18 = vmax.f32 %v3176_v32, %v1719_v11  ;;  %v1999_v8 = vpop.f32.mrb[32].mxu1 }
 0x156   :  { %v979_v20 = vmax.f32 %v915_v31, 0.0  ;;  %v916_v49 = vadd.f32 %v3182_v63, %v845_v13  ;;  %v1716_v53 = vmax.f32 %v3191_v26, %v1715_v38  ;;  %v1376_v27 = vmul.f32 %v1992_v57, %v2844_v41  ;;  %v1215_v31 = vpop.f32.mrb[33].mxu1 }
 0x157   :  { %v977_v3 = vmax.f32 %v913_v15, 0.0  ;;  %v914_v24 = vadd.f32 %v3182_v63, %v843_v16  ;;  %v1444_v12 = vadd.f32 %v2853_v10, %v1373_v22  ;;  %v1445_v21 = vadd.f32 %v2853_v10, %v1374_v28  ;;  %v2000_v38 = vpop.f32.mrb[34].mxu1 }
 0x158   :  { %1043 = vst.msk [vmem:[%s3534_s8 + $0x1d0] sm:$0xff] %vm389_vm1, %v979_v20  ;;  %v1607_v48 = vand.u32 2147483647, %v979_v20  ;;  %v980_v29 = vmax.f32 %v916_v49, 0.0  ;;  %v1447_v58 = vadd.f32 %v2853_v10, %v1376_v27  ;;  %v1450_v37 = vadd.f32 %v2853_v10, %v1379_v40  ;;  %v1218_v49 = vpop.f32.mrb[35].mxu1 }
 0x159   :  { %1041 = vst.msk [vmem:[%s3534_s8 + $0x1c0] sm:$0xff] %vm389_vm1, %v977_v3  ;;  %v1605_v7 = vand.u32 2147483647, %v977_v3  ;;  %v978_v25 = vmax.f32 %v914_v24, 0.0  ;;  %v1961_v32 = vpop.f32.mrb[60].mxu0  ;;  %v1377_v0 = vmul.f32 %v2844_v41, %v1199_v1  ;;  %v1380_v6 = vmul.f32 %v1996_v35, %v2844_v41 }
 0x15a   :  { %1044 = vst.msk [vmem:[%s3534_s8 + $0x1d8] sm:$0xff] %vm389_vm1, %v980_v29  ;;  %v1608_v26 = vand.u32 2147483647, %v980_v29  ;;  %v848_v30 = vmul.f32 %v3188_v5, %v1961_v32  ;;  %v764_v33 = vpop.f32.mrb[61].mxu0  ;;  %v1725_v36 = vsel %vm389_vm1, %v1607_v48, -inf  ;;  %v1378_v19 = vmul.f32 %v2844_v41, %v1202_v39 }
 0x15b   :  { %1509 = vst.msk [vmem:[%s3537_s9 + $0xc0] sm:$0xff] %vm1484_vm2, %v1444_v12  ;;  %v1606_v42 = vand.u32 2147483647, %v978_v25  ;;  %v846_v56 = vmul.f32 %v3188_v5, %v764_v33  ;;  %v1962_v43 = vpop.f32.mrb[62].mxu0  ;;  %v1721_v62 = vsel %vm389_vm1, %v1605_v7, -inf  ;;  %v1726_v44 = vmax.f32 %v1718_v9, %v1725_v36  ;;  %1512 = vst.msk [vmem:[%s3537_s9 + $0xd8] sm:$0xff] %vm1484_vm2, %v1447_v58 }
 0x15c   :  { %1042 = vst.msk [vmem:[%s3534_s8 + $0x1c8] sm:$0xff] %vm389_vm1, %v978_v25  ;;  %v919_v46 = vadd.f32 %v3182_v63, %v848_v30  ;;  %v849_v47 = vmul.f32 %v3188_v5, %v1962_v43  ;;  %v767_v17 = vpop.f32.mrb[63].mxu0  ;;  %v1722_v50 = vmax.f32 %v1714_v14, %v1721_v62  ;;  %v1727_v51 = vsel %vm389_vm1, %v1608_v26, -inf }
 0x15d   :  { %1510 = vst.msk [vmem:[%s3537_s9 + $0xc8] sm:$0xff] %vm1484_vm2, %v1445_v21  ;;  %1515 = vst.msk [vmem:[%s3537_s9 + $0xf0] sm:$0xff] %vm1484_vm2, %v1450_v37  ;;  %v917_v52 = vadd.f32 %v3182_v63, %v846_v56  ;;  %v847_v54 = vmul.f32 %v3188_v5, %v767_v17  ;;  %v1723_v55 = vsel %vm389_vm1, %v1606_v42, -inf  ;;  %v1728_v57 = vmax.f32 %v1720_v18, %v1727_v51  ;;  %v2003_v21 = vpop.f32.mrb[36].mxu1 }
 0x15e   :  { %v983_v59 = vmax.f32 %v919_v46, 0.0  ;;  %v920_v60 = vadd.f32 %v3182_v63, %v849_v47  ;;  %v1724_v61 = vmax.f32 %v1716_v53, %v1723_v55  ;;  %v1448_v9 = vadd.f32 %v2853_v10, %v1377_v0  ;;  %v1231_v26 = vpop.f32.mrb[37].mxu1 }
 0x15f   :  { %v981_v2 = vmax.f32 %v917_v52, 0.0  ;;  %v918_v4 = vadd.f32 %v3182_v63, %v847_v54  ;;  %v1383_v11 = vmul.f32 %v1999_v8, %v2844_v41  ;;  %v1451_v34 = vadd.f32 %v2853_v10, %v1380_v6  ;;  %v2004_v33 = vpop.f32.mrb[38].mxu1 }
 0x160   :  { %1047 = vst.msk [vmem:[%s3534_s8 + $0x1f0] sm:$0xff] %vm389_vm1, %v983_v59  ;;  %v1611_v5 = vand.u32 2147483647, %v983_v59  ;;  %v984_v23 = vmax.f32 %v920_v60, 0.0  ;;  %v1449_v14 = vadd.f32 %v2853_v10, %v1378_v19  ;;  %v1381_v20 = vmul.f32 %v2844_v41, %v1215_v31  ;;  %v1234_v39 = vpop.f32.mrb[39].mxu1 }
 0x161   :  { %1045 = vst.msk [vmem:[%s3534_s8 + $0x1e0] sm:$0xff] %vm389_vm1, %v981_v2  ;;  %v1609_v63 = vand.u32 2147483647, %v981_v2  ;;  %v982_v13 = vmax.f32 %v918_v4, 0.0  ;;  %v1454_v18 = vadd.f32 %v2853_v10, %v1383_v11  ;;  %v1384_v24 = vmul.f32 %v2000_v38, %v2844_v41  ;;  %v2007_v43 = vpop.f32.mrb[40].mxu1 }
 0x162   :  { %1048 = vst.msk [vmem:[%s3534_s8 + $0x1f8] sm:$0xff] %vm389_vm1, %v984_v23  ;;  %v1612_v15 = vand.u32 2147483647, %v984_v23  ;;  %v1733_v16 = vsel %vm389_vm1, %v1611_v5, -inf  ;;  %v1452_v45 = vadd.f32 %v2853_v10, %v1381_v20  ;;  %v1382_v48 = vmul.f32 %v2844_v41, %v1218_v49  ;;  %v1247_v17 = vpop.f32.mrb[41].mxu1 }
 0x163   :  { %1513 = vst.msk [vmem:[%s3537_s9 + $0xe0] sm:$0xff] %vm1484_vm2, %v1448_v9  ;;  %v1610_v53 = vand.u32 2147483647, %v982_v13  ;;  %v1729_v22 = vsel %vm389_vm1, %v1609_v63, -inf  ;;  %v1734_v3 = vmax.f32 %v1726_v44, %v1733_v16  ;;  %1516 = vst.msk [vmem:[%s3537_s9 + $0xf8] sm:$0xff] %vm1484_vm2, %v1451_v34  ;;  %v1455_v40 = vadd.f32 %v2853_v10, %v1384_v24  ;;  %v2008_v51 = vpop.f32.mrb[42].mxu1 }
 0x164   :  { %1046 = vst.msk [vmem:[%s3534_s8 + $0x1e8] sm:$0xff] %vm389_vm1, %v982_v13  ;;  %v1730_v27 = vmax.f32 %v1722_v50, %v1729_v22  ;;  %v1735_v28 = vsel %vm389_vm1, %v1612_v15, -inf  ;;  %v1453_v7 = vadd.f32 %v2853_v10, %v1382_v48  ;;  %v1387_v35 = vmul.f32 %v2003_v21, %v2844_v41  ;;  %v1250_v54 = vpop.f32.mrb[43].mxu1 }
 0x165   :  { %1514 = vst.msk [vmem:[%s3537_s9 + $0xe8] sm:$0xff] %vm1484_vm2, %v1449_v14  ;;  %1519 = vst.msk [vmem:[%s3537_s9 + $0x110] sm:$0xff] %vm1484_vm2, %v1454_v18  ;;  %v1731_v29 = vsel %vm389_vm1, %v1610_v53, -inf  ;;  %v1736_v12 = vmax.f32 %v1728_v57, %v1735_v28  ;;  %v1385_v30 = vmul.f32 %v2844_v41, %v1231_v26  ;;  %v1388_v37 = vmul.f32 %v2004_v33, %v2844_v41  ;;  %v2011_v59 = vpop.f32.mrb[44].mxu1 }
 0x166   :  { %v1732_v1 = vmax.f32 %v1724_v61, %v1731_v29  ;;  %1517 = vst.msk [vmem:[%s3537_s9 + $0x100] sm:$0xff] %vm1484_vm2, %v1452_v45  ;;  %1520 = vst.msk [vmem:[%s3537_s9 + $0x118] sm:$0xff] %vm1484_vm2, %v1455_v40  ;;  %v1458_v36 = vadd.f32 %v2853_v10, %v1387_v35  ;;  %v1386_v56 = vmul.f32 %v2844_v41, %v1234_v39  ;;  %v1263_v0 = vpop.f32.mrb[45].mxu1  ;;  %v2099_v35 = vld [vmem:[%s3535_s6] ss:$0 sm:$0xff] }
 0x167   :  { %v1738_v25 = vmax.f32 %v1734_v3, %v1736_v12  ;;  %1518 = vst.msk [vmem:[%s3537_s9 + $0x108] sm:$0xff] %vm1484_vm2, %v1453_v7  ;;  %v1456_v42 = vadd.f32 %v2853_v10, %v1385_v30  ;;  %v1459_v62 = vadd.f32 %v2853_v10, %v1388_v37  ;;  %v1391_v44 = vmul.f32 %v2007_v43, %v2844_v41  ;;  %v2012_v6 = vpop.f32.mrb[46].mxu1  ;;  %v2100_v37 = vld [vmem:[%s3536_s7] ss:$0 sm:$0xff] }
 0x168   :  { %v1737_v32 = vmax.f32 %v1730_v27, %v1732_v1  ;;  %1523 = vst.msk [vmem:[%s3537_s9 + $0x130] sm:$0xff] %vm1484_vm2, %v1458_v36  ;;  %v1457_v46 = vadd.f32 %v2853_v10, %v1386_v56  ;;  %v1389_v50 = vmul.f32 %v2844_v41, %v1247_v17  ;;  %v1392_v52 = vmul.f32 %v2008_v51, %v2844_v41  ;;  %v1266_v5 = vpop.f32.mrb[47].mxu1 }
 0x169   :  { %1521 = vst.msk [vmem:[%s3537_s9 + $0x120] sm:$0xff] %vm1484_vm2, %v1456_v42  ;;  %1524 = vst.msk [vmem:[%s3537_s9 + $0x138] sm:$0xff] %vm1484_vm2, %v1459_v62  ;;  %v1462_v47 = vadd.f32 %v2853_v10, %v1391_v44  ;;  %v1390_v57 = vmul.f32 %v2844_v41, %v1250_v54  ;;  %v1395_v61 = vmul.f32 %v2011_v59, %v2844_v41  ;;  %v2015_v11 = vpop.f32.mrb[48].mxu1 }
 0x16a   :  { %v1739_v58 = vmax.f32 %v1737_v32, %v1738_v25  ;;  %1522 = vst.msk [vmem:[%s3537_s9 + $0x128] sm:$0xff] %vm1484_vm2, %v1457_v46  ;;  %v1460_v55 = vadd.f32 %v2853_v10, %v1389_v50  ;;  %v1463_v60 = vadd.f32 %v2853_v10, %v1392_v52  ;;  %v1393_v4 = vmul.f32 %v2844_v41, %v1263_v0  ;;  %v1279_v13 = vpop.f32.mrb[49].mxu1 }
 0x16b   :  { %1527 = vst.msk [vmem:[%s3537_s9 + $0x150] sm:$0xff] %vm1484_vm2, %v1462_v47  ;;  %v1461_v2 = vadd.f32 %v2853_v10, %v1390_v57  ;;  %v1466_v19 = vadd.f32 %v2853_v10, %v1395_v61  ;;  %v1396_v8 = vmul.f32 %v2012_v6, %v2844_v41  ;;  %v1394_v9 = vmul.f32 %v2844_v41, %v1266_v5  ;;  %v2016_v38 = vpop.f32.mrb[50].mxu1 }
 0x16c   :  { %1740 = vmax.xlane.f32.xlu0 %v1739_v58  ;;  %1525 = vst.msk [vmem:[%s3537_s9 + $0x140] sm:$0xff] %vm1484_vm2, %v1460_v55  ;;  %1528 = vst.msk [vmem:[%s3537_s9 + $0x158] sm:$0xff] %vm1484_vm2, %v1463_v60  ;;  %v1464_v23 = vadd.f32 %v2853_v10, %v1393_v4  ;;  %v1399_v63 = vmul.f32 %v2015_v11, %v2844_v41  ;;  %v1397_v14 = vmul.f32 %v2844_v41, %v1279_v13  ;;  %v1282_v18 = vpop.f32.mrb[51].mxu1 }
 0x16d   :  { %1526 = vst.msk [vmem:[%s3537_s9 + $0x148] sm:$0xff] %vm1484_vm2, %v1461_v2  ;;  %1531 = vst.msk [vmem:[%s3537_s9 + $0x170] sm:$0xff] %vm1484_vm2, %v1466_v19  ;;  %v1467_v31 = vadd.f32 %v2853_v10, %v1396_v8  ;;  %v1465_v34 = vadd.f32 %v2853_v10, %v1394_v9  ;;  %v1400_v16 = vmul.f32 %v2016_v38, %v2844_v41 }
 0x16e   :  { %1529 = vst.msk [vmem:[%s3537_s9 + $0x160] sm:$0xff] %vm1484_vm2, %v1464_v23  ;;  %v1470_v15 = vadd.f32 %v2853_v10, %v1399_v63  ;;  %v1468_v20 = vadd.f32 %v2853_v10, %v1397_v14  ;;  %v1398_v49 = vmul.f32 %v2844_v41, %v1282_v18  ;;  %v2019_v53 = vpop.f32.mrb[52].mxu1 }
 0x16f   :  { %1532 = vst.msk [vmem:[%s3537_s9 + $0x178] sm:$0xff] %vm1484_vm2, %v1467_v31  ;;  %1530 = vst.msk [vmem:[%s3537_s9 + $0x168] sm:$0xff] %vm1484_vm2, %v1465_v34  ;;  %v1471_v22 = vadd.f32 %v2853_v10, %v1400_v16  ;;  %v1403_v3 = vmul.f32 %v2019_v53, %v2844_v41  ;;  %v1295_v24 = vpop.f32.mrb[53].mxu1 }
 0x170   :  { %1535 = vst.msk [vmem:[%s3537_s9 + $0x190] sm:$0xff] %vm1484_vm2, %v1470_v15  ;;  %1533 = vst.msk [vmem:[%s3537_s9 + $0x180] sm:$0xff] %vm1484_vm2, %v1468_v20  ;;  %v1469_v27 = vadd.f32 %v2853_v10, %v1398_v49  ;;  %v1401_v28 = vmul.f32 %v2844_v41, %v1295_v24  ;;  %v2020_v45 = vpop.f32.mrb[54].mxu1 }
 0x171   :  { %1536 = vst.msk [vmem:[%s3537_s9 + $0x198] sm:$0xff] %vm1484_vm2, %v1471_v22  ;;  %v1474_v48 = vadd.f32 %v2853_v10, %v1403_v3  ;;  %v1404_v29 = vmul.f32 %v2020_v45, %v2844_v41  ;;  %v1298_v12 = vpop.f32.mrb[55].mxu1 }
 0x172   :  { %1534 = vst.msk [vmem:[%s3537_s9 + $0x188] sm:$0xff] %vm1484_vm2, %v1469_v27  ;;  %v1472_v40 = vadd.f32 %v2853_v10, %v1401_v28  ;;  %v1402_v1 = vmul.f32 %v2844_v41, %v1298_v12 }
 0x173   :  { %1539 = vst.msk [vmem:[%s3537_s9 + $0x1b0] sm:$0xff] %vm1484_vm2, %v1474_v48  ;;  %v1475_v25 = vadd.f32 %v2853_v10, %v1404_v29 }
 0x174   :  { %1537 = vst.msk [vmem:[%s3537_s9 + $0x1a0] sm:$0xff] %vm1484_vm2, %v1472_v40  ;;  %v1473_v21 = vadd.f32 %v2853_v10, %v1402_v1 }
 0x175   :  { %1540 = vst.msk [vmem:[%s3537_s9 + $0x1b8] sm:$0xff] %vm1484_vm2, %v1475_v25 }
 0x176   :  { %v2023_v7 = vpop.f32.mrb[56].mxu1  ;;  %1538 = vst.msk [vmem:[%s3537_s9 + $0x1a8] sm:$0xff] %vm1484_vm2, %v1473_v21 }
 0x177   :  { %v1407_v32 = vmul.f32 %v2023_v7, %v2844_v41  ;;  %v1311_v58 = vpop.f32.mrb[57].mxu1 }
 0x178   :  { %v1405_v26 = vmul.f32 %v2099_v35, %v1311_v58  ;;  %v2024_v30 = vpop.f32.mrb[58].mxu1 }
 0x179   :  { %v1478_v41 = vadd.f32 %v2853_v10, %v1407_v32  ;;  %v1408_v33 = vmul.f32 %v2099_v35, %v2024_v30  ;;  %v1314_v36 = vpop.f32.mrb[59].mxu1 }
 0x17a   :  { %v1476_v39 = vadd.f32 %v2100_v37, %v1405_v26  ;;  %v1406_v42 = vmul.f32 %v2099_v35, %v1314_v36 }
 0x17b   :  { %1543 = vst.msk [vmem:[%s3537_s9 + $0x1d0] sm:$0xff] %vm1484_vm2, %v1478_v41  ;;  %v1479_v10 = vadd.f32 %v2100_v37, %v1408_v33 }
 0x17c   :  { %1541 = vst.msk [vmem:[%s3537_s9 + $0x1c0] sm:$0xff] %vm1484_vm2, %v1476_v39  ;;  %v1477_v44 = vadd.f32 %v2100_v37, %v1406_v42 }
 0x17d   :  { %1544 = vst.msk [vmem:[%s3537_s9 + $0x1d8] sm:$0xff] %vm1484_vm2, %v1479_v10 }
 0x17e   :  { %v2027_v56 = vpop.f32.mrb[60].mxu1  ;;  %1542 = vst.msk [vmem:[%s3537_s9 + $0x1c8] sm:$0xff] %vm1484_vm2, %v1477_v44 }
 0x17f   :  { %v1411_v43 = vmul.f32 %v2099_v35, %v2027_v56  ;;  %v1327_v62 = vpop.f32.mrb[61].mxu1 }
 0x180   :  { %v1409_v46 = vmul.f32 %v2099_v35, %v1327_v62  ;;  %v2028_v47 = vpop.f32.mrb[62].mxu1 }
 0x181   :  { %v1482_v17 = vadd.f32 %v2100_v37, %v1411_v43  ;;  %v1412_v50 = vmul.f32 %v2099_v35, %v2028_v47  ;;  %v1330_v51 = vpop.f32.mrb[63].mxu1 }
 0x182   :  { %v1480_v52 = vadd.f32 %v2100_v37, %v1409_v46  ;;  %v1410_v54 = vmul.f32 %v2099_v35, %v1330_v51 }
 0x183   :  { %1547 = vst.msk [vmem:[%s3537_s9 + $0x1f0] sm:$0xff] %vm1484_vm2, %v1482_v17  ;;  %v1483_v55 = vadd.f32 %v2100_v37, %v1412_v50 }
 0x184   :  { %1545 = vst.msk [vmem:[%s3537_s9 + $0x1e0] sm:$0xff] %vm1484_vm2, %v1480_v52  ;;  %v1481_v57 = vadd.f32 %v2100_v37, %v1410_v54 }
 0x185   :  { %1548 = vst.msk [vmem:[%s3537_s9 + $0x1f8] sm:$0xff] %vm1484_vm2, %v1483_v55 }
 0x186   :  { %1546 = vst.msk [vmem:[%s3537_s9 + $0x1e8] sm:$0xff] %vm1484_vm2, %v1481_v57 }
 0x1f9   :  { %v1741_v59 = vpop.xlane.xlu0 %1740 }
 0x1fa   :  { %v1742_v60 = vrot.slane %v1741_v59, 4 }
 0x1fc   :  { %v1743_v61 = vmax.f32 %v1741_v59, %v1742_v60 }
 0x1fe   :  { %v1744_v0 = vrot.slane %v1743_v61, 2 }
 0x200   :  { %v1745_v2 = vmax.f32 %v1743_v61, %v1744_v0 }
 0x202   :  { %v1746_v4 = vrot.slane %v1745_v2, 1 }
 0x204   :  { %v1747_v6 = vmax.f32 %v1745_v2, %v1746_v4 }
 0x206   :  { %2095 = vpush %v1747_v6 }
 0x237   :  { %s2096_s25 = spop %2095 }
 0x238   :  { %v1749_v19 = vstv %s2096_s25 }
 0x239   :  { %1750 = vst [vmem:[%s3538_s10] sm:$0xff] %v1749_v19 }

// kernel: q_res_unit_bn_forward.9
= control target key start
LH: loop header
LB: loop body
LE: loop exit
PB: predicated region body
PF: predicated region fallthrough
CT: control target
= control target key end

     0   :  { %vm468_vm0 = vcmask 64512   ;;  %s1207_s0 = inlined_call_operand.vmem [shape: f32[512,8], index: 0, kind: input, shape index: {}]   ;;  %s1208_s1 = inlined_call_operand.<no memory space> [shape: f32[1,1], index: 1, kind: input, shape index: {}]   ;;  %s1209_s2 = inlined_call_operand.<no memory space> [shape: f32[1,1], index: 2, kind: input, shape index: {}]   ;;  %s1210_s3 = inlined_call_operand.vmem [shape: f32[512,8], index: 3, kind: output, shape index: {}]  }
   0x1   :  { %v16_v0 = vld [vmem:[%s1207_s0] sm:$0xff]  ;;  %v627_v1 = vstv %s1209_s2  ;;  %v17_v2 = vld [vmem:[%s1207_s0 + $0x8] sm:$0xff]  ;;  %v18_v5 = vld [vmem:[%s1207_s0 + $0x10] sm:$0xff] }
   0x2   :  { %v82_v3 = vmul.f32 %v627_v1, %v16_v0  ;;  %v83_v4 = vmul.f32 %v627_v1, %v17_v2  ;;  %v19_v6 = vld [vmem:[%s1207_s0 + $0x18] sm:$0xff]  ;;  %v20_v7 = vld [vmem:[%s1207_s0 + $0x20] sm:$0xff]  ;;  %v646_v8 = vstv %s1208_s1  ;;  %v84_v9 = vmul.f32 %v627_v1, %v18_v5  ;;  %v21_v12 = vld [vmem:[%s1207_s0 + $0x28] sm:$0xff] }
   0x3   :  { %v85_v10 = vmul.f32 %v627_v1, %v19_v6  ;;  %v86_v11 = vmul.f32 %v627_v1, %v20_v7  ;;  %v22_v13 = vld [vmem:[%s1207_s0 + $0x30] sm:$0xff]  ;;  %v23_v14 = vld [vmem:[%s1207_s0 + $0x38] sm:$0xff]  ;;  %v87_v17 = vmul.f32 %v627_v1, %v21_v12  ;;  %v24_v47 = vld [vmem:[%s1207_s0 + $0x40] sm:$0xff] }
   0x4   :  { %v537_v15 = vround.rtne.f32 %v82_v3  ;;  %v538_v16 = vround.rtne.f32 %v83_v4  ;;  %v88_v18 = vmul.f32 %v627_v1, %v22_v13  ;;  %v539_v19 = vround.rtne.f32 %v84_v9  ;;  %v25_v48 = vld [vmem:[%s1207_s0 + $0x48] sm:$0xff]  ;;  %v26_v53 = vld [vmem:[%s1207_s0 + $0x50] sm:$0xff]  ;;  %v27_v54 = vld [vmem:[%s1207_s0 + $0x58] sm:$0xff] }
   0x5   :  { %v540_v20 = vround.rtne.f32 %v85_v10  ;;  %v541_v21 = vround.rtne.f32 %v86_v11  ;;  %v89_v22 = vmul.f32 %v627_v1, %v23_v14  ;;  %v542_v25 = vround.rtne.f32 %v87_v17  ;;  %v28_v55 = vld [vmem:[%s1207_s0 + $0x60] sm:$0xff]  ;;  %v29_v60 = vld [vmem:[%s1207_s0 + $0x68] sm:$0xff]  ;;  %v30_v61 = vld [vmem:[%s1207_s0 + $0x70] sm:$0xff] }
   0x6   :  { %v210_v23 = vmax.f32 %v537_v15, -128.0  ;;  %v211_v24 = vmax.f32 %v538_v16, -128.0  ;;  %v543_v26 = vround.rtne.f32 %v88_v18  ;;  %v212_v27 = vmax.f32 %v539_v19, -128.0  ;;  %v31_v3 = vld [vmem:[%s1207_s0 + $0x78] sm:$0xff] }
   0x7   :  { %v213_v28 = vmax.f32 %v540_v20, -128.0  ;;  %v214_v29 = vmax.f32 %v541_v21, -128.0  ;;  %v544_v30 = vround.rtne.f32 %v89_v22  ;;  %v215_v33 = vmax.f32 %v542_v25, -128.0 }
   0x8   :  { %v274_v31 = vmin.f32 %v210_v23, 127.0  ;;  %v275_v32 = vmin.f32 %v211_v24, 127.0  ;;  %v216_v34 = vmax.f32 %v543_v26, -128.0  ;;  %v276_v35 = vmin.f32 %v212_v27, 127.0 }
   0x9   :  { %v277_v36 = vmin.f32 %v213_v28, 127.0  ;;  %v278_v37 = vmin.f32 %v214_v29, 127.0  ;;  %v217_v38 = vmax.f32 %v544_v30, -128.0  ;;  %v279_v41 = vmin.f32 %v215_v33, 127.0 }
   0xa   :  { %v340_v39 = vmul.f32 %v646_v8, %v274_v31  ;;  %v341_v40 = vmul.f32 %v646_v8, %v275_v32  ;;  %v280_v42 = vmin.f32 %v216_v34, 127.0  ;;  %v342_v43 = vmul.f32 %v646_v8, %v276_v35 }
   0xb   :  { %v343_v44 = vmul.f32 %v646_v8, %v277_v36  ;;  %v344_v45 = vmul.f32 %v646_v8, %v278_v37  ;;  %v281_v46 = vmin.f32 %v217_v38, 127.0  ;;  %v345_v51 = vmul.f32 %v646_v8, %v279_v41  ;;  %v32_v41 = vld [vmem:[%s1207_s0 + $0x80] sm:$0xff] }
   0xc   :  { %v404_v49 = vmax.f32 %v340_v39, 0.0  ;;  %v405_v50 = vmax.f32 %v341_v40, 0.0  ;;  %v346_v52 = vmul.f32 %v646_v8, %v280_v42  ;;  %v406_v56 = vmax.f32 %v342_v43, 0.0  ;;  %v33_v42 = vld [vmem:[%s1207_s0 + $0x88] sm:$0xff] }
   0xd   :  { %v407_v57 = vmax.f32 %v343_v44, 0.0  ;;  %v408_v58 = vmax.f32 %v344_v45, 0.0  ;;  %v347_v59 = vmul.f32 %v646_v8, %v281_v46  ;;  %v409_v62 = vmax.f32 %v345_v51, 0.0 }
   0xe   :  { %469 = vst.msk [vmem:[%s1210_s3] sm:$0xff] %vm468_vm0, %v404_v49  ;;  %470 = vst.msk [vmem:[%s1210_s3 + $0x8] sm:$0xff] %vm468_vm0, %v405_v50  ;;  %v410_v63 = vmax.f32 %v346_v52, 0.0  ;;  %v90_v0 = vmul.f32 %v627_v1, %v24_v47  ;;  %v91_v2 = vmul.f32 %v627_v1, %v25_v48  ;;  %v92_v5 = vmul.f32 %v627_v1, %v26_v53  ;;  %v34_v47 = vld [vmem:[%s1207_s0 + $0x90] sm:$0xff]  ;;  %v35_v48 = vld [vmem:[%s1207_s0 + $0x98] sm:$0xff] }
   0xf   :  { %471 = vst.msk [vmem:[%s1210_s3 + $0x10] sm:$0xff] %vm468_vm0, %v406_v56  ;;  %472 = vst.msk [vmem:[%s1210_s3 + $0x18] sm:$0xff] %vm468_vm0, %v407_v57  ;;  %v411_v4 = vmax.f32 %v347_v59, 0.0  ;;  %v93_v6 = vmul.f32 %v627_v1, %v27_v54  ;;  %v94_v7 = vmul.f32 %v627_v1, %v28_v55  ;;  %v95_v11 = vmul.f32 %v627_v1, %v29_v60  ;;  %v36_v49 = vld [vmem:[%s1207_s0 + $0xa0] sm:$0xff]  ;;  %v37_v54 = vld [vmem:[%s1207_s0 + $0xa8] sm:$0xff] }
  0x10   :  { %473 = vst.msk [vmem:[%s1210_s3 + $0x20] sm:$0xff] %vm468_vm0, %v408_v58  ;;  %474 = vst.msk [vmem:[%s1210_s3 + $0x28] sm:$0xff] %vm468_vm0, %v409_v62  ;;  %v545_v9 = vround.rtne.f32 %v90_v0  ;;  %v546_v10 = vround.rtne.f32 %v91_v2  ;;  %v96_v12 = vmul.f32 %v627_v1, %v30_v61  ;;  %v547_v13 = vround.rtne.f32 %v92_v5  ;;  %v38_v55 = vld [vmem:[%s1207_s0 + $0xb0] sm:$0xff]  ;;  %v39_v60 = vld [vmem:[%s1207_s0 + $0xb8] sm:$0xff] }
  0x11   :  { %475 = vst.msk [vmem:[%s1210_s3 + $0x30] sm:$0xff] %vm468_vm0, %v410_v63  ;;  %476 = vst.msk [vmem:[%s1210_s3 + $0x38] sm:$0xff] %vm468_vm0, %v411_v4  ;;  %v548_v14 = vround.rtne.f32 %v93_v6  ;;  %v549_v15 = vround.rtne.f32 %v94_v7  ;;  %v97_v16 = vmul.f32 %v627_v1, %v31_v3  ;;  %v550_v19 = vround.rtne.f32 %v95_v11 }
  0x12   :  { %v218_v17 = vmax.f32 %v545_v9, -128.0  ;;  %v219_v18 = vmax.f32 %v546_v10, -128.0  ;;  %v551_v20 = vround.rtne.f32 %v96_v12  ;;  %v220_v21 = vmax.f32 %v547_v13, -128.0 }
  0x13   :  { %v221_v22 = vmax.f32 %v548_v14, -128.0  ;;  %v222_v23 = vmax.f32 %v549_v15, -128.0  ;;  %v552_v24 = vround.rtne.f32 %v97_v16  ;;  %v223_v27 = vmax.f32 %v550_v19, -128.0 }
  0x14   :  { %v282_v25 = vmin.f32 %v218_v17, 127.0  ;;  %v283_v26 = vmin.f32 %v219_v18, 127.0  ;;  %v224_v28 = vmax.f32 %v551_v20, -128.0  ;;  %v284_v29 = vmin.f32 %v220_v21, 127.0 }
  0x15   :  { %v285_v30 = vmin.f32 %v221_v22, 127.0  ;;  %v286_v31 = vmin.f32 %v222_v23, 127.0  ;;  %v225_v32 = vmax.f32 %v552_v24, -128.0  ;;  %v287_v35 = vmin.f32 %v223_v27, 127.0 }
  0x16   :  { %v348_v33 = vmul.f32 %v646_v8, %v282_v25  ;;  %v349_v34 = vmul.f32 %v646_v8, %v283_v26  ;;  %v288_v36 = vmin.f32 %v224_v28, 127.0  ;;  %v350_v37 = vmul.f32 %v646_v8, %v284_v29 }
  0x17   :  { %v351_v38 = vmul.f32 %v646_v8, %v285_v30  ;;  %v352_v39 = vmul.f32 %v646_v8, %v286_v31  ;;  %v289_v40 = vmin.f32 %v225_v32, 127.0  ;;  %v353_v45 = vmul.f32 %v646_v8, %v287_v35  ;;  %v40_v35 = vld [vmem:[%s1207_s0 + $0xc0] sm:$0xff] }
  0x18   :  { %v412_v43 = vmax.f32 %v348_v33, 0.0  ;;  %v413_v44 = vmax.f32 %v349_v34, 0.0  ;;  %v354_v46 = vmul.f32 %v646_v8, %v288_v36  ;;  %v414_v50 = vmax.f32 %v350_v37, 0.0  ;;  %v41_v36 = vld [vmem:[%s1207_s0 + $0xc8] sm:$0xff] }
  0x19   :  { %v415_v51 = vmax.f32 %v351_v38, 0.0  ;;  %v416_v52 = vmax.f32 %v352_v39, 0.0  ;;  %v355_v53 = vmul.f32 %v646_v8, %v289_v40  ;;  %v417_v56 = vmax.f32 %v353_v45, 0.0 }
  0x1a   :  { %477 = vst.msk [vmem:[%s1210_s3 + $0x40] sm:$0xff] %vm468_vm0, %v412_v43  ;;  %478 = vst.msk [vmem:[%s1210_s3 + $0x48] sm:$0xff] %vm468_vm0, %v413_v44  ;;  %v418_v57 = vmax.f32 %v354_v46, 0.0  ;;  %v98_v58 = vmul.f32 %v627_v1, %v32_v41  ;;  %v99_v59 = vmul.f32 %v627_v1, %v33_v42  ;;  %v100_v62 = vmul.f32 %v627_v1, %v34_v47  ;;  %v42_v41 = vld [vmem:[%s1207_s0 + $0xd0] sm:$0xff]  ;;  %v43_v42 = vld [vmem:[%s1207_s0 + $0xd8] sm:$0xff] }
  0x1b   :  { %479 = vst.msk [vmem:[%s1210_s3 + $0x50] sm:$0xff] %vm468_vm0, %v414_v50  ;;  %480 = vst.msk [vmem:[%s1210_s3 + $0x58] sm:$0xff] %vm468_vm0, %v415_v51  ;;  %v419_v61 = vmax.f32 %v355_v53, 0.0  ;;  %v101_v63 = vmul.f32 %v627_v1, %v35_v48  ;;  %v102_v0 = vmul.f32 %v627_v1, %v36_v49  ;;  %v103_v4 = vmul.f32 %v627_v1, %v37_v54  ;;  %v44_v43 = vld [vmem:[%s1207_s0 + $0xe0] sm:$0xff]  ;;  %v45_v48 = vld [vmem:[%s1207_s0 + $0xe8] sm:$0xff] }
  0x1c   :  { %481 = vst.msk [vmem:[%s1210_s3 + $0x60] sm:$0xff] %vm468_vm0, %v416_v52  ;;  %482 = vst.msk [vmem:[%s1210_s3 + $0x68] sm:$0xff] %vm468_vm0, %v417_v56  ;;  %v553_v2 = vround.rtne.f32 %v98_v58  ;;  %v554_v3 = vround.rtne.f32 %v99_v59  ;;  %v104_v5 = vmul.f32 %v627_v1, %v38_v55  ;;  %v555_v6 = vround.rtne.f32 %v100_v62  ;;  %v46_v49 = vld [vmem:[%s1207_s0 + $0xf0] sm:$0xff]  ;;  %v47_v54 = vld [vmem:[%s1207_s0 + $0xf8] sm:$0xff] }
  0x1d   :  { %483 = vst.msk [vmem:[%s1210_s3 + $0x70] sm:$0xff] %vm468_vm0, %v418_v57  ;;  %484 = vst.msk [vmem:[%s1210_s3 + $0x78] sm:$0xff] %vm468_vm0, %v419_v61  ;;  %v556_v7 = vround.rtne.f32 %v101_v63  ;;  %v557_v9 = vround.rtne.f32 %v102_v0  ;;  %v105_v10 = vmul.f32 %v627_v1, %v39_v60  ;;  %v558_v13 = vround.rtne.f32 %v103_v4 }
  0x1e   :  { %v226_v11 = vmax.f32 %v553_v2, -128.0  ;;  %v227_v12 = vmax.f32 %v554_v3, -128.0  ;;  %v559_v14 = vround.rtne.f32 %v104_v5  ;;  %v228_v15 = vmax.f32 %v555_v6, -128.0 }
  0x1f   :  { %v229_v16 = vmax.f32 %v556_v7, -128.0  ;;  %v230_v17 = vmax.f32 %v557_v9, -128.0  ;;  %v560_v18 = vround.rtne.f32 %v105_v10  ;;  %v231_v21 = vmax.f32 %v558_v13, -128.0 }
  0x20   :  { %v290_v19 = vmin.f32 %v226_v11, 127.0  ;;  %v291_v20 = vmin.f32 %v227_v12, 127.0  ;;  %v232_v22 = vmax.f32 %v559_v14, -128.0  ;;  %v292_v23 = vmin.f32 %v228_v15, 127.0 }
  0x21   :  { %v293_v24 = vmin.f32 %v229_v16, 127.0  ;;  %v294_v25 = vmin.f32 %v230_v17, 127.0  ;;  %v233_v26 = vmax.f32 %v560_v18, -128.0  ;;  %v295_v29 = vmin.f32 %v231_v21, 127.0 }
  0x22   :  { %v356_v27 = vmul.f32 %v646_v8, %v290_v19  ;;  %v357_v28 = vmul.f32 %v646_v8, %v291_v20  ;;  %v296_v30 = vmin.f32 %v232_v22, 127.0  ;;  %v358_v31 = vmul.f32 %v646_v8, %v292_v23 }
  0x23   :  { %v359_v32 = vmul.f32 %v646_v8, %v293_v24  ;;  %v360_v33 = vmul.f32 %v646_v8, %v294_v25  ;;  %v297_v34 = vmin.f32 %v233_v26, 127.0  ;;  %v361_v39 = vmul.f32 %v646_v8, %v295_v29  ;;  %v48_v29 = vld [vmem:[%s1207_s0 + $0x100] sm:$0xff] }
  0x24   :  { %v420_v37 = vmax.f32 %v356_v27, 0.0  ;;  %v421_v38 = vmax.f32 %v357_v28, 0.0  ;;  %v362_v40 = vmul.f32 %v646_v8, %v296_v30  ;;  %v422_v44 = vmax.f32 %v358_v31, 0.0  ;;  %v49_v30 = vld [vmem:[%s1207_s0 + $0x108] sm:$0xff] }
  0x25   :  { %v423_v45 = vmax.f32 %v359_v32, 0.0  ;;  %v424_v46 = vmax.f32 %v360_v33, 0.0  ;;  %v363_v47 = vmul.f32 %v646_v8, %v297_v34  ;;  %v425_v50 = vmax.f32 %v361_v39, 0.0 }
  0x26   :  { %485 = vst.msk [vmem:[%s1210_s3 + $0x80] sm:$0xff] %vm468_vm0, %v420_v37  ;;  %486 = vst.msk [vmem:[%s1210_s3 + $0x88] sm:$0xff] %vm468_vm0, %v421_v38  ;;  %v426_v51 = vmax.f32 %v362_v40, 0.0  ;;  %v106_v52 = vmul.f32 %v627_v1, %v40_v35  ;;  %v107_v53 = vmul.f32 %v627_v1, %v41_v36  ;;  %v108_v56 = vmul.f32 %v627_v1, %v42_v41  ;;  %v50_v35 = vld [vmem:[%s1207_s0 + $0x110] sm:$0xff]  ;;  %v51_v36 = vld [vmem:[%s1207_s0 + $0x118] sm:$0xff] }
  0x27   :  { %487 = vst.msk [vmem:[%s1210_s3 + $0x90] sm:$0xff] %vm468_vm0, %v422_v44  ;;  %488 = vst.msk [vmem:[%s1210_s3 + $0x98] sm:$0xff] %vm468_vm0, %v423_v45  ;;  %v427_v55 = vmax.f32 %v363_v47, 0.0  ;;  %v109_v57 = vmul.f32 %v627_v1, %v43_v42  ;;  %v110_v58 = vmul.f32 %v627_v1, %v44_v43  ;;  %v111_v61 = vmul.f32 %v627_v1, %v45_v48  ;;  %v52_v37 = vld [vmem:[%s1207_s0 + $0x120] sm:$0xff]  ;;  %v53_v42 = vld [vmem:[%s1207_s0 + $0x128] sm:$0xff] }
  0x28   :  { %489 = vst.msk [vmem:[%s1210_s3 + $0xa0] sm:$0xff] %vm468_vm0, %v424_v46  ;;  %490 = vst.msk [vmem:[%s1210_s3 + $0xa8] sm:$0xff] %vm468_vm0, %v425_v50  ;;  %v561_v59 = vround.rtne.f32 %v106_v52  ;;  %v562_v60 = vround.rtne.f32 %v107_v53  ;;  %v112_v62 = vmul.f32 %v627_v1, %v46_v49  ;;  %v563_v63 = vround.rtne.f32 %v108_v56  ;;  %v54_v43 = vld [vmem:[%s1207_s0 + $0x130] sm:$0xff]  ;;  %v55_v48 = vld [vmem:[%s1207_s0 + $0x138] sm:$0xff] }
  0x29   :  { %491 = vst.msk [vmem:[%s1210_s3 + $0xb0] sm:$0xff] %vm468_vm0, %v426_v51  ;;  %492 = vst.msk [vmem:[%s1210_s3 + $0xb8] sm:$0xff] %vm468_vm0, %v427_v55  ;;  %v564_v0 = vround.rtne.f32 %v109_v57  ;;  %v565_v2 = vround.rtne.f32 %v110_v58  ;;  %v113_v3 = vmul.f32 %v627_v1, %v47_v54  ;;  %v566_v6 = vround.rtne.f32 %v111_v61 }
  0x2a   :  { %v234_v4 = vmax.f32 %v561_v59, -128.0  ;;  %v235_v5 = vmax.f32 %v562_v60, -128.0  ;;  %v567_v7 = vround.rtne.f32 %v112_v62  ;;  %v236_v9 = vmax.f32 %v563_v63, -128.0 }
  0x2b   :  { %v237_v10 = vmax.f32 %v564_v0, -128.0  ;;  %v238_v11 = vmax.f32 %v565_v2, -128.0  ;;  %v568_v12 = vround.rtne.f32 %v113_v3  ;;  %v239_v15 = vmax.f32 %v566_v6, -128.0 }
  0x2c   :  { %v298_v13 = vmin.f32 %v234_v4, 127.0  ;;  %v299_v14 = vmin.f32 %v235_v5, 127.0  ;;  %v240_v16 = vmax.f32 %v567_v7, -128.0  ;;  %v300_v17 = vmin.f32 %v236_v9, 127.0 }
  0x2d   :  { %v301_v18 = vmin.f32 %v237_v10, 127.0  ;;  %v302_v19 = vmin.f32 %v238_v11, 127.0  ;;  %v241_v20 = vmax.f32 %v568_v12, -128.0  ;;  %v303_v23 = vmin.f32 %v239_v15, 127.0 }
  0x2e   :  { %v364_v21 = vmul.f32 %v646_v8, %v298_v13  ;;  %v365_v22 = vmul.f32 %v646_v8, %v299_v14  ;;  %v304_v24 = vmin.f32 %v240_v16, 127.0  ;;  %v366_v25 = vmul.f32 %v646_v8, %v300_v17 }
  0x2f   :  { %v367_v26 = vmul.f32 %v646_v8, %v301_v18  ;;  %v368_v27 = vmul.f32 %v646_v8, %v302_v19  ;;  %v305_v28 = vmin.f32 %v241_v20, 127.0  ;;  %v369_v33 = vmul.f32 %v646_v8, %v303_v23  ;;  %v56_v23 = vld [vmem:[%s1207_s0 + $0x140] sm:$0xff] }
  0x30   :  { %v428_v31 = vmax.f32 %v364_v21, 0.0  ;;  %v429_v32 = vmax.f32 %v365_v22, 0.0  ;;  %v370_v34 = vmul.f32 %v646_v8, %v304_v24  ;;  %v430_v38 = vmax.f32 %v366_v25, 0.0  ;;  %v57_v24 = vld [vmem:[%s1207_s0 + $0x148] sm:$0xff] }
  0x31   :  { %v431_v39 = vmax.f32 %v367_v26, 0.0  ;;  %v432_v40 = vmax.f32 %v368_v27, 0.0  ;;  %v371_v41 = vmul.f32 %v646_v8, %v305_v28  ;;  %v433_v44 = vmax.f32 %v369_v33, 0.0 }
  0x32   :  { %493 = vst.msk [vmem:[%s1210_s3 + $0xc0] sm:$0xff] %vm468_vm0, %v428_v31  ;;  %494 = vst.msk [vmem:[%s1210_s3 + $0xc8] sm:$0xff] %vm468_vm0, %v429_v32  ;;  %v434_v45 = vmax.f32 %v370_v34, 0.0  ;;  %v114_v46 = vmul.f32 %v627_v1, %v48_v29  ;;  %v115_v47 = vmul.f32 %v627_v1, %v49_v30  ;;  %v116_v50 = vmul.f32 %v627_v1, %v50_v35  ;;  %v58_v29 = vld [vmem:[%s1207_s0 + $0x150] sm:$0xff]  ;;  %v59_v30 = vld [vmem:[%s1207_s0 + $0x158] sm:$0xff] }
  0x33   :  { %495 = vst.msk [vmem:[%s1210_s3 + $0xd0] sm:$0xff] %vm468_vm0, %v430_v38  ;;  %496 = vst.msk [vmem:[%s1210_s3 + $0xd8] sm:$0xff] %vm468_vm0, %v431_v39  ;;  %v435_v49 = vmax.f32 %v371_v41, 0.0  ;;  %v117_v51 = vmul.f32 %v627_v1, %v51_v36  ;;  %v118_v52 = vmul.f32 %v627_v1, %v52_v37  ;;  %v119_v55 = vmul.f32 %v627_v1, %v53_v42  ;;  %v60_v31 = vld [vmem:[%s1207_s0 + $0x160] sm:$0xff]  ;;  %v61_v36 = vld [vmem:[%s1207_s0 + $0x168] sm:$0xff] }
  0x34   :  { %497 = vst.msk [vmem:[%s1210_s3 + $0xe0] sm:$0xff] %vm468_vm0, %v432_v40  ;;  %498 = vst.msk [vmem:[%s1210_s3 + $0xe8] sm:$0xff] %vm468_vm0, %v433_v44  ;;  %v569_v53 = vround.rtne.f32 %v114_v46  ;;  %v570_v54 = vround.rtne.f32 %v115_v47  ;;  %v120_v56 = vmul.f32 %v627_v1, %v54_v43  ;;  %v571_v57 = vround.rtne.f32 %v116_v50  ;;  %v62_v37 = vld [vmem:[%s1207_s0 + $0x170] sm:$0xff]  ;;  %v63_v42 = vld [vmem:[%s1207_s0 + $0x178] sm:$0xff] }
  0x35   :  { %499 = vst.msk [vmem:[%s1210_s3 + $0xf0] sm:$0xff] %vm468_vm0, %v434_v45  ;;  %500 = vst.msk [vmem:[%s1210_s3 + $0xf8] sm:$0xff] %vm468_vm0, %v435_v49  ;;  %v572_v58 = vround.rtne.f32 %v117_v51  ;;  %v573_v59 = vround.rtne.f32 %v118_v52  ;;  %v121_v60 = vmul.f32 %v627_v1, %v55_v48  ;;  %v574_v63 = vround.rtne.f32 %v119_v55 }
  0x36   :  { %v242_v61 = vmax.f32 %v569_v53, -128.0  ;;  %v243_v62 = vmax.f32 %v570_v54, -128.0  ;;  %v575_v0 = vround.rtne.f32 %v120_v56  ;;  %v244_v2 = vmax.f32 %v571_v57, -128.0 }
  0x37   :  { %v245_v3 = vmax.f32 %v572_v58, -128.0  ;;  %v246_v4 = vmax.f32 %v573_v59, -128.0  ;;  %v576_v5 = vround.rtne.f32 %v121_v60  ;;  %v247_v9 = vmax.f32 %v574_v63, -128.0 }
  0x38   :  { %v306_v6 = vmin.f32 %v242_v61, 127.0  ;;  %v307_v7 = vmin.f32 %v243_v62, 127.0  ;;  %v248_v10 = vmax.f32 %v575_v0, -128.0  ;;  %v308_v11 = vmin.f32 %v244_v2, 127.0 }
  0x39   :  { %v309_v12 = vmin.f32 %v245_v3, 127.0  ;;  %v310_v13 = vmin.f32 %v246_v4, 127.0  ;;  %v249_v14 = vmax.f32 %v576_v5, -128.0  ;;  %v311_v17 = vmin.f32 %v247_v9, 127.0 }
  0x3a   :  { %v372_v15 = vmul.f32 %v646_v8, %v306_v6  ;;  %v373_v16 = vmul.f32 %v646_v8, %v307_v7  ;;  %v312_v18 = vmin.f32 %v248_v10, 127.0  ;;  %v374_v19 = vmul.f32 %v646_v8, %v308_v11 }
  0x3b   :  { %v375_v20 = vmul.f32 %v646_v8, %v309_v12  ;;  %v376_v21 = vmul.f32 %v646_v8, %v310_v13  ;;  %v313_v22 = vmin.f32 %v249_v14, 127.0  ;;  %v377_v27 = vmul.f32 %v646_v8, %v311_v17  ;;  %v64_v17 = vld [vmem:[%s1207_s0 + $0x180] sm:$0xff] }
  0x3c   :  { %v436_v25 = vmax.f32 %v372_v15, 0.0  ;;  %v437_v26 = vmax.f32 %v373_v16, 0.0  ;;  %v378_v28 = vmul.f32 %v646_v8, %v312_v18  ;;  %v438_v32 = vmax.f32 %v374_v19, 0.0  ;;  %v65_v18 = vld [vmem:[%s1207_s0 + $0x188] sm:$0xff] }
  0x3d   :  { %v439_v33 = vmax.f32 %v375_v20, 0.0  ;;  %v440_v34 = vmax.f32 %v376_v21, 0.0  ;;  %v379_v35 = vmul.f32 %v646_v8, %v313_v22  ;;  %v441_v38 = vmax.f32 %v377_v27, 0.0 }
  0x3e   :  { %501 = vst.msk [vmem:[%s1210_s3 + $0x100] sm:$0xff] %vm468_vm0, %v436_v25  ;;  %502 = vst.msk [vmem:[%s1210_s3 + $0x108] sm:$0xff] %vm468_vm0, %v437_v26  ;;  %v442_v39 = vmax.f32 %v378_v28, 0.0  ;;  %v122_v40 = vmul.f32 %v627_v1, %v56_v23  ;;  %v123_v41 = vmul.f32 %v627_v1, %v57_v24  ;;  %v124_v44 = vmul.f32 %v627_v1, %v58_v29  ;;  %v66_v23 = vld [vmem:[%s1207_s0 + $0x190] sm:$0xff]  ;;  %v67_v24 = vld [vmem:[%s1207_s0 + $0x198] sm:$0xff] }
  0x3f   :  { %503 = vst.msk [vmem:[%s1210_s3 + $0x110] sm:$0xff] %vm468_vm0, %v438_v32  ;;  %504 = vst.msk [vmem:[%s1210_s3 + $0x118] sm:$0xff] %vm468_vm0, %v439_v33  ;;  %v443_v43 = vmax.f32 %v379_v35, 0.0  ;;  %v125_v45 = vmul.f32 %v627_v1, %v59_v30  ;;  %v126_v46 = vmul.f32 %v627_v1, %v60_v31  ;;  %v127_v49 = vmul.f32 %v627_v1, %v61_v36  ;;  %v68_v25 = vld [vmem:[%s1207_s0 + $0x1a0] sm:$0xff]  ;;  %v69_v30 = vld [vmem:[%s1207_s0 + $0x1a8] sm:$0xff] }
  0x40   :  { %505 = vst.msk [vmem:[%s1210_s3 + $0x120] sm:$0xff] %vm468_vm0, %v440_v34  ;;  %506 = vst.msk [vmem:[%s1210_s3 + $0x128] sm:$0xff] %vm468_vm0, %v441_v38  ;;  %v577_v47 = vround.rtne.f32 %v122_v40  ;;  %v578_v48 = vround.rtne.f32 %v123_v41  ;;  %v128_v50 = vmul.f32 %v627_v1, %v62_v37  ;;  %v579_v51 = vround.rtne.f32 %v124_v44  ;;  %v70_v31 = vld [vmem:[%s1207_s0 + $0x1b0] sm:$0xff]  ;;  %v71_v36 = vld [vmem:[%s1207_s0 + $0x1b8] sm:$0xff] }
  0x41   :  { %507 = vst.msk [vmem:[%s1210_s3 + $0x130] sm:$0xff] %vm468_vm0, %v442_v39  ;;  %508 = vst.msk [vmem:[%s1210_s3 + $0x138] sm:$0xff] %vm468_vm0, %v443_v43  ;;  %v580_v52 = vround.rtne.f32 %v125_v45  ;;  %v581_v53 = vround.rtne.f32 %v126_v46  ;;  %v129_v54 = vmul.f32 %v627_v1, %v63_v42  ;;  %v582_v57 = vround.rtne.f32 %v127_v49 }
  0x42   :  { %v250_v55 = vmax.f32 %v577_v47, -128.0  ;;  %v251_v56 = vmax.f32 %v578_v48, -128.0  ;;  %v583_v58 = vround.rtne.f32 %v128_v50  ;;  %v252_v59 = vmax.f32 %v579_v51, -128.0 }
  0x43   :  { %v253_v60 = vmax.f32 %v580_v52, -128.0  ;;  %v254_v61 = vmax.f32 %v581_v53, -128.0  ;;  %v584_v62 = vround.rtne.f32 %v129_v54  ;;  %v255_v2 = vmax.f32 %v582_v57, -128.0 }
  0x44   :  { %v314_v63 = vmin.f32 %v250_v55, 127.0  ;;  %v315_v0 = vmin.f32 %v251_v56, 127.0  ;;  %v256_v3 = vmax.f32 %v583_v58, -128.0  ;;  %v316_v4 = vmin.f32 %v252_v59, 127.0 }
  0x45   :  { %v317_v5 = vmin.f32 %v253_v60, 127.0  ;;  %v318_v6 = vmin.f32 %v254_v61, 127.0  ;;  %v257_v7 = vmax.f32 %v584_v62, -128.0  ;;  %v319_v11 = vmin.f32 %v255_v2, 127.0 }
  0x46   :  { %v380_v9 = vmul.f32 %v646_v8, %v314_v63  ;;  %v381_v10 = vmul.f32 %v646_v8, %v315_v0  ;;  %v320_v12 = vmin.f32 %v256_v3, 127.0  ;;  %v382_v13 = vmul.f32 %v646_v8, %v316_v4 }
  0x47   :  { %v383_v14 = vmul.f32 %v646_v8, %v317_v5  ;;  %v384_v15 = vmul.f32 %v646_v8, %v318_v6  ;;  %v321_v16 = vmin.f32 %v257_v7, 127.0  ;;  %v385_v21 = vmul.f32 %v646_v8, %v319_v11  ;;  %v72_v11 = vld [vmem:[%s1207_s0 + $0x1c0] sm:$0xff] }
  0x48   :  { %v444_v19 = vmax.f32 %v380_v9, 0.0  ;;  %v445_v20 = vmax.f32 %v381_v10, 0.0  ;;  %v386_v22 = vmul.f32 %v646_v8, %v320_v12  ;;  %v446_v26 = vmax.f32 %v382_v13, 0.0  ;;  %v73_v12 = vld [vmem:[%s1207_s0 + $0x1c8] sm:$0xff] }
  0x49   :  { %v447_v27 = vmax.f32 %v383_v14, 0.0  ;;  %v448_v28 = vmax.f32 %v384_v15, 0.0  ;;  %v387_v29 = vmul.f32 %v646_v8, %v321_v16  ;;  %v449_v32 = vmax.f32 %v385_v21, 0.0 }
  0x4a   :  { %509 = vst.msk [vmem:[%s1210_s3 + $0x140] sm:$0xff] %vm468_vm0, %v444_v19  ;;  %510 = vst.msk [vmem:[%s1210_s3 + $0x148] sm:$0xff] %vm468_vm0, %v445_v20  ;;  %v450_v33 = vmax.f32 %v386_v22, 0.0  ;;  %v130_v34 = vmul.f32 %v627_v1, %v64_v17  ;;  %v131_v35 = vmul.f32 %v627_v1, %v65_v18  ;;  %v132_v38 = vmul.f32 %v627_v1, %v66_v23  ;;  %v74_v17 = vld [vmem:[%s1207_s0 + $0x1d0] sm:$0xff]  ;;  %v75_v18 = vld [vmem:[%s1207_s0 + $0x1d8] sm:$0xff] }
  0x4b   :  { %511 = vst.msk [vmem:[%s1210_s3 + $0x150] sm:$0xff] %vm468_vm0, %v446_v26  ;;  %512 = vst.msk [vmem:[%s1210_s3 + $0x158] sm:$0xff] %vm468_vm0, %v447_v27  ;;  %v451_v37 = vmax.f32 %v387_v29, 0.0  ;;  %v133_v39 = vmul.f32 %v627_v1, %v67_v24  ;;  %v134_v40 = vmul.f32 %v627_v1, %v68_v25  ;;  %v135_v43 = vmul.f32 %v627_v1, %v69_v30  ;;  %v76_v19 = vld [vmem:[%s1207_s0 + $0x1e0] sm:$0xff]  ;;  %v77_v24 = vld [vmem:[%s1207_s0 + $0x1e8] sm:$0xff] }
  0x4c   :  { %513 = vst.msk [vmem:[%s1210_s3 + $0x160] sm:$0xff] %vm468_vm0, %v448_v28  ;;  %514 = vst.msk [vmem:[%s1210_s3 + $0x168] sm:$0xff] %vm468_vm0, %v449_v32  ;;  %v585_v41 = vround.rtne.f32 %v130_v34  ;;  %v586_v42 = vround.rtne.f32 %v131_v35  ;;  %v136_v44 = vmul.f32 %v627_v1, %v70_v31  ;;  %v587_v45 = vround.rtne.f32 %v132_v38  ;;  %v78_v25 = vld [vmem:[%s1207_s0 + $0x1f0] sm:$0xff]  ;;  %v79_v30 = vld [vmem:[%s1207_s0 + $0x1f8] sm:$0xff] }
  0x4d   :  { %515 = vst.msk [vmem:[%s1210_s3 + $0x170] sm:$0xff] %vm468_vm0, %v450_v33  ;;  %516 = vst.msk [vmem:[%s1210_s3 + $0x178] sm:$0xff] %vm468_vm0, %v451_v37  ;;  %v588_v46 = vround.rtne.f32 %v133_v39  ;;  %v589_v47 = vround.rtne.f32 %v134_v40  ;;  %v137_v48 = vmul.f32 %v627_v1, %v71_v36  ;;  %v590_v51 = vround.rtne.f32 %v135_v43 }
  0x4e   :  { %v258_v49 = vmax.f32 %v585_v41, -128.0  ;;  %v259_v50 = vmax.f32 %v586_v42, -128.0  ;;  %v591_v52 = vround.rtne.f32 %v136_v44  ;;  %v260_v53 = vmax.f32 %v587_v45, -128.0 }
  0x4f   :  { %v261_v54 = vmax.f32 %v588_v46, -128.0  ;;  %v262_v55 = vmax.f32 %v589_v47, -128.0  ;;  %v592_v56 = vround.rtne.f32 %v137_v48  ;;  %v263_v59 = vmax.f32 %v590_v51, -128.0 }
  0x50   :  { %v322_v57 = vmin.f32 %v258_v49, 127.0  ;;  %v323_v58 = vmin.f32 %v259_v50, 127.0  ;;  %v264_v60 = vmax.f32 %v591_v52, -128.0  ;;  %v324_v61 = vmin.f32 %v260_v53, 127.0 }
  0x51   :  { %v325_v62 = vmin.f32 %v261_v54, 127.0  ;;  %v326_v63 = vmin.f32 %v262_v55, 127.0  ;;  %v265_v0 = vmax.f32 %v592_v56, -128.0  ;;  %v327_v4 = vmin.f32 %v263_v59, 127.0 }
  0x52   :  { %v388_v2 = vmul.f32 %v646_v8, %v322_v57  ;;  %v389_v3 = vmul.f32 %v646_v8, %v323_v58  ;;  %v328_v5 = vmin.f32 %v264_v60, 127.0  ;;  %v390_v6 = vmul.f32 %v646_v8, %v324_v61 }
  0x53   :  { %v391_v7 = vmul.f32 %v646_v8, %v325_v62  ;;  %v392_v9 = vmul.f32 %v646_v8, %v326_v63  ;;  %v329_v10 = vmin.f32 %v265_v0, 127.0  ;;  %v393_v15 = vmul.f32 %v646_v8, %v327_v4 }
  0x54   :  { %v452_v13 = vmax.f32 %v388_v2, 0.0  ;;  %v453_v14 = vmax.f32 %v389_v3, 0.0  ;;  %v394_v16 = vmul.f32 %v646_v8, %v328_v5  ;;  %v454_v20 = vmax.f32 %v390_v6, 0.0 }
  0x55   :  { %v455_v21 = vmax.f32 %v391_v7, 0.0  ;;  %v456_v22 = vmax.f32 %v392_v9, 0.0  ;;  %v395_v23 = vmul.f32 %v646_v8, %v329_v10  ;;  %v457_v26 = vmax.f32 %v393_v15, 0.0 }
  0x56   :  { %517 = vst.msk [vmem:[%s1210_s3 + $0x180] sm:$0xff] %vm468_vm0, %v452_v13  ;;  %518 = vst.msk [vmem:[%s1210_s3 + $0x188] sm:$0xff] %vm468_vm0, %v453_v14  ;;  %v458_v27 = vmax.f32 %v394_v16, 0.0  ;;  %v138_v28 = vmul.f32 %v627_v1, %v72_v11  ;;  %v139_v29 = vmul.f32 %v627_v1, %v73_v12  ;;  %v140_v32 = vmul.f32 %v627_v1, %v74_v17 }
  0x57   :  { %519 = vst.msk [vmem:[%s1210_s3 + $0x190] sm:$0xff] %vm468_vm0, %v454_v20  ;;  %520 = vst.msk [vmem:[%s1210_s3 + $0x198] sm:$0xff] %vm468_vm0, %v455_v21  ;;  %v459_v31 = vmax.f32 %v395_v23, 0.0  ;;  %v141_v33 = vmul.f32 %v627_v1, %v75_v18  ;;  %v142_v34 = vmul.f32 %v627_v1, %v76_v19  ;;  %v143_v37 = vmul.f32 %v627_v1, %v77_v24 }
  0x58   :  { %521 = vst.msk [vmem:[%s1210_s3 + $0x1a0] sm:$0xff] %vm468_vm0, %v456_v22  ;;  %522 = vst.msk [vmem:[%s1210_s3 + $0x1a8] sm:$0xff] %vm468_vm0, %v457_v26  ;;  %v593_v35 = vround.rtne.f32 %v138_v28  ;;  %v594_v36 = vround.rtne.f32 %v139_v29  ;;  %v144_v38 = vmul.f32 %v627_v1, %v78_v25  ;;  %v595_v39 = vround.rtne.f32 %v140_v32 }
  0x59   :  { %523 = vst.msk [vmem:[%s1210_s3 + $0x1b0] sm:$0xff] %vm468_vm0, %v458_v27  ;;  %524 = vst.msk [vmem:[%s1210_s3 + $0x1b8] sm:$0xff] %vm468_vm0, %v459_v31  ;;  %v596_v40 = vround.rtne.f32 %v141_v33  ;;  %v597_v41 = vround.rtne.f32 %v142_v34  ;;  %v145_v42 = vmul.f32 %v627_v1, %v79_v30  ;;  %v598_v45 = vround.rtne.f32 %v143_v37 }
  0x5a   :  { %v266_v43 = vmax.f32 %v593_v35, -128.0  ;;  %v267_v44 = vmax.f32 %v594_v36, -128.0  ;;  %v599_v46 = vround.rtne.f32 %v144_v38  ;;  %v268_v47 = vmax.f32 %v595_v39, -128.0 }
  0x5b   :  { %v269_v48 = vmax.f32 %v596_v40, -128.0  ;;  %v270_v49 = vmax.f32 %v597_v41, -128.0  ;;  %v600_v50 = vround.rtne.f32 %v145_v42  ;;  %v271_v53 = vmax.f32 %v598_v45, -128.0 }
  0x5c   :  { %v330_v51 = vmin.f32 %v266_v43, 127.0  ;;  %v331_v52 = vmin.f32 %v267_v44, 127.0  ;;  %v272_v54 = vmax.f32 %v599_v46, -128.0  ;;  %v332_v55 = vmin.f32 %v268_v47, 127.0 }
  0x5d   :  { %v333_v56 = vmin.f32 %v269_v48, 127.0  ;;  %v334_v57 = vmin.f32 %v270_v49, 127.0  ;;  %v273_v58 = vmax.f32 %v600_v50, -128.0  ;;  %v335_v60 = vmin.f32 %v271_v53, 127.0 }
  0x5e   :  { %v396_v59 = vmul.f32 %v646_v8, %v330_v51  ;;  %v397_v1 = vmul.f32 %v646_v8, %v331_v52  ;;  %v336_v61 = vmin.f32 %v272_v54, 127.0  ;;  %v398_v62 = vmul.f32 %v646_v8, %v332_v55 }
  0x5f   :  { %v399_v63 = vmul.f32 %v646_v8, %v333_v56  ;;  %v400_v0 = vmul.f32 %v646_v8, %v334_v57  ;;  %v337_v2 = vmin.f32 %v273_v58, 127.0  ;;  %v401_v5 = vmul.f32 %v646_v8, %v335_v60 }
  0x60   :  { %v460_v3 = vmax.f32 %v396_v59, 0.0  ;;  %v461_v4 = vmax.f32 %v397_v1, 0.0  ;;  %v402_v6 = vmul.f32 %v646_v8, %v336_v61  ;;  %v462_v7 = vmax.f32 %v398_v62, 0.0 }
  0x61   :  { %v463_v9 = vmax.f32 %v399_v63, 0.0  ;;  %v464_v10 = vmax.f32 %v400_v0, 0.0  ;;  %v403_v11 = vmul.f32 %v646_v8, %v337_v2  ;;  %v465_v12 = vmax.f32 %v401_v5, 0.0 }
  0x62   :  { %525 = vst.msk [vmem:[%s1210_s3 + $0x1c0] sm:$0xff] %vm468_vm0, %v460_v3  ;;  %526 = vst.msk [vmem:[%s1210_s3 + $0x1c8] sm:$0xff] %vm468_vm0, %v461_v4  ;;  %v466_v13 = vmax.f32 %v402_v6, 0.0 }
  0x63   :  { %527 = vst.msk [vmem:[%s1210_s3 + $0x1d0] sm:$0xff] %vm468_vm0, %v462_v7  ;;  %528 = vst.msk [vmem:[%s1210_s3 + $0x1d8] sm:$0xff] %vm468_vm0, %v463_v9  ;;  %v467_v8 = vmax.f32 %v403_v11, 0.0 }
  0x64   :  { %529 = vst.msk [vmem:[%s1210_s3 + $0x1e0] sm:$0xff] %vm468_vm0, %v464_v10  ;;  %530 = vst.msk [vmem:[%s1210_s3 + $0x1e8] sm:$0xff] %vm468_vm0, %v465_v12 }
  0x65   :  { %531 = vst.msk [vmem:[%s1210_s3 + $0x1f0] sm:$0xff] %vm468_vm0, %v466_v13  ;;  %532 = vst.msk [vmem:[%s1210_s3 + $0x1f8] sm:$0xff] %vm468_vm0, %v467_v8 }

// kernel: q_res_unit_bn_forward.8
= control target key start
LH: loop header
LB: loop body
LE: loop exit
PB: predicated region body
PF: predicated region fallthrough
CT: control target
= control target key end

     0   :  { %vm479_vm0 = vcmask 1041408   ;;  %vm382_vm1 = vcmask 31744   ;;  %vm1042_vm2 = vcmask 64512   ;;  %s2813_s2 = inlined_call_operand.vmem [shape: bf16[4,8], index: 2, kind: input, shape index: {}]   ;;  %s2814_s0 = inlined_call_operand.vmem [shape: f32[512,4], index: 0, kind: input, shape index: {}]   ;;  %s2815_s1 = inlined_call_operand.<no memory space> [shape: f32[1,1], index: 1, kind: input, shape index: {}]   ;;  %s2816_s3 = inlined_call_operand.vmem [shape: f32[1,8], index: 3, kind: input, shape index: {}]   ;;  %s2817_s4 = inlined_call_operand.vmem [shape: f32[1,8], index: 4, kind: input, shape index: {}]   ;;  %s2818_s5 = inlined_call_operand.vmem [shape: f32[512,8], index: 5, kind: input, shape index: {}]   ;;  %s2819_s6 = inlined_call_operand.vmem [shape: f32[512,8], index: 6, kind: output, shape index: {0}]   ;;  %s2820_s7 = inlined_call_operand.vmem [shape: f32[8,128], index: 7, kind: output, shape index: {1}]  }
   0x1   :  { %v381_v0 = vld [vmem:[%s2813_s2] sm:$0x3]  ;;  %v28_v2 = vld [vmem:[%s2814_s0 + $0x8] sm:$0xff]  ;;  %v1572_v3 = vstv %s2815_s1  ;;  %v29_v7 = vld [vmem:[%s2814_s0 + $0x10] sm:$0xff] }
   0x2   :  { %v27_v1 = vld [vmem:[%s2814_s0] sm:$0xff]  ;;  %1452 = vmatprep.subr.msk.bf16.mxu0 %vm479_vm0, %v381_v0  ;;  %v481_v4 = vsel %vm479_vm0, %v381_v0, 0  ;;  %v94_v6 = vmul.f32 %v1572_v3, %v28_v2  ;;  %v30_v8 = vld [vmem:[%s2814_s0 + $0x18] sm:$0xff]  ;;  %1453 = vmatprep.subr.msk.bf16.mxu1 %vm479_vm0, %v381_v0  ;;  %v95_v10 = vmul.f32 %v1572_v3, %v29_v7  ;;  %v32_v12 = vld [vmem:[%s2814_s0 + $0x28] sm:$0xff] }
   0x3   :  { %v93_v5 = vmul.f32 %v1572_v3, %v27_v1  ;;  %v31_v9 = vld [vmem:[%s2814_s0 + $0x20] sm:$0xff]  ;;  %1385 = vmatpush3.bf16.msra.mxu0 %v481_v4  ;;  %v96_v11 = vmul.f32 %v1572_v3, %v30_v8  ;;  %v33_v14 = vld [vmem:[%s2814_s0 + $0x30] sm:$0xff]  ;;  %v34_v15 = vld [vmem:[%s2814_s0 + $0x38] sm:$0xff]  ;;  %1451 = vmatpush3.bf16.msra.mxu1 %v481_v4  ;;  %v98_v18 = vmul.f32 %v1572_v3, %v32_v12 }
   0x4   :  { %v97_v13 = vmul.f32 %v1572_v3, %v31_v9  ;;  %v1455_v17 = vround.rtne.f32 %v94_v6  ;;  %v99_v19 = vmul.f32 %v1572_v3, %v33_v14  ;;  %v1456_v20 = vround.rtne.f32 %v95_v10  ;;  %v59_v32 = vld [vmem:[%s2814_s0 + $0x100] sm:$0xff]  ;;  %v60_v37 = vld [vmem:[%s2814_s0 + $0x108] sm:$0xff]  ;;  %v61_v38 = vld [vmem:[%s2814_s0 + $0x110] sm:$0xff] }
   0x5   :  { %v1454_v16 = vround.rtne.f32 %v93_v5  ;;  %v1457_v21 = vround.rtne.f32 %v96_v11  ;;  %v100_v23 = vmul.f32 %v1572_v3, %v34_v15  ;;  %v1459_v26 = vround.rtne.f32 %v98_v18  ;;  %v62_v43 = vld [vmem:[%s2814_s0 + $0x118] sm:$0xff]  ;;  %v35_v44 = vld [vmem:[%s2814_s0 + $0x40] sm:$0xff]  ;;  %v36_v49 = vld [vmem:[%s2814_s0 + $0x48] sm:$0xff] }
   0x6   :  { %v1458_v22 = vround.rtne.f32 %v97_v13  ;;  %v222_v25 = vmax.f32 %v1455_v17, -128.0  ;;  %v1460_v27 = vround.rtne.f32 %v99_v19  ;;  %v223_v28 = vmax.f32 %v1456_v20, -128.0  ;;  %v37_v54 = vld [vmem:[%s2814_s0 + $0x50] sm:$0xff]  ;;  %v38_v59 = vld [vmem:[%s2814_s0 + $0x58] sm:$0xff]  ;;  %v63_v9 = vld [vmem:[%s2814_s0 + $0x120] sm:$0xff] }
   0x7   :  { %v221_v24 = vmax.f32 %v1454_v16, -128.0  ;;  %v224_v29 = vmax.f32 %v1457_v21, -128.0  ;;  %v1461_v31 = vround.rtne.f32 %v100_v23  ;;  %v226_v35 = vmax.f32 %v1459_v26, -128.0  ;;  %v64_v14 = vld [vmem:[%s2814_s0 + $0x128] sm:$0xff]  ;;  %v65_v19 = vld [vmem:[%s2814_s0 + $0x130] sm:$0xff] }
   0x8   :  { %v225_v30 = vmax.f32 %v1458_v22, -128.0  ;;  %v286_v34 = vmin.f32 %v222_v25, 127.0  ;;  %v227_v36 = vmax.f32 %v1460_v27, -128.0  ;;  %v287_v39 = vmin.f32 %v223_v28, 127.0 }
   0x9   :  { %v285_v33 = vmin.f32 %v221_v24, 127.0  ;;  %v288_v40 = vmin.f32 %v224_v29, 127.0  ;;  %v228_v42 = vmax.f32 %v1461_v31, -128.0  ;;  %v290_v46 = vmin.f32 %v226_v35, 127.0  ;;  %v66_v24 = vld [vmem:[%s2814_s0 + $0x138] sm:$0xff]  ;;  %v39_v29 = vld [vmem:[%s2814_s0 + $0x60] sm:$0xff] }
   0xa   :  { %v289_v41 = vmin.f32 %v225_v30, 127.0  ;;  %v291_v47 = vmin.f32 %v227_v36, 127.0  ;;  %v125_v48 = vmul.f32 %v1572_v3, %v59_v32  ;;  %v126_v52 = vmul.f32 %v1572_v3, %v60_v37  ;;  %v40_v30 = vld [vmem:[%s2814_s0 + $0x68] sm:$0xff]  ;;  %v41_v35 = vld [vmem:[%s2814_s0 + $0x70] sm:$0xff] }
   0xb   :  { %v349_v45 = vpack.c.bf16 %v286_v34, %v285_v33  ;;  %v350_v50 = vpack.c.bf16 %v288_v40, %v287_v39  ;;  %v292_v51 = vmin.f32 %v228_v42, 127.0  ;;  %v127_v53 = vmul.f32 %v1572_v3, %v61_v38 }
   0xc   :  { %v351_v55 = vpack.c.bf16 %v290_v46, %v289_v41  ;;  %v1486_v56 = vround.rtne.f32 %v125_v48  ;;  %v128_v57 = vmul.f32 %v1572_v3, %v62_v43  ;;  %v101_v58 = vmul.f32 %v1572_v3, %v35_v44  ;;  %v42_v44 = vld [vmem:[%s2814_s0 + $0x78] sm:$0xff] }
   0xd   :  { %1386 = vmatprep.mubr.msk.bf16.mxu0 %vm382_vm1, %v349_v45  ;;  %v352_v60 = vpack.c.bf16 %v292_v51, %v291_v47  ;;  %v1487_v61 = vround.rtne.f32 %v126_v52  ;;  %v1488_v62 = vround.rtne.f32 %v127_v53  ;;  %v102_v63 = vmul.f32 %v1572_v3, %v36_v49  ;;  %v67_v49 = vld [vmem:[%s2814_s0 + $0x140] sm:$0xff] }
   0xe   :  { %1387 = vmatmul.mubr.msk.bf16.vlgmr.msra.gmra.mrb[0].mxu0 %vm382_vm1, %v350_v50  ;;  %v253_v0 = vmax.f32 %v1486_v56, -128.0  ;;  %v1489_v1 = vround.rtne.f32 %v128_v57  ;;  %v1462_v2 = vround.rtne.f32 %v101_v58  ;;  %v103_v4 = vmul.f32 %v1572_v3, %v37_v54  ;;  %v68_v58 = vld [vmem:[%s2814_s0 + $0x148] sm:$0xff] }
   0xf   :  { %1390 = vmatprep.mubr.msk.bf16.mxu0 %vm382_vm1, %v351_v55  ;;  %v254_v5 = vmax.f32 %v1487_v61, -128.0  ;;  %v255_v6 = vmax.f32 %v1488_v62, -128.0  ;;  %v1463_v7 = vround.rtne.f32 %v102_v63  ;;  %v104_v8 = vmul.f32 %v1572_v3, %v38_v59  ;;  %v69_v63 = vld [vmem:[%s2814_s0 + $0x150] sm:$0xff] }
  0x10   :  { %v317_v10 = vmin.f32 %v253_v0, 127.0  ;;  %v256_v11 = vmax.f32 %v1489_v1, -128.0  ;;  %v229_v12 = vmax.f32 %v1462_v2, -128.0  ;;  %v1464_v13 = vround.rtne.f32 %v103_v4 }
  0x11   :  { %v318_v15 = vmin.f32 %v254_v5, 127.0  ;;  %v319_v16 = vmin.f32 %v255_v6, 127.0  ;;  %v230_v17 = vmax.f32 %v1463_v7, -128.0  ;;  %v1465_v18 = vround.rtne.f32 %v104_v8  ;;  %v70_v5 = vld [vmem:[%s2814_s0 + $0x158] sm:$0xff] }
  0x12   :  { %v320_v20 = vmin.f32 %v256_v11, 127.0  ;;  %v293_v21 = vmin.f32 %v229_v12, 127.0  ;;  %v231_v22 = vmax.f32 %v1464_v13, -128.0  ;;  %v129_v23 = vmul.f32 %v1572_v3, %v63_v9  ;;  %v44_v11 = vld [vmem:[%s2814_s0 + $0x88] sm:$0xff] }
  0x13   :  { %v365_v25 = vpack.c.bf16 %v318_v15, %v317_v10  ;;  %v294_v26 = vmin.f32 %v230_v17, 127.0  ;;  %v232_v27 = vmax.f32 %v1465_v18, -128.0  ;;  %v130_v28 = vmul.f32 %v1572_v3, %v64_v14  ;;  %v43_v10 = vld [vmem:[%s2814_s0 + $0x80] sm:$0xff] }
  0x14   :  { %v366_v31 = vpack.c.bf16 %v320_v20, %v319_v16  ;;  %v295_v32 = vmin.f32 %v231_v22, 127.0  ;;  %v1490_v33 = vround.rtne.f32 %v129_v23  ;;  %v131_v34 = vmul.f32 %v1572_v3, %v65_v19  ;;  %v45_v16 = vld [vmem:[%s2814_s0 + $0x90] sm:$0xff] }
  0x15   :  { %1418 = vmatprep.mubr.msk.bf16.mxu1 %vm382_vm1, %v365_v25  ;;  %v353_v36 = vpack.c.bf16 %v294_v26, %v293_v21  ;;  %v296_v37 = vmin.f32 %v232_v27, 127.0  ;;  %v1491_v38 = vround.rtne.f32 %v130_v28  ;;  %v132_v39 = vmul.f32 %v1572_v3, %v66_v24  ;;  %v46_v25 = vld [vmem:[%s2814_s0 + $0x98] sm:$0xff] }
  0x16   :  { %1391 = vmatmul.mubr.msk.bf16.gmra.mrb[4].mxu0 %vm382_vm1, %v352_v60  ;;  %1419 = vmatmul.mubr.msk.bf16.vlgmr.msra.gmra.mrb[0].mxu1 %vm382_vm1, %v366_v31  ;;  %v257_v40 = vmax.f32 %v1490_v33, -128.0  ;;  %v1492_v41 = vround.rtne.f32 %v131_v34  ;;  %v105_v42 = vmul.f32 %v1572_v3, %v39_v29  ;;  %v106_v43 = vmul.f32 %v1572_v3, %v40_v30  ;;  %v71_v30 = vld [vmem:[%s2814_s0 + $0x160] sm:$0xff] }
  0x17   :  { %1394 = vmatprep.mubr.msk.bf16.mxu0 %vm382_vm1, %v353_v36  ;;  %v354_v45 = vpack.c.bf16 %v296_v37, %v295_v32  ;;  %v258_v46 = vmax.f32 %v1491_v38, -128.0  ;;  %v1493_v47 = vround.rtne.f32 %v132_v39  ;;  %v107_v48 = vmul.f32 %v1572_v3, %v41_v35  ;;  %v72_v39 = vld [vmem:[%s2814_s0 + $0x168] sm:$0xff] }
  0x18   :  { %v321_v50 = vmin.f32 %v257_v40, 127.0  ;;  %v259_v51 = vmax.f32 %v1492_v41, -128.0  ;;  %v1466_v52 = vround.rtne.f32 %v105_v42  ;;  %v1467_v53 = vround.rtne.f32 %v106_v43 }
  0x19   :  { %v322_v54 = vmin.f32 %v258_v46, 127.0  ;;  %v260_v55 = vmax.f32 %v1493_v47, -128.0  ;;  %v108_v56 = vmul.f32 %v1572_v3, %v42_v44  ;;  %v1468_v57 = vround.rtne.f32 %v107_v48  ;;  %v73_v44 = vld [vmem:[%s2814_s0 + $0x170] sm:$0xff] }
  0x1a   :  { %v323_v59 = vmin.f32 %v259_v51, 127.0  ;;  %v233_v60 = vmax.f32 %v1466_v52, -128.0  ;;  %v234_v61 = vmax.f32 %v1467_v53, -128.0  ;;  %v133_v62 = vmul.f32 %v1572_v3, %v67_v49  ;;  %v74_v49 = vld [vmem:[%s2814_s0 + $0x178] sm:$0xff] }
  0x1b   :  { %v367_v0 = vpack.c.bf16 %v322_v54, %v321_v50  ;;  %v324_v1 = vmin.f32 %v260_v55, 127.0  ;;  %v1469_v2 = vround.rtne.f32 %v108_v56  ;;  %v235_v4 = vmax.f32 %v1468_v57, -128.0  ;;  %v47_v54 = vld [vmem:[%s2814_s0 + $0xa0] sm:$0xff]  ;;  %v48_v55 = vld [vmem:[%s2814_s0 + $0xa8] sm:$0xff] }
  0x1c   :  { %v297_v6 = vmin.f32 %v233_v60, 127.0  ;;  %v298_v7 = vmin.f32 %v234_v61, 127.0  ;;  %v134_v8 = vmul.f32 %v1572_v3, %v68_v58  ;;  %v1494_v9 = vround.rtne.f32 %v133_v62  ;;  %v49_v60 = vld [vmem:[%s2814_s0 + $0xb0] sm:$0xff] }
  0x1d   :  { %1422 = vmatprep.mubr.msk.bf16.mxu1 %vm382_vm1, %v367_v0  ;;  %v368_v12 = vpack.c.bf16 %v324_v1, %v323_v59  ;;  %v236_v13 = vmax.f32 %v1469_v2, -128.0  ;;  %v299_v14 = vmin.f32 %v235_v4, 127.0  ;;  %v135_v15 = vmul.f32 %v1572_v3, %v69_v63 }
  0x1e   :  { %1395 = vmatmul.mubr.msk.bf16.gmra.mrb[8].mxu0 %vm382_vm1, %v354_v45  ;;  %v355_v17 = vpack.c.bf16 %v298_v7, %v297_v6  ;;  %v1495_v18 = vround.rtne.f32 %v134_v8  ;;  %v261_v19 = vmax.f32 %v1494_v9, -128.0  ;;  %v136_v20 = vmul.f32 %v1572_v3, %v70_v5  ;;  %v50_v6 = vld [vmem:[%s2814_s0 + $0xb8] sm:$0xff] }
  0x1f   :  { %1423 = vmatmul.mubr.msk.bf16.gmra.mrb[4].mxu1 %vm382_vm1, %v368_v12  ;;  %v300_v21 = vmin.f32 %v236_v13, 127.0  ;;  %v1496_v22 = vround.rtne.f32 %v135_v15  ;;  %v109_v23 = vmul.f32 %v1572_v3, %v43_v10  ;;  %v110_v24 = vmul.f32 %v1572_v3, %v44_v11  ;;  %v75_v11 = vld [vmem:[%s2814_s0 + $0x180] sm:$0xff] }
  0x20   :  { %1398 = vmatprep.mubr.msk.bf16.mxu0 %vm382_vm1, %v355_v17  ;;  %v262_v26 = vmax.f32 %v1495_v18, -128.0  ;;  %v325_v27 = vmin.f32 %v261_v19, 127.0  ;;  %v1497_v28 = vround.rtne.f32 %v136_v20  ;;  %v111_v29 = vmul.f32 %v1572_v3, %v45_v16  ;;  %v76_v20 = vld [vmem:[%s2814_s0 + $0x188] sm:$0xff] }
  0x21   :  { %v356_v31 = vpack.c.bf16 %v300_v21, %v299_v14  ;;  %v263_v32 = vmax.f32 %v1496_v22, -128.0  ;;  %v1470_v33 = vround.rtne.f32 %v109_v23  ;;  %v1471_v34 = vround.rtne.f32 %v110_v24 }
  0x22   :  { %v326_v35 = vmin.f32 %v262_v26, 127.0  ;;  %v264_v36 = vmax.f32 %v1497_v28, -128.0  ;;  %v112_v37 = vmul.f32 %v1572_v3, %v46_v25  ;;  %v1472_v38 = vround.rtne.f32 %v111_v29  ;;  %v77_v25 = vld [vmem:[%s2814_s0 + $0x190] sm:$0xff] }
  0x23   :  { %v327_v40 = vmin.f32 %v263_v32, 127.0  ;;  %v237_v41 = vmax.f32 %v1470_v33, -128.0  ;;  %v238_v42 = vmax.f32 %v1471_v34, -128.0  ;;  %v137_v43 = vmul.f32 %v1572_v3, %v71_v30  ;;  %v78_v30 = vld [vmem:[%s2814_s0 + $0x198] sm:$0xff] }
  0x24   :  { %v369_v45 = vpack.c.bf16 %v326_v35, %v325_v27  ;;  %v328_v46 = vmin.f32 %v264_v36, 127.0  ;;  %v1473_v47 = vround.rtne.f32 %v112_v37  ;;  %v239_v48 = vmax.f32 %v1472_v38, -128.0  ;;  %v51_v35 = vld [vmem:[%s2814_s0 + $0xc0] sm:$0xff]  ;;  %v52_v36 = vld [vmem:[%s2814_s0 + $0xc8] sm:$0xff] }
  0x25   :  { %v301_v50 = vmin.f32 %v237_v41, 127.0  ;;  %v302_v51 = vmin.f32 %v238_v42, 127.0  ;;  %v138_v52 = vmul.f32 %v1572_v3, %v72_v39  ;;  %v1498_v53 = vround.rtne.f32 %v137_v43  ;;  %v53_v41 = vld [vmem:[%s2814_s0 + $0xd0] sm:$0xff] }
  0x26   :  { %1399 = vmatmul.mubr.msk.bf16.gmra.mrb[12].mxu0 %vm382_vm1, %v356_v31  ;;  %1426 = vmatprep.mubr.msk.bf16.mxu1 %vm382_vm1, %v369_v45  ;;  %v370_v56 = vpack.c.bf16 %v328_v46, %v327_v40  ;;  %v240_v57 = vmax.f32 %v1473_v47, -128.0  ;;  %v303_v58 = vmin.f32 %v239_v48, 127.0  ;;  %v139_v59 = vmul.f32 %v1572_v3, %v73_v44 }
  0x27   :  { %v357_v61 = vpack.c.bf16 %v302_v51, %v301_v50  ;;  %v1499_v62 = vround.rtne.f32 %v138_v52  ;;  %v265_v63 = vmax.f32 %v1498_v53, -128.0  ;;  %v140_v0 = vmul.f32 %v1572_v3, %v74_v49  ;;  %v54_v50 = vld [vmem:[%s2814_s0 + $0xd8] sm:$0xff] }
  0x28   :  { %1427 = vmatmul.mubr.msk.bf16.gmra.mrb[8].mxu1 %vm382_vm1, %v370_v56  ;;  %v304_v1 = vmin.f32 %v240_v57, 127.0  ;;  %v1500_v2 = vround.rtne.f32 %v139_v59  ;;  %v113_v4 = vmul.f32 %v1572_v3, %v47_v54  ;;  %v114_v5 = vmul.f32 %v1572_v3, %v48_v55  ;;  %v79_v55 = vld [vmem:[%s2814_s0 + $0x1a0] sm:$0xff] }
  0x29   :  { %1402 = vmatprep.mubr.msk.bf16.mxu0 %vm382_vm1, %v357_v61  ;;  %v266_v7 = vmax.f32 %v1499_v62, -128.0  ;;  %v329_v8 = vmin.f32 %v265_v63, 127.0  ;;  %v1501_v9 = vround.rtne.f32 %v140_v0  ;;  %v115_v10 = vmul.f32 %v1572_v3, %v49_v60  ;;  %v80_v0 = vld [vmem:[%s2814_s0 + $0x1a8] sm:$0xff] }
  0x2a   :  { %v358_v12 = vpack.c.bf16 %v304_v1, %v303_v58  ;;  %v267_v13 = vmax.f32 %v1500_v2, -128.0  ;;  %v1474_v14 = vround.rtne.f32 %v113_v4  ;;  %v1475_v15 = vround.rtne.f32 %v114_v5 }
  0x2b   :  { %v330_v16 = vmin.f32 %v266_v7, 127.0  ;;  %v268_v17 = vmax.f32 %v1501_v9, -128.0  ;;  %v116_v18 = vmul.f32 %v1572_v3, %v50_v6  ;;  %v1476_v19 = vround.rtne.f32 %v115_v10  ;;  %v81_v6 = vld [vmem:[%s2814_s0 + $0x1b0] sm:$0xff] }
  0x2c   :  { %v331_v21 = vmin.f32 %v267_v13, 127.0  ;;  %v241_v22 = vmax.f32 %v1474_v14, -128.0  ;;  %v242_v23 = vmax.f32 %v1475_v15, -128.0  ;;  %v141_v24 = vmul.f32 %v1572_v3, %v75_v11  ;;  %v82_v11 = vld [vmem:[%s2814_s0 + $0x1b8] sm:$0xff] }
  0x2d   :  { %v371_v26 = vpack.c.bf16 %v330_v16, %v329_v8  ;;  %v332_v27 = vmin.f32 %v268_v17, 127.0  ;;  %v1477_v28 = vround.rtne.f32 %v116_v18  ;;  %v243_v29 = vmax.f32 %v1476_v19, -128.0  ;;  %v55_v16 = vld [vmem:[%s2814_s0 + $0xe0] sm:$0xff]  ;;  %v56_v17 = vld [vmem:[%s2814_s0 + $0xe8] sm:$0xff] }
  0x2e   :  { %1403 = vmatmul.mubr.msk.bf16.gmra.mrb[16].mxu0 %vm382_vm1, %v358_v12  ;;  %v305_v31 = vmin.f32 %v241_v22, 127.0  ;;  %v306_v32 = vmin.f32 %v242_v23, 127.0  ;;  %v142_v33 = vmul.f32 %v1572_v3, %v76_v20  ;;  %v1502_v34 = vround.rtne.f32 %v141_v24  ;;  %v57_v22 = vld [vmem:[%s2814_s0 + $0xf0] sm:$0xff] }
  0x2f   :  { %1430 = vmatprep.mubr.msk.bf16.mxu1 %vm382_vm1, %v371_v26  ;;  %v372_v37 = vpack.c.bf16 %v332_v27, %v331_v21  ;;  %v244_v38 = vmax.f32 %v1477_v28, -128.0  ;;  %v307_v39 = vmin.f32 %v243_v29, 127.0  ;;  %v143_v40 = vmul.f32 %v1572_v3, %v77_v25 }
  0x30   :  { %v359_v42 = vpack.c.bf16 %v306_v32, %v305_v31  ;;  %v1503_v43 = vround.rtne.f32 %v142_v33  ;;  %v269_v44 = vmax.f32 %v1502_v34, -128.0  ;;  %v144_v45 = vmul.f32 %v1572_v3, %v78_v30  ;;  %v58_v31 = vld [vmem:[%s2814_s0 + $0xf8] sm:$0xff] }
  0x31   :  { %1431 = vmatmul.mubr.msk.bf16.gmra.mrb[12].mxu1 %vm382_vm1, %v372_v37  ;;  %v308_v46 = vmin.f32 %v244_v38, 127.0  ;;  %v1504_v47 = vround.rtne.f32 %v143_v40  ;;  %v117_v48 = vmul.f32 %v1572_v3, %v51_v35  ;;  %v118_v49 = vmul.f32 %v1572_v3, %v52_v36  ;;  %v83_v36 = vld [vmem:[%s2814_s0 + $0x1c0] sm:$0xff] }
  0x32   :  { %1406 = vmatprep.mubr.msk.bf16.mxu0 %vm382_vm1, %v359_v42  ;;  %v270_v51 = vmax.f32 %v1503_v43, -128.0  ;;  %v333_v52 = vmin.f32 %v269_v44, 127.0  ;;  %v1505_v53 = vround.rtne.f32 %v144_v45  ;;  %v119_v54 = vmul.f32 %v1572_v3, %v53_v41  ;;  %v84_v45 = vld [vmem:[%s2814_s0 + $0x1c8] sm:$0xff] }
  0x33   :  { %v360_v56 = vpack.c.bf16 %v308_v46, %v307_v39  ;;  %v271_v57 = vmax.f32 %v1504_v47, -128.0  ;;  %v1478_v58 = vround.rtne.f32 %v117_v48  ;;  %v1479_v59 = vround.rtne.f32 %v118_v49 }
  0x34   :  { %v334_v60 = vmin.f32 %v270_v51, 127.0  ;;  %v272_v61 = vmax.f32 %v1505_v53, -128.0  ;;  %v120_v62 = vmul.f32 %v1572_v3, %v54_v50  ;;  %v1480_v63 = vround.rtne.f32 %v119_v54  ;;  %v85_v50 = vld [vmem:[%s2814_s0 + $0x1d0] sm:$0xff] }
  0x35   :  { %v335_v1 = vmin.f32 %v271_v57, 127.0  ;;  %v245_v2 = vmax.f32 %v1478_v58, -128.0  ;;  %v246_v4 = vmax.f32 %v1479_v59, -128.0  ;;  %v145_v5 = vmul.f32 %v1572_v3, %v79_v55  ;;  %v86_v55 = vld [vmem:[%s2814_s0 + $0x1d8] sm:$0xff] }
  0x36   :  { %1407 = vmatmul.mubr.msk.bf16.gmra.mrb[20].mxu0 %vm382_vm1, %v360_v56  ;;  %v373_v7 = vpack.c.bf16 %v334_v60, %v333_v52  ;;  %v336_v8 = vmin.f32 %v272_v61, 127.0  ;;  %v1481_v9 = vround.rtne.f32 %v120_v62  ;;  %v247_v10 = vmax.f32 %v1480_v63, -128.0  ;;  %v87_v60 = vld [vmem:[%s2814_s0 + $0x1e0] sm:$0xff]  ;;  %v88_v61 = vld [vmem:[%s2814_s0 + $0x1e8] sm:$0xff] }
  0x37   :  { %v309_v12 = vmin.f32 %v245_v2, 127.0  ;;  %v310_v13 = vmin.f32 %v246_v4, 127.0  ;;  %v146_v14 = vmul.f32 %v1572_v3, %v80_v0  ;;  %v1506_v15 = vround.rtne.f32 %v145_v5  ;;  %v89_v2 = vld [vmem:[%s2814_s0 + $0x1f0] sm:$0xff] }
  0x38   :  { %1434 = vmatprep.mubr.msk.bf16.mxu1 %vm382_vm1, %v373_v7  ;;  %v374_v18 = vpack.c.bf16 %v336_v8, %v335_v1  ;;  %v248_v19 = vmax.f32 %v1481_v9, -128.0  ;;  %v311_v20 = vmin.f32 %v247_v10, 127.0  ;;  %v147_v21 = vmul.f32 %v1572_v3, %v81_v6 }
  0x39   :  { %v361_v23 = vpack.c.bf16 %v310_v13, %v309_v12  ;;  %v1507_v24 = vround.rtne.f32 %v146_v14  ;;  %v273_v25 = vmax.f32 %v1506_v15, -128.0  ;;  %v148_v26 = vmul.f32 %v1572_v3, %v82_v11  ;;  %v90_v12 = vld [vmem:[%s2814_s0 + $0x1f8] sm:$0xff] }
  0x3a   :  { %1435 = vmatmul.mubr.msk.bf16.gmra.mrb[16].mxu1 %vm382_vm1, %v374_v18  ;;  %v312_v27 = vmin.f32 %v248_v19, 127.0  ;;  %v1508_v28 = vround.rtne.f32 %v147_v21  ;;  %v121_v29 = vmul.f32 %v1572_v3, %v55_v16  ;;  %v122_v30 = vmul.f32 %v1572_v3, %v56_v17 }
  0x3b   :  { %1410 = vmatprep.mubr.msk.bf16.mxu0 %vm382_vm1, %v361_v23  ;;  %v274_v32 = vmax.f32 %v1507_v24, -128.0  ;;  %v337_v33 = vmin.f32 %v273_v25, 127.0  ;;  %v1509_v34 = vround.rtne.f32 %v148_v26  ;;  %v123_v35 = vmul.f32 %v1572_v3, %v57_v22 }
  0x3c   :  { %v362_v37 = vpack.c.bf16 %v312_v27, %v311_v20  ;;  %v275_v38 = vmax.f32 %v1508_v28, -128.0  ;;  %v1482_v39 = vround.rtne.f32 %v121_v29  ;;  %v1483_v40 = vround.rtne.f32 %v122_v30 }
  0x3d   :  { %v338_v41 = vmin.f32 %v274_v32, 127.0  ;;  %v276_v42 = vmax.f32 %v1509_v34, -128.0  ;;  %v124_v43 = vmul.f32 %v1572_v3, %v58_v31  ;;  %v1484_v44 = vround.rtne.f32 %v123_v35 }
  0x3e   :  { %1411 = vmatmul.mubr.msk.bf16.gmra.mrb[24].mxu0 %vm382_vm1, %v362_v37  ;;  %v339_v46 = vmin.f32 %v275_v38, 127.0  ;;  %v249_v47 = vmax.f32 %v1482_v39, -128.0  ;;  %v250_v48 = vmax.f32 %v1483_v40, -128.0  ;;  %v149_v49 = vmul.f32 %v1572_v3, %v83_v36  ;;  %v1859_v39 = vld [vmem:[%s2816_s3] ss:$0 sm:$0xff] }
  0x3f   :  { %v375_v51 = vpack.c.bf16 %v338_v41, %v337_v33  ;;  %v340_v52 = vmin.f32 %v276_v42, 127.0  ;;  %v1485_v53 = vround.rtne.f32 %v124_v43  ;;  %v251_v54 = vmax.f32 %v1484_v44, -128.0  ;;  %v1864_v41 = vld [vmem:[%s2817_s4] ss:$0 sm:$0xff]  ;;  %v916_v44 = vld [vmem:[%s2818_s5 + $0x10] sm:$0xff] }
  0x40   :  { %v313_v56 = vmin.f32 %v249_v47, 127.0  ;;  %v314_v57 = vmin.f32 %v250_v48, 127.0  ;;  %v150_v58 = vmul.f32 %v1572_v3, %v84_v45  ;;  %v1510_v59 = vround.rtne.f32 %v149_v49  ;;  %v914_v48 = vld [vmem:[%s2818_s5] sm:$0xff] }
  0x41   :  { %1438 = vmatprep.mubr.msk.bf16.mxu1 %vm382_vm1, %v375_v51  ;;  %v376_v62 = vpack.c.bf16 %v340_v52, %v339_v46  ;;  %v252_v63 = vmax.f32 %v1485_v53, -128.0  ;;  %v315_v0 = vmin.f32 %v251_v54, 127.0  ;;  %v151_v1 = vmul.f32 %v1572_v3, %v85_v50  ;;  %v917_v52 = vld [vmem:[%s2818_s5 + $0x18] sm:$0xff] }
  0x42   :  { %v363_v4 = vpack.c.bf16 %v314_v57, %v313_v56  ;;  %v1511_v5 = vround.rtne.f32 %v150_v58  ;;  %v277_v6 = vmax.f32 %v1510_v59, -128.0  ;;  %v152_v7 = vmul.f32 %v1572_v3, %v86_v55  ;;  %v915_v56 = vld [vmem:[%s2818_s5 + $0x8] sm:$0xff] }
  0x43   :  { %1439 = vmatmul.mubr.msk.bf16.gmra.mrb[20].mxu1 %vm382_vm1, %v376_v62  ;;  %v316_v8 = vmin.f32 %v252_v63, 127.0  ;;  %v1512_v9 = vround.rtne.f32 %v151_v1  ;;  %v153_v10 = vmul.f32 %v1572_v3, %v87_v60  ;;  %v154_v11 = vmul.f32 %v1572_v3, %v88_v61 }
  0x44   :  { %1414 = vmatprep.mubr.msk.bf16.mxu0 %vm382_vm1, %v363_v4  ;;  %v278_v13 = vmax.f32 %v1511_v5, -128.0  ;;  %v341_v14 = vmin.f32 %v277_v6, 127.0  ;;  %v1513_v15 = vround.rtne.f32 %v152_v7  ;;  %v155_v16 = vmul.f32 %v1572_v3, %v89_v2  ;;  %v920_v5 = vld [vmem:[%s2818_s5 + $0x30] sm:$0xff] }
  0x45   :  { %v364_v17 = vpack.c.bf16 %v316_v8, %v315_v0  ;;  %v279_v18 = vmax.f32 %v1512_v9, -128.0  ;;  %v1514_v19 = vround.rtne.f32 %v153_v10  ;;  %v1515_v20 = vround.rtne.f32 %v154_v11 }
  0x46   :  { %v342_v21 = vmin.f32 %v278_v13, 127.0  ;;  %v280_v22 = vmax.f32 %v1513_v15, -128.0  ;;  %v156_v23 = vmul.f32 %v1572_v3, %v90_v12  ;;  %v1516_v24 = vround.rtne.f32 %v155_v16  ;;  %v918_v12 = vld [vmem:[%s2818_s5 + $0x20] sm:$0xff]  ;;  %v948_v15 = vld [vmem:[%s2818_s5 + $0x110] sm:$0xff] }
  0x47   :  { %1415 = vmatmul.mubr.msk.bf16.gmra.mrb[28].mxu0 %vm382_vm1, %v364_v17  ;;  %v343_v25 = vmin.f32 %v279_v18, 127.0  ;;  %v281_v26 = vmax.f32 %v1514_v19, -128.0  ;;  %v282_v27 = vmax.f32 %v1515_v20, -128.0  ;;  %v921_v20 = vld [vmem:[%s2818_s5 + $0x38] sm:$0xff] }
  0x48   :  { %v377_v28 = vpack.c.bf16 %v342_v21, %v341_v14  ;;  %v344_v29 = vmin.f32 %v280_v22, 127.0  ;;  %v1517_v30 = vround.rtne.f32 %v156_v23  ;;  %v283_v31 = vmax.f32 %v1516_v24, -128.0  ;;  %v946_v23 = vld [vmem:[%s2818_s5 + $0x100] sm:$0xff] }
  0x49   :  { %v345_v32 = vmin.f32 %v281_v26, 127.0  ;;  %v346_v33 = vmin.f32 %v282_v27, 127.0  ;;  %v919_v27 = vld [vmem:[%s2818_s5 + $0x28] sm:$0xff] }
  0x4a   :  { %1442 = vmatprep.mubr.msk.bf16.mxu1 %vm382_vm1, %v377_v28  ;;  %v378_v34 = vpack.c.bf16 %v344_v29, %v343_v25  ;;  %v284_v35 = vmax.f32 %v1517_v30, -128.0  ;;  %v347_v3 = vmin.f32 %v283_v31, 127.0 }
  0x4b   :  { %v379_v36 = vpack.c.bf16 %v346_v33, %v345_v32  ;;  %v949_v33 = vld [vmem:[%s2818_s5 + $0x118] sm:$0xff] }
  0x4c   :  { %1443 = vmatmul.mubr.msk.bf16.gmra.mrb[24].mxu1 %vm382_vm1, %v378_v34  ;;  %v348_v37 = vmin.f32 %v284_v35, 127.0 }
  0x4d   :  { %1446 = vmatprep.mubr.msk.bf16.mxu1 %vm382_vm1, %v379_v36 }
  0x4e   :  { %v380_v38 = vpack.c.bf16 %v348_v37, %v347_v3 }
  0x54   :  { %1447 = vmatmul.mubr.msk.bf16.gmra.mrb[28].mxu1 %vm382_vm1, %v380_v38 }
  0xe1   :  { %v1388_v40 = vpop.f32.mrb[0].mxu0 }
  0xe2   :  { %v781_v42 = vmul.f32 %v1388_v40, %v1859_v39  ;;  %v517_v43 = vpop.f32.mrb[1].mxu0 }
  0xe3   :  { %v779_v45 = vmul.f32 %v1859_v39, %v517_v43  ;;  %v1389_v46 = vpop.f32.mrb[2].mxu0 }
  0xe4   :  { %v852_v47 = vadd.f32 %v1864_v41, %v781_v42  ;;  %v782_v49 = vmul.f32 %v1389_v46, %v1859_v39  ;;  %v520_v50 = vpop.f32.mrb[3].mxu0 }
  0xe5   :  { %v850_v51 = vadd.f32 %v1864_v41, %v779_v45  ;;  %v780_v53 = vmul.f32 %v1859_v39, %v520_v50  ;;  %v947_v45 = vld [vmem:[%s2818_s5 + $0x108] sm:$0xff] }
  0xe6   :  { %v980_v54 = vadd.f32 %v916_v44, %v852_v47  ;;  %v853_v55 = vadd.f32 %v1864_v41, %v782_v49 }
  0xe7   :  { %v978_v57 = vadd.f32 %v914_v48, %v850_v51  ;;  %v851_v58 = vadd.f32 %v1864_v41, %v780_v53 }
  0xe8   :  { %1045 = vst.msk [vmem:[%s2819_s6 + $0x10] sm:$0xff] %vm1042_vm2, %v980_v54  ;;  %v1109_v59 = vand.u32 2147483647, %v980_v54  ;;  %v981_v60 = vadd.f32 %v917_v52, %v853_v55 }
  0xe9   :  { %1043 = vst.msk [vmem:[%s2819_s6] sm:$0xff] %vm1042_vm2, %v978_v57  ;;  %v1894_v61 = vadd.f32 %v915_v56, %v851_v58  ;;  %v1392_v62 = vpop.f32.mrb[4].mxu0  ;;  %v1420_v1 = vpop.f32.mrb[0].mxu1  ;;  %v1107_v4 = vand.u32 2147483647, %v978_v57 }
  0xea   :  { %1046 = vst.msk [vmem:[%s2819_s6 + $0x18] sm:$0xff] %vm1042_vm2, %v981_v60  ;;  %v785_v63 = vmul.f32 %v1392_v62, %v1859_v39  ;;  %v533_v0 = vpop.f32.mrb[5].mxu0  ;;  %v1902_v2 = vsel %vm1042_vm2, %v1109_v59, -inf  ;;  %v813_v8 = vmul.f32 %v1420_v1, %v1859_v39  ;;  %v645_v9 = vpop.f32.mrb[1].mxu1  ;;  %v1110_v10 = vand.u32 2147483647, %v981_v60 }
  0xeb   :  { %1044 = vst.msk [vmem:[%s2819_s6 + $0x8] sm:$0xff] %vm1042_vm2, %v1894_v61  ;;  %v783_v6 = vmul.f32 %v1859_v39, %v533_v0  ;;  %v1393_v7 = vpop.f32.mrb[6].mxu0  ;;  %v811_v16 = vmul.f32 %v1859_v39, %v645_v9  ;;  %v1421_v17 = vpop.f32.mrb[2].mxu1  ;;  %v1108_v18 = vand.u32 2147483647, %v1894_v61  ;;  %v1171_v38 = vsel %vm1042_vm2, %v1107_v4, -inf }
  0xec   :  { %v856_v11 = vadd.f32 %v1864_v41, %v785_v63  ;;  %v786_v13 = vmul.f32 %v1393_v7, %v1859_v39  ;;  %v536_v14 = vpop.f32.mrb[7].mxu0  ;;  %v884_v22 = vadd.f32 %v1864_v41, %v813_v8  ;;  %v648_v24 = vpop.f32.mrb[3].mxu1  ;;  %v814_v29 = vmul.f32 %v1421_v17, %v1859_v39  ;;  %v924_v8 = vld [vmem:[%s2818_s5 + $0x50] sm:$0xff] }
  0xed   :  { %v854_v19 = vadd.f32 %v1864_v41, %v783_v6  ;;  %v784_v21 = vmul.f32 %v1859_v39, %v536_v14  ;;  %v882_v28 = vadd.f32 %v1864_v41, %v811_v16  ;;  %v812_v34 = vmul.f32 %v1859_v39, %v648_v24  ;;  %v925_v16 = vld [vmem:[%s2818_s5 + $0x58] sm:$0xff] }
  0xee   :  { %v984_v25 = vadd.f32 %v920_v5, %v856_v11  ;;  %v857_v26 = vadd.f32 %v1864_v41, %v786_v13  ;;  %v1012_v32 = vadd.f32 %v948_v15, %v884_v22  ;;  %v885_v37 = vadd.f32 %v1864_v41, %v814_v29  ;;  %v922_v15 = vld [vmem:[%s2818_s5 + $0x40] sm:$0xff] }
  0xef   :  { %v982_v30 = vadd.f32 %v918_v12, %v854_v19  ;;  %v855_v31 = vadd.f32 %v1864_v41, %v784_v21  ;;  %v1948_v3 = vadd.f32 %v946_v23, %v882_v28  ;;  %v883_v44 = vadd.f32 %v1864_v41, %v812_v34  ;;  %v950_v28 = vld [vmem:[%s2818_s5 + $0x120] sm:$0xff] }
  0xf0   :  { %1049 = vst.msk [vmem:[%s2819_s6 + $0x30] sm:$0xff] %vm1042_vm2, %v984_v25  ;;  %v1113_v35 = vand.u32 2147483647, %v984_v25  ;;  %v985_v36 = vadd.f32 %v921_v20, %v857_v26  ;;  %1077 = vst.msk [vmem:[%s2819_s6 + $0x110] sm:$0xff] %vm1042_vm2, %v1012_v32  ;;  %v1141_v48 = vand.u32 2147483647, %v1012_v32  ;;  %v1976_v49 = vadd.f32 %v949_v33, %v885_v37 }
  0xf1   :  { %1047 = vst.msk [vmem:[%s2819_s6 + $0x20] sm:$0xff] %vm1042_vm2, %v982_v30  ;;  %v1111_v40 = vand.u32 2147483647, %v982_v30  ;;  %v983_v42 = vadd.f32 %v919_v27, %v855_v31  ;;  %v1396_v43 = vpop.f32.mrb[8].mxu0  ;;  %1075 = vst.msk [vmem:[%s2819_s6 + $0x100] sm:$0xff] %vm1042_vm2, %v1948_v3  ;;  %v1174_v51 = vsel %vm1042_vm2, %v1110_v10, -inf  ;;  %v1011_v4 = vadd.f32 %v947_v45, %v883_v44 }
  0xf2   :  { %v1965_v46 = vsel %vm1042_vm2, %v1113_v35, -inf  ;;  %1050 = vst.msk [vmem:[%s2819_s6 + $0x38] sm:$0xff] %vm1042_vm2, %v985_v36  ;;  %v1114_v47 = vand.u32 2147483647, %v985_v36  ;;  %v549_v50 = vpop.f32.mrb[9].mxu0  ;;  %v1424_v56 = vpop.f32.mrb[4].mxu1  ;;  %v789_v1 = vmul.f32 %v1396_v43, %v1859_v39 }
  0xf3   :  { %v1180_v52 = vmax.f32 %v1902_v2, %v1965_v46  ;;  %v1175_v53 = vsel %vm1042_vm2, %v1111_v40, -inf  ;;  %1048 = vst.msk [vmem:[%s2819_s6 + $0x28] sm:$0xff] %vm1042_vm2, %v983_v42  ;;  %v1112_v54 = vand.u32 2147483647, %v983_v42  ;;  %v1397_v55 = vpop.f32.mrb[10].mxu0  ;;  %v1172_v57 = vsel %vm1042_vm2, %v1108_v18, -inf }
  0xf4   :  { %v1176_v58 = vmax.f32 %v1171_v38, %v1175_v53  ;;  %v1181_v59 = vsel %vm1042_vm2, %v1114_v47, -inf  ;;  %v1139_v60 = vand.u32 2147483647, %v1948_v3  ;;  %1078 = vst.msk [vmem:[%s2819_s6 + $0x118] sm:$0xff] %vm1042_vm2, %v1976_v49  ;;  %v552_v61 = vpop.f32.mrb[11].mxu0  ;;  %v661_v62 = vpop.f32.mrb[5].mxu1  ;;  %v787_v9 = vmul.f32 %v1859_v39, %v549_v50 }
  0xf5   :  { %v1182_v63 = vmax.f32 %v1174_v51, %v1181_v59  ;;  %v1177_v0 = vsel %vm1042_vm2, %v1112_v54, -inf  ;;  %v1425_v5 = vpop.f32.mrb[6].mxu1  ;;  %v1235_v7 = vsel %vm1042_vm2, %v1141_v48, -inf  ;;  %v790_v10 = vmul.f32 %v1397_v55, %v1859_v39  ;;  %1076 = vst.msk [vmem:[%s2819_s6 + $0x108] sm:$0xff] %vm1042_vm2, %v1011_v4  ;;  %v923_v20 = vld [vmem:[%s2818_s5 + $0x48] sm:$0xff]  ;;  %v952_v27 = vld [vmem:[%s2818_s5 + $0x130] sm:$0xff] }
  0xf6   :  { %v1178_v6 = vmax.f32 %v1172_v57, %v1177_v0  ;;  %v664_v11 = vpop.f32.mrb[7].mxu1  ;;  %v1142_v13 = vand.u32 2147483647, %v1976_v49  ;;  %v860_v14 = vadd.f32 %v1864_v41, %v789_v1  ;;  %v788_v17 = vmul.f32 %v1859_v39, %v552_v61  ;;  %v953_v45 = vld [vmem:[%s2818_s5 + $0x138] sm:$0xff]  ;;  %v951_v0 = vld [vmem:[%s2818_s5 + $0x128] sm:$0xff] }
  0xf7   :  { %v1184_v12 = vmax.f32 %v1176_v58, %v1182_v63  ;;  %v858_v18 = vadd.f32 %v1864_v41, %v787_v9  ;;  %v861_v19 = vadd.f32 %v1864_v41, %v790_v10  ;;  %v817_v21 = vmul.f32 %v1424_v56, %v1859_v39 }
  0xf8   :  { %v815_v22 = vmul.f32 %v1859_v39, %v661_v62  ;;  %v988_v24 = vadd.f32 %v924_v8, %v860_v14  ;;  %v1140_v25 = vand.u32 2147483647, %v1011_v4  ;;  %v859_v26 = vadd.f32 %v1864_v41, %v788_v17  ;;  %v928_v62 = vld [vmem:[%s2818_s5 + $0x70] sm:$0xff] }
  0xf9   :  { %v1190_v23 = vmax.f32 %v1178_v6, %v1184_v12  ;;  %v1400_v29 = vpop.f32.mrb[12].mxu0  ;;  %v986_v30 = vadd.f32 %v922_v15, %v858_v18  ;;  %v2029_v31 = vadd.f32 %v925_v16, %v861_v19  ;;  %v888_v32 = vadd.f32 %v1864_v41, %v817_v21  ;;  %v927_v19 = vld [vmem:[%s2818_s5 + $0x68] sm:$0xff] }
  0xfa   :  { %v886_v33 = vadd.f32 %v1864_v41, %v815_v22  ;;  %v565_v34 = vpop.f32.mrb[13].mxu0  ;;  %1053 = vst.msk [vmem:[%s2819_s6 + $0x50] sm:$0xff] %vm1042_vm2, %v988_v24  ;;  %v1117_v36 = vand.u32 2147483647, %v988_v24  ;;  %v2037_v3 = vadd.f32 %v923_v20, %v859_v26  ;;  %v818_v37 = vmul.f32 %v1425_v5, %v1859_v39  ;;  %v956_v26 = vld [vmem:[%s2818_s5 + $0x150] sm:$0xff] }
  0xfb   :  { %v1186_v35 = vmax.f32 %v1235_v7, %v1190_v23  ;;  %v1401_v38 = vpop.f32.mrb[14].mxu0  ;;  %v1231_v40 = vsel %vm1042_vm2, %v1139_v60, -inf  ;;  %1051 = vst.msk [vmem:[%s2819_s6 + $0x40] sm:$0xff] %vm1042_vm2, %v986_v30  ;;  %v1115_v42 = vand.u32 2147483647, %v986_v30  ;;  %1054 = vst.msk [vmem:[%s2819_s6 + $0x58] sm:$0xff] %vm1042_vm2, %v2029_v31  ;;  %v2050_v43 = vadd.f32 %v952_v27, %v888_v32 }
  0xfc   :  { %v2052_v44 = vadd.f32 %v950_v28, %v886_v33  ;;  %v568_v47 = vpop.f32.mrb[15].mxu0  ;;  %v1428_v48 = vpop.f32.mrb[8].mxu1  ;;  %v1187_v50 = vsel %vm1042_vm2, %v1117_v36, -inf  ;;  %1052 = vst.msk [vmem:[%s2819_s6 + $0x48] sm:$0xff] %vm1042_vm2, %v2037_v3  ;;  %v889_v51 = vadd.f32 %v1864_v41, %v818_v37  ;;  %v1237_v54 = vsel %vm1042_vm2, %v1142_v13, -inf  ;;  %v926_v7 = vld [vmem:[%s2818_s5 + $0x60] sm:$0xff] }
  0xfd   :  { %v1196_v49 = vmax.f32 %v1231_v40, %v1186_v35  ;;  %v677_v53 = vpop.f32.mrb[9].mxu1  ;;  %v1188_v55 = vmax.f32 %v1180_v52, %v1187_v50  ;;  %v1233_v56 = vsel %vm1042_vm2, %v1140_v25, -inf  ;;  %1081 = vst.msk [vmem:[%s2819_s6 + $0x130] sm:$0xff] %vm1042_vm2, %v2050_v43  ;;  %v1118_v2 = vand.u32 2147483647, %v2029_v31  ;;  %v929_v13 = vld [vmem:[%s2818_s5 + $0x78] sm:$0xff] }
  0xfe   :  { %1079 = vst.msk [vmem:[%s2819_s6 + $0x120] sm:$0xff] %vm1042_vm2, %v2052_v44  ;;  %v2079_v57 = vpop.f32.mrb[10].mxu1  ;;  %v1116_v46 = vand.u32 2147483647, %v2037_v3  ;;  %v1017_v52 = vadd.f32 %v953_v45, %v889_v51  ;;  %v1183_v60 = vsel %vm1042_vm2, %v1115_v42, -inf  ;;  %v793_v61 = vmul.f32 %v1400_v29, %v1859_v39  ;;  %v954_v35 = vld [vmem:[%s2818_s5 + $0x140] sm:$0xff] }
  0xff   :  { %v1192_v58 = vmax.f32 %v1237_v54, %v1196_v49  ;;  %v2083_v59 = vpop.f32.mrb[11].mxu1  ;;  %v816_v63 = vmul.f32 %v1859_v39, %v664_v11  ;;  %v791_v1 = vmul.f32 %v1859_v39, %v565_v34  ;;  %v1145_v5 = vand.u32 2147483647, %v2050_v43 }
 0x100   :  { %v1143_v6 = vand.u32 2147483647, %v2052_v44  ;;  %1082 = vst.msk [vmem:[%s2819_s6 + $0x138] sm:$0xff] %vm1042_vm2, %v1017_v52  ;;  %v794_v8 = vmul.f32 %v1401_v38, %v1859_v39  ;;  %v864_v10 = vadd.f32 %v1864_v41, %v793_v61  ;;  %v792_v14 = vmul.f32 %v1859_v39, %v568_v47 }
 0x101   :  { %v1198_v4 = vmax.f32 %v1188_v55, %v1192_v58  ;;  %v1404_v9 = vpop.f32.mrb[16].mxu0  ;;  %v887_v11 = vadd.f32 %v1864_v41, %v816_v63  ;;  %v862_v12 = vadd.f32 %v1864_v41, %v791_v1  ;;  %v1146_v17 = vand.u32 2147483647, %v1017_v52 }
 0x102   :  { %v581_v15 = vpop.f32.mrb[17].mxu0  ;;  %v865_v18 = vadd.f32 %v1864_v41, %v794_v8  ;;  %v821_v20 = vmul.f32 %v1428_v48, %v1859_v39  ;;  %v992_v22 = vadd.f32 %v928_v62, %v864_v10  ;;  %v863_v25 = vadd.f32 %v1864_v41, %v792_v14 }
 0x103   :  { %v1194_v16 = vmax.f32 %v1233_v56, %v1198_v4  ;;  %v1405_v21 = vpop.f32.mrb[18].mxu0  ;;  %v2117_v23 = vadd.f32 %v951_v0, %v887_v11  ;;  %v2119_v24 = vadd.f32 %v926_v7, %v862_v12  ;;  %v819_v31 = vmul.f32 %v1859_v39, %v677_v53  ;;  %v957_v56 = vld [vmem:[%s2818_s5 + $0x158] sm:$0xff] }
 0x104   :  { %v584_v27 = vpop.f32.mrb[19].mxu0  ;;  %v2125_v29 = vadd.f32 %v929_v13, %v865_v18  ;;  %v892_v30 = vadd.f32 %v1864_v41, %v821_v20  ;;  %v1432_v32 = vpop.f32.mrb[12].mxu1  ;;  %v1189_v33 = vsel %vm1042_vm2, %v1118_v2, -inf  ;;  %1057 = vst.msk [vmem:[%s2819_s6 + $0x70] sm:$0xff] %vm1042_vm2, %v992_v22  ;;  %v2144_v34 = vadd.f32 %v927_v19, %v863_v25  ;;  %v933_v11 = vld [vmem:[%s2818_s5 + $0x98] sm:$0xff] }
 0x105   :  { %v1204_v28 = vmax.f32 %v1183_v60, %v1194_v16  ;;  %1080 = vst.msk [vmem:[%s2819_s6 + $0x128] sm:$0xff] %vm1042_vm2, %v2117_v23  ;;  %1055 = vst.msk [vmem:[%s2819_s6 + $0x60] sm:$0xff] %vm1042_vm2, %v2119_v24  ;;  %v1121_v3 = vand.u32 2147483647, %v992_v22  ;;  %v890_v38 = vadd.f32 %v1864_v41, %v819_v31  ;;  %v2157_v40 = vpop.f32.mrb[13].mxu1  ;;  %v1185_v42 = vsel %vm1042_vm2, %v1116_v46, -inf }
 0x106   :  { %1058 = vst.msk [vmem:[%s2819_s6 + $0x78] sm:$0xff] %vm1042_vm2, %v2125_v29  ;;  %v2154_v37 = vadd.f32 %v956_v26, %v892_v30  ;;  %v1243_v43 = vsel %vm1042_vm2, %v1145_v5, -inf  ;;  %v1239_v44 = vsel %vm1042_vm2, %v1143_v6, -inf  ;;  %1056 = vst.msk [vmem:[%s2819_s6 + $0x68] sm:$0xff] %vm1042_vm2, %v2144_v34  ;;  %v2167_v45 = vpop.f32.mrb[14].mxu1  ;;  %v1245_v48 = vsel %vm1042_vm2, %v1146_v17, -inf }
 0x107   :  { %v1200_v36 = vmax.f32 %v1189_v33, %v1204_v28  ;;  %v1144_v49 = vand.u32 2147483647, %v2117_v23  ;;  %v2176_v50 = vadd.f32 %v954_v35, %v890_v38  ;;  %v2180_v53 = vpop.f32.mrb[15].mxu1  ;;  %v1119_v54 = vand.u32 2147483647, %v2119_v24  ;;  %v930_v5 = vld [vmem:[%s2818_s5 + $0x80] sm:$0xff] }
 0x108   :  { %1085 = vst.msk [vmem:[%s2819_s6 + $0x150] sm:$0xff] %vm1042_vm2, %v2154_v37  ;;  %v822_v55 = vmul.f32 %v2079_v57, %v1859_v39  ;;  %v797_v58 = vmul.f32 %v1404_v9, %v1859_v39  ;;  %v820_v2 = vmul.f32 %v1859_v39, %v2083_v59  ;;  %v1195_v60 = vsel %vm1042_vm2, %v1121_v3, -inf  ;;  %v932_v57 = vld [vmem:[%s2818_s5 + $0x90] sm:$0xff]  ;;  %v955_v59 = vld [vmem:[%s2818_s5 + $0x148] sm:$0xff] }
 0x109   :  { %v1206_v47 = vmax.f32 %v1185_v42, %v1200_v36  ;;  %v2178_v51 = vpop.f32.mrb[20].mxu0  ;;  %v1122_v61 = vand.u32 2147483647, %v2125_v29  ;;  %1083 = vst.msk [vmem:[%s2819_s6 + $0x140] sm:$0xff] %vm1042_vm2, %v2176_v50  ;;  %v795_v62 = vmul.f32 %v1859_v39, %v581_v15  ;;  %v798_v6 = vmul.f32 %v1405_v21, %v1859_v39  ;;  %v931_v17 = vld [vmem:[%s2818_s5 + $0x88] sm:$0xff]  ;;  %v960_v26 = vld [vmem:[%s2818_s5 + $0x170] sm:$0xff] }
 0x10a   :  { %v2191_v46 = vpop.f32.mrb[21].mxu0  ;;  %v893_v0 = vadd.f32 %v1864_v41, %v822_v55  ;;  %v868_v1 = vadd.f32 %v1864_v41, %v797_v58  ;;  %v891_v4 = vadd.f32 %v1864_v41, %v820_v2  ;;  %v1120_v9 = vand.u32 2147483647, %v2144_v34 }
 0x10b   :  { %v1202_v52 = vmax.f32 %v1243_v43, %v1206_v47  ;;  %v2207_v63 = vpop.f32.mrb[22].mxu0  ;;  %v866_v10 = vadd.f32 %v1864_v41, %v795_v62  ;;  %v796_v12 = vmul.f32 %v1859_v39, %v584_v27  ;;  %v869_v16 = vadd.f32 %v1864_v41, %v798_v6  ;;  %v934_v62 = vld [vmem:[%s2818_s5 + $0xa0] sm:$0xff] }
 0x10c   :  { %v2216_v7 = vpop.f32.mrb[23].mxu0  ;;  %v2224_v13 = vadd.f32 %v957_v56, %v893_v0  ;;  %v2226_v14 = vadd.f32 %v932_v57, %v868_v1  ;;  %v2228_v15 = vadd.f32 %v955_v59, %v891_v4  ;;  %v825_v22 = vmul.f32 %v1432_v32, %v1859_v39 }
 0x10d   :  { %v1212_v8 = vmax.f32 %v1239_v44, %v1202_v52  ;;  %v2234_v18 = vpop.f32.mrb[16].mxu1  ;;  %v2236_v20 = vadd.f32 %v930_v5, %v866_v10  ;;  %v867_v21 = vadd.f32 %v1864_v41, %v796_v12  ;;  %v1149_v24 = vand.u32 2147483647, %v2154_v37  ;;  %v958_v44 = vld [vmem:[%s2818_s5 + $0x160] sm:$0xff] }
 0x10e   :  { %v2240_v23 = vpop.f32.mrb[17].mxu1  ;;  %1086 = vst.msk [vmem:[%s2819_s6 + $0x158] sm:$0xff] %vm1042_vm2, %v2224_v13  ;;  %1061 = vst.msk [vmem:[%s2819_s6 + $0x90] sm:$0xff] %vm1042_vm2, %v2226_v14  ;;  %v2258_v25 = vadd.f32 %v933_v11, %v869_v16  ;;  %v896_v29 = vadd.f32 %v1864_v41, %v825_v22  ;;  %v1241_v31 = vsel %vm1042_vm2, %v1144_v49, -inf  ;;  %v1191_v32 = vsel %vm1042_vm2, %v1119_v54, -inf }
 0x10f   :  { %v1208_v19 = vmax.f32 %v1245_v48, %v1212_v8  ;;  %1084 = vst.msk [vmem:[%s2819_s6 + $0x148] sm:$0xff] %vm1042_vm2, %v2228_v15  ;;  %1059 = vst.msk [vmem:[%s2819_s6 + $0x80] sm:$0xff] %vm1042_vm2, %v2236_v20  ;;  %v2268_v28 = vadd.f32 %v931_v17, %v867_v21  ;;  %v2271_v30 = vpop.f32.mrb[18].mxu1  ;;  %v1197_v35 = vsel %vm1042_vm2, %v1122_v61, -inf  ;;  %v1193_v36 = vsel %vm1042_vm2, %v1120_v9, -inf  ;;  %v961_v48 = vld [vmem:[%s2818_s5 + $0x178] sm:$0xff] }
 0x110   :  { %1062 = vst.msk [vmem:[%s2819_s6 + $0x98] sm:$0xff] %vm1042_vm2, %v2258_v25  ;;  %v2289_v3 = vadd.f32 %v960_v26, %v896_v29  ;;  %v2291_v37 = vpop.f32.mrb[19].mxu1  ;;  %v1251_v42 = vsel %vm1042_vm2, %v1149_v24, -inf  ;;  %v823_v43 = vmul.f32 %v1859_v39, %v2157_v40  ;;  %v826_v47 = vmul.f32 %v2167_v45, %v1859_v39  ;;  %v936_v45 = vld [vmem:[%s2818_s5 + $0xb0] sm:$0xff]  ;;  %v937_v8 = vld [vmem:[%s2818_s5 + $0xb8] sm:$0xff] }
 0x111   :  { %v1214_v27 = vmax.f32 %v1195_v60, %v1208_v19  ;;  %v2280_v33 = vpop.f32.mrb[24].mxu0  ;;  %1060 = vst.msk [vmem:[%s2819_s6 + $0x88] sm:$0xff] %vm1042_vm2, %v2268_v28  ;;  %v801_v49 = vmul.f32 %v2178_v51, %v1859_v39  ;;  %v1147_v56 = vand.u32 2147483647, %v2176_v50  ;;  %v1150_v40 = vand.u32 2147483647, %v2224_v13 }
 0x112   :  { %v2293_v38 = vpop.f32.mrb[25].mxu0  ;;  %1089 = vst.msk [vmem:[%s2819_s6 + $0x170] sm:$0xff] %vm1042_vm2, %v2289_v3  ;;  %v824_v51 = vmul.f32 %v1859_v39, %v2180_v53  ;;  %v894_v2 = vadd.f32 %v1864_v41, %v823_v43  ;;  %v897_v50 = vadd.f32 %v1864_v41, %v826_v47  ;;  %v959_v60 = vld [vmem:[%s2818_s5 + $0x168] sm:$0xff]  ;;  %v799_v61 = vmul.f32 %v1859_v39, %v2191_v46 }
 0x113   :  { %v1210_v34 = vmax.f32 %v1241_v31, %v1214_v27  ;;  %v2308_v54 = vpop.f32.mrb[26].mxu0  ;;  %v872_v52 = vadd.f32 %v1864_v41, %v801_v49  ;;  %v1125_v59 = vand.u32 2147483647, %v2226_v14  ;;  %v802_v0 = vmul.f32 %v2207_v63, %v1859_v39 }
 0x114   :  { %v2322_v58 = vpop.f32.mrb[27].mxu0  ;;  %v895_v53 = vadd.f32 %v1864_v41, %v824_v51  ;;  %v2341_v4 = vadd.f32 %v958_v44, %v894_v2  ;;  %v2343_v5 = vadd.f32 %v961_v48, %v897_v50  ;;  %v870_v46 = vadd.f32 %v1864_v41, %v799_v61 }
 0x115   :  { %v1220_v55 = vmax.f32 %v1191_v32, %v1210_v34  ;;  %v2345_v6 = vadd.f32 %v936_v45, %v872_v52  ;;  %v873_v63 = vadd.f32 %v1864_v41, %v802_v0  ;;  %v800_v12 = vmul.f32 %v1859_v39, %v2216_v7  ;;  %v963_v52 = vld [vmem:[%s2818_s5 + $0x188] sm:$0xff] }
 0x116   :  { %v2339_v1 = vpop.f32.mrb[20].mxu1  ;;  %v2353_v11 = vadd.f32 %v959_v60, %v895_v53  ;;  %v1148_v14 = vand.u32 2147483647, %v2228_v15  ;;  %1087 = vst.msk [vmem:[%s2819_s6 + $0x160] sm:$0xff] %vm1042_vm2, %v2341_v4  ;;  %1090 = vst.msk [vmem:[%s2819_s6 + $0x178] sm:$0xff] %vm1042_vm2, %v2343_v5  ;;  %v2376_v7 = vadd.f32 %v934_v62, %v870_v46  ;;  %v935_v15 = vld [vmem:[%s2818_s5 + $0xa8] sm:$0xff]  ;;  %v827_v43 = vmul.f32 %v1859_v39, %v2240_v23 }
 0x117   :  { %v1216_v57 = vmax.f32 %v1197_v35, %v1220_v55  ;;  %v2351_v9 = vpop.f32.mrb[21].mxu1  ;;  %1065 = vst.msk [vmem:[%s2819_s6 + $0xb0] sm:$0xff] %vm1042_vm2, %v2345_v6  ;;  %v2386_v17 = vadd.f32 %v937_v8, %v873_v63  ;;  %v871_v19 = vadd.f32 %v1864_v41, %v800_v12  ;;  %v1247_v24 = vsel %vm1042_vm2, %v1147_v56, -inf  ;;  %v965_v23 = vld [vmem:[%s2818_s5 + $0x198] sm:$0xff] }
 0x118   :  { %v2358_v13 = vpop.f32.mrb[22].mxu1  ;;  %1088 = vst.msk [vmem:[%s2819_s6 + $0x168] sm:$0xff] %vm1042_vm2, %v2353_v11  ;;  %v1123_v26 = vand.u32 2147483647, %v2236_v20  ;;  %1063 = vst.msk [vmem:[%s2819_s6 + $0xa0] sm:$0xff] %vm1042_vm2, %v2376_v7  ;;  %v1253_v31 = vsel %vm1042_vm2, %v1150_v40, -inf  ;;  %v830_v44 = vmul.f32 %v2271_v30, %v1859_v39  ;;  %v805_v30 = vmul.f32 %v2280_v33, %v1859_v39 }
 0x119   :  { %v1222_v10 = vmax.f32 %v1193_v36, %v1216_v57  ;;  %v2391_v22 = vpop.f32.mrb[23].mxu1  ;;  %v1203_v32 = vsel %vm1042_vm2, %v1125_v59, -inf  ;;  %1066 = vst.msk [vmem:[%s2819_s6 + $0xb8] sm:$0xff] %vm1042_vm2, %v2386_v17  ;;  %v2409_v20 = vadd.f32 %v935_v15, %v871_v19  ;;  %v1249_v35 = vsel %vm1042_vm2, %v1148_v14, -inf  ;;  %v940_v40 = vld [vmem:[%s2818_s5 + $0xd0] sm:$0xff]  ;;  %v941_v12 = vld [vmem:[%s2818_s5 + $0xd8] sm:$0xff] }
 0x11a   :  { %v2389_v21 = vpop.f32.mrb[28].mxu0  ;;  %v829_v36 = vmul.f32 %v2234_v18, %v1859_v39  ;;  %v1126_v49 = vand.u32 2147483647, %v2258_v25  ;;  %v1124_v55 = vand.u32 2147483647, %v2268_v28  ;;  %v962_v18 = vld [vmem:[%s2818_s5 + $0x180] sm:$0xff]  ;;  %v898_v28 = vadd.f32 %v1864_v41, %v827_v43 }
 0x11b   :  { %v1218_v16 = vmax.f32 %v1251_v42, %v1222_v10  ;;  %v2400_v27 = vpop.f32.mrb[29].mxu0  ;;  %v964_v42 = vld [vmem:[%s2818_s5 + $0x190] sm:$0xff]  ;;  %1064 = vst.msk [vmem:[%s2819_s6 + $0xa8] sm:$0xff] %vm1042_vm2, %v2409_v20  ;;  %v901_v56 = vadd.f32 %v1864_v41, %v830_v44  ;;  %v828_v45 = vmul.f32 %v1859_v39, %v2291_v37  ;;  %v1153_v50 = vand.u32 2147483647, %v2289_v3  ;;  %v938_v3 = vld [vmem:[%s2818_s5 + $0xc0] sm:$0xff] }
 0x11c   :  { %v2411_v34 = vpop.f32.mrb[30].mxu0  ;;  %v900_v25 = vadd.f32 %v1864_v41, %v829_v36  ;;  %v876_v33 = vadd.f32 %v1864_v41, %v805_v30  ;;  %v803_v60 = vmul.f32 %v1859_v39, %v2293_v38  ;;  %v2461_v59 = vadd.f32 %v962_v18, %v898_v28  ;;  %v968_v43 = vld [vmem:[%s2818_s5 + $0x1b0] sm:$0xff] }
 0x11d   :  { %v1228_v29 = vmax.f32 %v1247_v24, %v1218_v16  ;;  %v2423_v47 = vpop.f32.mrb[31].mxu0  ;;  %v2463_v37 = vadd.f32 %v965_v23, %v901_v56  ;;  %v899_v53 = vadd.f32 %v1864_v41, %v828_v45  ;;  %v806_v8 = vmul.f32 %v2308_v54, %v1859_v39  ;;  %v969_v23 = vld [vmem:[%s2818_s5 + $0x1b8] sm:$0xff] }
 0x11e   :  { %v2459_v57 = vadd.f32 %v964_v42, %v900_v25  ;;  %v2471_v46 = vadd.f32 %v940_v40, %v876_v33  ;;  %v874_v38 = vadd.f32 %v1864_v41, %v803_v60  ;;  %v1199_v63 = vsel %vm1042_vm2, %v1123_v26, -inf  ;;  %1091 = vst.msk [vmem:[%s2819_s6 + $0x180] sm:$0xff] %vm1042_vm2, %v2461_v59  ;;  %v939_v42 = vld [vmem:[%s2818_s5 + $0xc8] sm:$0xff]  ;;  %v944_v40 = vld [vmem:[%s2818_s5 + $0xf0] sm:$0xff] }
 0x11f   :  { %v1236_v48 = vmax.f32 %v1228_v29, %v1253_v31  ;;  %v2448_v51 = vpop.f32.mrb[24].mxu1  ;;  %1094 = vst.msk [vmem:[%s2819_s6 + $0x198] sm:$0xff] %vm1042_vm2, %v2463_v37  ;;  %v2494_v54 = vadd.f32 %v963_v52, %v899_v53  ;;  %v877_v16 = vadd.f32 %v1864_v41, %v806_v8  ;;  %v1205_v19 = vsel %vm1042_vm2, %v1126_v49, -inf  ;;  %v967_v60 = vld [vmem:[%s2818_s5 + $0x1a8] sm:$0xff] }
 0x120   :  { %v2457_v61 = vpop.f32.mrb[25].mxu1  ;;  %1093 = vst.msk [vmem:[%s2819_s6 + $0x190] sm:$0xff] %vm1042_vm2, %v2459_v57  ;;  %1069 = vst.msk [vmem:[%s2819_s6 + $0xd0] sm:$0xff] %vm1042_vm2, %v2471_v46  ;;  %v2504_v15 = vadd.f32 %v938_v3, %v874_v38  ;;  %v1201_v24 = vsel %vm1042_vm2, %v1124_v55, -inf  ;;  %v1259_v29 = vsel %vm1042_vm2, %v1153_v50, -inf  ;;  %v804_v36 = vmul.f32 %v1859_v39, %v2322_v58 }
 0x121   :  { %v1244_v2 = vmax.f32 %v1236_v48, %v1203_v32  ;;  %v2469_v62 = vpop.f32.mrb[26].mxu1  ;;  %1092 = vst.msk [vmem:[%s2819_s6 + $0x188] sm:$0xff] %vm1042_vm2, %v2494_v54  ;;  %v1151_v31 = vand.u32 2147483647, %v2341_v4  ;;  %v2521_v32 = vadd.f32 %v941_v12, %v877_v16  ;;  %v833_v4 = vmul.f32 %v2339_v1, %v1859_v39  ;;  %v966_v1 = vld [vmem:[%s2818_s5 + $0x1a0] sm:$0xff] }
 0x122   :  { %v2476_v10 = vpop.f32.mrb[27].mxu1  ;;  %1067 = vst.msk [vmem:[%s2819_s6 + $0xc0] sm:$0xff] %vm1042_vm2, %v2504_v15  ;;  %v831_v44 = vmul.f32 %v1859_v39, %v2351_v9  ;;  %v1129_v49 = vand.u32 2147483647, %v2345_v6  ;;  %v1152_v58 = vand.u32 2147483647, %v2353_v11  ;;  %v834_v9 = vmul.f32 %v2358_v13, %v1859_v39 }
 0x123   :  { %v1224_v0 = vmax.f32 %v1249_v35, %v1244_v2  ;;  %v1154_v35 = vand.u32 2147483647, %v2343_v5  ;;  %1070 = vst.msk [vmem:[%s2819_s6 + $0xd8] sm:$0xff] %vm1042_vm2, %v2521_v32  ;;  %v875_v18 = vadd.f32 %v1864_v41, %v804_v36  ;;  %v904_v6 = vadd.f32 %v1864_v41, %v833_v4  ;;  %v945_v36 = vld [vmem:[%s2818_s5 + $0xf8] sm:$0xff] }
 0x124   :  { %v902_v11 = vadd.f32 %v1864_v41, %v831_v44  ;;  %v809_v30 = vmul.f32 %v2389_v21, %v1859_v39  ;;  %v1255_v13 = vsel %vm1042_vm2, %v1151_v31, -inf  ;;  %v905_v56 = vadd.f32 %v1864_v41, %v834_v9 }
 0x125   :  { %v1232_v14 = vmax.f32 %v1224_v0, %v1199_v63  ;;  %v832_v45 = vmul.f32 %v1859_v39, %v2391_v22  ;;  %v2571_v50 = vadd.f32 %v939_v42, %v875_v18  ;;  %v2573_v33 = vadd.f32 %v968_v43, %v904_v6 }
 0x126   :  { %v2575_v21 = vadd.f32 %v966_v1, %v902_v11  ;;  %v880_v52 = vadd.f32 %v1864_v41, %v809_v30  ;;  %v2581_v3 = vadd.f32 %v969_v23, %v905_v56  ;;  %v807_v22 = vmul.f32 %v1859_v39, %v2400_v27 }
 0x127   :  { %v1240_v26 = vmax.f32 %v1232_v14, %v1205_v19  ;;  %v2536_v48 = vpop.f32.mrb[28].mxu1  ;;  %v903_v0 = vadd.f32 %v1864_v41, %v832_v45  ;;  %v1261_v38 = vsel %vm1042_vm2, %v1154_v35, -inf  ;;  %v1211_v8 = vsel %vm1042_vm2, %v1129_v49, -inf  ;;  %1068 = vst.msk [vmem:[%s2819_s6 + $0xc8] sm:$0xff] %vm1042_vm2, %v2571_v50  ;;  %1097 = vst.msk [vmem:[%s2819_s6 + $0x1b0] sm:$0xff] %vm1042_vm2, %v2573_v33  ;;  %v970_v49 = vld [vmem:[%s2818_s5 + $0x1c0] sm:$0xff] }
 0x128   :  { %v2550_v55 = vpop.f32.mrb[29].mxu1  ;;  %v1127_v63 = vand.u32 2147483647, %v2376_v7  ;;  %1095 = vst.msk [vmem:[%s2819_s6 + $0x1a0] sm:$0xff] %vm1042_vm2, %v2575_v21  ;;  %v2604_v27 = vadd.f32 %v944_v40, %v880_v52  ;;  %v942_v7 = vld [vmem:[%s2818_s5 + $0xe0] sm:$0xff]  ;;  %1098 = vst.msk [vmem:[%s2819_s6 + $0x1b8] sm:$0xff] %vm1042_vm2, %v2581_v3  ;;  %v878_v16 = vadd.f32 %v1864_v41, %v807_v22  ;;  %v810_v35 = vmul.f32 %v2411_v34, %v1859_v39 }
 0x129   :  { %v1230_v5 = vmax.f32 %v1201_v24, %v1240_v26  ;;  %v2560_v25 = vpop.f32.mrb[30].mxu1  ;;  %v2614_v14 = vadd.f32 %v967_v60, %v903_v0  ;;  %v1257_v24 = vsel %vm1042_vm2, %v1152_v58, -inf  ;;  %v1130_v26 = vand.u32 2147483647, %v2386_v17  ;;  %v943_v34 = vld [vmem:[%s2818_s5 + $0xe8] sm:$0xff] }
 0x12a   :  { %v2569_v2 = vpop.f32.mrb[31].mxu1  ;;  %1073 = vst.msk [vmem:[%s2819_s6 + $0xf0] sm:$0xff] %vm1042_vm2, %v2604_v27  ;;  %v1207_v31 = vsel %vm1042_vm2, %v1127_v63, -inf  ;;  %v808_v17 = vmul.f32 %v1859_v39, %v2423_v47  ;;  %v837_v42 = vmul.f32 %v2448_v51, %v1859_v39  ;;  %v1128_v43 = vand.u32 2147483647, %v2409_v20  ;;  %v972_v47 = vld [vmem:[%s2818_s5 + $0x1d0] sm:$0xff] }
 0x12b   :  { %v1238_v28 = vmax.f32 %v1230_v5, %v1259_v29  ;;  %1096 = vst.msk [vmem:[%s2819_s6 + $0x1a8] sm:$0xff] %vm1042_vm2, %v2614_v14  ;;  %v2629_v29 = vadd.f32 %v942_v7, %v878_v16  ;;  %v1157_v44 = vand.u32 2147483647, %v2459_v57  ;;  %v835_v51 = vmul.f32 %v1859_v39, %v2457_v61  ;;  %v973_v61 = vld [vmem:[%s2818_s5 + $0x1d8] sm:$0xff] }
 0x12c   :  { %v881_v20 = vadd.f32 %v1864_v41, %v810_v35  ;;  %v879_v57 = vadd.f32 %v1864_v41, %v808_v17  ;;  %v908_v5 = vadd.f32 %v1864_v41, %v837_v42  ;;  %v838_v58 = vmul.f32 %v2469_v62, %v1859_v39  ;;  %v975_v35 = vld [vmem:[%s2818_s5 + $0x1e8] sm:$0xff] }
 0x12d   :  { %v1246_v53 = vmax.f32 %v1238_v28, %v1255_v13  ;;  %1071 = vst.msk [vmem:[%s2819_s6 + $0xe0] sm:$0xff] %vm1042_vm2, %v2629_v29  ;;  %v1213_v9 = vsel %vm1042_vm2, %v1130_v26, -inf  ;;  %v906_v18 = vadd.f32 %v1864_v41, %v835_v51  ;;  %v836_v6 = vmul.f32 %v1859_v39, %v2476_v10  ;;  %v971_v28 = vld [vmem:[%s2818_s5 + $0x1c8] sm:$0xff] }
 0x12e   :  { %v2671_v11 = vadd.f32 %v945_v36, %v881_v20  ;;  %v2673_v23 = vadd.f32 %v943_v34, %v879_v57  ;;  %v2675_v30 = vadd.f32 %v972_v47, %v908_v5  ;;  %v909_v62 = vadd.f32 %v1864_v41, %v838_v58 }
 0x12f   :  { %v1226_v12 = vmax.f32 %v1261_v38, %v1246_v53  ;;  %v2681_v56 = vadd.f32 %v970_v49, %v906_v18  ;;  %v907_v40 = vadd.f32 %v1864_v41, %v836_v6  ;;  %v841_v10 = vmul.f32 %v2536_v48, %v1859_v39 }
 0x130   :  { %v1209_v45 = vsel %vm1042_vm2, %v1128_v43, -inf  ;;  %v1267_v52 = vsel %vm1042_vm2, %v1157_v44, -inf  ;;  %v1155_v60 = vand.u32 2147483647, %v2461_v59  ;;  %1074 = vst.msk [vmem:[%s2819_s6 + $0xf8] sm:$0xff] %vm1042_vm2, %v2671_v11  ;;  %1072 = vst.msk [vmem:[%s2819_s6 + $0xe8] sm:$0xff] %vm1042_vm2, %v2673_v23  ;;  %v2704_v48 = vadd.f32 %v973_v61, %v909_v62 }
 0x131   :  { %v1234_v19 = vmax.f32 %v1226_v12, %v1211_v8  ;;  %1101 = vst.msk [vmem:[%s2819_s6 + $0x1d0] sm:$0xff] %vm1042_vm2, %v2675_v30  ;;  %v976_v59 = vld [vmem:[%s2818_s5 + $0x1f0] sm:$0xff]  ;;  %v1158_v0 = vand.u32 2147483647, %v2463_v37  ;;  %1099 = vst.msk [vmem:[%s2819_s6 + $0x1c0] sm:$0xff] %vm1042_vm2, %v2681_v56  ;;  %v2715_v22 = vadd.f32 %v971_v28, %v907_v40  ;;  %v912_v38 = vadd.f32 %v1864_v41, %v841_v10 }
 0x132   :  { %v1133_v8 = vand.u32 2147483647, %v2471_v46  ;;  %1102 = vst.msk [vmem:[%s2819_s6 + $0x1d8] sm:$0xff] %vm1042_vm2, %v2704_v48  ;;  %v839_v37 = vmul.f32 %v1859_v39, %v2550_v55  ;;  %v974_v46 = vld [vmem:[%s2818_s5 + $0x1e0] sm:$0xff]  ;;  %v842_v12 = vmul.f32 %v2560_v25, %v1859_v39  ;;  %v1263_v16 = vsel %vm1042_vm2, %v1155_v60, -inf }
 0x133   :  { %v1242_v4 = vmax.f32 %v1234_v19, %v1257_v24  ;;  %1100 = vst.msk [vmem:[%s2819_s6 + $0x1c8] sm:$0xff] %vm1042_vm2, %v2715_v22  ;;  %v2731_v7 = vadd.f32 %v976_v59, %v912_v38  ;;  %v977_v19 = vld [vmem:[%s2818_s5 + $0x1f8] sm:$0xff]  ;;  %v840_v24 = vmul.f32 %v1859_v39, %v2569_v2  ;;  %v1156_v17 = vand.u32 2147483647, %v2494_v54 }
 0x134   :  { %v910_v55 = vadd.f32 %v1864_v41, %v839_v37  ;;  %v913_v25 = vadd.f32 %v1864_v41, %v842_v12  ;;  %v1219_v36 = vsel %vm1042_vm2, %v1133_v8, -inf  ;;  %v1131_v43 = vand.u32 2147483647, %v2504_v15 }
 0x135   :  { %v1248_v1 = vmax.f32 %v1207_v31, %v1242_v4  ;;  %v1269_v31 = vsel %vm1042_vm2, %v1158_v0, -inf  ;;  %1105 = vst.msk [vmem:[%s2819_s6 + $0x1f0] sm:$0xff] %vm1042_vm2, %v2731_v7  ;;  %v911_v2 = vadd.f32 %v1864_v41, %v840_v24  ;;  %v1265_v41 = vsel %vm1042_vm2, %v1156_v17, -inf }
 0x136   :  { %v1038_v39 = vadd.f32 %v974_v46, %v910_v55  ;;  %v2758_v4 = vadd.f32 %v977_v19, %v913_v25  ;;  %v1134_v54 = vand.u32 2147483647, %v2521_v32  ;;  %v1215_v47 = vsel %vm1042_vm2, %v1131_v43, -inf }
 0x137   :  { %v1250_v13 = vmax.f32 %v1213_v9, %v1248_v1  ;;  %v1039_v44 = vadd.f32 %v975_v35, %v911_v2  ;;  %v1132_v51 = vand.u32 2147483647, %v2571_v50  ;;  %v1161_v20 = vand.u32 2147483647, %v2573_v33 }
 0x138   :  { %1103 = vst.msk [vmem:[%s2819_s6 + $0x1e0] sm:$0xff] %vm1042_vm2, %v1038_v39  ;;  %1106 = vst.msk [vmem:[%s2819_s6 + $0x1f8] sm:$0xff] %vm1042_vm2, %v2758_v4  ;;  %v1221_v5 = vsel %vm1042_vm2, %v1134_v54, -inf  ;;  %v1159_v1 = vand.u32 2147483647, %v2575_v21 }
 0x139   :  { %v1252_v53 = vmax.f32 %v1209_v45, %v1250_v13  ;;  %1104 = vst.msk [vmem:[%s2819_s6 + $0x1e8] sm:$0xff] %vm1042_vm2, %v1039_v44  ;;  %v1217_v58 = vsel %vm1042_vm2, %v1132_v51, -inf  ;;  %v1275_v32 = vsel %vm1042_vm2, %v1161_v20, -inf  ;;  %v1162_v18 = vand.u32 2147483647, %v2581_v3 }
 0x13a   :  { %v1137_v61 = vand.u32 2147483647, %v2604_v27  ;;  %v1271_v50 = vsel %vm1042_vm2, %v1159_v1, -inf  ;;  %v1160_v13 = vand.u32 2147483647, %v2614_v14 }
 0x13b   :  { %v1254_v63 = vmax.f32 %v1267_v52, %v1252_v53  ;;  %v1277_v33 = vsel %vm1042_vm2, %v1162_v18, -inf  ;;  %v1135_v10 = vand.u32 2147483647, %v2629_v29  ;;  %v1138_v3 = vand.u32 2147483647, %v2671_v11 }
 0x13c   :  { %v1227_v28 = vsel %vm1042_vm2, %v1137_v61, -inf  ;;  %v1273_v21 = vsel %vm1042_vm2, %v1160_v13, -inf  ;;  %v1136_v60 = vand.u32 2147483647, %v2673_v23  ;;  %v1163_v59 = vand.u32 2147483647, %v2681_v56 }
 0x13d   :  { %v1256_v26 = vmax.f32 %v1263_v16, %v1254_v63  ;;  %v1223_v27 = vsel %vm1042_vm2, %v1135_v10, -inf  ;;  %v1229_v0 = vsel %vm1042_vm2, %v1138_v3, -inf  ;;  %v1164_v29 = vand.u32 2147483647, %v2715_v22 }
 0x13e   :  { %v1225_v14 = vsel %vm1042_vm2, %v1136_v60, -inf  ;;  %v1279_v8 = vsel %vm1042_vm2, %v1163_v59, -inf  ;;  %v1165_v11 = vand.u32 2147483647, %v2675_v30  ;;  %v1166_v46 = vand.u32 2147483647, %v2704_v48 }
 0x13f   :  { %v1258_v42 = vmax.f32 %v1269_v31, %v1256_v26  ;;  %v1167_v12 = vand.u32 2147483647, %v1038_v39  ;;  %v1281_v23 = vsel %vm1042_vm2, %v1164_v29, -inf  ;;  %v1168_v19 = vand.u32 2147483647, %v1039_v44 }
 0x140   :  { %v1283_v16 = vsel %vm1042_vm2, %v1165_v11, -inf  ;;  %v1285_v24 = vsel %vm1042_vm2, %v1166_v46, -inf  ;;  %v1169_v31 = vand.u32 2147483647, %v2731_v7  ;;  %v1170_v30 = vand.u32 2147483647, %v2758_v4 }
 0x141   :  { %v1260_v34 = vmax.f32 %v1219_v36, %v1258_v42  ;;  %v1287_v22 = vsel %vm1042_vm2, %v1167_v12, -inf  ;;  %v1289_v48 = vsel %vm1042_vm2, %v1168_v19, -inf }
 0x142   :  { %v1291_v36 = vsel %vm1042_vm2, %v1169_v31, -inf  ;;  %v1293_v39 = vsel %vm1042_vm2, %v1170_v30, -inf }
 0x143   :  { %v1262_v15 = vmax.f32 %v1265_v41, %v1260_v34 }
 0x145   :  { %v1264_v57 = vmax.f32 %v1215_v47, %v1262_v15 }
 0x147   :  { %v1266_v49 = vmax.f32 %v1221_v5, %v1264_v57 }
 0x149   :  { %v1268_v9 = vmax.f32 %v1217_v58, %v1266_v49 }
 0x14b   :  { %v1270_v6 = vmax.f32 %v1275_v32, %v1268_v9 }
 0x14d   :  { %v1272_v62 = vmax.f32 %v1270_v6, %v1271_v50 }
 0x14f   :  { %v1274_v40 = vmax.f32 %v1277_v33, %v1272_v62 }
 0x151   :  { %v1276_v45 = vmax.f32 %v1227_v28, %v1274_v40 }
 0x153   :  { %v1278_v52 = vmax.f32 %v1273_v21, %v1276_v45 }
 0x155   :  { %v1280_v53 = vmax.f32 %v1223_v27, %v1278_v52 }
 0x157   :  { %v1282_v38 = vmax.f32 %v1229_v0, %v1280_v53 }
 0x159   :  { %v1284_v37 = vmax.f32 %v1225_v14, %v1282_v38 }
 0x15b   :  { %v1286_v63 = vmax.f32 %v1279_v8, %v1284_v37 }
 0x15d   :  { %v1288_v56 = vmax.f32 %v1281_v23, %v1286_v63 }
 0x15f   :  { %v1290_v55 = vmax.f32 %v1283_v16, %v1288_v56 }
 0x161   :  { %v1292_v26 = vmax.f32 %v1285_v24, %v1290_v55 }
 0x163   :  { %v1294_v25 = vmax.f32 %v1287_v22, %v1292_v26 }
 0x165   :  { %v1295_v35 = vmax.f32 %v1289_v48, %v1294_v25 }
 0x167   :  { %v1296_v17 = vmax.f32 %v1291_v36, %v1295_v35 }
 0x169   :  { %v1297_v2 = vmax.f32 %v1293_v39, %v1296_v17 }
 0x16b   :  { %1298 = vmax.xlane.f32.xlu0 %v1297_v2 }
 0x1f8   :  { %v1299_v42 = vpop.xlane.xlu0 %1298 }
 0x1f9   :  { %v1300_v43 = vrot.slane %v1299_v42, 4 }
 0x1fb   :  { %v1301_v44 = vmax.f32 %v1299_v42, %v1300_v43 }
 0x1fd   :  { %v1302_v34 = vrot.slane %v1301_v44, 2 }
 0x1ff   :  { %v1303_v41 = vmax.f32 %v1301_v44, %v1302_v34 }
 0x201   :  { %v1304_v54 = vrot.slane %v1303_v41, 1 }
 0x203   :  { %v1305_v7 = vmax.f32 %v1303_v41, %v1304_v54 }
 0x205   :  { %1518 = vpush %v1305_v7 }
 0x236   :  { %s1519_s6 = spop %1518 }
 0x237   :  { %v1307_v4 = vstv %s1519_s6 }
 0x238   :  { %1308 = vst [vmem:[%s2820_s7] sm:$0xff] %v1307_v4 }

// kernel: q_res_unit_bn_forward.7
= control target key start
LH: loop header
LB: loop body
LE: loop exit
PB: predicated region body
PF: predicated region fallthrough
CT: control target
= control target key end

     0   :  { %s4969_s26 = smov 0   ;;  %s6468_s0 = inlined_call_operand.vmem [shape: f32[2,328,4], index: 0, kind: input, shape index: {}]   ;;  %s6469_s1 = inlined_call_operand.<no memory space> [shape: f32[1,1], index: 1, kind: input, shape index: {}]   ;;  %s6470_s2 = inlined_call_operand.vmem [shape: bf16[9,4,4], index: 2, kind: input, shape index: {}]   ;;  %s6471_s3 = inlined_call_operand.vmem [shape: f32[1,4], index: 3, kind: input, shape index: {}]   ;;  %s6472_s4 = inlined_call_operand.vmem [shape: f32[1,4], index: 4, kind: input, shape index: {}]   ;;  %s6473_s5 = inlined_call_operand.vmem [shape: f32[288,1], index: 5, kind: input, shape index: {}]   ;;  %s6474_s6 = inlined_call_operand.vmem [shape: f32[2,288,4], index: 6, kind: output, shape index: {0}]   ;;  %s6475_s7 = inlined_call_operand.vmem [shape: f32[16,128], index: 7, kind: output, shape index: {1}]  }
   0x1   :  { %13 = sst [smem:[#allocation2]] %s6469_s1 }
   0x2 LB: > { %s3865_s27 = sadd.s32 4294967295, %s4923_s26   ;;  %p3869_p0 = scmp.ge.s32.totalorder %s4923_s26, 1  ;;  %s4923_s26 = sphi %s4969_s26, %s19_s26  }
   0x3   : > { %p241_p1 = scmp.lt.s32.totalorder %s4923_s26, 3 }
   0x5   : > { %p242_p2 = pnand %p3869_p0, %p241_p1 }
   0x7   : > { %245 = sbr.rel (%p242_p2) target bundleno = 810 (0x32a), region = 44 }
   0xe   : > { %vm725_vm0 = vcmask 1041408   ;;  %v3948_v0 = vld [vmem:[%s6470_s2 + $0x8] sm:$0x3]  ;;  %v3873_v1 = vld [vmem:[%s6470_s2 + $0x2] sm:$0x3]  ;;  %p277_p3 = scmp.lt.s32.totalorder %s3865_s27, 1 }
   0xf   : > { %4854 = vmatprep.subr.msk.bf16.mxu0 %vm725_vm0, %v3948_v0  ;;  %4850 = vmatprep.subr.msk.bf16.mxu1 %vm725_vm0, %v3873_v1  ;;  %v4986_v2 = vsel %vm725_vm0, %v3948_v0, 0  ;;  %v727_v3 = vsel %vm725_vm0, %v3873_v1, 0  ;;  %s292_s8 = sld [smem:[#allocation2]]  ;;  %v3967_v4 = vld [vmem:[%s6470_s2 + $0xa] sm:$0x3]  ;;  %vm670_vm2 = vcmask 31744  }
  0x10   : > { %6509 = vst [vmem:[#allocation3_spill] sm:$0xff] %v4986_v2  ;;  %4371 = vmatpush3.bf16.msra.mxu0 %v4986_v2  ;;  %4219 = vmatpush3.bf16.msra.mxu1 %v727_v3  ;;  %s6548_s27 = smov (!%p277_p3, %s3865_s27), 1  ;;  %v517_v5 = vld [vmem:[%s6470_s2] sm:$0x3]  ;;  %v5018_v16 = vsel %vm725_vm0, %v3967_v4, 0  ;;  %vm2043_vm4 = vcmask 1045504  }
  0x11   : > { %4856 = vmatprep.subr.msk.bf16.mxu0 %vm725_vm0, %v3967_v4  ;;  %s4860_s13 = smul.u32 328, %s6548_s27  ;;  %4851 = vmatprep.subr.msk.bf16.mxu1 %vm725_vm0, %v517_v5  ;;  %v5026_v22 = vsel %vm725_vm0, %v517_v5, 0  ;;  %vm521_vm1 = vsmask.f32 7424  ;;  %vm1685_vm3 = vsmask.f32 6400 }
  0x12   : > { %vm2585_vm5 = vsmask.f32 5376  ;;  %vm1143_vm6 = vcmask 1046528   ;;  %vm2943_vm7 = vcmask 1044480   ;;  %s4861_s15 = smul.u32 288, %s6548_s27  ;;  %s3872_s21 = sshll.u32 %s6548_s27, 3 }
  0x13   : > { %s5004_s16 = scalar_lea.vmem %s6468_s0, %s4860_s13  ;;  %s290_s24 = scalar_lea.vmem %s6475_s7, %s3872_s21 }
  0x14   : > { %v293_v6 = vld [vmem:[%s5004_s16] sm:$0xff]  ;;  %v294_v7 = vld [vmem:[%s5004_s16 + $0x8] sm:$0xff]  ;;  %v295_v8 = vld [vmem:[%s5004_s16 + $0x10] sm:$0xff]  ;;  %s6100_s20 = scalar_lea.vmem %s6474_s6, %s4861_s15 }
  0x15   : > { %v5009_v9 = vstv %s292_s8  ;;  %v296_v10 = vld [vmem:[%s5004_s16 + $0x18] sm:$0xff]  ;;  %v297_v14 = vld [vmem:[%s5004_s16 + $0x20] sm:$0xff]  ;;  %v298_v15 = vld [vmem:[%s5004_s16 + $0x28] sm:$0xff] }
  0x16   : > { %v335_v11 = vmul.f32 %v5009_v9, %v293_v6  ;;  %v336_v12 = vmul.f32 %v5009_v9, %v294_v7  ;;  %v337_v13 = vmul.f32 %v5009_v9, %v295_v8  ;;  %v338_v17 = vmul.f32 %v5009_v9, %v296_v10  ;;  %v299_v20 = vld [vmem:[%s5004_s16 + $0x30] sm:$0xff]  ;;  %v300_v21 = vld [vmem:[%s5004_s16 + $0x38] sm:$0xff]  ;;  %v301_v39 = vld [vmem:[%s5004_s16 + $0x40] sm:$0xff] }
  0x17   : > { %v339_v18 = vmul.f32 %v5009_v9, %v297_v14  ;;  %v340_v19 = vmul.f32 %v5009_v9, %v298_v15  ;;  %v341_v26 = vmul.f32 %v5009_v9, %v299_v20  ;;  %v342_v30 = vmul.f32 %v5009_v9, %v300_v21  ;;  %v302_v40 = vld [vmem:[%s5004_s16 + $0x48] sm:$0xff]  ;;  %v303_v45 = vld [vmem:[%s5004_s16 + $0x50] sm:$0xff]  ;;  %v304_v21 = vld [vmem:[%s5004_s16 + $0x58] sm:$0xff] }
  0x18   : > { %v4862_v23 = vround.rtne.f32 %v335_v11  ;;  %v4863_v24 = vround.rtne.f32 %v336_v12  ;;  %v4864_v25 = vround.rtne.f32 %v337_v13  ;;  %v4865_v27 = vround.rtne.f32 %v338_v17 }
  0x19   : > { %v4866_v28 = vround.rtne.f32 %v339_v18  ;;  %v4867_v29 = vround.rtne.f32 %v340_v19  ;;  %v4868_v34 = vround.rtne.f32 %v341_v26  ;;  %v4869_v38 = vround.rtne.f32 %v342_v30 }
  0x1a   : > { %v417_v31 = vmax.f32 %v4862_v23, -128.0  ;;  %v418_v32 = vmax.f32 %v4863_v24, -128.0  ;;  %v419_v33 = vmax.f32 %v4864_v25, -128.0  ;;  %v420_v35 = vmax.f32 %v4865_v27, -128.0  ;;  %v305_v23 = vld [vmem:[%s5004_s16 + $0x60] sm:$0xff] }
  0x1b   : > { %v421_v36 = vmax.f32 %v4866_v28, -128.0  ;;  %v422_v37 = vmax.f32 %v4867_v29, -128.0  ;;  %v423_v44 = vmax.f32 %v4868_v34, -128.0  ;;  %v424_v49 = vmax.f32 %v4869_v38, -128.0  ;;  %v5081_v38 = vld [vmem:[%s6470_s2 + $0x4] sm:$0x3] }
  0x1c   : > { %v458_v41 = vmin.f32 %v417_v31, 127.0  ;;  %v459_v42 = vmin.f32 %v418_v32, 127.0  ;;  %v460_v43 = vmin.f32 %v419_v33, 127.0  ;;  %v461_v46 = vmin.f32 %v420_v35, 127.0  ;;  %v306_v32 = vld [vmem:[%s5004_s16 + $0x68] sm:$0xff] }
  0x1d   : > { %v462_v47 = vmin.f32 %v421_v36, 127.0  ;;  %v463_v48 = vmin.f32 %v422_v37, 127.0  ;;  %v464_v51 = vmin.f32 %v423_v44, 127.0  ;;  %v343_v52 = vmul.f32 %v5009_v9, %v301_v39  ;;  %v307_v37 = vld [vmem:[%s5004_s16 + $0x70] sm:$0xff] }
  0x1e   : > { %v5033_v50 = vpack.c.bf16 %v459_v42, %v458_v41  ;;  %v344_v53 = vmul.f32 %v5009_v9, %v302_v40  ;;  %v5037_v54 = vpack.c.bf16 %v461_v46, %v460_v43  ;;  %v465_v56 = vmin.f32 %v424_v49, 127.0 }
  0x1f   : > { %v5039_v55 = vpack.c.bf16 %v463_v48, %v462_v47  ;;  %v345_v57 = vmul.f32 %v5009_v9, %v303_v45  ;;  %v4870_v60 = vround.rtne.f32 %v343_v52  ;;  %v346_v34 = vmul.f32 %v5009_v9, %v304_v21  ;;  %v308_v47 = vld [vmem:[%s5004_s16 + $0x78] sm:$0xff] }
  0x20   : > { %v523_v58 = vshrl.u32 %v5033_v50, 16  ;;  %v525_v59 = vshll.u32 %v5033_v50, 16  ;;  %v4871_v61 = vround.rtne.f32 %v344_v53  ;;  %v530_v62 = vshll.u32 %v5037_v54, 16  ;;  %v312_v21 = vld [vmem:[%s5004_s16 + $0x98] sm:$0xff] }
  0x21   : > { %v534_v63 = vshrl.u32 %v5037_v54, 16  ;;  %v5047_v0 = vshll.u32 %v5039_v55, 16  ;;  %v5050_v1 = vshrl.u32 %v5039_v55, 16  ;;  %v5052_v4 = vpack.c.bf16 %v465_v56, %v464_v51 }
  0x22   : > { %v527_v3 = vrot.slane %v525_v59, 1  ;;  %v425_v5 = vmax.f32 %v4870_v60, -128.0  ;;  %v426_v6 = vmax.f32 %v4871_v61, -128.0  ;;  %v532_v7 = vrot.slane %v530_v62, 1 }
  0x23   : > { %v1686_v8 = vrot.slane %v534_v63, 1  ;;  %v1687_v10 = vrot.slane %v530_v62, 2  ;;  %v1689_v11 = vrot.slane %v5050_v1, 1  ;;  %v1690_v13 = vrot.slane %v5047_v0, 2 }
  0x24   : > { %v528_v12 = vor.u32 %v527_v3, %v523_v58  ;;  %v540_v14 = vrot.slane %v5047_v0, 1  ;;  %v5058_v15 = vshll.u32 %v5052_v4, 16  ;;  %v536_v17 = vor.u32 %v534_v63, %v532_v7  ;;  %v309_v63 = vld [vmem:[%s5004_s16 + $0x80] sm:$0xff] }
  0x25   : > { %v1688_v18 = vor.u32 %v1687_v10, %v1686_v8  ;;  %v5061_v19 = vshrl.u32 %v5052_v4, 16  ;;  %v466_v20 = vmin.f32 %v425_v5, 127.0  ;;  %v1691_v25 = vor.u32 %v1690_v13, %v1689_v11  ;;  %v310_v8 = vld [vmem:[%s5004_s16 + $0x88] sm:$0xff]  ;;  %v311_v10 = vld [vmem:[%s5004_s16 + $0x90] sm:$0xff] }
  0x26   : > { %v533_v24 = vsel %vm521_vm1, %v528_v12, %v532_v7  ;;  %v1694_v26 = vrot.slane %v5058_v15, 2  ;;  %v544_v27 = vor.u32 %v5050_v1, %v540_v14  ;;  %v541_v28 = vsel %vm521_vm1, %v536_v17, %v540_v14 }
  0x27   : > { %4220 = vmatprep.mubr.msk.bf16.mxu1 %vm670_vm2, %v533_v24  ;;  %v1693_v29 = vrot.slane %v5061_v19, 1  ;;  %v548_v30 = vrot.slane %v5058_v15, 1  ;;  %v467_v31 = vmin.f32 %v426_v6, 127.0  ;;  %v1692_v33 = vsel %vm1685_vm3, %v1688_v18, %v1691_v25 }
  0x28   : > { %4221 = vmatmul.mubr.msk.bf16.vlgmr.msra.gmra.mrb[0].mxu1 %vm670_vm2, %v541_v28  ;;  %v4872_v35 = vround.rtne.f32 %v345_v57  ;;  %v347_v36 = vmul.f32 %v5009_v9, %v305_v23  ;;  %4372 = vmatprep.mubr.msk.bf16.mxu0 %vm670_vm2, %v1692_v33  ;;  %v4873_v43 = vround.rtne.f32 %v346_v34  ;;  %v348_v45 = vmul.f32 %v5009_v9, %v306_v32 }
  0x29   : > { %v1695_v39 = vor.u32 %v1694_v26, %v1693_v29  ;;  %v549_v40 = vsel %vm521_vm1, %v544_v27, %v548_v30  ;;  %v5085_v41 = vpack.c.bf16 %v467_v31, %v466_v20  ;;  %v552_v42 = vor.u32 %v5061_v19, %v548_v30  ;;  %4257 = vmatpush3.bf16.msra.mxu1 %v5026_v22  ;;  %v5103_v22 = vld [vmem:[%s6470_s2 + $0xc] sm:$0x3] }
  0x2a   : > { %4224 = vmatprep.mubr.msk.bf16.mxu1 %vm670_vm2, %v549_v40  ;;  %v427_v44 = vmax.f32 %v4872_v35, -128.0  ;;  %v4874_v46 = vround.rtne.f32 %v347_v36  ;;  %v349_v52 = vmul.f32 %v5009_v9, %v307_v37  ;;  %4852 = vmatprep.subr.msk.bf16.mxu1 %vm725_vm0, %v5081_v38  ;;  %v428_v53 = vmax.f32 %v4873_v43, -128.0 }
  0x2b   : > { %v1696_v48 = vsel %vm1685_vm3, %v1691_v25, %v1695_v39  ;;  %v5094_v49 = vshll.u32 %v5085_v41, 16  ;;  %v5097_v51 = vshrl.u32 %v5085_v41, 16  ;;  %v4875_v57 = vround.rtne.f32 %v348_v45 }
  0x2c   : > { %4373 = vmatmul.mubr.msk.bf16.vlgmr.msra.gmra.mrb[0].mxu0 %vm670_vm2, %v1696_v48  ;;  %v468_v56 = vmin.f32 %v427_v44, 127.0  ;;  %v429_v58 = vmax.f32 %v4874_v46, -128.0  ;;  %v350_v62 = vmul.f32 %v5009_v9, %v308_v47  ;;  %v469_v3 = vmin.f32 %v428_v53, 127.0 }
  0x2d   : > { %4409 = vmatpush3.bf16.msra.mxu0 %v5018_v16  ;;  %v1697_v59 = vrot.slane %v5097_v51, 1  ;;  %v1698_v60 = vrot.slane %v5094_v49, 2  ;;  %v556_v61 = vrot.slane %v5094_v49, 1  ;;  %v430_v5 = vmax.f32 %v4875_v57, -128.0 }
  0x2e   : > { %v470_v6 = vmin.f32 %v429_v58, 127.0  ;;  %v4876_v7 = vround.rtne.f32 %v349_v52  ;;  %4857 = vmatprep.subr.msk.bf16.mxu0 %vm725_vm0, %v5103_v22  ;;  %v4877_v13 = vround.rtne.f32 %v350_v62  ;;  %v5121_v14 = vpack.c.bf16 %v469_v3, %v468_v56  ;;  %v313_v62 = vld [vmem:[%s5004_s16 + $0xa0] sm:$0xff] }
  0x2f   : > { %v1699_v16 = vor.u32 %v1698_v60, %v1697_v59  ;;  %v557_v11 = vsel %vm521_vm1, %v552_v42, %v556_v61  ;;  %v560_v12 = vor.u32 %v5097_v51, %v556_v61  ;;  %v471_v17 = vmin.f32 %v430_v5, 127.0 }
  0x30   : > { %4225 = vmatmul.mubr.msk.bf16.gmra.mrb[4].mxu1 %vm670_vm2, %v557_v11  ;;  %v431_v18 = vmax.f32 %v4876_v7, -128.0  ;;  %v351_v20 = vmul.f32 %v5009_v9, %v309_v63  ;;  %v432_v24 = vmax.f32 %v4877_v13, -128.0  ;;  %v352_v25 = vmul.f32 %v5009_v9, %v310_v8  ;;  %v314_v11 = vld [vmem:[%s5004_s16 + $0xa8] sm:$0xff] }
  0x31   : > { %v1700_v23 = vsel %vm1685_vm3, %v1695_v39, %v1699_v16  ;;  %v353_v26 = vmul.f32 %v5009_v9, %v311_v10  ;;  %v5130_v27 = vshll.u32 %v5121_v14, 16  ;;  %v5133_v28 = vshrl.u32 %v5121_v14, 16 }
  0x32   : > { %4376 = vmatprep.mubr.msk.bf16.mxu0 %vm670_vm2, %v1700_v23  ;;  %v5135_v29 = vpack.c.bf16 %v471_v17, %v470_v6  ;;  %v472_v30 = vmin.f32 %v431_v18, 127.0  ;;  %v473_v31 = vmin.f32 %v432_v24, 127.0  ;;  %v4878_v32 = vround.rtne.f32 %v351_v20 }
  0x33   : > { %v4879_v33 = vround.rtne.f32 %v352_v25  ;;  %v354_v34 = vmul.f32 %v5009_v9, %v312_v21  ;;  %v1701_v35 = vrot.slane %v5133_v28, 1  ;;  %v1702_v36 = vrot.slane %v5130_v27, 2  ;;  %v315_v25 = vld [vmem:[%s5004_s16 + $0xb0] sm:$0xff] }
  0x34   : > { %v564_v37 = vrot.slane %v5130_v27, 1  ;;  %v5142_v39 = vshll.u32 %v5135_v29, 16  ;;  %v5145_v40 = vshrl.u32 %v5135_v29, 16  ;;  %v5147_v42 = vpack.c.bf16 %v473_v31, %v472_v30 }
  0x35   : > { %v433_v43 = vmax.f32 %v4878_v32, -128.0  ;;  %v434_v44 = vmax.f32 %v4879_v33, -128.0  ;;  %v1703_v45 = vor.u32 %v1702_v36, %v1701_v35  ;;  %v4880_v61 = vround.rtne.f32 %v353_v26  ;;  %v316_v26 = vld [vmem:[%s5004_s16 + $0xb8] sm:$0xff] }
  0x36   : > { %v565_v46 = vsel %vm521_vm1, %v560_v12, %v564_v37  ;;  %v1706_v47 = vrot.slane %v5142_v39, 2  ;;  %v568_v48 = vor.u32 %v5133_v28, %v564_v37  ;;  %v1705_v52 = vrot.slane %v5145_v40, 1 }
  0x37   : > { %4228 = vmatprep.mubr.msk.bf16.mxu1 %vm670_vm2, %v565_v46  ;;  %v572_v53 = vrot.slane %v5142_v39, 1  ;;  %v5156_v56 = vshll.u32 %v5147_v42, 16  ;;  %v5159_v57 = vshrl.u32 %v5147_v42, 16  ;;  %v1704_v58 = vsel %vm1685_vm3, %v1699_v16, %v1703_v45 }
  0x38   : > { %v474_v59 = vmin.f32 %v433_v43, 127.0  ;;  %v475_v60 = vmin.f32 %v434_v44, 127.0  ;;  %4377 = vmatmul.mubr.msk.bf16.gmra.mrb[4].mxu0 %vm670_vm2, %v1704_v58  ;;  %v1707_v63 = vor.u32 %v1706_v47, %v1705_v52  ;;  %v4881_v16 = vround.rtne.f32 %v354_v34 }
  0x39   : > { %v573_v3 = vsel %vm521_vm1, %v568_v48, %v572_v53  ;;  %v1709_v5 = vrot.slane %v5159_v57, 1  ;;  %v1710_v6 = vrot.slane %v5156_v56, 2  ;;  %v576_v7 = vor.u32 %v5145_v40, %v572_v53 }
  0x3a   : > { %4229 = vmatmul.mubr.msk.bf16.gmra.mrb[8].mxu1 %vm670_vm2, %v573_v3  ;;  %v580_v8 = vrot.slane %v5156_v56, 1  ;;  %v5170_v10 = vpack.c.bf16 %v475_v60, %v474_v59  ;;  %v1708_v12 = vsel %vm1685_vm3, %v1703_v45, %v1707_v63  ;;  %v435_v17 = vmax.f32 %v4880_v61, -128.0  ;;  %v317_v61 = vld [vmem:[%s5004_s16 + $0xc0] sm:$0xff] }
  0x3b   : > { %v1711_v13 = vor.u32 %v1710_v6, %v1709_v5  ;;  %v355_v18 = vmul.f32 %v5009_v9, %v313_v62  ;;  %4380 = vmatprep.mubr.msk.bf16.mxu0 %vm670_vm2, %v1708_v12  ;;  %v436_v31 = vmax.f32 %v4881_v16, -128.0  ;;  %v356_v33 = vmul.f32 %v5009_v9, %v314_v11  ;;  %v318_v62 = vld [vmem:[%s5004_s16 + $0xc8] sm:$0xff] }
  0x3c   : > { %v581_v20 = vsel %vm521_vm1, %v576_v7, %v580_v8  ;;  %v5178_v21 = vshll.u32 %v5170_v10, 16  ;;  %v5181_v23 = vshrl.u32 %v5170_v10, 16  ;;  %v584_v24 = vor.u32 %v5159_v57, %v580_v8 }
  0x3d   : > { %v1712_v30 = vsel %vm1685_vm3, %v1707_v63, %v1711_v13  ;;  %4232 = vmatprep.mubr.msk.bf16.mxu1 %vm670_vm2, %v581_v20  ;;  %v476_v32 = vmin.f32 %v435_v17, 127.0  ;;  %v4882_v37 = vround.rtne.f32 %v355_v18  ;;  %v477_v43 = vmin.f32 %v436_v31, 127.0 }
  0x3e   : > { %6510 = vst [vmem:[#allocation4_spill] sm:$0xff] %v5178_v21  ;;  %6511 = vst [vmem:[#allocation5_spill] sm:$0xff] %v5181_v23  ;;  %v1713_v34 = vrot.slane %v5181_v23, 1  ;;  %v1714_v35 = vrot.slane %v5178_v21, 2  ;;  %v588_v36 = vrot.slane %v5178_v21, 1  ;;  %v4883_v44 = vround.rtne.f32 %v356_v33 }
  0x3f   : > { %v357_v45 = vmul.f32 %v5009_v9, %v315_v25  ;;  %v358_v46 = vmul.f32 %v5009_v9, %v316_v26  ;;  %v437_v52 = vmax.f32 %v4882_v37, -128.0  ;;  %v5196_v53 = vpack.c.bf16 %v477_v43, %v476_v32 }
  0x40   : > { %v1715_v47 = vor.u32 %v1714_v35, %v1713_v34  ;;  %v589_v48 = vsel %vm521_vm1, %v584_v24, %v588_v36  ;;  %4381 = vmatmul.mubr.msk.bf16.gmra.mrb[8].mxu0 %vm670_vm2, %v1712_v30  ;;  %v438_v58 = vmax.f32 %v4883_v44, -128.0  ;;  %v592_v3 = vor.u32 %v5181_v23, %v588_v36 }
  0x41   : > { %v4884_v59 = vround.rtne.f32 %v357_v45  ;;  %v4885_v60 = vround.rtne.f32 %v358_v46  ;;  %v478_v5 = vmin.f32 %v437_v52, 127.0  ;;  %v2044_v6 = vrot.slane %v5037_v54, 2 }
  0x42   : > { %v1716_v63 = vsel %vm1685_vm3, %v1711_v13, %v1715_v47  ;;  %4233 = vmatmul.mubr.msk.bf16.gmra.mrb[12].mxu1 %vm670_vm2, %v589_v48  ;;  %v5206_v7 = vshll.u32 %v5196_v53, 16  ;;  %v5209_v8 = vshrl.u32 %v5196_v53, 16  ;;  %v479_v16 = vmin.f32 %v438_v58, 127.0 }
  0x43   : > { %4384 = vmatprep.mubr.msk.bf16.mxu0 %vm670_vm2, %v1716_v63  ;;  %v439_v11 = vmax.f32 %v4884_v59, -128.0  ;;  %v440_v12 = vmax.f32 %v4885_v60, -128.0  ;;  %v2045_v13 = vrot.slane %v5039_v55, 2  ;;  %v359_v17 = vmul.f32 %v5009_v9, %v317_v61 }
  0x44   : > { %v360_v18 = vmul.f32 %v5009_v9, %v318_v62  ;;  %v1717_v20 = vrot.slane %v5209_v8, 1  ;;  %v1718_v24 = vrot.slane %v5206_v7, 2  ;;  %v596_v25 = vrot.slane %v5206_v7, 1 }
  0x45   : > { %v5217_v26 = vpack.c.bf16 %v479_v16, %v478_v5  ;;  %v480_v30 = vmin.f32 %v439_v11, 127.0  ;;  %v481_v31 = vmin.f32 %v440_v12, 127.0  ;;  %v4886_v32 = vround.rtne.f32 %v359_v17 }
  0x46   : > { %v4887_v33 = vround.rtne.f32 %v360_v18  ;;  %v1719_v34 = vor.u32 %v1718_v24, %v1717_v20  ;;  %v597_v35 = vsel %vm521_vm1, %v592_v3, %v596_v25  ;;  %v600_v43 = vor.u32 %v5209_v8, %v596_v25  ;;  %v319_v3 = vld [vmem:[%s5004_s16 + $0xd0] sm:$0xff] }
  0x47   : > { %v5221_v36 = vshll.u32 %v5217_v26, 16  ;;  %v5224_v37 = vshrl.u32 %v5217_v26, 16  ;;  %4236 = vmatprep.mubr.msk.bf16.mxu1 %vm670_vm2, %v597_v35  ;;  %v5228_v44 = vpack.c.bf16 %v481_v31, %v480_v30  ;;  %v441_v45 = vmax.f32 %v4886_v32, -128.0  ;;  %v321_v32 = vld [vmem:[%s5004_s16 + $0xe0] sm:$0xff] }
  0x48   : > { %v442_v46 = vmax.f32 %v4887_v33, -128.0  ;;  %v1720_v48 = vsel %vm1685_vm3, %v1715_v47, %v1719_v34  ;;  %v320_v47 = vld [vmem:[%s5004_s16 + $0xd8] sm:$0xff]  ;;  %v2046_v25 = vsel %vm2043_vm4, %v2044_v6, %v2045_v13  ;;  %v361_v30 = vmul.f32 %v5009_v9, %v319_v3  ;;  %v322_v33 = vld [vmem:[%s5004_s16 + $0xe8] sm:$0xff]  ;;  %v323_v3 = vld [vmem:[%s5004_s16 + $0xf0] sm:$0xff] }
  0x49   : > { %v1721_v52 = vrot.slane %v5224_v37, 1  ;;  %v1722_v58 = vrot.slane %v5221_v36, 2  ;;  %v604_v59 = vrot.slane %v5221_v36, 1  ;;  %4385 = vmatmul.mubr.msk.bf16.gmra.mrb[12].mxu0 %vm670_vm2, %v1720_v48  ;;  %v5236_v60 = vshll.u32 %v5228_v44, 16 }
  0x4a   : > { %v5239_v61 = vshrl.u32 %v5228_v44, 16  ;;  %v482_v62 = vmin.f32 %v441_v45, 127.0  ;;  %v483_v63 = vmin.f32 %v442_v46, 127.0  ;;  %v362_v31 = vmul.f32 %v5009_v9, %v320_v47 }
  0x4b   : > { %v1723_v5 = vor.u32 %v1722_v58, %v1721_v52  ;;  %v605_v16 = vsel %vm521_vm1, %v600_v43, %v604_v59  ;;  %v608_v11 = vor.u32 %v5224_v37, %v604_v59  ;;  %v1726_v17 = vrot.slane %v5236_v60, 2 }
  0x4c   : > { %4237 = vmatmul.mubr.msk.bf16.gmra.mrb[16].mxu1 %vm670_vm2, %v605_v16  ;;  %v1725_v12 = vrot.slane %v5239_v61, 1  ;;  %v612_v18 = vrot.slane %v5236_v60, 1  ;;  %v5249_v20 = vpack.c.bf16 %v483_v63, %v482_v62  ;;  %v2047_v6 = vrot.slane %v5052_v4, 2 }
  0x4d   : > { %v1724_v24 = vsel %vm1685_vm3, %v1719_v34, %v1723_v5  ;;  %v4888_v46 = vround.rtne.f32 %v361_v30  ;;  %v4889_v48 = vround.rtne.f32 %v362_v31  ;;  %v6477_v52 = vrot.slane %v5085_v41, 2  ;;  %v325_v30 = vld [vmem:[%s5004_s16 + $0x100] sm:$0xff]  ;;  %v326_v31 = vld [vmem:[%s5004_s16 + $0x108] sm:$0xff] }
  0x4e   : > { %4388 = vmatprep.mubr.msk.bf16.mxu0 %vm670_vm2, %v1724_v24  ;;  %v5260_v35 = vor.u32 %v1726_v17, %v1725_v12  ;;  %v613_v43 = vsel %vm521_vm1, %v608_v11, %v612_v18  ;;  %v616_v34 = vor.u32 %v5239_v61, %v612_v18  ;;  %v5265_v45 = vshll.u32 %v5249_v20, 16  ;;  %v324_v12 = vld [vmem:[%s5004_s16 + $0xf8] sm:$0xff] }
  0x4f   : > { %4240 = vmatprep.mubr.msk.bf16.mxu1 %vm670_vm2, %v613_v43  ;;  %v363_v62 = vmul.f32 %v5009_v9, %v321_v32  ;;  %v364_v63 = vmul.f32 %v5009_v9, %v322_v33  ;;  %v2368_v47 = vsel %vm725_vm0, %v5103_v22, 0  ;;  %v443_v16 = vmax.f32 %v4888_v46, -128.0 }
  0x50   : > { %6512 = vst [vmem:[#allocation6_spill] sm:$0xff] %v5260_v35  ;;  %6513 = vst [vmem:[#allocation7_spill] sm:$0xff] %v5265_v45  ;;  %v1728_v58 = vsel %vm1685_vm3, %v1723_v5, %v5260_v35  ;;  %v620_v59 = vrot.slane %v5265_v45, 1  ;;  %v444_v11 = vmax.f32 %v4889_v48, -128.0  ;;  %v5282_v18 = vshrl.u32 %v5249_v20, 16  ;;  %v327_v35 = vld [vmem:[%s5004_s16 + $0x110] sm:$0xff] }
  0x51   : > { %4389 = vmatmul.mubr.msk.bf16.gmra.mrb[16].mxu0 %vm670_vm2, %v1728_v58  ;;  %v4890_v5 = vround.rtne.f32 %v363_v62  ;;  %v4891_v24 = vround.rtne.f32 %v364_v63  ;;  %v5290_v22 = vsel %vm2043_vm4, %v2045_v13, %v2047_v6  ;;  %v484_v32 = vmin.f32 %v443_v16, 127.0 }
  0x52   : > { %v621_v17 = vsel %vm521_vm1, %v616_v34, %v620_v59  ;;  %6514 = vst [vmem:[#allocation8_spill] sm:$0xff] %v5282_v18  ;;  %4410 = vmatprep.mubr.msk.bf16.mxu0 %vm670_vm2, %v2046_v25  ;;  %v485_v33 = vmin.f32 %v444_v11, 127.0  ;;  %v365_v43 = vmul.f32 %v5009_v9, %v323_v3  ;;  %v5297_v34 = vsel %vm2043_vm4, %v2047_v6, %v6477_v52  ;;  %v5321_v52 = vld [vmem:[%s6470_s2 + $0xe] sm:$0x3] }
  0x53   : > { %v445_v46 = vmax.f32 %v4890_v5, -128.0  ;;  %v446_v48 = vmax.f32 %v4891_v24, -128.0  ;;  %v366_v25 = vmul.f32 %v5009_v9, %v324_v12  ;;  %v367_v62 = vmul.f32 %v5009_v9, %v325_v30 }
  0x54   : > { %4241 = vmatmul.mubr.msk.bf16.gmra.mrb[20].mxu1 %vm670_vm2, %v621_v17  ;;  %v5300_v58 = vpack.c.bf16 %v485_v33, %v484_v32  ;;  %v4892_v13 = vround.rtne.f32 %v365_v43  ;;  %v368_v63 = vmul.f32 %v5009_v9, %v326_v31  ;;  %v624_v3 = vor.u32 %v5282_v18, %v620_v59 }
  0x55   : > { %v486_v16 = vmin.f32 %v445_v46, 127.0  ;;  %v487_v11 = vmin.f32 %v446_v48, 127.0  ;;  %v4893_v17 = vround.rtne.f32 %v366_v25  ;;  %v4894_v24 = vround.rtne.f32 %v367_v62  ;;  %v328_v48 = vld [vmem:[%s5004_s16 + $0x118] sm:$0xff] }
  0x56   : > { %v5307_v6 = vshll.u32 %v5300_v58, 16  ;;  %v5310_v5 = vshrl.u32 %v5300_v58, 16  ;;  %v447_v12 = vmax.f32 %v4892_v13, -128.0  ;;  %v2051_v30 = vrot.slane %v5121_v14, 2 }
  0x57   : > { %v5312_v32 = vpack.c.bf16 %v487_v11, %v486_v16  ;;  %v448_v31 = vmax.f32 %v4893_v17, -128.0  ;;  %v4895_v59 = vround.rtne.f32 %v368_v63  ;;  %v449_v46 = vmax.f32 %v4894_v24, -128.0  ;;  %v329_v11 = vld [vmem:[%s5004_s16 + $0x120] sm:$0xff] }
  0x58   : > { %6515 = vst [vmem:[#allocation9_spill] sm:$0xff] %v5307_v6  ;;  %6516 = vst [vmem:[#allocation10_spill] sm:$0xff] %v5310_v5  ;;  %v628_v33 = vrot.slane %v5307_v6, 1  ;;  %v488_v43 = vmin.f32 %v447_v12, 127.0  ;;  %v369_v25 = vmul.f32 %v5009_v9, %v327_v35  ;;  %v2053_v12 = vrot.slane %v5135_v29, 2 }
  0x59   : > { %4411 = vmatmul.mubr.msk.bf16.vlgmr.msra.gmra.mrb[0].mxu0 %vm670_vm2, %v5290_v22  ;;  %v5326_v13 = vshll.u32 %v5312_v32, 16  ;;  %v489_v62 = vmin.f32 %v448_v31, 127.0  ;;  %v5329_v63 = vshrl.u32 %v5312_v32, 16  ;;  %v450_v16 = vmax.f32 %v4895_v59, -128.0 }
  0x5a   : > { %4447 = vmatpush3.bf16.msra.mxu0 %v2368_v47  ;;  %v629_v35 = vsel %vm521_vm1, %v624_v3, %v628_v33  ;;  %4414 = vmatprep.mubr.msk.bf16.mxu0 %vm670_vm2, %v5297_v34  ;;  %v632_v17 = vor.u32 %v5310_v5, %v628_v33  ;;  %v490_v24 = vmin.f32 %v449_v46, 127.0  ;;  %v370_v59 = vmul.f32 %v5009_v9, %v328_v48 }
  0x5b   : > { %6517 = vst [vmem:[#allocation11_spill] sm:$0xff] %v5326_v13  ;;  %6518 = vst [vmem:[#allocation12_spill] sm:$0xff] %v5329_v63  ;;  %4244 = vmatprep.mubr.msk.bf16.mxu1 %vm670_vm2, %v629_v35  ;;  %v636_v31 = vrot.slane %v5326_v13, 1  ;;  %v5339_v2 = vpack.c.bf16 %v489_v62, %v488_v43  ;;  %v491_v6 = vmin.f32 %v450_v16, 127.0  ;;  %4858 = vmatprep.subr.msk.bf16.mxu0 %vm725_vm0, %v5321_v52  ;;  %v4896_v47 = vround.rtne.f32 %v369_v25 }
  0x5c   : > { %v371_v3 = vmul.f32 %v5009_v9, %v329_v11  ;;  %v6520_v43 = vrot.slane %v5085_v41, 2  ;;  %v4897_v62 = vround.rtne.f32 %v370_v59 }
  0x5d   : > { %v637_v33 = vsel %vm521_vm1, %v632_v17, %v636_v31  ;;  %v640_v5 = vor.u32 %v5329_v63, %v636_v31  ;;  %v5348_v46 = vshll.u32 %v5339_v2, 16  ;;  %v5350_v35 = vpack.c.bf16 %v491_v6, %v490_v24 }
  0x5e   : > { %4245 = vmatmul.mubr.msk.bf16.gmra.mrb[24].mxu1 %vm670_vm2, %v637_v33  ;;  %v5356_v48 = vsel %vm2043_vm4, %v6520_v43, %v2051_v30  ;;  %v5359_v25 = vshrl.u32 %v5339_v2, 16  ;;  %v451_v16 = vmax.f32 %v4896_v47, -128.0  ;;  %v5363_v17 = vsel %vm2043_vm4, %v2051_v30, %v2053_v12 }
  0x5f   : > { %6519 = vst [vmem:[#allocation13_spill] sm:$0xff] %v5348_v46  ;;  %v644_v11 = vrot.slane %v5348_v46, 1  ;;  %v5366_v6 = vshll.u32 %v5350_v35, 16  ;;  %v4898_v24 = vround.rtne.f32 %v371_v3  ;;  %v452_v31 = vmax.f32 %v4897_v62, -128.0 }
  0x60   : > { %6521 = vst [vmem:[#allocation14_spill] sm:$0xff] %v5359_v25  ;;  %v492_v33 = vmin.f32 %v451_v16, 127.0  ;;  %v2055_v30 = vrot.slane %v5147_v42, 2  ;;  %v5378_v62 = vshrl.u32 %v5350_v35, 16  ;;  %v330_v16 = vld [vmem:[%s5004_s16 + $0x128] sm:$0xff] }
  0x61   : > { %6522 = vst [vmem:[#allocation15_spill] sm:$0xff] %v5366_v6  ;;  %4415 = vmatmul.mubr.msk.bf16.gmra.mrb[4].mxu0 %vm670_vm2, %v5356_v48  ;;  %v645_v43 = vsel %vm521_vm1, %v640_v5, %v644_v11  ;;  %v648_v59 = vor.u32 %v5359_v25, %v644_v11  ;;  %v652_v47 = vrot.slane %v5366_v6, 1  ;;  %v453_v46 = vmax.f32 %v4898_v24, -128.0 }
  0x62   : > { %4248 = vmatprep.mubr.msk.bf16.mxu1 %vm670_vm2, %v645_v43  ;;  %4418 = vmatprep.mubr.msk.bf16.mxu0 %vm670_vm2, %v5363_v17  ;;  %v493_v3 = vmin.f32 %v452_v31, 127.0  ;;  %6523 = vst [vmem:[#allocation16_spill] sm:$0xff] %v5378_v62  ;;  %v2057_v11 = vrot.slane %v5170_v10, 2  ;;  %v372_v24 = vmul.f32 %v5009_v9, %v330_v16  ;;  %v5390_v31 = vsel %vm2043_vm4, %v2053_v12, %v2055_v30 }
  0x63   : > { %v653_v5 = vsel %vm521_vm1, %v648_v59, %v652_v47  ;;  %v494_v25 = vmin.f32 %v453_v46, 127.0  ;;  %v656_v13 = vor.u32 %v5378_v62, %v652_v47 }
  0x64   : > { %v5383_v6 = vpack.c.bf16 %v493_v3, %v492_v33  ;;  %v5400_v46 = vsel %vm2043_vm4, %v2055_v30, %v2057_v11  ;;  %v331_v3 = vld [vmem:[%s5004_s16 + $0x130] sm:$0xff]  ;;  %v4899_v12 = vround.rtne.f32 %v372_v24  ;;  %v2059_v30 = vrot.slane %v5196_v53, 2 }
  0x65   : > { %v5386_v43 = vpack.c.bf16 %v494_v25, %v494_v25  ;;  %v373_v45 = vmul.f32 %v5009_v9, %v331_v3 }
  0x66   : > { %4249 = vmatmul.mubr.msk.bf16.gmra.mrb[28].mxu1 %vm670_vm2, %v653_v5  ;;  %v5394_v63 = vshll.u32 %v5383_v6, 16  ;;  %v5397_v59 = vshrl.u32 %v5383_v6, 16  ;;  %v454_v24 = vmax.f32 %v4899_v12, -128.0 }
  0x67   : > { %6524 = vst [vmem:[#allocation17_spill] sm:$0xff] %v5386_v43  ;;  %v666_v33 = vshll.u32 %v5386_v43, 16  ;;  %v332_v43 = vld [vmem:[%s5004_s16 + $0x138] sm:$0xff] }
  0x68   : > { %6525 = vst [vmem:[#allocation18_spill] sm:$0xff] %v5394_v63  ;;  %6526 = vst [vmem:[#allocation19_spill] sm:$0xff] %v5397_v59  ;;  %v660_v16 = vrot.slane %v5394_v63, 1  ;;  %v2061_v63 = vrot.slane %v5217_v26, 2  ;;  %v374_v3 = vmul.f32 %v5009_v9, %v332_v43  ;;  %v5438_v43 = vld [vmem:[%s6470_s2 + $0x6] sm:$0x3] }
  0x69   : > { %4419 = vmatmul.mubr.msk.bf16.gmra.mrb[8].mxu0 %vm670_vm2, %v5390_v31  ;;  %v668_v47 = vrot.slane %v666_v33, 1  ;;  %v4900_v33 = vround.rtne.f32 %v373_v45  ;;  %v2065_v45 = vrot.slane %v5249_v20, 2 }
  0x6a   : > { %v661_v5 = vsel %vm521_vm1, %v656_v13, %v660_v16  ;;  %4422 = vmatprep.mubr.msk.bf16.mxu0 %vm670_vm2, %v5400_v46  ;;  %v664_v62 = vor.u32 %v5397_v59, %v660_v16  ;;  %v5419_v13 = vsel %vm2043_vm4, %v2057_v11, %v2059_v30  ;;  %v5424_v16 = vsel %vm2043_vm4, %v2059_v30, %v2061_v63 }
  0x6b   : > { %4252 = vmatprep.mubr.msk.bf16.mxu1 %vm670_vm2, %v661_v5  ;;  %v455_v11 = vmax.f32 %v4900_v33, -128.0  ;;  %v4901_v12 = vround.rtne.f32 %v374_v3  ;;  %v2618_v59 = vrot.slane %v5221_v36, 3 }
  0x6c   : > { %v669_v18 = vsel %vm521_vm1, %v664_v62, %v668_v47  ;;  %v495_v62 = vmin.f32 %v454_v24, 127.0  ;;  %v1236_v47 = vsel %vm725_vm0, %v5081_v38, 0 }
  0x6d   : > { %v456_v5 = vmax.f32 %v4901_v12, -128.0  ;;  %v496_v33 = vmin.f32 %v455_v11, 127.0 }
  0x6e   : > { %4253 = vmatmul.mubr.msk.bf16.gmra.mrb[32].mxu1 %vm670_vm2, %v669_v18  ;;  %v2063_v18 = vrot.slane %v5228_v44, 2  ;;  %v5440_v30 = vpack.c.bf16 %v495_v62, %v494_v25 }
  0x6f   : > { %4258 = vmatprep.mubr.msk.bf16.mxu1 %vm670_vm2, %v5033_v50  ;;  %v497_v3 = vmin.f32 %v456_v5, 127.0 }
  0x70   : > { %6527 = vst [vmem:[#allocation20_spill] sm:$0xff] %v5440_v30  ;;  %v5445_v24 = vsel %vm2043_vm4, %v2061_v63, %v2063_v18  ;;  %v5450_v38 = vsel %vm2043_vm4, %v2063_v18, %v2065_v45  ;;  %v2067_v63 = vrot.slane %v5300_v58, 2  ;;  %v2077_v62 = vrot.slane %v5440_v30, 2 }
  0x71   : > { %4423 = vmatmul.mubr.msk.bf16.gmra.mrb[12].mxu0 %vm670_vm2, %v5419_v13  ;;  %v5454_v25 = vpack.c.bf16 %v497_v3, %v496_v33  ;;  %v2069_v18 = vrot.slane %v5312_v32, 2  ;;  %v2613_v3 = vrot.slane %v5209_v8, 2  ;;  %v2614_v30 = vrot.slane %v5206_v7, 3 }
  0x72   : > { %4426 = vmatprep.mubr.msk.bf16.mxu0 %vm670_vm2, %v5424_v16  ;;  %v2073_v8 = vrot.slane %v5350_v35, 2  ;;  %v2622_v7 = vrot.slane %v5236_v60, 3 }
  0x73   : > { %v6504_v11 = vrot.slane %v5454_v25, 2  ;;  %v5477_v5 = vsel %vm2043_vm4, %v2067_v63, %v2069_v18  ;;  %v5488_v21 = vor.u32 %v2614_v30, %v2613_v3 }
  0x75   : > { %v5467_v12 = vsel %vm2043_vm4, %v2077_v62, %v6504_v11  ;;  %v2617_v11 = vrot.slane %v5224_v37, 2 }
  0x76   : > { %4259 = vmatmul.mubr.msk.bf16.vlgmr.msra.gmra.mrb[0].mxu1 %vm670_vm2, %v5037_v54 }
  0x77   : > { %4262 = vmatprep.mubr.msk.bf16.mxu1 %vm670_vm2, %v5039_v55  ;;  %4295 = vmatpush3.bf16.msra.mxu1 %v1236_v47  ;;  %v5472_v47 = vsel %vm2043_vm4, %v2065_v45, %v2067_v63  ;;  %v2071_v45 = vrot.slane %v5339_v2, 2  ;;  %v2621_v63 = vrot.slane %v5239_v61, 2  ;;  %v2619_v23 = vor.u32 %v2618_v59, %v2617_v11 }
  0x78   : > { %4853 = vmatprep.subr.msk.bf16.mxu1 %vm725_vm0, %v5438_v43  ;;  %v2075_v59 = vrot.slane %v5383_v6, 2 }
  0x79   : > { %4427 = vmatmul.mubr.msk.bf16.gmra.mrb[16].mxu0 %vm670_vm2, %v5445_v24  ;;  %v5495_v37 = vsel %vm2585_vm5, %v5488_v21, %v2619_v23  ;;  %v5497_v36 = vor.u32 %v2622_v7, %v2621_v63  ;;  %v5502_v30 = vsel %vm2043_vm4, %v2069_v18, %v2071_v45  ;;  %v5507_v61 = vsel %vm2043_vm4, %v2071_v45, %v2073_v8  ;;  %v333_v7 = vld [vmem:[%s5004_s16 + $0x140] sm:$0xff] }
  0x7a   : > { %4430 = vmatprep.mubr.msk.bf16.mxu0 %vm670_vm2, %v5450_v38  ;;  %v5521_v11 = vsel %vm2043_vm4, %v2073_v8, %v2075_v59  ;;  %v5523_v18 = vpack.c.bf16 %v496_v33, %v496_v33  ;;  %v2726_v45 = vsel %vm725_vm0, %v5321_v52, 0  ;;  %v1144_v52 = vrot.slane %v5033_v50, 1 }
  0x7b   : > { %v5511_v60 = vsel %vm2585_vm5, %v2619_v23, %v5497_v36  ;;  %v5528_v23 = vsel %vm2043_vm4, %v2075_v59, %v2077_v62  ;;  %v1149_v50 = vrot.slane %v5052_v4, 1  ;;  %v4925_v63 = vmov 0  }
  0x7c   : > { %v2079_v3 = vrot.slane %v5523_v18, 2  ;;  %4915 = vset.pattern.permute.xlu1 %v4925_v63  ;;  %4914 = vset.pattern.permute.xlu0 %v4925_v63  ;;  %v375_v59 = vmul.f32 %v5009_v9, %v333_v7  ;;  %v2586_v7 = vrot.slane %v5050_v1, 2  ;;  %v3419_v1 = vld [vmem:[%s6473_s5 + $0x50] sm:$0xff] }
  0x7e   : > { %4263 = vmatmul.mubr.msk.bf16.gmra.mrb[4].mxu1 %vm670_vm2, %v5052_v4  ;;  %v2080_v33 = vsel %vm2043_vm4, %v2077_v62, %v2079_v3  ;;  %v5552_v62 = vld [vmem:[%s6470_s2 + $0x10] sm:$0x3]  ;;  %v1157_v3 = vrot.slane %v5147_v42, 1  ;;  %v4902_v9 = vround.rtne.f32 %v375_v59  ;;  %v2587_v59 = vrot.slane %v5047_v0, 3 }
  0x7f   : > { %4266 = vmatprep.mubr.msk.bf16.mxu1 %vm670_vm2, %v5085_v41 }
  0x81   : > { %4431 = vmatmul.mubr.msk.bf16.gmra.mrb[20].mxu0 %vm670_vm2, %v5472_v47 }
  0x82   : > { %4434 = vmatprep.mubr.msk.bf16.mxu0 %vm670_vm2, %v5477_v5 }
  0x86   : > { %4267 = vmatmul.mubr.msk.bf16.gmra.mrb[8].mxu1 %vm670_vm2, %v5121_v14 }
  0x87   : > { %4270 = vmatprep.mubr.msk.bf16.mxu1 %vm670_vm2, %v5135_v29 }
  0x89   : > { %4435 = vmatmul.mubr.msk.bf16.gmra.mrb[24].mxu0 %vm670_vm2, %v5502_v30 }
  0x8a   : > { %4438 = vmatprep.mubr.msk.bf16.mxu0 %vm670_vm2, %v5507_v61 }
  0x8e   : > { %4271 = vmatmul.mubr.msk.bf16.gmra.mrb[12].mxu1 %vm670_vm2, %v5147_v42 }
  0x8f   : > { %4274 = vmatprep.mubr.msk.bf16.mxu1 %vm670_vm2, %v5170_v10 }
  0x91   : > { %4439 = vmatmul.mubr.msk.bf16.gmra.mrb[28].mxu0 %vm670_vm2, %v5521_v11 }
  0x92   : > { %4442 = vmatprep.mubr.msk.bf16.mxu0 %vm670_vm2, %v5528_v23 }
  0x96   : > { %4275 = vmatmul.mubr.msk.bf16.gmra.mrb[16].mxu1 %vm670_vm2, %v5196_v53 }
  0x97   : > { %4278 = vmatprep.mubr.msk.bf16.mxu1 %vm670_vm2, %v5217_v26 }
  0x99   : > { %4443 = vmatmul.mubr.msk.bf16.gmra.mrb[32].mxu0 %vm670_vm2, %v2080_v33  ;;  %v3412_v33 = vld [vmem:[%s6473_s5 + $0x18] sm:$0xff] }
  0x9a   : > { %4448 = vmatprep.mubr.msk.bf16.mxu0 %vm670_vm2, %v5290_v22  ;;  %v1145_v22 = vrot.slane %v5037_v54, 1 }
  0x9e   : > { %4279 = vmatmul.mubr.msk.bf16.gmra.mrb[20].mxu1 %vm670_vm2, %v5228_v44 }
  0x9f   : > { %4282 = vmatprep.mubr.msk.bf16.mxu1 %vm670_vm2, %v5249_v20 }
  0xa1   : > { %4449 = vmatmul.mubr.msk.bf16.vlgmr.msra.gmra.mrb[0].mxu0 %vm670_vm2, %v5297_v34  ;;  %v1146_v34 = vsel %vm1143_vm6, %v1144_v52, %v1145_v22 }
  0xa2   : > { %4485 = vmatpush3.bf16.msra.mxu0 %v2726_v45  ;;  %4452 = vmatprep.mubr.msk.bf16.mxu0 %vm670_vm2, %v5356_v48  ;;  %v1147_v48 = vrot.slane %v5039_v55, 1  ;;  %v3410_v45 = vld [vmem:[%s6473_s5 + $0x8] sm:$0xff] }
  0xa3   : > { %4859 = vmatprep.subr.msk.bf16.mxu0 %vm725_vm0, %v5552_v62 }
  0xa4   : > { %v5589_v54 = vsel %vm1143_vm6, %v1145_v22, %v1147_v48 }
  0xa6   : > { %4283 = vmatmul.mubr.msk.bf16.gmra.mrb[24].mxu1 %vm670_vm2, %v5300_v58 }
  0xa7   : > { %4286 = vmatprep.mubr.msk.bf16.mxu1 %vm670_vm2, %v5312_v32 }
  0xa9   : > { %4453 = vmatmul.mubr.msk.bf16.gmra.mrb[4].mxu0 %vm670_vm2, %v5363_v17  ;;  %v5592_v17 = vsel %vm1143_vm6, %v1147_v48, %v1149_v50  ;;  %v1159_v48 = vrot.slane %v5170_v10, 1 }
  0xaa   : > { %4456 = vmatprep.mubr.msk.bf16.mxu0 %vm670_vm2, %v5390_v31  ;;  %v1468_v31 = vsel %vm725_vm0, %v5438_v43, 0  ;;  %v3411_v43 = vld [vmem:[%s6473_s5 + $0x10] sm:$0xff] }
  0xab   : > { %3457 = vperm.xlu1 %4915, %v3411_v43  }
  0xae   : > { %4287 = vmatmul.mubr.msk.bf16.gmra.mrb[28].mxu1 %vm670_vm2, %v5339_v2 }
  0xaf   : > { %4290 = vmatprep.mubr.msk.bf16.mxu1 %vm670_vm2, %v5350_v35  ;;  %3462 = vperm.xlu1 %4915, %v3412_v33   ;;  %v1165_v33 = vrot.slane %v5228_v44, 1 }
  0xb1   : > { %4457 = vmatmul.mubr.msk.bf16.gmra.mrb[8].mxu0 %vm670_vm2, %v5400_v46  ;;  %v1151_v46 = vrot.slane %v5085_v41, 1 }
  0xb2   : > { %4460 = vmatprep.mubr.msk.bf16.mxu0 %vm670_vm2, %v5419_v13  ;;  %v1153_v13 = vrot.slane %v5121_v14, 1 }
  0xb3   : > { %v5617_v8 = vsel %vm1143_vm6, %v1149_v50, %v1151_v46  ;;  %v1161_v50 = vrot.slane %v5196_v53, 1 }
  0xb5   : > { %v5675_v43 = vsel %vm1143_vm6, %v1159_v48, %v1161_v50 }
  0xb6   : > { %4291 = vmatmul.mubr.msk.bf16.gmra.mrb[32].mxu1 %vm670_vm2, %v5383_v6 }
  0xb7   : > { %4296 = vmatprep.mubr.msk.bf16.mxu1 %vm670_vm2, %v1146_v34  ;;  %v3413_v34 = vld [vmem:[%s6473_s5 + $0x20] sm:$0xff] }
  0xb9   : > { %4461 = vmatmul.mubr.msk.bf16.gmra.mrb[12].mxu0 %vm670_vm2, %v5424_v16  ;;  %v4916_v16 = vld [vmem:[%s6470_s2 + $0x8] sm:$0x3] }
  0xba   : > { %4464 = vmatprep.mubr.msk.bf16.mxu0 %vm670_vm2, %v5445_v24  ;;  %v3409_v24 = vld [vmem:[%s6473_s5] sm:$0xff] }
  0xbb   : > { %3447 = vperm.xlu0 %4914, %v3409_v24   ;;  %v3417_v24 = vld [vmem:[%s6473_s5 + $0x40] sm:$0xff] }
  0xbe   : > { %4297 = vmatmul.mubr.msk.bf16.vlgmr.msra.gmra.mrb[0].mxu1 %vm670_vm2, %v5589_v54 }
  0xbf   : > { %4300 = vmatprep.mubr.msk.bf16.mxu1 %vm670_vm2, %v5592_v17  ;;  %4333 = vmatpush3.bf16.msra.mxu1 %v1468_v31  ;;  %v3416_v31 = vld [vmem:[%s6473_s5 + $0x38] sm:$0xff] }
  0xc0   : > { %4855 = vmatprep.subr.msk.bf16.mxu1 %vm725_vm0, %v4916_v16  ;;  %3452 = vperm.xlu0 %4914, %v3410_v45   ;;  %v5669_v16 = vsel %vm1143_vm6, %v1157_v3, %v1159_v48  ;;  %v3420_v45 = vld [vmem:[%s6473_s5 + $0x58] sm:$0xff]  ;;  %v2593_v48 = vrot.slane %v5097_v51, 2  ;;  %v3423_v51 = vld [vmem:[%s6473_s5 + $0x70] sm:$0xff] }
  0xc1   : > { %4465 = vmatmul.mubr.msk.bf16.gmra.mrb[16].mxu0 %vm670_vm2, %v5450_v38  ;;  %v5621_v38 = vsel %vm1143_vm6, %v1151_v46, %v1153_v13  ;;  %v3415_v46 = vld [vmem:[%s6473_s5 + $0x30] sm:$0xff] }
  0xc2   : > { %4468 = vmatprep.mubr.msk.bf16.mxu0 %vm670_vm2, %v5472_v47  ;;  %v1155_v47 = vrot.slane %v5135_v29, 1 }
  0xc4   : > { %v5641_v52 = vsel %vm1143_vm6, %v1153_v13, %v1155_v47  ;;  %v5647_v22 = vsel %vm1143_vm6, %v1155_v47, %v1157_v3  ;;  %3467 = vperm.xlu0 %4914, %v3413_v34   ;;  %v2589_v47 = vrot.slane %v5061_v19, 2  ;;  %v2590_v3 = vrot.slane %v5058_v15, 3 }
  0xc5   : > { %v2588_v19 = vor.u32 %v2587_v59, %v2586_v7  ;;  %v6528_v34 = vrot.slane %v5454_v25, 2  ;;  %v3426_v7 = vld [vmem:[%s6473_s5 + $0x88] sm:$0xff] }
  0xc6   : > { %4301 = vmatmul.mubr.msk.bf16.gmra.mrb[4].mxu1 %vm670_vm2, %v5617_v8 }
  0xc7   : > { %4304 = vmatprep.mubr.msk.bf16.mxu1 %vm670_vm2, %v5621_v38 }
  0xc8   : > { %3477 = vperm.xlu0 %4914, %v3415_v46   ;;  %v1167_v46 = vrot.slane %v5249_v20, 1 }
  0xc9   : > { %4469 = vmatmul.mubr.msk.bf16.gmra.mrb[20].mxu0 %vm670_vm2, %v5477_v5  ;;  %v3414_v5 = vld [vmem:[%s6473_s5 + $0x28] sm:$0xff] }
  0xca   : > { %4472 = vmatprep.mubr.msk.bf16.mxu0 %vm670_vm2, %v5502_v30  ;;  %v457_v30 = vmax.f32 %v4902_v9, -128.0  ;;  %3472 = vperm.xlu1 %4915, %v3414_v5   ;;  %v2591_v9 = vor.u32 %v2590_v3, %v2589_v47  ;;  %v3425_v47 = vld [vmem:[%s6473_s5 + $0x80] sm:$0xff] }
  0xcc   : > { %v498_v13 = vmin.f32 %v457_v30, 127.0  ;;  %3487 = vperm.xlu0 %4914, %v3417_v24   ;;  %v1169_v24 = vrot.slane %v5300_v58, 1 }
  0xce   : > { %4305 = vmatmul.mubr.msk.bf16.gmra.mrb[8].mxu1 %vm670_vm2, %v5641_v52  ;;  %3482 = vperm.xlu1 %4915, %v3416_v31   ;;  %v5683_v63 = vpack.c.bf16 %v498_v13, %v498_v13  ;;  %v2592_v31 = vsel %vm2585_vm5, %v2588_v19, %v2591_v9  ;;  %v2597_v13 = vrot.slane %v5133_v28, 2  ;;  %v5738_v28 = vsel %vm1143_vm6, %v1165_v33, %v1167_v46 }
  0xcf   : > { %4308 = vmatprep.mubr.msk.bf16.mxu1 %vm670_vm2, %v5647_v22  ;;  %v5744_v59 = vsel %vm1143_vm6, %v1167_v46, %v1169_v24  ;;  %v1171_v19 = vrot.slane %v5312_v32, 1 }
  0xd0   : > { %v2359_v0 = vrot.slane %v5683_v63, 2  ;;  %3497 = vperm.xlu0 %4914, %v3419_v1   ;;  %v2602_v1 = vrot.slane %v5142_v39, 3  ;;  %v3428_v39 = vld [vmem:[%s6473_s5 + $0x98] sm:$0xff] }
  0xd1   : > { %4473 = vmatmul.mubr.msk.bf16.gmra.mrb[24].mxu0 %vm670_vm2, %v5507_v61  ;;  %v3418_v61 = vld [vmem:[%s6473_s5 + $0x48] sm:$0xff] }
  0xd2   : > { %4476 = vmatprep.mubr.msk.bf16.mxu0 %vm670_vm2, %v5521_v11  ;;  %v1163_v11 = vrot.slane %v5217_v26, 1  ;;  %3492 = vperm.xlu1 %4915, %v3418_v61   ;;  %v2360_v30 = vsel %vm2043_vm4, %v6528_v34, %v2359_v0  ;;  %v2598_v61 = vrot.slane %v5130_v27, 3 }
  0xd4   : > { %v5704_v15 = vsel %vm1143_vm6, %v1161_v50, %v1163_v11  ;;  %v5710_v5 = vsel %vm1143_vm6, %v1163_v11, %v1165_v33  ;;  %v2594_v50 = vrot.slane %v5094_v49, 3  ;;  %v3424_v49 = vld [vmem:[%s6473_s5 + $0x78] sm:$0xff]  ;;  %v2599_v27 = vor.u32 %v2598_v61, %v2597_v13  ;;  %v6530_v13 = vld [vmem:[#allocation4_spill] sm:$0xff] }
  0xd5   : > { %v3036_v33 = vsel %vm725_vm0, %v5552_v62, 0  ;;  %v2610_v61 = vrot.slane %v6530_v13, 3 }
  0xd6   : > { %4309 = vmatmul.mubr.msk.bf16.gmra.mrb[12].mxu1 %vm670_vm2, %v5669_v16  ;;  %3502 = vperm.xlu1 %4915, %v3420_v45   ;;  %v2595_v11 = vor.u32 %v2594_v50, %v2593_v48  ;;  %v2601_v45 = vrot.slane %v5145_v40, 2  ;;  %v3427_v40 = vld [vmem:[%s6473_s5 + $0x90] sm:$0xff]  ;;  %v3429_v48 = vld [vmem:[%s6473_s5 + $0xa0] sm:$0xff] }
  0xd7   : > { %4312 = vmatprep.mubr.msk.bf16.mxu1 %vm670_vm2, %v5675_v43 }
  0xd8   : > { %v2596_v3 = vsel %vm2585_vm5, %v2591_v9, %v2595_v11  ;;  %v2600_v0 = vsel %vm2585_vm5, %v2595_v11, %v2599_v27  ;;  %v1173_v9 = vrot.slane %v5339_v2, 1  ;;  %v2603_v62 = vor.u32 %v2602_v1, %v2601_v45  ;;  %v3432_v11 = vld [vmem:[%s6473_s5 + $0xb8] sm:$0xff]  ;;  %v3433_v45 = vld [vmem:[%s6473_s5 + $0xc0] sm:$0xff] }
  0xd9   : > { %4477 = vmatmul.mubr.msk.bf16.gmra.mrb[28].mxu0 %vm670_vm2, %v5528_v23  ;;  %v3422_v23 = vld [vmem:[%s6473_s5 + $0x68] sm:$0xff] }
  0xda   : > { %4480 = vmatprep.mubr.msk.bf16.mxu0 %vm670_vm2, %v5467_v12  ;;  %v3421_v12 = vld [vmem:[%s6473_s5 + $0x60] sm:$0xff]  ;;  %3512 = vperm.xlu1 %4915, %v3422_v23   ;;  %v2605_v23 = vrot.slane %v5159_v57, 2  ;;  %v5772_v57 = vsel %vm1143_vm6, %v1169_v24, %v1171_v19  ;;  %v5775_v34 = vsel %vm1143_vm6, %v1171_v19, %v1173_v9  ;;  %v2604_v50 = vsel %vm2585_vm5, %v2599_v27, %v2603_v62  ;;  %v3431_v27 = vld [vmem:[%s6473_s5 + $0xb0] sm:$0xff] }
  0xdb   : > { %3507 = vperm.xlu0 %4914, %v3421_v12   ;;  %v2606_v12 = vrot.slane %v5156_v56, 3  ;;  %v6531_v19 = vld [vmem:[#allocation17_spill] sm:$0xff] }
  0xdd   : > { %v2607_v56 = vor.u32 %v2606_v12, %v2605_v23  ;;  %v1179_v23 = vrot.slane %v6531_v19, 1  ;;  %v3436_v12 = vld [vmem:[%s6473_s5 + $0xd8] sm:$0xff] }
  0xde   : > { %4313 = vmatmul.mubr.msk.bf16.gmra.mrb[16].mxu1 %vm670_vm2, %v5704_v15  ;;  %3522 = vperm.xlu1 %4915, %v3424_v49   ;;  %v1175_v49 = vrot.slane %v5350_v35, 1  ;;  %v6539_v19 = vld [vmem:[#allocation14_spill] sm:$0xff] }
  0xdf   : > { %4316 = vmatprep.mubr.msk.bf16.mxu1 %vm670_vm2, %v5710_v5  ;;  %3517 = vperm.xlu0 %4914, %v3423_v51   ;;  %v2608_v24 = vsel %vm2585_vm5, %v2603_v62, %v2607_v56  ;;  %v5793_v51 = vrot.slane %v5383_v6, 1  ;;  %v6532_v62 = vld [vmem:[#allocation8_spill] sm:$0xff] }
  0xe1   : > { %4481 = vmatmul.mubr.msk.bf16.gmra.mrb[32].mxu0 %vm670_vm2, %v2360_v30  ;;  %v3430_v30 = vld [vmem:[%s6473_s5 + $0xa8] sm:$0xff] }
  0xe2   : > { %4486 = vmatprep.mubr.msk.bf16.mxu0 %vm670_vm2, %v2592_v31  ;;  %3532 = vperm.xlu1 %4915, %v3426_v7   ;;  %v6529_v31 = vld [vmem:[#allocation5_spill] sm:$0xff] }
  0xe3   : > { %3527 = vperm.xlu0 %4914, %v3425_v47   ;;  %v2609_v46 = vrot.slane %v6529_v31, 2  ;;  %v5804_v47 = vsel %vm1143_vm6, %v1173_v9, %v1175_v49  ;;  %v3435_v9 = vld [vmem:[%s6473_s5 + $0xd0] sm:$0xff] }
  0xe5   : > { %v2611_v7 = vor.u32 %v2610_v61, %v2609_v46  ;;  %v6535_v46 = vld [vmem:[#allocation9_spill] sm:$0xff]  ;;  %v3440_v61 = vld [vmem:[%s6473_s5 + $0xf8] sm:$0xff] }
  0xe6   : > { %4317 = vmatmul.mubr.msk.bf16.gmra.mrb[20].mxu1 %vm670_vm2, %v5738_v28  ;;  %3542 = vperm.xlu1 %4915, %v3428_v39   ;;  %v1180_v39 = vsel %vm1143_vm6, %v5793_v51, %v1179_v23  ;;  %v2630_v13 = vrot.slane %v6535_v46, 3  ;;  %v2637_v23 = vrot.slane %v6539_v19, 2 }
  0xe7   : > { %4320 = vmatprep.mubr.msk.bf16.mxu1 %vm670_vm2, %v5744_v59  ;;  %3537 = vperm.xlu0 %4914, %v3427_v40   ;;  %v2612_v1 = vsel %vm2585_vm5, %v2607_v56, %v2611_v7  ;;  %v3437_v40 = vld [vmem:[%s6473_s5 + $0xe0] sm:$0xff]  ;;  %v2625_v56 = vrot.slane %v6532_v62, 2 }
  0xe9   : > { %4487 = vmatmul.mubr.msk.bf16.vlgmr.msra.gmra.mrb[0].mxu0 %vm670_vm2, %v2596_v3  ;;  %v5808_v3 = vsel %vm1143_vm6, %v1175_v49, %v5793_v51 }
  0xea   : > { %4523 = vmatpush3.bf16.msra.mxu0 %v3036_v33  ;;  %4490 = vmatprep.mubr.msk.bf16.mxu0 %vm670_vm2, %v2600_v0  ;;  %v3434_v33 = vld [vmem:[%s6473_s5 + $0xc8] sm:$0xff]  ;;  %v2616_v0 = vsel %vm2585_vm5, %v2611_v7, %v5488_v21 }
  0xeb   : > { %3552 = vperm.xlu1 %4915, %v3430_v30   ;;  %3547 = vperm.xlu0 %4914, %v3429_v48   ;;  %v3438_v21 = vld [vmem:[%s6473_s5 + $0xe8] sm:$0xff]  ;;  %v6533_v30 = vld [vmem:[#allocation7_spill] sm:$0xff] }
  0xec   : > { %v2626_v48 = vrot.slane %v6533_v30, 3  ;;  %v6536_v7 = vld [vmem:[#allocation12_spill] sm:$0xff] }
  0xee   : > { %4321 = vmatmul.mubr.msk.bf16.gmra.mrb[24].mxu1 %vm670_vm2, %v5772_v57 }
  0xef   : > { %4324 = vmatprep.mubr.msk.bf16.mxu1 %vm670_vm2, %v5775_v34  ;;  %3562 = vperm.xlu1 %4915, %v3432_v11   ;;  %v3442_v11 = vld [vmem:[%s6473_s5 + $0x108] sm:$0xff] }
  0xf0   : > { %3557 = vperm.xlu0 %4914, %v3431_v27   ;;  %v3441_v27 = vld [vmem:[%s6473_s5 + $0x100] sm:$0xff] }
  0xf1   : > { %4491 = vmatmul.mubr.msk.bf16.gmra.mrb[4].mxu0 %vm670_vm2, %v2604_v50  ;;  %v6534_v50 = vld [vmem:[#allocation10_spill] sm:$0xff] }
  0xf2   : > { %4494 = vmatprep.mubr.msk.bf16.mxu0 %vm670_vm2, %v2608_v24  ;;  %v2629_v31 = vrot.slane %v6534_v50, 2  ;;  %v3439_v24 = vld [vmem:[%s6473_s5 + $0xf0] sm:$0xff] }
  0xf3   : > { %3572 = vperm.xlu1 %4915, %v3434_v33   ;;  %v6537_v33 = vld [vmem:[#allocation11_spill] sm:$0xff] }
  0xf4   : > { %3567 = vperm.xlu0 %4914, %v3433_v45   ;;  %v2631_v49 = vor.u32 %v2630_v13, %v2629_v31  ;;  %v2634_v45 = vrot.slane %v6537_v33, 3 }
  0xf6   : > { %4325 = vmatmul.mubr.msk.bf16.gmra.mrb[28].mxu1 %vm670_vm2, %v5804_v47 }
  0xf7   : > { %4328 = vmatprep.mubr.msk.bf16.mxu1 %vm670_vm2, %v5808_v3  ;;  %3582 = vperm.xlu1 %4915, %v3436_v12   ;;  %v6540_v12 = vld [vmem:[#allocation13_spill] sm:$0xff] }
  0xf8   : > { %3577 = vperm.xlu0 %4914, %v3435_v9   ;;  %v2638_v9 = vrot.slane %v6540_v12, 3 }
  0xf9   : > { %4495 = vmatmul.mubr.msk.bf16.gmra.mrb[8].mxu0 %vm670_vm2, %v2612_v1 }
  0xfa   : > { %4498 = vmatprep.mubr.msk.bf16.mxu0 %vm670_vm2, %v2616_v0  ;;  %v6538_v0 = vld [vmem:[#allocation3_spill] sm:$0xff] }
  0xfb   : > { %3592 = vperm.xlu1 %4915, %v3438_v21  }
  0xfc   : > { %3587 = vperm.xlu0 %4914, %v3437_v40   ;;  %v6541_v40 = vld [vmem:[#allocation16_spill] sm:$0xff] }
  0xfe   : > { %4329 = vmatmul.mubr.msk.bf16.gmra.mrb[32].mxu1 %vm670_vm2, %v1180_v39  ;;  %v2639_v39 = vor.u32 %v2638_v9, %v2637_v23 }
  0xff   : > { %4334 = vmatprep.mubr.msk.bf16.mxu1 %vm670_vm2, %v5589_v54  ;;  %v2627_v54 = vor.u32 %v2626_v48, %v2625_v56  ;;  %3602 = vperm.xlu1 %4915, %v3440_v61   ;;  %v2641_v56 = vrot.slane %v6541_v40, 2  ;;  %v6542_v48 = vld [vmem:[#allocation15_spill] sm:$0xff] }
 0x100   : > { %3597 = vperm.xlu0 %4914, %v3439_v24   ;;  %v2642_v31 = vrot.slane %v6542_v48, 3  ;;  %v6543_v61 = vld [vmem:[#allocation19_spill] sm:$0xff] }
 0x101   : > { %4499 = vmatmul.mubr.msk.bf16.gmra.mrb[12].mxu0 %vm670_vm2, %v5495_v37  ;;  %v2628_v37 = vsel %vm2585_vm5, %v5497_v36, %v2627_v54  ;;  %v2632_v1 = vsel %vm2585_vm5, %v2627_v54, %v2631_v49  ;;  %v3444_v36 = vld [vmem:[%s6473_s5 + $0x118] sm:$0xff]  ;;  %v2645_v24 = vrot.slane %v6543_v61, 2 }
 0x102   : > { %4502 = vmatprep.mubr.msk.bf16.mxu0 %vm670_vm2, %v5511_v60  ;;  %v2633_v60 = vrot.slane %v6536_v7, 2  ;;  %v6544_v54 = vld [vmem:[#allocation18_spill] sm:$0xff] }
 0x103   : > { %3612 = vperm.xlu1 %4915, %v3442_v11   ;;  %v2646_v11 = vrot.slane %v6544_v54, 3 }
 0x104   : > { %3607 = vperm.xlu0 %4914, %v3441_v27   ;;  %v6545_v27 = vld [vmem:[#allocation20_spill] sm:$0xff] }
 0x106   : > { %4335 = vmatmul.mubr.msk.bf16.vlgmr.msra.gmra.mrb[0].mxu1 %vm670_vm2, %v5592_v17  ;;  %v3443_v17 = vld [vmem:[%s6473_s5 + $0x110] sm:$0xff] }
 0x107   : > { %4338 = vmatprep.mubr.msk.bf16.mxu1 %vm670_vm2, %v5617_v8  ;;  %4561 = vmatpush3.bf16.msra.mxu1 %v6538_v0  ;;  %v2635_v8 = vor.u32 %v2634_v45, %v2633_v60  ;;  %v2647_v60 = vor.u32 %v2646_v11, %v2645_v24  ;;  %v2654_v45 = vshrl.u32 %v5454_v25, 16  ;;  %v2944_v11 = vrot.slane %v5039_v55, 3 }
 0x108   : > { %3622 = vperm.xlu1 %4915, %v3444_v36   ;;  %3617 = vperm.xlu0 %4914, %v3443_v17   ;;  %v2949_v55 = vrot.slane %v5121_v14, 3 }
 0x109   : > { %4503 = vmatmul.mubr.msk.bf16.gmra.mrb[16].mxu0 %vm670_vm2, %v2628_v37  ;;  %v2636_v21 = vsel %vm2585_vm5, %v2631_v49, %v2635_v8  ;;  %v2640_v13 = vsel %vm2585_vm5, %v2635_v8, %v2639_v39  ;;  %v1754_v49 = vshrl.u32 %v6545_v27, 16  ;;  %v1757_v37 = vshll.u32 %v6545_v27, 16 }
 0x10a   : > { %4506 = vmatprep.mubr.msk.bf16.mxu0 %vm670_vm2, %v2632_v1  ;;  %v2656_v36 = vrot.slane %v2654_v45, 2  ;;  %v2663_v8 = vshrl.u32 %v5683_v63, 16  ;;  %v1729_v45 = vrot.slane %v6532_v62, 1  ;;  %v2961_v62 = vrot.slane %v5228_v44, 3 }
 0x10b   : > { %v2649_v0 = vrot.slane %v1754_v49, 2  ;;  %v2650_v23 = vrot.slane %v1757_v37, 3 }
 0x10e   : > { %4339 = vmatmul.mubr.msk.bf16.gmra.mrb[4].mxu1 %vm670_vm2, %v5621_v38  ;;  %v2643_v38 = vor.u32 %v2642_v31, %v2641_v56 }
 0x10f   : > { %4342 = vmatprep.mubr.msk.bf16.mxu1 %vm670_vm2, %v5641_v52  ;;  %v2657_v52 = vshll.u32 %v5454_v25, 16 }
 0x110   : > { %v2644_v1 = vsel %vm2585_vm5, %v2639_v39, %v2643_v38  ;;  %v2648_v9 = vsel %vm2585_vm5, %v2643_v38, %v2647_v60  ;;  %v2666_v39 = vshll.u32 %v5683_v63, 16  ;;  %v2945_v38 = vrot.slane %v5052_v4, 3 }
 0x111   : > { %4507 = vmatmul.mubr.msk.bf16.gmra.mrb[20].mxu0 %vm670_vm2, %v2636_v21  ;;  %v2659_v17 = vrot.slane %v2657_v52, 3  ;;  %v1730_v52 = vrot.slane %v6533_v30, 2  ;;  %v1734_v30 = vrot.slane %v6535_v46, 2 }
 0x112   : > { %4510 = vmatprep.mubr.msk.bf16.mxu0 %vm670_vm2, %v2640_v13  ;;  %v2668_v31 = vrot.slane %v2666_v39, 3  ;;  %v1742_v39 = vrot.slane %v6540_v12, 2 }
 0x113   : > { %v2660_v21 = vor.u32 %v2659_v17, %v2656_v36  ;;  %v1737_v36 = vrot.slane %v6536_v7, 1  ;;  %v1738_v17 = vrot.slane %v6537_v33, 2  ;;  %v2965_v7 = vrot.slane %v5300_v58, 3 }
 0x114   : > { %v1741_v33 = vrot.slane %v6539_v19, 1  ;;  %v2967_v19 = vrot.slane %v5312_v32, 3 }
 0x116   : > { %4343 = vmatmul.mubr.msk.bf16.gmra.mrb[8].mxu1 %vm670_vm2, %v5647_v22  ;;  %v2651_v22 = vor.u32 %v2650_v23, %v2649_v0  ;;  %v1731_v0 = vor.u32 %v1730_v52, %v1729_v45  ;;  %v6546_v23 = vld [vmem:[#allocation6_spill] sm:$0xff]  ;;  %v2968_v32 = vsel %vm2943_vm7, %v2965_v7, %v2967_v19 }
 0x117   : > { %4346 = vmatprep.mubr.msk.bf16.mxu1 %vm670_vm2, %v5669_v16  ;;  %v2665_v16 = vrot.slane %v2663_v8, 2  ;;  %v1739_v8 = vor.u32 %v1738_v17, %v1737_v36 }
 0x118   : > { %v2652_v56 = vsel %vm2585_vm5, %v2647_v60, %v2651_v22  ;;  %v2661_v13 = vsel %vm2585_vm5, %v2651_v22, %v2660_v21  ;;  %v2947_v60 = vrot.slane %v5085_v41, 3  ;;  %v2953_v41 = vrot.slane %v5147_v42, 3 }
 0x119   : > { %4511 = vmatmul.mubr.msk.bf16.gmra.mrb[24].mxu0 %vm670_vm2, %v2644_v1  ;;  %v2669_v24 = vor.u32 %v2668_v31, %v2665_v16  ;;  %v2957_v42 = vrot.slane %v5196_v53, 3  ;;  %v2959_v53 = vrot.slane %v5217_v26, 3  ;;  %v1746_v16 = vrot.slane %v6542_v48, 2 }
 0x11a   : > { %4514 = vmatprep.mubr.msk.bf16.mxu0 %vm670_vm2, %v2648_v9  ;;  %v2948_v4 = vsel %vm2943_vm7, %v2945_v38, %v2947_v60  ;;  %v1732_v9 = vsel %vm1685_vm3, %v6546_v23, %v1731_v0  ;;  %v1749_v48 = vrot.slane %v6543_v61, 1  ;;  %v1763_v61 = vshrl.u32 %v5523_v18, 16 }
 0x11b   : > { %v2960_v22 = vsel %vm2943_vm7, %v2957_v42, %v2959_v53  ;;  %v2962_v26 = vsel %vm2943_vm7, %v2959_v53, %v2961_v62 }
 0x11e   : > { %4347 = vmatmul.mubr.msk.bf16.gmra.mrb[12].mxu1 %vm670_vm2, %v5675_v43  ;;  %v2670_v43 = vsel %vm2585_vm5, %v2660_v21, %v2669_v24  ;;  %v1750_v24 = vrot.slane %v6544_v54, 2  ;;  %v1766_v54 = vshll.u32 %v5523_v18, 16 }
 0x11f   : > { %4350 = vmatprep.mubr.msk.bf16.mxu1 %vm670_vm2, %v5704_v15  ;;  %v2946_v15 = vsel %vm2943_vm7, %v2944_v11, %v2945_v38  ;;  %v1756_v38 = vrot.slane %v1754_v49, 1  ;;  %v2971_v49 = vrot.slane %v5350_v35, 3  ;;  %v2975_v35 = vrot.slane %v6545_v27, 3 }
 0x121   : > { %4515 = vmatmul.mubr.msk.bf16.gmra.mrb[28].mxu0 %vm670_vm2, %v2652_v56  ;;  %v1745_v56 = vrot.slane %v6541_v40, 1  ;;  %v2969_v40 = vrot.slane %v5339_v2, 3 }
 0x122   : > { %4518 = vmatprep.mubr.msk.bf16.mxu0 %vm670_vm2, %v2661_v13  ;;  %v1743_v13 = vor.u32 %v1742_v39, %v1741_v33 }
 0x123   : > { %v1747_v58 = vor.u32 %v1746_v16, %v1745_v56  ;;  %v2970_v2 = vsel %vm2943_vm7, %v2967_v19, %v2969_v40 }
 0x124   : > { %v1744_v12 = vsel %vm1685_vm3, %v1739_v8, %v1743_v13 }
 0x125   : > { %v1748_v11 = vsel %vm1685_vm3, %v1743_v13, %v1747_v58  ;;  %v6081_v13 = vld [vmem:[%s6471_s3] ss:$0 sm:$0xff] }
 0x126   : > { %4351 = vmatmul.mubr.msk.bf16.gmra.mrb[16].mxu1 %vm670_vm2, %v5710_v5  ;;  %v2950_v5 = vsel %vm2943_vm7, %v2947_v60, %v2949_v55 }
 0x127   : > { %4354 = vmatprep.mubr.msk.bf16.mxu1 %vm670_vm2, %v5738_v28  ;;  %v2951_v28 = vrot.slane %v5135_v29, 3  ;;  %v2955_v29 = vrot.slane %v5170_v10, 3  ;;  %v1459_v10 = vrot.slane %v5523_v18, 1 }
 0x129   : > { %4519 = vmatmul.mubr.msk.bf16.gmra.mrb[32].mxu0 %vm670_vm2, %v2670_v43  ;;  %v2952_v14 = vsel %vm2943_vm7, %v2949_v55, %v2951_v28  ;;  %v2958_v1 = vsel %vm2943_vm7, %v2955_v29, %v2957_v42  ;;  %v1759_v43 = vrot.slane %v1757_v37, 2  ;;  %v2973_v55 = vrot.slane %v5383_v6, 3 }
 0x12a   : > { %4524 = vmatprep.mubr.msk.bf16.mxu0 %vm670_vm2, %v2946_v15  ;;  %v1751_v15 = vor.u32 %v1750_v24, %v1749_v48  ;;  %v2979_v42 = vrot.slane %v5683_v63, 3 }
 0x12b   : > { %v1760_v60 = vor.u32 %v1759_v43, %v1756_v38  ;;  %v2974_v18 = vsel %vm2943_vm7, %v2971_v49, %v2973_v55 }
 0x12c   : > { %v1752_v37 = vsel %vm1685_vm3, %v1747_v58, %v1751_v15 }
 0x12e   : > { %4355 = vmatmul.mubr.msk.bf16.gmra.mrb[20].mxu1 %vm670_vm2, %v5744_v59  ;;  %v2954_v59 = vsel %vm2943_vm7, %v2951_v28, %v2953_v41  ;;  %v1761_v28 = vsel %vm1685_vm3, %v1751_v15, %v1760_v60 }
 0x12f   : > { %4358 = vmatprep.mubr.msk.bf16.mxu1 %vm670_vm2, %v5772_v57  ;;  %v1457_v57 = vrot.slane %v6545_v27, 1 }
 0x131   : > { %4525 = vmatmul.mubr.msk.bf16.vlgmr.msra.gmra.mrb[0].mxu0 %vm670_vm2, %v2948_v4  ;;  %v1765_v4 = vrot.slane %v1763_v61, 1 }
 0x132   : > { %4528 = vmatprep.mubr.msk.bf16.mxu0 %vm670_vm2, %v2950_v5  ;;  %v1768_v5 = vrot.slane %v1766_v54, 2 }
 0x136   : > { %4359 = vmatmul.mubr.msk.bf16.gmra.mrb[24].mxu1 %vm670_vm2, %v5775_v34  ;;  %v1458_v34 = vsel %vm1143_vm6, %v5793_v51, %v1457_v57  ;;  %v1460_v51 = vsel %vm1143_vm6, %v1457_v57, %v1459_v10  ;;  %v2976_v57 = vsel %vm2943_vm7, %v2973_v55, %v2975_v35 }
 0x137   : > { %4362 = vmatprep.mubr.msk.bf16.mxu1 %vm670_vm2, %v5804_v47  ;;  %v2956_v47 = vsel %vm2943_vm7, %v2953_v41, %v2955_v29  ;;  %v2972_v41 = vsel %vm2943_vm7, %v2969_v40, %v2971_v49  ;;  %v6089_v40 = vld [vmem:[%s6472_s4] ss:$0 sm:$0xff] }
 0x139   : > { %4529 = vmatmul.mubr.msk.bf16.gmra.mrb[4].mxu0 %vm670_vm2, %v2952_v14  ;;  %v1769_v14 = vor.u32 %v1768_v5, %v1765_v4 }
 0x13a   : > { %4532 = vmatprep.mubr.msk.bf16.mxu0 %vm670_vm2, %v2954_v59  ;;  %v2977_v59 = vrot.slane %v5454_v25, 3  ;;  %v3448_v53 = vpop.permute.xlu0 %3447 }
 0x13b   : > { %v1770_v6 = vsel %vm1685_vm3, %v1760_v60, %v1769_v14 }
 0x13c   : > { %v2978_v29 = vsel %vm2943_vm7, %v2975_v35, %v2977_v59 }
 0x13e   : > { %4363 = vmatmul.mubr.msk.bf16.gmra.mrb[28].mxu1 %vm670_vm2, %v5808_v3  ;;  %v1733_v3 = vrot.slane %v6534_v50, 1  ;;  %v2963_v50 = vrot.slane %v5249_v20, 3 }
 0x13f   : > { %4366 = vmatprep.mubr.msk.bf16.mxu1 %vm670_vm2, %v1458_v34  ;;  %v2980_v34 = vsel %vm2943_vm7, %v2977_v59, %v2979_v42  ;;  %v6042_v63 = vpop.permute.xlu0 %3452 }
 0x140   : > { %v1735_v44 = vor.u32 %v1734_v30, %v1733_v3  ;;  %v2964_v31 = vsel %vm2943_vm7, %v2961_v62, %v2963_v50  ;;  %v2966_v20 = vsel %vm2943_vm7, %v2963_v50, %v2965_v7 }
 0x141   : > { %4533 = vmatmul.mubr.msk.bf16.gmra.mrb[8].mxu0 %vm670_vm2, %v2956_v47 }
 0x142   : > { %4536 = vmatprep.mubr.msk.bf16.mxu0 %vm670_vm2, %v2958_v1  ;;  %v1736_v46 = vsel %vm1685_vm3, %v1731_v0, %v1735_v44  ;;  %v1740_v21 = vsel %vm1685_vm3, %v1735_v44, %v1739_v8 }
 0x143   : > { %v6048_v36 = vpop.permute.xlu0 %3467 }
 0x146   : > { %4367 = vmatmul.mubr.msk.bf16.gmra.mrb[32].mxu1 %vm670_vm2, %v1460_v51  ;;  %v3458_v51 = vpop.permute.xlu1 %3457 }
 0x147   : > { %4392 = vmatprep.mubr.msk.bf16.mxu1 %vm670_vm2, %v1732_v9  ;;  %v6060_v50 = vpop.permute.xlu0 %3477 }
 0x149   : > { %4537 = vmatmul.mubr.msk.bf16.gmra.mrb[12].mxu0 %vm670_vm2, %v2960_v22 }
 0x14a   : > { %4540 = vmatprep.mubr.msk.bf16.mxu0 %vm670_vm2, %v2962_v26  ;;  %v3463_v9 = vpop.permute.xlu1 %3462 }
 0x14b   : > { %v6072_v56 = vpop.permute.xlu0 %3487 }
 0x14e   : > { %4393 = vmatmul.mubr.msk.bf16.vlgmr.msra.gmra.mrb[20].mxu1 %vm670_vm2, %v1736_v46  ;;  %v6054_v26 = vpop.permute.xlu1 %3472 }
 0x14f   : > { %4396 = vmatprep.mubr.msk.bf16.mxu1 %vm670_vm2, %v1740_v21 }
 0x151   : > { %4541 = vmatmul.mubr.msk.bf16.gmra.mrb[16].mxu0 %vm670_vm2, %v2964_v31  ;;  %v6076_v31 = vpop.permute.xlu0 %3497 }
 0x152   : > { %4544 = vmatprep.mubr.msk.bf16.mxu0 %vm670_vm2, %v2966_v20  ;;  %v6062_v46 = vpop.permute.xlu1 %3482 }
 0x156   : > { %4397 = vmatmul.mubr.msk.bf16.gmra.mrb[24].mxu1 %vm670_vm2, %v1744_v12  ;;  %v6074_v16 = vpop.permute.xlu1 %3492 }
 0x157   : > { %4400 = vmatprep.mubr.msk.bf16.mxu1 %vm670_vm2, %v1748_v11 }
 0x159   : > { %4545 = vmatmul.mubr.msk.bf16.gmra.mrb[20].mxu0 %vm670_vm2, %v2968_v32 }
 0x15a   : > { %4548 = vmatprep.mubr.msk.bf16.mxu0 %vm670_vm2, %v2970_v2  ;;  %v6083_v58 = vpop.permute.xlu1 %3502  ;;  %v6093_v15 = vpop.permute.xlu0 %3507 }
 0x15e   : > { %4401 = vmatmul.mubr.msk.bf16.gmra.mrb[28].mxu1 %vm670_vm2, %v1752_v37  ;;  %v6104_v37 = vpop.permute.xlu1 %3512 }
 0x15f   : > { %4404 = vmatprep.mubr.msk.bf16.mxu1 %vm670_vm2, %v1761_v28 }
 0x161   : > { %4549 = vmatmul.mubr.msk.bf16.gmra.mrb[24].mxu0 %vm670_vm2, %v2972_v41 }
 0x162   : > { %4552 = vmatprep.mubr.msk.bf16.mxu0 %vm670_vm2, %v2974_v18 }
 0x166   : > { %4405 = vmatmul.mubr.msk.bf16.gmra.mrb[32].mxu1 %vm670_vm2, %v1770_v6 }
 0x169   : > { %4553 = vmatmul.mubr.msk.bf16.gmra.mrb[28].mxu0 %vm670_vm2, %v2976_v57 }
 0x16a   : > { %4556 = vmatprep.mubr.msk.bf16.mxu0 %vm670_vm2, %v2978_v29 }
 0x171   : > { %4557 = vmatmul.mubr.msk.bf16.gmra.mrb[32].mxu0 %vm670_vm2, %v2980_v34  ;;  %v6112_v34 = vpop.permute.xlu0 %3517 }
 0x1d9   : > { %v4336_v27 = vpop.f32.mrb[0].mxu1 }
 0x1da   : > { %v1504_v45 = vpop.f32.mrb[1].mxu1 }
 0x1db   : > { %v4337_v52 = vpop.f32.mrb[2].mxu1 }
 0x1dc   : > { %v1507_v25 = vpop.f32.mrb[3].mxu1 }
 0x1e1   : > { %v4340_v47 = vpop.f32.mrb[4].mxu1 }
 0x1e2   : > { %v1520_v1 = vpop.f32.mrb[5].mxu1 }
 0x1e3   : > { %v6034_v10 = vpop.f32.mrb[6].mxu1 }
 0x1e4   : > { %v6036_v0 = vpop.f32.mrb[7].mxu1 }
 0x1e9   : > { %v6038_v62 = vpop.f32.mrb[8].mxu1 }
 0x1ea   : > { %v6040_v3 = vpop.f32.mrb[9].mxu1 }
 0x1eb   : > { %v6044_v30 = vpop.f32.mrb[10].mxu1 }
 0x1ec   : > { %v6046_v23 = vpop.f32.mrb[11].mxu1 }
 0x1f1   : > { %v6050_v17 = vpop.f32.mrb[12].mxu1 }
 0x1f2   : > { %v6052_v22 = vpop.f32.mrb[13].mxu1 }
 0x1f3   : > { %v6056_v44 = vpop.f32.mrb[14].mxu1 }
 0x1f4   : > { %v6058_v8 = vpop.f32.mrb[15].mxu1 }
 0x1f9   : > { %v6064_v7 = vpop.f32.mrb[16].mxu1 }
 0x1fa   : > { %v6066_v33 = vpop.f32.mrb[17].mxu1 }
 0x1fb   : > { %v6068_v39 = vpop.f32.mrb[18].mxu1 }
 0x1fc   : > { %v6070_v21 = vpop.f32.mrb[19].mxu1 }
 0x204   : > { %v4526_v20 = vpop.f32.mrb[0].mxu0 }
 0x205   : > { %v4562_v19 = vadd.f32 %v4526_v20, %v4336_v27  ;;  %v3072_v12 = vpop.f32.mrb[1].mxu0 }
 0x206   : > { %v4563_v48 = vadd.f32 %v3072_v12, %v1504_v45  ;;  %v4527_v24 = vpop.f32.mrb[2].mxu0 }
 0x207   : > { %v3260_v11 = vmul.f32 %v4562_v19, %v6081_v13  ;;  %v4564_v38 = vadd.f32 %v4527_v24, %v4337_v52  ;;  %v3075_v43 = vpop.f32.mrb[3].mxu0  ;;  %v6123_v19 = vpop.permute.xlu1 %3522 }
 0x208   : > { %v3258_v32 = vmul.f32 %v4563_v48, %v6081_v13  ;;  %v4565_v2 = vadd.f32 %v3075_v43, %v1507_v25 }
 0x209   : > { %v3303_v61 = vadd.f32 %v6089_v40, %v3260_v11  ;;  %v3261_v54 = vmul.f32 %v4564_v38, %v6081_v13 }
 0x20a   : > { %v3301_v60 = vadd.f32 %v6089_v40, %v3258_v32  ;;  %v3259_v49 = vmul.f32 %v4565_v2, %v6081_v13 }
 0x20b   : > { %v3339_v55 = vmax.f32 %v3303_v61, 0.0  ;;  %v3304_v4 = vadd.f32 %v6089_v40, %v3261_v54  ;;  %v6137_v54 = vpop.permute.xlu0 %3527 }
 0x20c   : > { %v3337_v5 = vmax.f32 %v3301_v60, 0.0  ;;  %v3302_v28 = vadd.f32 %v6089_v40, %v3259_v49  ;;  %v4530_v41 = vpop.f32.mrb[4].mxu0 }
 0x20d   : > { %3375 = vst.msk [vmem:[%s6100_s20 + $0x10] sm:$0xff] %vm670_vm2, %v3339_v55  ;;  %v3627_v18 = vmul.f32 %v3458_v51, %v3339_v55  ;;  %v3340_v14 = vmax.f32 %v3304_v4, 0.0  ;;  %v4566_v35 = vadd.f32 %v4530_v41, %v4340_v47  ;;  %v3088_v6 = vpop.f32.mrb[5].mxu0 }
 0x20e   : > { %3373 = vst.msk [vmem:[%s6100_s20] sm:$0xff] %vm670_vm2, %v3337_v5  ;;  %v3625_v59 = vmul.f32 %v3448_v53, %v3337_v5  ;;  %v3338_v57 = vmax.f32 %v3302_v28, 0.0  ;;  %v4567_v29 = vadd.f32 %v3088_v6, %v1520_v1  ;;  %v4531_v42 = vpop.f32.mrb[6].mxu0  ;;  %v6153_v6 = vpop.permute.xlu1 %3532 }
 0x20f   : > { %v3663_v27 = vand.u32 2147483647, %v3627_v18  ;;  %3376 = vst.msk [vmem:[%s6100_s20 + $0x18] sm:$0xff] %vm670_vm2, %v3340_v14  ;;  %v3628_v45 = vmul.f32 %v3463_v9, %v3340_v14  ;;  %v3264_v52 = vmul.f32 %v4566_v35, %v6081_v13  ;;  %v4568_v25 = vadd.f32 %v4531_v42, %v6034_v10  ;;  %v3091_v51 = vpop.f32.mrb[7].mxu0 }
 0x210   : > { %v3661_v20 = vand.u32 2147483647, %v3625_v59  ;;  %3374 = vst.msk [vmem:[%s6100_s20 + $0x8] sm:$0xff] %vm670_vm2, %v3338_v57  ;;  %v3626_v47 = vmul.f32 %v6042_v63, %v3338_v57  ;;  %v3262_v53 = vmul.f32 %v4567_v29, %v6081_v13  ;;  %v4569_v1 = vadd.f32 %v3091_v51, %v6036_v0 }
 0x211   : > { %v3664_v12 = vand.u32 2147483647, %v3628_v45  ;;  %v3307_v9 = vadd.f32 %v6089_v40, %v3264_v52  ;;  %v3265_v48 = vmul.f32 %v4568_v25, %v6081_v13  ;;  %v6131_v43 = vsel %vm670_vm2, %v3663_v27, -inf }
 0x212   : > { %v3662_v24 = vand.u32 2147483647, %v3626_v47  ;;  %v3305_v10 = vadd.f32 %v6089_v40, %v3262_v53  ;;  %v3263_v11 = vmul.f32 %v4569_v1, %v6081_v13  ;;  %v6134_v0 = vsel %vm670_vm2, %v3661_v20, -inf }
 0x213   : > { %v3343_v38 = vmax.f32 %v3307_v9, 0.0  ;;  %v3308_v63 = vadd.f32 %v6089_v40, %v3265_v48  ;;  %v6140_v60 = vsel %vm670_vm2, %v3664_v12, -inf }
 0x214   : > { %v3341_v32 = vmax.f32 %v3305_v10, 0.0  ;;  %v3306_v2 = vadd.f32 %v6089_v40, %v3263_v11  ;;  %v4534_v61 = vpop.f32.mrb[8].mxu0  ;;  %v6147_v28 = vsel %vm670_vm2, %v3662_v24, -inf }
 0x215   : > { %3379 = vst.msk [vmem:[%s6100_s20 + $0x30] sm:$0xff] %vm670_vm2, %v3343_v38  ;;  %v3631_v49 = vmul.f32 %v6060_v50, %v3343_v38  ;;  %v3344_v55 = vmax.f32 %v3308_v63, 0.0  ;;  %v4570_v4 = vadd.f32 %v4534_v61, %v6038_v62  ;;  %v3104_v5 = vpop.f32.mrb[9].mxu0  ;;  %v6181_v38 = vpop.permute.xlu1 %3542 }
 0x216   : > { %3377 = vst.msk [vmem:[%s6100_s20 + $0x20] sm:$0xff] %vm670_vm2, %v3341_v32  ;;  %v3629_v41 = vmul.f32 %v6048_v36, %v3341_v32  ;;  %v3342_v18 = vmax.f32 %v3306_v2, 0.0  ;;  %v4571_v14 = vadd.f32 %v3104_v5, %v6040_v3  ;;  %v4535_v35 = vpop.f32.mrb[10].mxu0 }
 0x217   : > { %v3667_v59 = vand.u32 2147483647, %v3631_v49  ;;  %3380 = vst.msk [vmem:[%s6100_s20 + $0x38] sm:$0xff] %vm670_vm2, %v3344_v55  ;;  %v3632_v62 = vmul.f32 %v6062_v46, %v3344_v55  ;;  %v3268_v50 = vmul.f32 %v4570_v4, %v6081_v13  ;;  %v4572_v57 = vadd.f32 %v4535_v35, %v6044_v30  ;;  %v3107_v29 = vpop.f32.mrb[11].mxu0 }
 0x218   : > { %v3665_v42 = vand.u32 2147483647, %v3629_v41  ;;  %3378 = vst.msk [vmem:[%s6100_s20 + $0x28] sm:$0xff] %vm670_vm2, %v3342_v18  ;;  %v3630_v36 = vmul.f32 %v6054_v26, %v3342_v18  ;;  %v3266_v3 = vmul.f32 %v4571_v14, %v6081_v13  ;;  %v4573_v27 = vadd.f32 %v3107_v29, %v6046_v23  ;;  %v6171_v26 = vpop.permute.xlu0 %3537 }
 0x219   : > { %v3705_v45 = vsel %vm670_vm2, %v3667_v59, -inf  ;;  %v3668_v52 = vand.u32 2147483647, %v3632_v62  ;;  %v3311_v25 = vadd.f32 %v6089_v40, %v3268_v50  ;;  %v3269_v46 = vmul.f32 %v4572_v57, %v6081_v13 }
 0x21a   : > { %v3706_v51 = vmax.f32 %v6131_v43, %v3705_v45  ;;  %v3701_v30 = vsel %vm670_vm2, %v3665_v42, -inf  ;;  %v3666_v20 = vand.u32 2147483647, %v3630_v36  ;;  %v3309_v47 = vadd.f32 %v6089_v40, %v3266_v3  ;;  %v6217_v36 = vpop.permute.xlu1 %3552 }
 0x21b   : > { %v3702_v53 = vmax.f32 %v6134_v0, %v3701_v30  ;;  %v3707_v23 = vsel %vm670_vm2, %v3668_v52, -inf  ;;  %v3347_v1 = vmax.f32 %v3311_v25, 0.0  ;;  %v3312_v12 = vadd.f32 %v6089_v40, %v3269_v46 }
 0x21c   : > { %v3708_v9 = vmax.f32 %v6140_v60, %v3707_v23  ;;  %v6178_v48 = vsel %vm670_vm2, %v3666_v20, -inf  ;;  %v3345_v24 = vmax.f32 %v3309_v47, 0.0  ;;  %v3267_v10 = vmul.f32 %v4573_v27, %v6081_v13  ;;  %v4538_v11 = vpop.f32.mrb[12].mxu0  ;;  %v6201_v35 = vpop.permute.xlu0 %3547 }
 0x21d   : > { %v3704_v63 = vmax.f32 %v6147_v28, %v6178_v48  ;;  %3383 = vst.msk [vmem:[%s6100_s20 + $0x50] sm:$0xff] %vm670_vm2, %v3347_v1  ;;  %v3635_v43 = vmul.f32 %v6076_v31, %v3347_v1  ;;  %v3348_v0 = vmax.f32 %v3312_v12, 0.0  ;;  %v4574_v32 = vadd.f32 %v4538_v11, %v6050_v17  ;;  %v3120_v2 = vpop.f32.mrb[13].mxu0 }
 0x21e   : > { %3381 = vst.msk [vmem:[%s6100_s20 + $0x40] sm:$0xff] %vm670_vm2, %v3345_v24  ;;  %v3633_v61 = vmul.f32 %v6072_v56, %v3345_v24  ;;  %v3310_v60 = vadd.f32 %v6089_v40, %v3267_v10  ;;  %v4575_v49 = vadd.f32 %v3120_v2, %v6052_v22  ;;  %v4539_v55 = vpop.f32.mrb[14].mxu0 }
 0x21f   : > { %v3671_v4 = vand.u32 2147483647, %v3635_v43  ;;  %3384 = vst.msk [vmem:[%s6100_s20 + $0x58] sm:$0xff] %vm670_vm2, %v3348_v0  ;;  %v3636_v5 = vmul.f32 %v6083_v58, %v3348_v0  ;;  %v3272_v31 = vmul.f32 %v4574_v32, %v6081_v13  ;;  %v4576_v17 = vadd.f32 %v4539_v55, %v6056_v44  ;;  %v3123_v28 = vpop.f32.mrb[15].mxu0 }
 0x220   : > { %v3669_v41 = vand.u32 2147483647, %v3633_v61  ;;  %v3346_v18 = vmax.f32 %v3310_v60, 0.0  ;;  %v3270_v56 = vmul.f32 %v4575_v49, %v6081_v13  ;;  %v4577_v14 = vadd.f32 %v3123_v28, %v6058_v8  ;;  %v6240_v43 = vpop.permute.xlu0 %3557  ;;  %v6250_v49 = vpop.permute.xlu1 %3562 }
 0x221   : > { %v3713_v22 = vsel %vm670_vm2, %v3671_v4, -inf  ;;  %v3672_v59 = vand.u32 2147483647, %v3636_v5  ;;  %v3315_v62 = vadd.f32 %v6089_v40, %v3272_v31  ;;  %v3273_v58 = vmul.f32 %v4576_v17, %v6081_v13  ;;  %v6206_v50 = vpop.f32.mrb[20].mxu1 }
 0x222   : > { %v6208_v57 = vmax.f32 %v3706_v51, %v3713_v22  ;;  %v3709_v44 = vsel %vm670_vm2, %v3669_v41, -inf  ;;  %3382 = vst.msk [vmem:[%s6100_s20 + $0x48] sm:$0xff] %vm670_vm2, %v3346_v18  ;;  %v3634_v8 = vmul.f32 %v6074_v16, %v3346_v18  ;;  %v3313_v29 = vadd.f32 %v6089_v40, %v3270_v56  ;;  %v6215_v42 = vpop.f32.mrb[21].mxu1 }
 0x223   : > { %v6219_v3 = vmax.f32 %v3702_v53, %v3709_v44  ;;  %v3715_v27 = vsel %vm670_vm2, %v3672_v59, -inf  ;;  %v3351_v45 = vmax.f32 %v3315_v62, 0.0  ;;  %v3316_v52 = vadd.f32 %v6089_v40, %v3273_v58  ;;  %v6223_v25 = vpop.f32.mrb[22].mxu1 }
 0x224   : > { %v6225_v46 = vmax.f32 %v3708_v9, %v3715_v27  ;;  %v3670_v51 = vand.u32 2147483647, %v3634_v8  ;;  %v3349_v16 = vmax.f32 %v3313_v29, 0.0  ;;  %v3271_v30 = vmul.f32 %v4577_v14, %v6081_v13  ;;  %v4542_v20 = vpop.f32.mrb[16].mxu0  ;;  %v6228_v47 = vpop.f32.mrb[23].mxu1 }
 0x225   : > { %3387 = vst.msk [vmem:[%s6100_s20 + $0x70] sm:$0xff] %vm670_vm2, %v3351_v45  ;;  %v3639_v53 = vmul.f32 %v6112_v34, %v3351_v45  ;;  %v3352_v23 = vmax.f32 %v3316_v52, 0.0  ;;  %v4578_v1 = vadd.f32 %v4542_v20, %v6064_v7  ;;  %v3136_v12 = vpop.f32.mrb[17].mxu0  ;;  %v6277_v8 = vpop.permute.xlu0 %3567 }
 0x226   : > { %v3711_v48 = vsel %vm670_vm2, %v3670_v51, -inf  ;;  %3385 = vst.msk [vmem:[%s6100_s20 + $0x60] sm:$0xff] %vm670_vm2, %v3349_v16  ;;  %v3637_v9 = vmul.f32 %v6093_v15, %v3349_v16  ;;  %v3314_v24 = vadd.f32 %v6089_v40, %v3271_v30  ;;  %v4579_v10 = vadd.f32 %v3136_v12, %v6066_v33  ;;  %v4543_v11 = vpop.f32.mrb[18].mxu0  ;;  %v6290_v20 = vpop.permute.xlu1 %3572 }
 0x227   : > { %v6242_v0 = vmax.f32 %v3704_v63, %v3711_v48  ;;  %v3675_v34 = vand.u32 2147483647, %v3639_v53  ;;  %3388 = vst.msk [vmem:[%s6100_s20 + $0x78] sm:$0xff] %vm670_vm2, %v3352_v23  ;;  %v3640_v7 = vmul.f32 %v6123_v19, %v3352_v23  ;;  %v3276_v32 = vmul.f32 %v4578_v1, %v6081_v13  ;;  %v3139_v2 = vpop.f32.mrb[19].mxu0 }
 0x228   : > { %v3673_v61 = vand.u32 2147483647, %v3637_v9  ;;  %v3350_v15 = vmax.f32 %v3314_v24, 0.0  ;;  %v3274_v60 = vmul.f32 %v4579_v10, %v6081_v13  ;;  %v4580_v33 = vadd.f32 %v4543_v11, %v6068_v39 }
 0x229   : > { %v3721_v63 = vsel %vm670_vm2, %v3675_v34, -inf  ;;  %v3676_v55 = vand.u32 2147483647, %v3640_v7  ;;  %v3319_v4 = vadd.f32 %v6089_v40, %v3276_v32  ;;  %v4581_v5 = vadd.f32 %v3139_v2, %v6070_v21  ;;  %v6255_v31 = vpop.f32.mrb[24].mxu1 }
 0x22a   : > { %v3722_v19 = vmax.f32 %v6208_v57, %v3721_v63  ;;  %v3717_v17 = vsel %vm670_vm2, %v3673_v61, -inf  ;;  %3386 = vst.msk [vmem:[%s6100_s20 + $0x68] sm:$0xff] %vm670_vm2, %v3350_v15  ;;  %v3638_v39 = vmul.f32 %v6104_v37, %v3350_v15  ;;  %v3317_v28 = vadd.f32 %v6089_v40, %v3274_v60  ;;  %v6263_v41 = vpop.f32.mrb[25].mxu1 }
 0x22b   : > { %v3718_v18 = vmax.f32 %v6219_v3, %v3717_v17  ;;  %v6267_v56 = vsel %vm670_vm2, %v3676_v55, -inf  ;;  %v3355_v21 = vmax.f32 %v3319_v4, 0.0  ;;  %v3277_v14 = vmul.f32 %v4580_v33, %v6081_v13  ;;  %v6270_v22 = vpop.f32.mrb[26].mxu1 }
 0x22c   : > { %v3724_v59 = vmax.f32 %v6225_v46, %v6267_v56  ;;  %v3674_v62 = vand.u32 2147483647, %v3638_v39  ;;  %v3353_v37 = vmax.f32 %v3317_v28, 0.0  ;;  %v3275_v58 = vmul.f32 %v4581_v5, %v6081_v13  ;;  %v4546_v57 = vpop.f32.mrb[20].mxu0  ;;  %v6275_v44 = vpop.f32.mrb[27].mxu1 }
 0x22d   : > { %3391 = vst.msk [vmem:[%s6100_s20 + $0x90] sm:$0xff] %vm670_vm2, %v3355_v21  ;;  %v3643_v29 = vmul.f32 %v6171_v26, %v3355_v21  ;;  %v3320_v3 = vadd.f32 %v6089_v40, %v3277_v14  ;;  %v4582_v27 = vadd.f32 %v4546_v57, %v6206_v50  ;;  %v3152_v45 = vpop.f32.mrb[21].mxu0 }
 0x22e   : > { %v3719_v52 = vsel %vm670_vm2, %v3674_v62, -inf  ;;  %3389 = vst.msk [vmem:[%s6100_s20 + $0x80] sm:$0xff] %vm670_vm2, %v3353_v37  ;;  %v3641_v46 = vmul.f32 %v6137_v54, %v3353_v37  ;;  %v3318_v51 = vadd.f32 %v6089_v40, %v3275_v58  ;;  %v4583_v16 = vadd.f32 %v3152_v45, %v6215_v42  ;;  %v4547_v30 = vpop.f32.mrb[22].mxu0 }
 0x22f   : > { %v3720_v26 = vmax.f32 %v6242_v0, %v3719_v52  ;;  %v3679_v53 = vand.u32 2147483647, %v3643_v29  ;;  %v3356_v50 = vmax.f32 %v3320_v3, 0.0  ;;  %v3280_v23 = vmul.f32 %v4582_v27, %v6081_v13  ;;  %v3155_v1 = vpop.f32.mrb[23].mxu0 }
 0x230   : > { %v3677_v12 = vand.u32 2147483647, %v3641_v46  ;;  %v3354_v48 = vmax.f32 %v3318_v51, 0.0  ;;  %v3278_v9 = vmul.f32 %v4583_v16, %v6081_v13  ;;  %v4584_v54 = vadd.f32 %v4547_v30, %v6223_v25 }
 0x231   : > { %v3729_v24 = vsel %vm670_vm2, %v3679_v53, -inf  ;;  %3392 = vst.msk [vmem:[%s6100_s20 + $0x98] sm:$0xff] %vm670_vm2, %v3356_v50  ;;  %v3644_v42 = vmul.f32 %v6181_v38, %v3356_v50  ;;  %v3323_v10 = vadd.f32 %v6089_v40, %v3280_v23  ;;  %v4585_v11 = vadd.f32 %v3155_v1, %v6228_v47  ;;  %v6302_v0 = vpop.f32.mrb[28].mxu1  ;;  %v3578_v38 = vpop.permute.xlu0 %3577 }
 0x232   : > { %v6304_v34 = vmax.f32 %v3722_v19, %v3729_v24  ;;  %v3725_v7 = vsel %vm670_vm2, %v3677_v12, -inf  ;;  %3390 = vst.msk [vmem:[%s6100_s20 + $0x88] sm:$0xff] %vm670_vm2, %v3354_v48  ;;  %v3642_v25 = vmul.f32 %v6153_v6, %v3354_v48  ;;  %v3321_v32 = vadd.f32 %v6089_v40, %v3278_v9  ;;  %v6311_v2 = vpop.f32.mrb[29].mxu1  ;;  %v6321_v19 = vpop.permute.xlu1 %3582 }
 0x233   : > { %v6313_v61 = vmax.f32 %v3718_v18, %v3725_v7  ;;  %v3680_v15 = vand.u32 2147483647, %v3644_v42  ;;  %v3359_v47 = vmax.f32 %v3323_v10, 0.0  ;;  %v3281_v60 = vmul.f32 %v4584_v54, %v6081_v13  ;;  %v6316_v33 = vpop.f32.mrb[30].mxu1 }
 0x234   : > { %v3678_v63 = vand.u32 2147483647, %v3642_v25  ;;  %v3357_v55 = vmax.f32 %v3321_v32, 0.0  ;;  %v3279_v4 = vmul.f32 %v4585_v11, %v6081_v13  ;;  %v4550_v6 = vpop.f32.mrb[24].mxu0  ;;  %v6319_v5 = vpop.f32.mrb[31].mxu1 }
 0x235   : > { %v3731_v17 = vsel %vm670_vm2, %v3680_v15, -inf  ;;  %3395 = vst.msk [vmem:[%s6100_s20 + $0xb0] sm:$0xff] %vm670_vm2, %v3359_v47  ;;  %v3647_v39 = vmul.f32 %v6240_v43, %v3359_v47  ;;  %v3324_v28 = vadd.f32 %v6089_v40, %v3281_v60  ;;  %v4586_v18 = vadd.f32 %v4550_v6, %v6255_v31  ;;  %v3168_v56 = vpop.f32.mrb[25].mxu0 }
 0x236   : > { %v6329_v21 = vmax.f32 %v3724_v59, %v3731_v17  ;;  %v3727_v14 = vsel %vm670_vm2, %v3678_v63, -inf  ;;  %3393 = vst.msk [vmem:[%s6100_s20 + $0xa0] sm:$0xff] %vm670_vm2, %v3357_v55  ;;  %v3645_v62 = vmul.f32 %v6201_v35, %v3357_v55  ;;  %v3322_v37 = vadd.f32 %v6089_v40, %v3279_v4  ;;  %v4551_v58 = vpop.f32.mrb[26].mxu0  ;;  %v6361_v23 = vpop.permute.xlu1 %3592 }
 0x237   : > { %v6336_v57 = vmax.f32 %v3720_v26, %v3727_v14  ;;  %v3683_v43 = vand.u32 2147483647, %v3647_v39  ;;  %v3360_v29 = vmax.f32 %v3324_v28, 0.0  ;;  %v3284_v31 = vmul.f32 %v4586_v18, %v6081_v13  ;;  %v3171_v3 = vpop.f32.mrb[27].mxu0  ;;  %v6349_v26 = vpop.permute.xlu0 %3587 }
 0x238   : > { %v3681_v59 = vand.u32 2147483647, %v3645_v62  ;;  %v3358_v27 = vmax.f32 %v3322_v37, 0.0  ;;  %v4587_v45 = vadd.f32 %v3168_v56, %v6263_v41  ;;  %v4588_v52 = vadd.f32 %v4551_v58, %v6270_v22 }
 0x239   : > { %v3737_v46 = vsel %vm670_vm2, %v3683_v43, -inf  ;;  %3396 = vst.msk [vmem:[%s6100_s20 + $0xb8] sm:$0xff] %vm670_vm2, %v3360_v29  ;;  %v3648_v35 = vmul.f32 %v6250_v49, %v3360_v29  ;;  %v3327_v51 = vadd.f32 %v6089_v40, %v3284_v31  ;;  %v4589_v16 = vadd.f32 %v3171_v3, %v6275_v44  ;;  %v6347_v30 = vpop.f32.mrb[32].mxu1 }
 0x23a   : > { %v3738_v53 = vmax.f32 %v6304_v34, %v3737_v46  ;;  %v6353_v41 = vsel %vm670_vm2, %v3681_v59, -inf  ;;  %3394 = vst.msk [vmem:[%s6100_s20 + $0xa8] sm:$0xff] %vm670_vm2, %v3358_v27  ;;  %v3646_v22 = vmul.f32 %v6217_v36, %v3358_v27  ;;  %v3282_v49 = vmul.f32 %v4587_v45, %v6081_v13  ;;  %v6359_v50 = vpop.f32.mrb[33].mxu1  ;;  %v3603_v29 = vpop.permute.xlu1 %3602 }
 0x23b   : > { %v3734_v44 = vmax.f32 %v6313_v61, %v6353_v41  ;;  %v3684_v1 = vand.u32 2147483647, %v3648_v35  ;;  %v3363_v12 = vmax.f32 %v3327_v51, 0.0  ;;  %v3285_v48 = vmul.f32 %v4588_v52, %v6081_v13  ;;  %v6366_v9 = vpop.f32.mrb[34].mxu1  ;;  %v3598_v39 = vpop.permute.xlu0 %3597 }
 0x23c   : > { %v3682_v54 = vand.u32 2147483647, %v3646_v22  ;;  %v3325_v24 = vadd.f32 %v6089_v40, %v3282_v49  ;;  %v3283_v36 = vmul.f32 %v4589_v16, %v6081_v13  ;;  %v4554_v42 = vpop.f32.mrb[28].mxu0  ;;  %v6370_v10 = vpop.f32.mrb[35].mxu1 }
 0x23d   : > { %v6373_v11 = vsel %vm670_vm2, %v3684_v1, -inf  ;;  %3399 = vst.msk [vmem:[%s6100_s20 + $0xd0] sm:$0xff] %vm670_vm2, %v3363_v12  ;;  %v3651_v34 = vmul.f32 %v3578_v38, %v3363_v12  ;;  %v3328_v7 = vadd.f32 %v6089_v40, %v3285_v48  ;;  %v4590_v25 = vadd.f32 %v4554_v42, %v6302_v0  ;;  %v3184_v32 = vpop.f32.mrb[29].mxu0 }
 0x23e   : > { %v3740_v15 = vmax.f32 %v6329_v21, %v6373_v11  ;;  %v6382_v47 = vsel %vm670_vm2, %v3682_v54, -inf  ;;  %v3361_v60 = vmax.f32 %v3325_v24, 0.0  ;;  %v3326_v63 = vadd.f32 %v6089_v40, %v3283_v36  ;;  %v4555_v55 = vpop.f32.mrb[30].mxu0 }
 0x23f   : > { %v3736_v4 = vmax.f32 %v6336_v57, %v6382_v47  ;;  %v3687_v38 = vand.u32 2147483647, %v3651_v34  ;;  %v3364_v6 = vmax.f32 %v3328_v7, 0.0  ;;  %v3288_v0 = vmul.f32 %v4590_v25, %v6081_v13  ;;  %v3187_v17 = vpop.f32.mrb[31].mxu0  ;;  %v3608_v49 = vpop.permute.xlu0 %3607 }
 0x240   : > { %3397 = vst.msk [vmem:[%s6100_s20 + $0xc0] sm:$0xff] %vm670_vm2, %v3361_v60  ;;  %v3649_v28 = vmul.f32 %v6277_v8, %v3361_v60  ;;  %v3362_v18 = vmax.f32 %v3326_v63, 0.0  ;;  %v4591_v56 = vadd.f32 %v3184_v32, %v6311_v2  ;;  %v4592_v14 = vadd.f32 %v4555_v55, %v6316_v33  ;;  %v3613_v32 = vpop.permute.xlu1 %3612 }
 0x241   : > { %v3745_v62 = vsel %vm670_vm2, %v3687_v38, -inf  ;;  %3400 = vst.msk [vmem:[%s6100_s20 + $0xd8] sm:$0xff] %vm670_vm2, %v3364_v6  ;;  %v3652_v37 = vmul.f32 %v6321_v19, %v3364_v6  ;;  %v3331_v58 = vadd.f32 %v6089_v40, %v3288_v0  ;;  %v4593_v43 = vadd.f32 %v3187_v17, %v6319_v5 }
 0x242   : > { %v3685_v31 = vand.u32 2147483647, %v3649_v28  ;;  %3398 = vst.msk [vmem:[%s6100_s20 + $0xc8] sm:$0xff] %vm670_vm2, %v3362_v18  ;;  %v3650_v8 = vmul.f32 %v6290_v20, %v3362_v18  ;;  %v3286_v2 = vmul.f32 %v4591_v56, %v6081_v13  ;;  %v3289_v33 = vmul.f32 %v4592_v14, %v6081_v13 }
 0x243   : > { %v3688_v3 = vand.u32 2147483647, %v3652_v37  ;;  %v3367_v59 = vmax.f32 %v3331_v58, 0.0  ;;  %v3287_v27 = vmul.f32 %v4593_v43, %v6081_v13  ;;  %v6405_v19 = vmax.f32 %v3738_v53, %v3745_v62  ;;  %v3618_v56 = vpop.permute.xlu0 %3617 }
 0x244   : > { %v3741_v45 = vsel %vm670_vm2, %v3685_v31, -inf  ;;  %v3686_v5 = vand.u32 2147483647, %v3650_v8  ;;  %v3329_v52 = vadd.f32 %v6089_v40, %v3286_v2  ;;  %v3332_v46 = vadd.f32 %v6089_v40, %v3289_v33  ;;  %v4558_v35 = vpop.f32.mrb[32].mxu0  ;;  %v3623_v47 = vpop.permute.xlu1 %3622 }
 0x245   : > { %v3747_v20 = vsel %vm670_vm2, %v3688_v3, -inf  ;;  %3403 = vst.msk [vmem:[%s6100_s20 + $0xf0] sm:$0xff] %vm670_vm2, %v3367_v59  ;;  %v3655_v51 = vmul.f32 %v3598_v39, %v3367_v59  ;;  %v3330_v16 = vadd.f32 %v6089_v40, %v3287_v27  ;;  %v4594_v22 = vadd.f32 %v4558_v35, %v6347_v30  ;;  %v3200_v53 = vpop.f32.mrb[33].mxu0 }
 0x246   : > { %v3743_v1 = vsel %vm670_vm2, %v3686_v5, -inf  ;;  %v3365_v12 = vmax.f32 %v3329_v52, 0.0  ;;  %v3368_v48 = vmax.f32 %v3332_v46, 0.0  ;;  %v4595_v54 = vadd.f32 %v3200_v53, %v6359_v50  ;;  %v4559_v24 = vpop.f32.mrb[34].mxu0 }
 0x247   : > { %v3691_v36 = vand.u32 2147483647, %v3655_v51  ;;  %v3366_v42 = vmax.f32 %v3330_v16, 0.0  ;;  %v3292_v34 = vmul.f32 %v4594_v22, %v6081_v13  ;;  %v4596_v7 = vadd.f32 %v4559_v24, %v6366_v9  ;;  %v3203_v25 = vpop.f32.mrb[35].mxu0 }
 0x248   : > { %3401 = vst.msk [vmem:[%s6100_s20 + $0xe0] sm:$0xff] %vm670_vm2, %v3365_v12  ;;  %v3653_v30 = vmul.f32 %v6349_v26, %v3365_v12  ;;  %3404 = vst.msk [vmem:[%s6100_s20 + $0xf8] sm:$0xff] %vm670_vm2, %v3368_v48  ;;  %v3656_v60 = vmul.f32 %v3603_v29, %v3368_v48  ;;  %v3290_v63 = vmul.f32 %v4595_v54, %v6081_v13 }
 0x249   : > { %v4597_v50 = vadd.f32 %v3203_v25, %v6370_v10  ;;  %3402 = vst.msk [vmem:[%s6100_s20 + $0xe8] sm:$0xff] %vm670_vm2, %v3366_v42  ;;  %v3654_v55 = vmul.f32 %v6361_v23, %v3366_v42  ;;  %v3335_v38 = vadd.f32 %v6089_v40, %v3292_v34  ;;  %v3293_v9 = vmul.f32 %v4596_v7, %v6081_v13 }
 0x24a   : > { %v3742_v26 = vmax.f32 %v3734_v44, %v3741_v45  ;;  %v3689_v6 = vand.u32 2147483647, %v3653_v30  ;;  %v3692_v0 = vand.u32 2147483647, %v3656_v60  ;;  %v3333_v17 = vadd.f32 %v6089_v40, %v3290_v63 }
 0x24b   : > { %v3291_v39 = vmul.f32 %v4597_v50, %v6081_v13  ;;  %v3690_v10 = vand.u32 2147483647, %v3654_v55  ;;  %v3371_v28 = vmax.f32 %v3335_v38, 0.0  ;;  %v3336_v23 = vadd.f32 %v6089_v40, %v3293_v9 }
 0x24c   : > { %v3744_v18 = vmax.f32 %v3736_v4, %v3743_v1  ;;  %v3369_v14 = vmax.f32 %v3333_v17, 0.0  ;;  %v3748_v41 = vmax.f32 %v3740_v15, %v3747_v20  ;;  %v3749_v13 = vsel %vm670_vm2, %v3689_v6, -inf }
 0x24d   : > { %v3334_v61 = vadd.f32 %v6089_v40, %v3291_v39  ;;  %3407 = vst.msk [vmem:[%s6100_s20 + $0x110] sm:$0xff] %vm670_vm2, %v3371_v28  ;;  %v3659_v44 = vmul.f32 %v3618_v56, %v3371_v28  ;;  %v3372_v62 = vmax.f32 %v3336_v23, 0.0  ;;  %v3750_v37 = vmax.f32 %v3742_v26, %v3749_v13 }
 0x24e   : > { %v3751_v57 = vsel %vm670_vm2, %v3690_v10, -inf  ;;  %3405 = vst.msk [vmem:[%s6100_s20 + $0x100] sm:$0xff] %vm670_vm2, %v3369_v14  ;;  %v3657_v4 = vmul.f32 %v3608_v49, %v3369_v14  ;;  %v3753_v43 = vsel %vm670_vm2, %v3691_v36, -inf  ;;  %v3755_v29 = vsel %vm670_vm2, %v3692_v0, -inf }
 0x24f   : > { %v3370_v58 = vmax.f32 %v3334_v61, 0.0  ;;  %v3752_v40 = vmax.f32 %v3744_v18, %v3751_v57  ;;  %v3695_v21 = vand.u32 2147483647, %v3659_v44  ;;  %3408 = vst.msk [vmem:[%s6100_s20 + $0x118] sm:$0xff] %vm670_vm2, %v3372_v62  ;;  %v3660_v11 = vmul.f32 %v3623_v47, %v3372_v62 }
 0x250   : > { %v3754_v15 = vmax.f32 %v6405_v19, %v3753_v43  ;;  %v3693_v31 = vand.u32 2147483647, %v3657_v4  ;;  %v3756_v2 = vmax.f32 %v3748_v41, %v3755_v29 }
 0x251   : > { %3406 = vst.msk [vmem:[%s6100_s20 + $0x108] sm:$0xff] %vm670_vm2, %v3370_v58  ;;  %v3658_v8 = vmul.f32 %v3613_v32, %v3370_v58  ;;  %v3696_v33 = vand.u32 2147483647, %v3660_v11  ;;  %v3761_v3 = vsel %vm670_vm2, %v3695_v21, -inf }
 0x252   : > { %v3757_v27 = vsel %vm670_vm2, %v3693_v31, -inf  ;;  %v3762_v45 = vmax.f32 %v3754_v15, %v3761_v3 }
 0x253   : > { %v3694_v59 = vand.u32 2147483647, %v3658_v8  ;;  %v3758_v5 = vmax.f32 %v3750_v37, %v3757_v27  ;;  %v3763_v52 = vsel %vm670_vm2, %v3696_v33, -inf }
 0x254   : > { %v3764_v46 = vmax.f32 %v3756_v2, %v3763_v52 }
 0x255   : > { %v3759_v19 = vsel %vm670_vm2, %v3694_v59, -inf }
 0x256   : > { %v3760_v35 = vmax.f32 %v3752_v40, %v3759_v19  ;;  %v3766_v20 = vmax.f32 %v3762_v45, %v3764_v46 }
 0x258   : > { %v3765_v51 = vmax.f32 %v3758_v5, %v3760_v35 }
 0x25a   : > { %v3767_v16 = vmax.f32 %v3765_v51, %v3766_v20 }
 0x25c   : > { %3768 = vmax.xlane.f32.xlu0 %v3767_v16 }
 0x2e9   : > { %v3769_v22 = vpop.xlane.xlu0 %3768 }
 0x2ea   : > { %v3770_v53 = vrot.slane %v3769_v22, 4 }
 0x2ec   : > { %v3771_v49 = vmax.f32 %v3769_v22, %v3770_v53 }
 0x2ee   : > { %v3772_v1 = vrot.slane %v3771_v49, 2 }
 0x2f0   : > { %v3773_v12 = vmax.f32 %v3771_v49, %v3772_v1 }
 0x2f2   : > { %v3774_v48 = vrot.slane %v3773_v12, 1 }
 0x2f4   : > { %v3775_v54 = vmax.f32 %v3773_v12, %v3774_v48 }
 0x2f6   : > { %4903 = vpush %v3775_v54 }
 0x327   : > { %s4904_s25 = spop %4903 }
 0x328   : > { %v3777_v24 = vstv %s4904_s25 }
 0x329   : > { %3778 = vst [vmem:[%s290_s24] sm:$0xff] %v3777_v24 }
 0x32a PF: > { %s19_s26 = sadd.s32 1, %s4923_s26  }
 0x32b   : > { %p16_p4 = scmp.ge.s32.totalorder %s19_s26, 4  }
 0x32d   :  { %18 = sbr.rel (!%p16_p4) target bundleno = 2 (0x2), region = 94 }

</bundles_post_ra>
